<compile_context>
chip_gen: v5e
topology: v5e:2x2
jax: 0.10.0
libtpu: 0.0.40
codegen_flags: <defaults>
</compile_context>

<pallas_src>
import functools

import jax
import jax.numpy as jnp
from jax.experimental import pallas as pl
from jax.experimental.pallas import tpu as pltpu


def bow_block_kernel(x_ref, wfc_ref, bfc_ref, wproj_ref, bproj_ref, o_ref, *, seq_len):
    # x_ref: (rows, C) f32 with rows = tb*seq_len; rows of one sequence are
    # contiguous and every block starts on a sequence boundary.
    x = x_ref[...]

    # Position of each row inside its length-T sequence.
    t_pos = jax.lax.broadcasted_iota(jnp.int32, x.shape, 0) % seq_len

    # Causal bag-of-words sum: acc[r] = sum_{k=0..t(r)} x[r-k], built from T-1
    # static sublane rolls + masked adds.  Rows that would wrap around the top of
    # the block are always masked off (t_pos < k there), so no cross-sequence mix.
    acc = x
    for k in range(1, seq_len):
        shifted = pltpu.roll(x, shift=k, axis=0)        # shifted[r] = x[r - k]
        acc = acc + jnp.where(t_pos >= k, shifted, 0.0)

    # Residual #1: h = x + causal average.
    h = x + acc / (t_pos.astype(jnp.float32) + 1.0)

    # MLP over all rows at once: two dense 2-D matmuls on the MXU (f32 acc).
    fc = jnp.tanh(
        jnp.dot(h, wfc_ref[...], preferred_element_type=jnp.float32) + bfc_ref[...]
    )
    proj = (
        jnp.dot(fc, wproj_ref[...], preferred_element_type=jnp.float32) + bproj_ref[...]
    )

    # Residual #2.
    o_ref[...] = (h + proj).astype(o_ref.dtype)


def bow_block(x, w_fc, b_fc, w_proj, b_proj, *, batch_tiles: int = 1):
    """x: (B, T, C); w_fc: (C, H); b_fc: (1, H); w_proj: (H, C); b_proj: (1, C).

    PyTorch Linear weights are stored transposed as (in_features, out_features).
    batch_tiles: number of grid steps over the batch.  1 is best on single-TC
    v5e/v6e; 2 can feed both v7x TensorCores once the problem is big enough.
    """
    B, T, C = x.shape
    H = w_fc.shape[1]
    f32 = jnp.float32

    # Largest divisor of B that is <= batch_tiles (keeps blocks on batch boundaries).
    n_steps = max(1, min(int(batch_tiles), B))
    while B % n_steps:
        n_steps -= 1
    tb = B // n_steps
    rows_blk = tb * T
    if n_steps > 1 and rows_blk % 8 != 0:
        # Sub-8-row blocks are illegal unless they span the full array; fall back.
        n_steps, tb, rows_blk = 1, B, B * T

    # Free reshape (contiguous collapse) — no extra HBM copy or XLA kernel.
    x2 = x.reshape(B * T, C).astype(f32)

    kernel = functools.partial(bow_block_kernel, seq_len=T)

    out = pl.pallas_call(
        kernel,
        out_shape=jax.ShapeDtypeStruct((B * T, C), x.dtype),
        grid_spec=pltpu.PrefetchScalarGridSpec(
            num_scalar_prefetch=0,
            grid=(n_steps,),
            in_specs=[
                pl.BlockSpec((rows_blk, C), lambda i: (i, 0)),  # x rows
                pl.BlockSpec((C, H), lambda i: (0, 0)),         # W_fc   (resident)
                pl.BlockSpec((1, H), lambda i: (0, 0)),         # b_fc   (resident)
                pl.BlockSpec((H, C), lambda i: (0, 0)),         # W_proj (resident)
                pl.BlockSpec((1, C), lambda i: (0, 0)),         # b_proj (resident)
            ],
            out_specs=pl.BlockSpec((rows_blk, C), lambda i: (i, 0)),
        ),
        compiler_params=pltpu.CompilerParams(
            dimension_semantics=("parallel",),
        ),
    )(
        x2,
        w_fc.astype(f32),
        b_fc.reshape(1, H).astype(f32),
        w_proj.astype(f32),
        b_proj.reshape(1, C).astype(f32),
    )

    return out.reshape(B, T, C)


def bow_block_reference(x, w_fc, b_fc, w_proj, b_proj):
    """Plain-JAX reference mirroring the PyTorch forward."""
    B, T, C = x.shape
    mask = jnp.tril(jnp.ones((T, T), jnp.float32))
    att = jnp.where(mask == 0, -jnp.inf, 0.0)
    att = jax.nn.softmax(att, axis=-1)
    y = jnp.einsum("ts,bsc->btc", att, x)
    h = x + y
    mlp = jnp.tanh(h @ w_fc + b_fc.reshape(1, -1)) @ w_proj + b_proj.reshape(1, -1)
    return h + mlp


if __name__ == "__main__":
    # BoWBlock(n_embd=32, n_embd2=64, block_size=8).  Batch 64 keeps the whole
    # problem in a single 512-row block (~64 KiB of real activation data).
    B, T, C, H = 64, 8, 32, 64

    key = jax.random.PRNGKey(0)
    kx, k1, k2, k3, k4 = jax.random.split(key, 5)

    x = jax.random.normal(kx, (B, T, C), dtype=jnp.float32)

    # Deterministic parameter init (PyTorch Linear-style uniform bounds),
    # stored transposed: (in_features, out_features).
    bound_fc = 1.0 / jnp.sqrt(jnp.float32(C))
    bound_pr = 1.0 / jnp.sqrt(jnp.float32(H))
    w_fc = jax.random.uniform(k1, (C, H), jnp.float32, -bound_fc, bound_fc)
    b_fc = jax.random.uniform(k2, (1, H), jnp.float32, -bound_fc, bound_fc)
    w_proj = jax.random.uniform(k3, (H, C), jnp.float32, -bound_pr, bound_pr)
    b_proj = jax.random.uniform(k4, (1, C), jnp.float32, -bound_pr, bound_pr)

    out = jax.jit(bow_block)(x, w_fc, b_fc, w_proj, b_proj)
    out = jax.block_until_ready(out)

    ref = bow_block_reference(x, w_fc, b_fc, w_proj, b_proj)
    assert out.shape == (B, T, C)
    assert jnp.allclose(out, ref, atol=2e-5, rtol=2e-5), "mismatch vs reference"

    print("KERNEL_OK")
</pallas_src>

<mosaic_0001>
module attributes {stable_mosaic.version = 11 : i64} {
  func.func @bow_block_kernel(%arg0: i32, %arg1: memref<512x32xf32, #tpu.memory_space<vmem>>, %arg2: memref<32x64xf32, #tpu.memory_space<vmem>>, %arg3: memref<1x64xf32, #tpu.memory_space<vmem>>, %arg4: memref<64x32xf32, #tpu.memory_space<vmem>>, %arg5: memref<1x32xf32, #tpu.memory_space<vmem>>, %arg6: memref<512x32xf32, #tpu.memory_space<vmem>>) attributes {dimension_semantics = [#tpu.dimension_semantics<parallel>], iteration_bounds = array<i64: 1>, scalar_prefetch = 0 : i64, scratch_operands = 0 : i64, tpu.core_type = #tpu.core_type<tc>, window_params = [{transform_indices = @transform_0, window_bounds = array<i64: 512, 32>}, {pipeline_mode = #tpu.pipeline_mode<synchronous>, transform_indices = @transform_1, window_bounds = array<i64: 32, 64>}, {pipeline_mode = #tpu.pipeline_mode<synchronous>, transform_indices = @transform_2, window_bounds = array<i64: 1, 64>}, {pipeline_mode = #tpu.pipeline_mode<synchronous>, transform_indices = @transform_3, window_bounds = array<i64: 64, 32>}, {pipeline_mode = #tpu.pipeline_mode<synchronous>, transform_indices = @transform_4, window_bounds = array<i64: 1, 32>}, {transform_indices = @transform_5, window_bounds = array<i64: 512, 32>}]} {
    %c0 = arith.constant 0 : index
    %c0_0 = arith.constant 0 : index
    %0 = vector.load %arg1[%c0, %c0_0] : memref<512x32xf32, #tpu.memory_space<vmem>>, vector<512x32xf32>
    %1 = tpu.iota {dimensions = array<i32: 0>} : vector<512x32xi32>
    %c8_i32 = arith.constant 8 : i32
    %c0_i32 = arith.constant 0 : i32
    %2 = arith.cmpi eq, %c8_i32, %c0_i32 : i32
    %c1_i32 = arith.constant 1 : i32
    %3 = arith.select %2, %c1_i32, %c8_i32 : i32
    %4 = vector.broadcast %3 : i32 to vector<512x32xi32>
    %5 = arith.remsi %1, %4 : vector<512x32xi32>
    %c0_i32_1 = arith.constant 0 : i32
    %6 = vector.broadcast %c0_i32_1 : i32 to vector<512x32xi32>
    %7 = arith.cmpi ne, %5, %6 : vector<512x32xi32>
    %c0_i32_2 = arith.constant 0 : i32
    %8 = vector.broadcast %c0_i32_2 : i32 to vector<512x32xi32>
    %9 = arith.cmpi slt, %5, %8 : vector<512x32xi32>
    %c0_i32_3 = arith.constant 0 : i32
    %10 = arith.cmpi slt, %3, %c0_i32_3 : i32
    %11 = vector.broadcast %10 : i1 to vector<512x32xi1>
    %12 = vector.broadcast %11 : vector<512x32xi1> to vector<512x32xi1>
    %13 = arith.xori %9, %12 : vector<512x32xi1>
    %14 = arith.andi %13, %7 : vector<512x32xi1>
    %15 = vector.broadcast %3 : i32 to vector<512x32xi32>
    %16 = arith.addi %5, %15 : vector<512x32xi32>
    %17 = arith.select %14, %16, %5 : vector<512x32xi1>, vector<512x32xi32>
    %c1_i32_4 = arith.constant 1 : i32
    %18 = tpu.dynamic_rotate %0 by %c1_i32_4 dim 0 : vector<512x32xf32>, i32 -> vector<512x32xf32>
    %c1_i32_5 = arith.constant 1 : i32
    %19 = vector.broadcast %c1_i32_5 : i32 to vector<512x32xi32>
    %20 = arith.cmpi sge, %17, %19 : vector<512x32xi32>
    %cst = arith.constant 0.000000e+00 : f32
    %21 = vector.broadcast %cst : f32 to vector<512x32xf32>
    %22 = arith.select %20, %18, %21 : vector<512x32xi1>, vector<512x32xf32>
    %23 = arith.addf %0, %22 : vector<512x32xf32>
    %c2_i32 = arith.constant 2 : i32
    %24 = tpu.dynamic_rotate %0 by %c2_i32 dim 0 : vector<512x32xf32>, i32 -> vector<512x32xf32>
    %c2_i32_6 = arith.constant 2 : i32
    %25 = vector.broadcast %c2_i32_6 : i32 to vector<512x32xi32>
    %26 = arith.cmpi sge, %17, %25 : vector<512x32xi32>
    %cst_7 = arith.constant 0.000000e+00 : f32
    %27 = vector.broadcast %cst_7 : f32 to vector<512x32xf32>
    %28 = arith.select %26, %24, %27 : vector<512x32xi1>, vector<512x32xf32>
    %29 = arith.addf %23, %28 : vector<512x32xf32>
    %c3_i32 = arith.constant 3 : i32
    %30 = tpu.dynamic_rotate %0 by %c3_i32 dim 0 : vector<512x32xf32>, i32 -> vector<512x32xf32>
    %c3_i32_8 = arith.constant 3 : i32
    %31 = vector.broadcast %c3_i32_8 : i32 to vector<512x32xi32>
    %32 = arith.cmpi sge, %17, %31 : vector<512x32xi32>
    %cst_9 = arith.constant 0.000000e+00 : f32
    %33 = vector.broadcast %cst_9 : f32 to vector<512x32xf32>
    %34 = arith.select %32, %30, %33 : vector<512x32xi1>, vector<512x32xf32>
    %35 = arith.addf %29, %34 : vector<512x32xf32>
    %c4_i32 = arith.constant 4 : i32
    %36 = tpu.dynamic_rotate %0 by %c4_i32 dim 0 : vector<512x32xf32>, i32 -> vector<512x32xf32>
    %c4_i32_10 = arith.constant 4 : i32
    %37 = vector.broadcast %c4_i32_10 : i32 to vector<512x32xi32>
    %38 = arith.cmpi sge, %17, %37 : vector<512x32xi32>
    %cst_11 = arith.constant 0.000000e+00 : f32
    %39 = vector.broadcast %cst_11 : f32 to vector<512x32xf32>
    %40 = arith.select %38, %36, %39 : vector<512x32xi1>, vector<512x32xf32>
    %41 = arith.addf %35, %40 : vector<512x32xf32>
    %c5_i32 = arith.constant 5 : i32
    %42 = tpu.dynamic_rotate %0 by %c5_i32 dim 0 : vector<512x32xf32>, i32 -> vector<512x32xf32>
    %c5_i32_12 = arith.constant 5 : i32
    %43 = vector.broadcast %c5_i32_12 : i32 to vector<512x32xi32>
    %44 = arith.cmpi sge, %17, %43 : vector<512x32xi32>
    %cst_13 = arith.constant 0.000000e+00 : f32
    %45 = vector.broadcast %cst_13 : f32 to vector<512x32xf32>
    %46 = arith.select %44, %42, %45 : vector<512x32xi1>, vector<512x32xf32>
    %47 = arith.addf %41, %46 : vector<512x32xf32>
    %c6_i32 = arith.constant 6 : i32
    %48 = tpu.dynamic_rotate %0 by %c6_i32 dim 0 : vector<512x32xf32>, i32 -> vector<512x32xf32>
    %c6_i32_14 = arith.constant 6 : i32
    %49 = vector.broadcast %c6_i32_14 : i32 to vector<512x32xi32>
    %50 = arith.cmpi sge, %17, %49 : vector<512x32xi32>
    %cst_15 = arith.constant 0.000000e+00 : f32
    %51 = vector.broadcast %cst_15 : f32 to vector<512x32xf32>
    %52 = arith.select %50, %48, %51 : vector<512x32xi1>, vector<512x32xf32>
    %53 = arith.addf %47, %52 : vector<512x32xf32>
    %c7_i32 = arith.constant 7 : i32
    %54 = tpu.dynamic_rotate %0 by %c7_i32 dim 0 : vector<512x32xf32>, i32 -> vector<512x32xf32>
    %c7_i32_16 = arith.constant 7 : i32
    %55 = vector.broadcast %c7_i32_16 : i32 to vector<512x32xi32>
    %56 = arith.cmpi sge, %17, %55 : vector<512x32xi32>
    %cst_17 = arith.constant 0.000000e+00 : f32
    %57 = vector.broadcast %cst_17 : f32 to vector<512x32xf32>
    %58 = arith.select %56, %54, %57 : vector<512x32xi1>, vector<512x32xf32>
    %59 = arith.addf %53, %58 : vector<512x32xf32>
    %60 = arith.sitofp %17 : vector<512x32xi32> to vector<512x32xf32>
    %cst_18 = arith.constant 1.000000e+00 : f32
    %61 = vector.broadcast %cst_18 : f32 to vector<512x32xf32>
    %62 = arith.addf %60, %61 : vector<512x32xf32>
    %63 = arith.divf %59, %62 : vector<512x32xf32>
    %64 = arith.addf %0, %63 : vector<512x32xf32>
    %c0_19 = arith.constant 0 : index
    %c0_20 = arith.constant 0 : index
    %65 = vector.load %arg2[%c0_19, %c0_20] : memref<32x64xf32, #tpu.memory_space<vmem>>, vector<32x64xf32>
    %cst_21 = arith.constant dense<0.000000e+00> : vector<512x64xf32>
    %66 = tpu.matmul %64, %65, %cst_21 {dimension_numbers = #tpu.dot_dimension_numbers<[1], [0], [0], [1], [0, 0, 1, 1], [], []>} : vector<512x32xf32>, vector<32x64xf32>, vector<512x64xf32> -> vector<512x64xf32>
    %c0_22 = arith.constant 0 : index
    %c0_23 = arith.constant 0 : index
    %67 = vector.load %arg3[%c0_22, %c0_23] : memref<1x64xf32, #tpu.memory_space<vmem>>, vector<1x64xf32>
    %68 = vector.broadcast %67 : vector<1x64xf32> to vector<512x64xf32>
    %69 = arith.addf %66, %68 : vector<512x64xf32>
    %70 = math.tanh %69 : vector<512x64xf32>
    %c0_24 = arith.constant 0 : index
    %c0_25 = arith.constant 0 : index
    %71 = vector.load %arg4[%c0_24, %c0_25] : memref<64x32xf32, #tpu.memory_space<vmem>>, vector<64x32xf32>
    %cst_26 = arith.constant dense<0.000000e+00> : vector<512x32xf32>
    %72 = tpu.matmul %70, %71, %cst_26 {dimension_numbers = #tpu.dot_dimension_numbers<[1], [0], [0], [1], [0, 0, 1, 1], [], []>} : vector<512x64xf32>, vector<64x32xf32>, vector<512x32xf32> -> vector<512x32xf32>
    %c0_27 = arith.constant 0 : index
    %c0_28 = arith.constant 0 : index
    %73 = vector.load %arg5[%c0_27, %c0_28] : memref<1x32xf32, #tpu.memory_space<vmem>>, vector<1x32xf32>
    %74 = vector.broadcast %73 : vector<1x32xf32> to vector<512x32xf32>
    %75 = arith.addf %72, %74 : vector<512x32xf32>
    %76 = arith.addf %64, %75 : vector<512x32xf32>
    %c0_29 = arith.constant 0 : index
    %c0_30 = arith.constant 0 : index
    %77 = vector.load %arg6[%c0_29, %c0_30] : memref<512x32xf32, #tpu.memory_space<vmem>>, vector<512x32xf32>
    tpu.vector_store %arg6[%c0_29, %c0_30], %76 {strides = array<i32>} : memref<512x32xf32, #tpu.memory_space<vmem>>, vector<512x32xf32>,
    return
  }
  func.func @transform_0(%arg0: i32) -> (i32, i32) {
    %c0_i32 = arith.constant 0 : i32
    %c0_i32_0 = arith.constant 0 : i32
    return %arg0, %c0_i32 : i32, i32
  }
  func.func @transform_1(%arg0: i32) -> (i32, i32) {
    %c0_i32 = arith.constant 0 : i32
    %c0_i32_0 = arith.constant 0 : i32
    %c0_i32_1 = arith.constant 0 : i32
    return %c0_i32, %c0_i32_0 : i32, i32
  }
  func.func @transform_2(%arg0: i32) -> (i32, i32) {
    %c0_i32 = arith.constant 0 : i32
    %c0_i32_0 = arith.constant 0 : i32
    %c0_i32_1 = arith.constant 0 : i32
    return %c0_i32, %c0_i32_0 : i32, i32
  }
  func.func @transform_3(%arg0: i32) -> (i32, i32) {
    %c0_i32 = arith.constant 0 : i32
    %c0_i32_0 = arith.constant 0 : i32
    %c0_i32_1 = arith.constant 0 : i32
    return %c0_i32, %c0_i32_0 : i32, i32
  }
  func.func @transform_4(%arg0: i32) -> (i32, i32) {
    %c0_i32 = arith.constant 0 : i32
    %c0_i32_0 = arith.constant 0 : i32
    %c0_i32_1 = arith.constant 0 : i32
    return %c0_i32, %c0_i32_0 : i32, i32
  }
  func.func @transform_5(%arg0: i32) -> (i32, i32) {
    %c0_i32 = arith.constant 0 : i32
    %c0_i32_0 = arith.constant 0 : i32
    return %arg0, %c0_i32 : i32, i32
  }
}

</mosaic_0001>

<bundles_post_ra>
// kernel: bow_block.1
= control target key start
LH: loop header
LB: loop body
LE: loop exit
PB: predicated region body
PF: predicated region fallthrough
CT: control target
= control target key end

     0   :  { %v84_v0 = vlaneseq  ;;  %s11819_s1 = inlined_call_operand.vmem [shape: f32[32,64], index: 1, kind: input, shape index: {}]   ;;  %s11820_s0 = inlined_call_operand.vmem [shape: f32[512,32], index: 0, kind: input, shape index: {}]   ;;  %s11821_s2 = inlined_call_operand.vmem [shape: f32[1,64], index: 2, kind: input, shape index: {}]   ;;  %s11822_s3 = inlined_call_operand.vmem [shape: f32[64,32], index: 3, kind: input, shape index: {}]   ;;  %s11823_s4 = inlined_call_operand.vmem [shape: f32[1,32], index: 4, kind: input, shape index: {}]   ;;  %s11824_s5 = inlined_call_operand.vmem [shape: f32[512,32], index: 5, kind: output, shape index: {}]  }
   0x1   :  { %v4319_v1 = vld [vmem:[%s11819_s1 + $0x18] sm:$0xff]  ;;  %v4318_v2 = vld [vmem:[%s11819_s1 + $0x10] sm:$0xff]  ;;  %v5784_v3 = vld [vmem:[%s11820_s0] sm:$0xff] }
   0x2   :  { %4529 = vmatpush.msra.mxu0 %v4319_v1  ;;  %v5789_v4 = vld [vmem:[%s11820_s0 + $0x1f8] sm:$0xff]  ;;  %v5791_v5 = vshrl.u32 %v84_v0, 7  ;;  %5464 = vmatpush.msra.mxu3 %v4319_v1  ;;  %v4317_v6 = vld [vmem:[%s11819_s1 + $0x8] sm:$0xff]  ;;  %v917_v7 = vrot.slane %v5784_v3, 7  ;;  %v1238_v9 = vrot.slane %v5784_v3, 6  ;;  %v1559_v12 = vrot.slane %v5784_v3, 5 }
   0x3   :  { %v11831_v8 = vrot.slane %v5789_v4, 7  ;;  %v11830_v10 = vrot.slane %v5789_v4, 6  ;;  %v4316_v13 = vld [vmem:[%s11819_s1] sm:$0xff]  ;;  %v11829_v16 = vrot.slane %v5789_v4, 5  ;;  %v1880_v17 = vrot.slane %v5784_v3, 4  ;;  %v5857_v35 = vld [vmem:[%s11820_s0 + $0x8] sm:$0xff] }
   0x4   :  { %4530 = vmatpush.msra.mxu0 %v4318_v2  ;;  %v5801_v11 = vand.u32 7, %v5791_v5  ;;  %vm981_vm0 = vcmp.lt.s32.totalorder %v5791_v5, 1  ;;  %vm1302_vm1 = vcmp.lt.s32.totalorder %v5791_v5, 2  ;;  %5465 = vmatpush.msra.mxu3 %v4318_v2  ;;  %vm1623_vm2 = vcmp.lt.s32.totalorder %v5791_v5, 3 }
   0x5   :  { %v1045_v14 = vsel %vm981_vm0, %v11831_v8, %v917_v7  ;;  %v1366_v15 = vsel %vm1302_vm1, %v11830_v10, %v1238_v9  ;;  %v1687_v20 = vsel %vm1623_vm2, %v11829_v16, %v1559_v12  ;;  %v11828_v21 = vrot.slane %v5789_v4, 4 }
   0x6   :  { %4531 = vmatpush.msra.mxu0 %v4317_v6  ;;  %vm1046_vm3 = vcmp.ge.s32.totalorder %v5801_v11, 1  ;;  %vm1367_vm4 = vcmp.ge.s32.totalorder %v5801_v11, 2  ;;  %vm1688_vm5 = vcmp.ge.s32.totalorder %v5801_v11, 3  ;;  %5466 = vmatpush.msra.mxu3 %v4317_v6  ;;  %vm1944_vm6 = vcmp.lt.s32.totalorder %v5791_v5, 4 }
   0x7   :  { %v1110_v18 = vsel %vm1046_vm3, %v1045_v14, 0.0  ;;  %v1431_v19 = vsel %vm1367_vm4, %v1366_v15, 0.0  ;;  %v1752_v23 = vsel %vm1688_vm5, %v1687_v20, 0.0  ;;  %vm2009_vm7 = vcmp.ge.s32.totalorder %v5801_v11, 4 }
   0x8   :  { %4532 = vmatpush.msra.mxu0 %v4316_v13  ;;  %v1174_v22 = vadd.f32 %v1110_v18, %v5784_v3  ;;  %5467 = vmatpush.msra.mxu3 %v4316_v13  ;;  %v2008_v24 = vsel %vm1944_vm6, %v11828_v21, %v1880_v17  ;;  %v2201_v25 = vrot.slane %v5784_v3, 3  ;;  %v11827_v26 = vrot.slane %v5789_v4, 3  ;;  %v5917_v13 = vld [vmem:[%s11820_s0 + $0x10] sm:$0xff] }
   0x9   :  { %vm2265_vm8 = vcmp.lt.s32.totalorder %v5791_v5, 5  ;;  %v2073_v28 = vsel %vm2009_vm7, %v2008_v24, 0.0  ;;  %v2522_v29 = vrot.slane %v5784_v3, 2  ;;  %vm2330_vm9 = vcmp.ge.s32.totalorder %v5801_v11, 5 }
   0xa   :  { %v1495_v27 = vadd.f32 %v1431_v19, %v1174_v22  ;;  %v2329_v30 = vsel %vm2265_vm8, %v11827_v26, %v2201_v25  ;;  %v11826_v31 = vrot.slane %v5789_v4, 2  ;;  %vm2586_vm10 = vcmp.lt.s32.totalorder %v5791_v5, 6 }
   0xb   :  { %v2843_v33 = vrot.slane %v5784_v3, 1  ;;  %v11825_v34 = vrot.slane %v5789_v4, 1  ;;  %vm2907_vm11 = vcmp.lt.s32.totalorder %v5791_v5, 7  ;;  %v3164_v36 = vcvt.s32.f32 %v5801_v11 }
   0xc   :  { %v1816_v32 = vadd.f32 %v1752_v23, %v1495_v27  ;;  %v2394_v38 = vsel %vm2330_vm9, %v2329_v30, 0.0  ;;  %v2650_v39 = vsel %vm2586_vm10, %v11826_v31, %v2522_v29  ;;  %vm2651_vm12 = vcmp.ge.s32.totalorder %v5801_v11, 6 }
   0xd   :  { %vm2972_vm13 = vcmp.ge.s32.totalorder %v5801_v11, 7  ;;  %v3228_v40 = vadd.f32 1.0, %v3164_v36  ;;  %v86_v41 = vadd.s32 8, %v5791_v5  ;;  %v918_v42 = vrot.slane %v5857_v35, 7 }
   0xe   :  { %v2137_v37 = vadd.f32 %v2073_v28, %v1816_v32  ;;  %v2971_v43 = vsel %vm2907_vm11, %v11825_v34, %v2843_v33  ;;  %v1239_v44 = vrot.slane %v5857_v35, 6  ;;  %v1560_v45 = vrot.slane %v5857_v35, 5 }
   0xf   :  { %v1881_v46 = vrot.slane %v5857_v35, 4  ;;  %v2715_v48 = vsel %vm2651_vm12, %v2650_v39, 0.0  ;;  %5478 = vrcp.f32 %v3228_v40  ;;  %v3301_v49 = vand.u32 2147483647, %v3228_v40 }
  0x10   :  { %v2458_v47 = vadd.f32 %v2394_v38, %v2137_v37  ;;  %v3303_v50 = vand.u32 2147483648, %v3228_v40  ;;  %v160_v51 = vand.u32 7, %v86_v41  ;;  %v1044_v52 = vsel %vm981_vm0, %v917_v7, %v918_v42 }
  0x11   :  { %v1365_v53 = vsel %vm1302_vm1, %v1238_v9, %v1239_v44  ;;  %v3036_v54 = vsel %vm2972_vm13, %v2971_v43, 0.0  ;;  %vm3297_vm14 = vweird.f32 %v3228_v40  ;;  %v1686_v55 = vsel %vm1623_vm2, %v1559_v12, %v1560_v45 }
  0x12   :  { %vm1047_vm15 = vcmp.ge.s32.totalorder %v160_v51, 1  ;;  %vm1368_vm3 = vcmp.ge.s32.totalorder %v160_v51, 2  ;;  %vm1689_vm4 = vcmp.ge.s32.totalorder %v160_v51, 3  ;;  %v2007_v56 = vsel %vm1944_vm6, %v1880_v17, %v1881_v46 }
  0x13   :  { %v2779_v57 = vadd.f32 %v2715_v48, %v2458_v47  ;;  %v1111_v58 = vsel %vm1047_vm15, %v1044_v52, 0.0  ;;  %v1432_v59 = vsel %vm1368_vm3, %v1365_v53, 0.0  ;;  %vm2010_vm5 = vcmp.ge.s32.totalorder %v160_v51, 4 }
  0x14   :  { %vm5902_vm7 = vcmp.eq.f32.partialorder %v3301_v49, 8.507059e+37  ;;  %v3304_v61 = vor.u32 1.1754944e-38, %v3303_v50  ;;  %v1175_v62 = vadd.f32 %v1111_v58, %v5857_v35  ;;  %v2202_v63 = vrot.slane %v5857_v35, 3 }
  0x15   :  { %vm2331_vm9 = vcmp.ge.s32.totalorder %v160_v51, 5  ;;  %v5479_v0 = vpop.eup %5478  ;;  %v1753_v1 = vsel %vm1689_vm4, %v1686_v55, 0.0  ;;  %v2074_v2 = vsel %vm2010_vm5, %v2007_v56, 0.0  ;;  %v2523_v6 = vrot.slane %v5857_v35, 2 }
  0x16   :  { %v2844_v7 = vrot.slane %v5857_v35, 1  ;;  %v3293_v9 = vmul.f32 %v5479_v0, %v3228_v40  ;;  %v1496_v11 = vadd.f32 %v1432_v59, %v1175_v62  ;;  %v2328_v12 = vsel %vm2265_vm8, %v2201_v25, %v2202_v63 }
  0x17   :  { %vm2652_vm12 = vcmp.ge.s32.totalorder %v160_v51, 6  ;;  %vm3298_vm13 = vweird.f32 %v5479_v0  ;;  %v2395_v14 = vsel %vm2331_vm9, %v2328_v12, 0.0  ;;  %vm2973_vm15 = vcmp.ge.s32.totalorder %v160_v51, 7 }
  0x18   :  { %v3165_v15 = vcvt.s32.f32 %v160_v51  ;;  %v3294_v17 = vsub.f32 1.0, %v3293_v9  ;;  %v1817_v18 = vadd.f32 %v1753_v1, %v1496_v11  ;;  %v2649_v19 = vsel %vm2586_vm10, %v2522_v29, %v2523_v6  ;;  %vm5935_vm4 = vmor %vm3297_vm14, %vm3298_vm13  ;;  %v5992_v9 = vld [vmem:[%s11820_s0 + $0x18] sm:$0xff] }
  0x19   :  { %v2970_v20 = vsel %vm2907_vm11, %v2843_v33, %v2844_v7  ;;  %vm4324_vm3 = vcmask 261120   ;;  %v87_v23 = vadd.s32 16, %v5791_v5  ;;  %v919_v24 = vrot.slane %v5917_v13, 7 }
  0x1a   :  { %v3229_v22 = vadd.f32 1.0, %v3165_v15  ;;  %v1240_v25 = vrot.slane %v5917_v13, 6  ;;  %v3100_v27 = vadd.f32 %v3036_v54, %v2779_v57  ;;  %v3295_v28 = vmul.f32 %v5479_v0, %v3294_v17 }
  0x1b   :  { %v2138_v30 = vadd.f32 %v2074_v2, %v1817_v18  ;;  %v1561_v32 = vrot.slane %v5917_v13, 5  ;;  %v2716_v33 = vsel %vm2652_vm12, %v2649_v19, 0.0  ;;  %v3037_v36 = vsel %vm2973_vm15, %v2970_v20, 0.0 }
  0x1c   :  { %5480 = vrcp.f32 %v3229_v22  ;;  %v3316_v37 = vand.u32 2147483647, %v3229_v22  ;;  %v3296_v38 = vadd.f32 %v5479_v0, %v3295_v28  ;;  %v167_v41 = vand.u32 7, %v87_v23 }
  0x1d   :  { %v2459_v39 = vadd.f32 %v2395_v14, %v2138_v30  ;;  %v1043_v40 = vsel %vm981_vm0, %v918_v42, %v919_v24  ;;  %vm3312_vm14 = vweird.f32 %v3229_v22  ;;  %v3318_v43 = vand.u32 2147483648, %v3229_v22 }
  0x1e   :  { %v1364_v47 = vsel %vm1302_vm1, %v1239_v44, %v1240_v25  ;;  %v1882_v48 = vrot.slane %v5917_v13, 4  ;;  %v3300_v49 = vsel %vm5935_vm4, %v5479_v0, %v3296_v38  ;;  %vm1048_vm5 = vcmp.ge.s32.totalorder %v167_v41, 1 }
  0x1f   :  { %vm1369_vm9 = vcmp.ge.s32.totalorder %v167_v41, 2  ;;  %v1685_v42 = vsel %vm1623_vm2, %v1560_v45, %v1561_v32  ;;  %v3305_v50 = vsel %vm5902_vm7, %v3304_v61, %v3300_v49  ;;  %v1112_v51 = vsel %vm1048_vm5, %v1043_v40, 0.0 }
  0x20   :  { %v1433_v52 = vsel %vm1369_vm9, %v1364_v47, 0.0  ;;  %vm1690_vm12 = vcmp.ge.s32.totalorder %v167_v41, 3  ;;  %v3306_v44 = vmul.f32 %v3305_v50, %v3100_v27  ;;  %v2780_v53 = vadd.f32 %v2716_v33, %v2459_v39 }
  0x21   :  { %vm5964_vm13 = vcmp.eq.f32.partialorder %v3316_v37, 8.507059e+37  ;;  %v1176_v55 = vadd.f32 %v1112_v51, %v5917_v13  ;;  %v1754_v57 = vsel %vm1690_vm12, %v1685_v42, 0.0  ;;  %v2006_v45 = vsel %vm1944_vm6, %v1881_v46, %v1882_v48 }
  0x22   :  { %v5481_v56 = vpop.eup %5480  ;;  %vm2011_vm7 = vcmp.ge.s32.totalorder %v167_v41, 4  ;;  %v2203_v58 = vrot.slane %v5917_v13, 3  ;;  %v5977_v59 = vadd.f32 %v3306_v44, %v5784_v3  ;;  %vm2332_vm15 = vcmp.ge.s32.totalorder %v167_v41, 5 }
  0x23   :  { %v3308_v60 = vmul.f32 %v5481_v56, %v3229_v22  ;;  %v1497_v61 = vadd.f32 %v1433_v52, %v1176_v55  ;;  %vm3313_vm4 = vweird.f32 %v5481_v56  ;;  %v2075_v62 = vsel %vm2011_vm7, %v2006_v45, 0.0 }
  0x24   :  { %v2327_v0 = vsel %vm2265_vm8, %v2202_v63, %v2203_v58  ;;  %v2524_v46 = vrot.slane %v5917_v13, 2  ;;  %5336 = vmatmul.msk.f32.vlgmr.msra.gmra.mxu0 %vm4324_vm3, %v5977_v59  ;;  %vm2653_vm5 = vcmp.ge.s32.totalorder %v167_v41, 6  ;;  %v2845_v2 = vrot.slane %v5917_v13, 1  ;;  %vm6009_vm12 = vmor %vm3312_vm14, %vm3313_vm4 }
  0x25   :  { %v3309_v1 = vsub.f32 1.0, %v3308_v60  ;;  %v1818_v3 = vadd.f32 %v1754_v57, %v1497_v61  ;;  %v2396_v11 = vsel %vm2332_vm15, %v2327_v0, 0.0  ;;  %v3166_v12 = vcvt.s32.f32 %v167_v41  ;;  %v6066_v0 = vld [vmem:[%s11820_s0 + $0x20] sm:$0xff] }
  0x26   :  { %v2648_v63 = vsel %vm2586_vm10, %v2523_v6, %v2524_v46  ;;  %v88_v14 = vadd.s32 24, %v5791_v5  ;;  %v2969_v18 = vsel %vm2907_vm11, %v2844_v7, %v2845_v2  ;;  %vm2974_vm9 = vcmp.ge.s32.totalorder %v167_v41, 7 }
  0x27   :  { %v3310_v15 = vmul.f32 %v5481_v56, %v3309_v1  ;;  %v2139_v17 = vadd.f32 %v2075_v62, %v1818_v3  ;;  %v3101_v19 = vadd.f32 %v3037_v36, %v2780_v53  ;;  %v3319_v6 = vor.u32 1.1754944e-38, %v3318_v43 }
  0x28   :  { %v3230_v23 = vadd.f32 1.0, %v3166_v12  ;;  %v920_v27 = vrot.slane %v5992_v9, 7  ;;  %v174_v29 = vand.u32 7, %v88_v14  ;;  %v1241_v33 = vrot.slane %v5992_v9, 6 }
  0x29   :  { %v3311_v28 = vadd.f32 %v5481_v56, %v3310_v15  ;;  %v2460_v30 = vadd.f32 %v2396_v11, %v2139_v17  ;;  %v2717_v37 = vsel %vm2653_vm5, %v2648_v63, 0.0  ;;  %v3038_v7 = vsel %vm2974_vm9, %v2969_v18, 0.0 }
  0x2a   :  { %5482 = vrcp.f32 %v3230_v23  ;;  %v1562_v36 = vrot.slane %v5992_v9, 5  ;;  %v3331_v38 = vand.u32 2147483647, %v3230_v23  ;;  %v1042_v39 = vsel %vm981_vm0, %v919_v24, %v920_v27 }
  0x2b   :  { %v3315_v22 = vsel %vm6009_vm12, %v5481_v56, %v3311_v28  ;;  %vm1049_vm14 = vcmp.ge.s32.totalorder %v174_v29, 1  ;;  %vm3327_vm7 = vweird.f32 %v3230_v23  ;;  %v3333_v40 = vand.u32 2147483648, %v3230_v23 }
  0x2c   :  { %v3320_v41 = vsel %vm5964_vm13, %v3319_v6, %v3315_v22  ;;  %v1113_v43 = vsel %vm1049_vm14, %v1042_v39, 0.0  ;;  %v2781_v49 = vadd.f32 %v2717_v37, %v2460_v30  ;;  %v1363_v50 = vsel %vm1302_vm1, %v1240_v25, %v1241_v33 }
  0x2d   :  { %v3321_v47 = vmul.f32 %v3320_v41, %v3101_v19  ;;  %v1177_v42 = vadd.f32 %v1113_v43, %v5992_v9  ;;  %vm1370_vm15 = vcmp.ge.s32.totalorder %v174_v29, 2  ;;  %v1684_v24 = vsel %vm1623_vm2, %v1561_v32, %v1562_v36 }
  0x2e   :  { %vm1691_vm13 = vcmp.ge.s32.totalorder %v174_v29, 3  ;;  %v1883_v51 = vrot.slane %v5992_v9, 4  ;;  %vm6044_vm4 = vcmp.eq.f32.partialorder %v3331_v38, 8.507059e+37  ;;  %v1434_v53 = vsel %vm1370_vm15, %v1363_v50, 0.0 }
  0x2f   :  { %v6042_v52 = vadd.f32 %v3321_v47, %v5857_v35  ;;  %v1755_v25 = vsel %vm1691_vm13, %v1684_v24, 0.0  ;;  %vm2012_vm5 = vcmp.ge.s32.totalorder %v174_v29, 4  ;;  %v1498_v55 = vadd.f32 %v1434_v53, %v1177_v42 }
  0x30   :  { %v5483_v54 = vpop.eup %5482  ;;  %v2005_v32 = vsel %vm1944_vm6, %v1882_v48, %v1883_v51  ;;  %v2204_v56 = vrot.slane %v5992_v9, 3  ;;  %vm2333_vm9 = vcmp.ge.s32.totalorder %v174_v29, 5  ;;  %v3334_v57 = vor.u32 1.1754944e-38, %v3333_v40 }
  0x31   :  { %5337 = vmatmul.msk.f32.gmra.mxu0 %vm4324_vm3, %v6042_v52  ;;  %v3323_v35 = vmul.f32 %v5483_v54, %v3230_v23  ;;  %v2076_v45 = vsel %vm2012_vm5, %v2005_v32, 0.0  ;;  %v2525_v60 = vrot.slane %v5992_v9, 2  ;;  %v1819_v61 = vadd.f32 %v1755_v25, %v1498_v55 }
  0x32   :  { %v2326_v62 = vsel %vm2265_vm8, %v2203_v58, %v2204_v56  ;;  %vm2654_vm12 = vcmp.ge.s32.totalorder %v174_v29, 6  ;;  %v2846_v48 = vrot.slane %v5992_v9, 1  ;;  %vm3328_vm14 = vweird.f32 %v5483_v54 }
  0x33   :  { %v3324_v1 = vsub.f32 1.0, %v3323_v35  ;;  %v2397_v3 = vsel %vm2333_vm9, %v2326_v62, 0.0  ;;  %v2647_v11 = vsel %vm2586_vm10, %v2524_v46, %v2525_v60  ;;  %v2140_v63 = vadd.f32 %v2076_v45, %v1819_v61  ;;  %vm6083_vm13 = vmor %vm3327_vm7, %vm3328_vm14 }
  0x34   :  { %v2968_v58 = vsel %vm2907_vm11, %v2845_v2, %v2846_v48  ;;  %vm2975_vm15 = vcmp.ge.s32.totalorder %v174_v29, 7  ;;  %v3167_v12 = vcvt.s32.f32 %v174_v29  ;;  %v2718_v15 = vsel %vm2654_vm12, %v2647_v11, 0.0 }
  0x35   :  { %v3325_v14 = vmul.f32 %v5483_v54, %v3324_v1  ;;  %v89_v17 = vadd.s32 32, %v5791_v5  ;;  %v921_v18 = vrot.slane %v6066_v0, 7  ;;  %v3102_v19 = vadd.f32 %v3038_v7, %v2781_v49 }
  0x36   :  { %v2461_v20 = vadd.f32 %v2397_v3, %v2140_v63  ;;  %v3231_v6 = vadd.f32 1.0, %v3167_v12  ;;  %v1242_v28 = vrot.slane %v6066_v0, 6  ;;  %v3039_v2 = vsel %vm2975_vm15, %v2968_v58, 0.0 }
  0x37   :  { %v3326_v30 = vadd.f32 %v5483_v54, %v3325_v14  ;;  %v181_v37 = vand.u32 7, %v89_v17  ;;  %v1041_v29 = vsel %vm981_vm0, %v920_v27, %v921_v18  ;;  %v1563_v23 = vrot.slane %v6066_v0, 5 }
  0x38   :  { %v2782_v7 = vadd.f32 %v2718_v15, %v2461_v20  ;;  %5484 = vrcp.f32 %v3231_v6  ;;  %v1884_v22 = vrot.slane %v6066_v0, 4  ;;  %vm3342_vm7 = vweird.f32 %v3231_v6 }
  0x39   :  { %v3330_v38 = vsel %vm6083_vm13, %v5483_v54, %v3326_v30  ;;  %vm1050_vm5 = vcmp.ge.s32.totalorder %v181_v37, 1  ;;  %v1362_v39 = vsel %vm1302_vm1, %v1241_v33, %v1242_v28  ;;  %v3346_v41 = vand.u32 2147483647, %v3231_v6 }
  0x3a   :  { %v3335_v27 = vsel %vm6044_vm4, %v3334_v57, %v3330_v38  ;;  %v3348_v40 = vand.u32 2147483648, %v3231_v6  ;;  %v1114_v43 = vsel %vm1050_vm5, %v1041_v29, 0.0  ;;  %v3103_v49 = vadd.f32 %v3039_v2, %v2782_v7 }
  0x3b   :  { %v3336_v47 = vmul.f32 %v3335_v27, %v3102_v19  ;;  %v1178_v42 = vadd.f32 %v1114_v43, %v6066_v0  ;;  %vm1371_vm9 = vcmp.ge.s32.totalorder %v181_v37, 2  ;;  %v1683_v24 = vsel %vm1623_vm2, %v1562_v36, %v1563_v23 }
  0x3c   :  { %v1435_v50 = vsel %vm1371_vm9, %v1362_v39, 0.0  ;;  %vm1692_vm12 = vcmp.ge.s32.totalorder %v181_v37, 3  ;;  %v2004_v33 = vsel %vm1944_vm6, %v1883_v51, %v1884_v22  ;;  %vm2013_vm4 = vcmp.ge.s32.totalorder %v181_v37, 4 }
  0x3d   :  { %v6118_v44 = vadd.f32 %v3336_v47, %v5917_v13  ;;  %v1499_v53 = vadd.f32 %v1435_v50, %v1178_v42  ;;  %v1756_v25 = vsel %vm1692_vm12, %v1683_v24, 0.0  ;;  %v2077_v55 = vsel %vm2013_vm4, %v2004_v33, 0.0  ;;  %v6127_v13 = vld [vmem:[%s11820_s0 + $0x28] sm:$0xff] }
  0x3e   :  { %v5485_v54 = vpop.eup %5484  ;;  %v2205_v32 = vrot.slane %v6066_v0, 3  ;;  %vm2334_vm14 = vcmp.ge.s32.totalorder %v181_v37, 5  ;;  %v2526_v35 = vrot.slane %v6066_v0, 2  ;;  %vm2655_vm13 = vcmp.ge.s32.totalorder %v181_v37, 6 }
  0x3f   :  { %5338 = vmatmul.msk.f32.gmra.mxu0 %vm4324_vm3, %v6118_v44  ;;  %v3338_v36 = vmul.f32 %v5485_v54, %v3231_v6  ;;  %vm3343_vm15 = vweird.f32 %v5485_v54  ;;  %v1820_v57 = vadd.f32 %v1756_v25, %v1499_v53  ;;  %v2847_v61 = vrot.slane %v6066_v0, 1 }
  0x40   :  { %v2325_v51 = vsel %vm2265_vm8, %v2204_v56, %v2205_v32  ;;  %v2646_v45 = vsel %vm2586_vm10, %v2525_v60, %v2526_v35  ;;  %vm2976_vm5 = vcmp.ge.s32.totalorder %v181_v37, 7  ;;  %v3168_v63 = vcvt.s32.f32 %v181_v37  ;;  %vm6155_vm12 = vmor %vm3342_vm7, %vm3343_vm15 }
  0x41   :  { %v3339_v62 = vsub.f32 1.0, %v3338_v36  ;;  %v2141_v1 = vadd.f32 %v2077_v55, %v1820_v57  ;;  %v2398_v3 = vsel %vm2334_vm14, %v2325_v51, 0.0  ;;  %v2719_v11 = vsel %vm2655_vm13, %v2646_v45, 0.0  ;;  %v6210_v51 = vld [vmem:[%s11820_s0 + $0x30] sm:$0xff] }
  0x42   :  { %v2967_v56 = vsel %vm2907_vm11, %v2846_v48, %v2847_v61  ;;  %v90_v58 = vadd.s32 40, %v5791_v5  ;;  %v922_v12 = vrot.slane %v6127_v13, 7  ;;  %vm6148_vm9 = vcmp.eq.f32.partialorder %v3346_v41, 8.507059e+37 }
  0x43   :  { %v3340_v60 = vmul.f32 %v5485_v54, %v3339_v62  ;;  %v2462_v15 = vadd.f32 %v2398_v3, %v2141_v1  ;;  %v1243_v17 = vrot.slane %v6127_v13, 6  ;;  %v3349_v48 = vor.u32 1.1754944e-38, %v3348_v40 }
  0x44   :  { %v3040_v46 = vsel %vm2976_vm5, %v2967_v56, 0.0  ;;  %v3232_v20 = vadd.f32 1.0, %v3168_v63  ;;  %v188_v30 = vand.u32 7, %v90_v58  ;;  %v1040_v29 = vsel %vm981_vm0, %v921_v18, %v922_v12 }
  0x45   :  { %v3341_v2 = vadd.f32 %v5485_v54, %v3340_v60  ;;  %v2783_v37 = vadd.f32 %v2719_v11, %v2462_v15  ;;  %v1564_v7 = vrot.slane %v6127_v13, 5  ;;  %v1361_v6 = vsel %vm1302_vm1, %v1242_v28, %v1243_v17 }
  0x46   :  { %5486 = vrcp.f32 %v3232_v20  ;;  %v1885_v38 = vrot.slane %v6127_v13, 4  ;;  %vm3357_vm7 = vweird.f32 %v3232_v20  ;;  %v3361_v27 = vand.u32 2147483647, %v3232_v20 }
  0x47   :  { %v3345_v39 = vsel %vm6155_vm12, %v5485_v54, %v3341_v2  ;;  %vm1051_vm4 = vcmp.ge.s32.totalorder %v188_v30, 1  ;;  %vm1372_vm14 = vcmp.ge.s32.totalorder %v188_v30, 2  ;;  %v6177_v41 = vadd.f32 %v3040_v46, %v2783_v37 }
  0x48   :  { %v3350_v18 = vsel %vm6148_vm9, %v3349_v48, %v3345_v39  ;;  %v3363_v40 = vand.u32 2147483648, %v3232_v20  ;;  %v1115_v43 = vsel %vm1051_vm4, %v1040_v29, 0.0  ;;  %v1436_v28 = vsel %vm1372_vm14, %v1361_v6, 0.0 }
  0x49   :  { %v3351_v47 = vmul.f32 %v3350_v18, %v3103_v49  ;;  %v1179_v42 = vadd.f32 %v1115_v43, %v6127_v13  ;;  %v1682_v50 = vsel %vm1623_vm2, %v1563_v23, %v1564_v7  ;;  %vm1693_vm15 = vcmp.ge.s32.totalorder %v188_v30, 3 }
  0x4a   :  { %v2003_v24 = vsel %vm1944_vm6, %v1884_v22, %v1885_v38  ;;  %vm2014_vm13 = vcmp.ge.s32.totalorder %v188_v30, 4  ;;  %v2206_v49 = vrot.slane %v6127_v13, 3  ;;  %vm6196_vm5 = vcmp.eq.f32.partialorder %v3361_v27, 8.507059e+37 }
  0x4b   :  { %v6194_v33 = vadd.f32 %v3351_v47, %v5992_v9  ;;  %v1500_v25 = vadd.f32 %v1436_v28, %v1179_v42  ;;  %v1757_v23 = vsel %vm1693_vm15, %v1682_v50, 0.0  ;;  %v2078_v55 = vsel %vm2014_vm13, %v2003_v24, 0.0 }
  0x4c   :  { %v5487_v54 = vpop.eup %5486  ;;  %v2324_v36 = vsel %vm2265_vm8, %v2205_v32, %v2206_v49  ;;  %vm2335_vm9 = vcmp.ge.s32.totalorder %v188_v30, 5  ;;  %v2527_v22 = vrot.slane %v6127_v13, 2  ;;  %vm2656_vm4 = vcmp.ge.s32.totalorder %v188_v30, 6 }
  0x4d   :  { %5339 = vmatmul.msk.f32.gmra.mxu0 %vm4324_vm3, %v6194_v33  ;;  %v3353_v9 = vmul.f32 %v5487_v54, %v3232_v20  ;;  %vm3358_vm12 = vweird.f32 %v5487_v54  ;;  %v1821_v57 = vadd.f32 %v1757_v23, %v1500_v25  ;;  %v2399_v45 = vsel %vm2335_vm9, %v2324_v36, 0.0 }
  0x4e   :  { %v2645_v32 = vsel %vm2586_vm10, %v2526_v35, %v2527_v22  ;;  %v2848_v62 = vrot.slane %v6127_v13, 1  ;;  %v3169_v1 = vcvt.s32.f32 %v188_v30  ;;  %vm2977_vm14 = vcmp.ge.s32.totalorder %v188_v30, 7  ;;  %vm6233_vm15 = vmor %vm3357_vm7, %vm3358_vm12 }
  0x4f   :  { %v3354_v3 = vsub.f32 1.0, %v3353_v9  ;;  %v2142_v11 = vadd.f32 %v2078_v55, %v1821_v57  ;;  %v91_v56 = vadd.s32 48, %v5791_v5  ;;  %v923_v60 = vrot.slane %v6210_v51, 7  ;;  %v6295_v57 = vld [vmem:[%s11820_s0 + $0x38] sm:$0xff] }
  0x50   :  { %v2966_v63 = vsel %vm2907_vm11, %v2847_v61, %v2848_v62  ;;  %v6224_v58 = vadd.f32 1.0, %v3169_v1  ;;  %v1244_v35 = vrot.slane %v6210_v51, 6  ;;  %v2720_v19 = vsel %vm2656_vm4, %v2645_v32, 0.0 }
  0x51   :  { %v3355_v14 = vmul.f32 %v5487_v54, %v3354_v3  ;;  %v2463_v15 = vadd.f32 %v2399_v45, %v2142_v11  ;;  %v6229_v48 = vand.u32 7, %v91_v56  ;;  %v3364_v2 = vor.u32 1.1754944e-38, %v3363_v40 }
  0x52   :  { %v3041_v61 = vsel %vm2977_vm14, %v2966_v63, 0.0  ;;  %5488 = vrcp.f32 %v6224_v58  ;;  %v3378_v37 = vand.u32 2147483648, %v6224_v58  ;;  %vm3372_vm13 = vweird.f32 %v6224_v58 }
  0x53   :  { %v3356_v29 = vadd.f32 %v5487_v54, %v3355_v14  ;;  %v1039_v20 = vsel %vm981_vm0, %v922_v12, %v923_v60  ;;  %vm1052_vm7 = vcmp.ge.s32.totalorder %v6229_v48, 1  ;;  %v2784_v30 = vadd.f32 %v2720_v19, %v2463_v15 }
  0x54   :  { %v3376_v6 = vand.u32 2147483647, %v6224_v58  ;;  %v1116_v39 = vsel %vm1052_vm7, %v1039_v20, 0.0  ;;  %v1360_v27 = vsel %vm1302_vm1, %v1243_v17, %v1244_v35  ;;  %v3379_v40 = vor.u32 1.1754944e-38, %v3378_v37 }
  0x55   :  { %v3360_v18 = vsel %vm6233_vm15, %v5487_v54, %v3356_v29  ;;  %v1180_v43 = vadd.f32 %v1116_v39, %v6210_v51  ;;  %vm1373_vm9 = vcmp.ge.s32.totalorder %v6229_v48, 2  ;;  %v1565_v42 = vrot.slane %v6210_v51, 5 }
  0x56   :  { %v3365_v12 = vsel %vm6196_vm5, %v3364_v2, %v3360_v18  ;;  %v1437_v47 = vsel %vm1373_vm9, %v1360_v27, 0.0  ;;  %vm1694_vm12 = vcmp.ge.s32.totalorder %v6229_v48, 3  ;;  %v1886_v17 = vrot.slane %v6210_v51, 4 }
  0x57   :  { %v3366_v28 = vmul.f32 %v3365_v12, %v6177_v41  ;;  %v1501_v50 = vadd.f32 %v1437_v47, %v1180_v43  ;;  %vm2015_vm4 = vcmp.ge.s32.totalorder %v6229_v48, 4  ;;  %v1681_v25 = vsel %vm1623_vm2, %v1564_v7, %v1565_v42 }
  0x58   :  { %v5489_v24 = vpop.eup %5488  ;;  %v2207_v53 = vrot.slane %v6210_v51, 3  ;;  %vm2336_vm5 = vcmp.ge.s32.totalorder %v6229_v48, 5  ;;  %v2528_v23 = vrot.slane %v6210_v51, 2  ;;  %v1758_v55 = vsel %vm1694_vm12, %v1681_v25, 0.0 }
  0x59   :  { %v6273_v54 = vadd.f32 %v3366_v28, %v6066_v0  ;;  %v3368_v41 = vmul.f32 %v5489_v24, %v6224_v58  ;;  %vm3373_vm14 = vweird.f32 %v5489_v24  ;;  %v1822_v36 = vadd.f32 %v1758_v55, %v1501_v50 }
  0x5a   :  { %v2002_v7 = vsel %vm1944_vm6, %v1885_v38, %v1886_v17  ;;  %v2323_v0 = vsel %vm2265_vm8, %v2206_v49, %v2207_v53  ;;  %v2644_v9 = vsel %vm2586_vm10, %v2527_v22, %v2528_v23  ;;  %vm2657_vm15 = vcmp.ge.s32.totalorder %v6229_v48, 6  ;;  %vm6310_vm9 = vmor %vm3372_vm13, %vm3373_vm14 }
  0x5b   :  { %5340 = vmatmul.msk.f32.gmra.mxu0 %vm4324_vm3, %v6273_v54  ;;  %v3369_v38 = vsub.f32 1.0, %v3368_v41  ;;  %v2079_v45 = vsel %vm2015_vm4, %v2002_v7, 0.0  ;;  %v2400_v32 = vsel %vm2336_vm5, %v2323_v0, 0.0  ;;  %v2721_v1 = vsel %vm2657_vm15, %v2644_v9, 0.0 }
  0x5c   :  { %v2143_v49 = vadd.f32 %v2079_v45, %v1822_v36  ;;  %v2849_v3 = vrot.slane %v6210_v51, 1  ;;  %vm2978_vm7 = vcmp.ge.s32.totalorder %v6229_v48, 7  ;;  %v3170_v11 = vcvt.s32.f32 %v6229_v48 }
  0x5d   :  { %v3370_v22 = vmul.f32 %v5489_v24, %v3369_v38  ;;  %v92_v56 = vadd.s32 56, %v5791_v5  ;;  %v924_v63 = vrot.slane %v6295_v57, 7  ;;  %v1245_v46 = vrot.slane %v6295_v57, 6  ;;  %v6359_v38 = vld [vmem:[%s11820_s0 + $0x40] sm:$0xff] }
  0x5e   :  { %v2464_v15 = vadd.f32 %v2400_v32, %v2143_v49  ;;  %v2965_v19 = vsel %vm2907_vm11, %v2848_v62, %v2849_v3  ;;  %v1566_v2 = vrot.slane %v6295_v57, 5  ;;  %v3105_v37 = vadd.f32 %v3041_v61, %v2784_v30 }
  0x5f   :  { %v3371_v29 = vadd.f32 %v5489_v24, %v3370_v22  ;;  %vm3377_vm12 = vcmp.eq.f32.partialorder %v3376_v6, 8.507059e+37  ;;  %v3234_v20 = vadd.f32 1.0, %v3170_v11  ;;  %v202_v58 = vand.u32 7, %v92_v56 }
  0x60   :  { %v2785_v39 = vadd.f32 %v2721_v1, %v2464_v15  ;;  %v1038_v27 = vsel %vm981_vm0, %v923_v60, %v924_v63  ;;  %v3042_v18 = vsel %vm2978_vm7, %v2965_v19, 0.0  ;;  %v1359_v61 = vsel %vm1302_vm1, %v1244_v35, %v1245_v46 }
  0x61   :  { %v3375_v62 = vsel %vm6310_vm9, %v5489_v24, %v3371_v29  ;;  %5490 = vrcp.f32 %v3234_v20  ;;  %vm3387_vm13 = vweird.f32 %v3234_v20  ;;  %vm1053_vm4 = vcmp.ge.s32.totalorder %v202_v58, 1 }
  0x62   :  { %v3380_v30 = vsel %vm3377_vm12, %v3379_v40, %v3375_v62  ;;  %v1680_v60 = vsel %vm1623_vm2, %v1565_v42, %v1566_v2  ;;  %v3391_v43 = vand.u32 2147483647, %v3234_v20  ;;  %v1117_v48 = vsel %vm1053_vm4, %v1038_v27, 0.0 }
  0x63   :  { %v3381_v6 = vmul.f32 %v3380_v30, %v3105_v37  ;;  %vm1374_vm5 = vcmp.ge.s32.totalorder %v202_v58, 2  ;;  %v3106_v12 = vadd.f32 %v3042_v18, %v2785_v39  ;;  %v1181_v47 = vadd.f32 %v1117_v48, %v6295_v57 }
  0x64   :  { %v1438_v28 = vsel %vm1374_vm5, %v1359_v61, 0.0  ;;  %vm1695_vm14 = vcmp.ge.s32.totalorder %v202_v58, 3  ;;  %v1887_v40 = vrot.slane %v6295_v57, 4  ;;  %vm2016_vm15 = vcmp.ge.s32.totalorder %v202_v58, 4 }
  0x65   :  { %v6342_v50 = vadd.f32 %v3381_v6, %v6127_v13  ;;  %v1759_v35 = vsel %vm1695_vm14, %v1680_v60, 0.0  ;;  %v3393_v24 = vand.u32 2147483648, %v3234_v20  ;;  %v1502_v25 = vadd.f32 %v1438_v28, %v1181_v47 }
  0x66   :  { %v2208_v42 = vrot.slane %v6295_v57, 3  ;;  %v2529_v41 = vrot.slane %v6295_v57, 2  ;;  %v2001_v13 = vsel %vm1944_vm6, %v1886_v17, %v1887_v40  ;;  %vm2337_vm7 = vcmp.ge.s32.totalorder %v202_v58, 5 }
  0x67   :  { %v5491_v55 = vpop.eup %5490  ;;  %5341 = vmatmul.msk.f32.gmra.mxu0 %vm4324_vm3, %v6342_v50  ;;  %vm2658_vm9 = vcmp.ge.s32.totalorder %v202_v58, 6  ;;  %v2850_v36 = vrot.slane %v6295_v57, 1  ;;  %v1823_v0 = vadd.f32 %v1759_v35, %v1502_v25  ;;  %v2080_v9 = vsel %vm2016_vm15, %v2001_v13, 0.0 }
  0x68   :  { %v3383_v7 = vmul.f32 %v5491_v55, %v3234_v20  ;;  %vm2979_vm12 = vcmp.ge.s32.totalorder %v202_v58, 7  ;;  %vm3388_vm4 = vweird.f32 %v5491_v55  ;;  %v2322_v17 = vsel %vm2265_vm8, %v2207_v53, %v2208_v42 }
  0x69   :  { %v2643_v45 = vsel %vm2586_vm10, %v2528_v23, %v2529_v41  ;;  %v3171_v32 = vcvt.s32.f32 %v202_v58  ;;  %v2144_v1 = vadd.f32 %v2080_v9, %v1823_v0  ;;  %v2401_v22 = vsel %vm2337_vm7, %v2322_v17, 0.0  ;;  %vm6383_vm5 = vmor %vm3387_vm13, %vm3388_vm4 }
  0x6a   :  { %v3384_v49 = vsub.f32 1.0, %v3383_v7  ;;  %v2964_v11 = vsel %vm2907_vm11, %v2849_v3, %v2850_v36  ;;  %v2722_v56 = vsel %vm2658_vm9, %v2643_v45, 0.0  ;;  %v93_v53 = vadd.s32 64, %v5791_v5 }
  0x6b   :  { %v3235_v14 = vadd.f32 1.0, %v3171_v32  ;;  %v925_v15 = vrot.slane %v6359_v38, 7  ;;  %v2465_v37 = vadd.f32 %v2401_v22, %v2144_v1  ;;  %v1246_v29 = vrot.slane %v6359_v38, 6  ;;  %v6446_v32 = vld [vmem:[%s11820_s0 + $0x48] sm:$0xff] }
  0x6c   :  { %v3385_v19 = vmul.f32 %v5491_v55, %v3384_v49  ;;  %v1567_v23 = vrot.slane %v6359_v38, 5  ;;  %vm6387_vm14 = vcmp.eq.f32.partialorder %v3391_v43, 8.507059e+37  ;;  %v3394_v27 = vor.u32 1.1754944e-38, %v3393_v24 }
  0x6d   :  { %v3043_v62 = vsel %vm2979_vm12, %v2964_v11, 0.0  ;;  %5492 = vrcp.f32 %v3235_v14  ;;  %v3406_v61 = vand.u32 2147483647, %v3235_v14  ;;  %v209_v30 = vand.u32 7, %v93_v53 }
  0x6e   :  { %v3386_v18 = vadd.f32 %v5491_v55, %v3385_v19  ;;  %v1037_v20 = vsel %vm981_vm0, %v924_v63, %v925_v15  ;;  %v2786_v60 = vadd.f32 %v2722_v56, %v2465_v37  ;;  %vm3402_vm13 = vweird.f32 %v3235_v14 }
  0x6f   :  { %v3408_v6 = vand.u32 2147483648, %v3235_v14  ;;  %v1358_v58 = vsel %vm1302_vm1, %v1245_v46, %v1246_v29  ;;  %vm1054_vm15 = vcmp.ge.s32.totalorder %v209_v30, 1  ;;  %vm1375_vm7 = vcmp.ge.s32.totalorder %v209_v30, 2 }
  0x70   :  { %v3390_v43 = vsel %vm6383_vm5, %v5491_v55, %v3386_v18  ;;  %v1679_v63 = vsel %vm1623_vm2, %v1566_v2, %v1567_v23  ;;  %v1118_v47 = vsel %vm1054_vm15, %v1037_v20, 0.0  ;;  %v1439_v28 = vsel %vm1375_vm7, %v1358_v58, 0.0 }
  0x71   :  { %v3395_v48 = vsel %vm6387_vm14, %v3394_v27, %v3390_v43  ;;  %vm1696_vm9 = vcmp.ge.s32.totalorder %v209_v30, 3  ;;  %vm6414_vm12 = vcmp.eq.f32.partialorder %v3406_v61, 8.507059e+37  ;;  %v1182_v24 = vadd.f32 %v1118_v47, %v6359_v38 }
  0x72   :  { %v3396_v35 = vmul.f32 %v3395_v48, %v3106_v12  ;;  %v1888_v25 = vrot.slane %v6359_v38, 4  ;;  %v1760_v13 = vsel %vm1696_vm9, %v1679_v63, 0.0  ;;  %vm2017_vm4 = vcmp.ge.s32.totalorder %v209_v30, 4 }
  0x73   :  { %v5493_v55 = vpop.eup %5492  ;;  %v2209_v2 = vrot.slane %v6359_v38, 3  ;;  %v2530_v7 = vrot.slane %v6359_v38, 2  ;;  %v1503_v12 = vadd.f32 %v1439_v28, %v1182_v24  ;;  %vm2338_vm5 = vcmp.ge.s32.totalorder %v209_v30, 5 }
  0x74   :  { %v6423_v0 = vadd.f32 %v3396_v35, %v6210_v51  ;;  %v3398_v9 = vmul.f32 %v5493_v55, %v3235_v14  ;;  %vm3403_vm14 = vweird.f32 %v5493_v55  ;;  %v2000_v17 = vsel %vm1944_vm6, %v1887_v40, %v1888_v25 }
  0x75   :  { %v2321_v45 = vsel %vm2265_vm8, %v2208_v42, %v2209_v2  ;;  %v2642_v51 = vsel %vm2586_vm10, %v2529_v41, %v2530_v7  ;;  %v1824_v49 = vadd.f32 %v1760_v13, %v1503_v12  ;;  %v2081_v1 = vsel %vm2017_vm4, %v2000_v17, 0.0  ;;  %vm6455_vm9 = vmor %vm3402_vm13, %vm3403_vm14 }
  0x76   :  { %5342 = vmatmul.msk.f32.gmra.mxu0 %vm4324_vm3, %v6423_v0  ;;  %v3399_v40 = vsub.f32 1.0, %v3398_v9  ;;  %vm2659_vm15 = vcmp.ge.s32.totalorder %v209_v30, 6  ;;  %v2402_v42 = vsel %vm2338_vm5, %v2321_v45, 0.0  ;;  %v2851_v22 = vrot.slane %v6359_v38, 1 }
  0x77   :  { %vm2980_vm7 = vcmp.ge.s32.totalorder %v209_v30, 7  ;;  %v3172_v11 = vcvt.s32.f32 %v209_v30  ;;  %v2145_v53 = vadd.f32 %v2081_v1, %v1824_v49  ;;  %v94_v41 = vadd.s32 72, %v5791_v5 }
  0x78   :  { %v3400_v56 = vmul.f32 %v5493_v55, %v3399_v40  ;;  %v926_v19 = vrot.slane %v6446_v32, 7  ;;  %v3107_v37 = vadd.f32 %v3043_v62, %v2786_v60  ;;  %v3409_v3 = vor.u32 1.1754944e-38, %v3408_v6 }
  0x79   :  { %v2963_v27 = vsel %vm2907_vm11, %v2850_v36, %v2851_v22  ;;  %v3236_v18 = vadd.f32 1.0, %v3172_v11  ;;  %v2466_v20 = vadd.f32 %v2402_v42, %v2145_v53  ;;  %v216_v58 = vand.u32 7, %v94_v41 }
  0x7a   :  { %v3401_v61 = vadd.f32 %v5493_v55, %v3400_v56  ;;  %v1247_v43 = vrot.slane %v6446_v32, 6  ;;  %v2723_v62 = vsel %vm2659_vm15, %v2642_v51, 0.0  ;;  %v3044_v14 = vsel %vm2980_vm7, %v2963_v27, 0.0  ;;  %v6516_v56 = vld [vmem:[%s11820_s0 + $0x50] sm:$0xff] }
  0x7b   :  { %5494 = vrcp.f32 %v3236_v18  ;;  %v1568_v60 = vrot.slane %v6446_v32, 5  ;;  %v3421_v63 = vand.u32 2147483647, %v3236_v18  ;;  %v1036_v36 = vsel %vm981_vm0, %v925_v15, %v926_v19 }
  0x7c   :  { %v3405_v6 = vsel %vm6455_vm9, %v5493_v55, %v3401_v61  ;;  %vm1055_vm13 = vcmp.ge.s32.totalorder %v216_v58, 1  ;;  %vm3417_vm4 = vweird.f32 %v3236_v18  ;;  %v3423_v30 = vand.u32 2147483648, %v3236_v18 }
  0x7d   :  { %v3410_v48 = vsel %vm6414_vm12, %v3409_v3, %v3405_v6  ;;  %v1119_v47 = vsel %vm1055_vm13, %v1036_v36, 0.0  ;;  %v2787_v35 = vadd.f32 %v2723_v62, %v2466_v20  ;;  %v1357_v55 = vsel %vm1302_vm1, %v1246_v29, %v1247_v43 }
  0x7e   :  { %v3411_v28 = vmul.f32 %v3410_v48, %v3107_v37  ;;  %v1183_v24 = vadd.f32 %v1119_v47, %v6446_v32  ;;  %vm1376_vm5 = vcmp.ge.s32.totalorder %v216_v58, 2  ;;  %v1678_v15 = vsel %vm1623_vm2, %v1567_v23, %v1568_v60 }
  0x7f   :  { %vm1697_vm12 = vcmp.ge.s32.totalorder %v216_v58, 3  ;;  %v1889_v46 = vrot.slane %v6446_v32, 4  ;;  %vm6494_vm14 = vcmp.eq.f32.partialorder %v3421_v63, 8.507059e+37  ;;  %v1440_v12 = vsel %vm1376_vm5, %v1357_v55, 0.0 }
  0x80   :  { %v6492_v13 = vadd.f32 %v3411_v28, %v6295_v57  ;;  %v1761_v29 = vsel %vm1697_vm12, %v1678_v15, 0.0  ;;  %vm2018_vm15 = vcmp.ge.s32.totalorder %v216_v58, 4  ;;  %v1504_v45 = vadd.f32 %v1440_v12, %v1183_v24 }
  0x81   :  { %v5495_v17 = vpop.eup %5494  ;;  %v1999_v23 = vsel %vm1944_vm6, %v1888_v25, %v1889_v46  ;;  %v2210_v51 = vrot.slane %v6446_v32, 3  ;;  %vm2339_vm7 = vcmp.ge.s32.totalorder %v216_v58, 5  ;;  %v3424_v40 = vor.u32 1.1754944e-38, %v3423_v30 }
  0x82   :  { %5343 = vmatmul.msk.f32.gmra.mxu0 %vm4324_vm3, %v6492_v13  ;;  %v3413_v57 = vmul.f32 %v5495_v17, %v3236_v18  ;;  %v2082_v49 = vsel %vm2018_vm15, %v1999_v23, 0.0  ;;  %v2531_v1 = vrot.slane %v6446_v32, 2  ;;  %v1825_v42 = vadd.f32 %v1761_v29, %v1504_v45 }
  0x83   :  { %v2320_v11 = vsel %vm2265_vm8, %v2209_v2, %v2210_v51  ;;  %vm2660_vm9 = vcmp.ge.s32.totalorder %v216_v58, 6  ;;  %v2852_v25 = vrot.slane %v6446_v32, 1  ;;  %vm3418_vm13 = vweird.f32 %v5495_v17 }
  0x84   :  { %v3414_v53 = vsub.f32 1.0, %v3413_v57  ;;  %v2403_v41 = vsel %vm2339_vm7, %v2320_v11, 0.0  ;;  %v2641_v37 = vsel %vm2586_vm10, %v2530_v7, %v2531_v1  ;;  %v2146_v39 = vadd.f32 %v2082_v49, %v1825_v42  ;;  %vm6531_vm12 = vmor %vm3417_vm4, %vm3418_vm13 }
  0x85   :  { %v2962_v2 = vsel %vm2907_vm11, %v2851_v22, %v2852_v25  ;;  %vm2981_vm5 = vcmp.ge.s32.totalorder %v216_v58, 7  ;;  %v3173_v3 = vcvt.s32.f32 %v216_v58  ;;  %v2724_v61 = vsel %vm2660_vm9, %v2641_v37, 0.0 }
  0x86   :  { %v3415_v27 = vmul.f32 %v5495_v17, %v3414_v53  ;;  %v95_v20 = vadd.s32 80, %v5791_v5  ;;  %v927_v62 = vrot.slane %v6516_v56, 7  ;;  %v3108_v6 = vadd.f32 %v3044_v14, %v2787_v35 }
  0x87   :  { %v2467_v7 = vadd.f32 %v2403_v41, %v2146_v39  ;;  %v3237_v36 = vadd.f32 1.0, %v3173_v3  ;;  %v1248_v48 = vrot.slane %v6516_v56, 6  ;;  %v3045_v22 = vsel %vm2981_vm5, %v2962_v2, 0.0 }
  0x88   :  { %v3416_v30 = vadd.f32 %v5495_v17, %v3415_v27  ;;  %v223_v47 = vand.u32 7, %v95_v20  ;;  %v1035_v58 = vsel %vm981_vm0, %v926_v19, %v927_v62  ;;  %v1569_v18 = vrot.slane %v6516_v56, 5 }
  0x89   :  { %v2788_v14 = vadd.f32 %v2724_v61, %v2467_v7  ;;  %5496 = vrcp.f32 %v3237_v36  ;;  %v1890_v28 = vrot.slane %v6516_v56, 4  ;;  %vm3432_vm4 = vweird.f32 %v3237_v36 }
  0x8a   :  { %v3420_v35 = vsel %vm6531_vm12, %v5495_v17, %v3416_v30  ;;  %vm1056_vm15 = vcmp.ge.s32.totalorder %v223_v47, 1  ;;  %v1356_v24 = vsel %vm1302_vm1, %v1247_v43, %v1248_v48  ;;  %v3436_v55 = vand.u32 2147483647, %v3237_v36 }
  0x8b   :  { %v3425_v19 = vsel %vm6494_vm14, %v3424_v40, %v3420_v35  ;;  %v3438_v15 = vand.u32 2147483648, %v3237_v36  ;;  %v1120_v12 = vsel %vm1056_vm15, %v1035_v58, 0.0  ;;  %v3109_v45 = vadd.f32 %v3045_v22, %v2788_v14 }
  0x8c   :  { %v3426_v29 = vmul.f32 %v3425_v19, %v3108_v6  ;;  %v1184_v23 = vadd.f32 %v1120_v12, %v6516_v56  ;;  %vm1377_vm7 = vcmp.ge.s32.totalorder %v223_v47, 2  ;;  %v1677_v57 = vsel %vm1623_vm2, %v1568_v60, %v1569_v18 }
  0x8d   :  { %v1441_v17 = vsel %vm1377_vm7, %v1356_v24, 0.0  ;;  %vm1698_vm9 = vcmp.ge.s32.totalorder %v223_v47, 3  ;;  %v1998_v43 = vsel %vm1944_vm6, %v1889_v46, %v1890_v28  ;;  %vm2019_vm14 = vcmp.ge.s32.totalorder %v223_v47, 4 }
  0x8e   :  { %v6566_v9 = vadd.f32 %v3426_v29, %v6359_v38  ;;  %v1505_v40 = vadd.f32 %v1441_v17, %v1184_v23  ;;  %v1762_v49 = vsel %vm1698_vm9, %v1677_v57, 0.0  ;;  %v2083_v11 = vsel %vm2019_vm14, %v1998_v43, 0.0  ;;  %v6575_v38 = vld [vmem:[%s11820_s0 + $0x58] sm:$0xff] }
  0x8f   :  { %v5497_v42 = vpop.eup %5496  ;;  %v2211_v53 = vrot.slane %v6516_v56, 3  ;;  %vm2340_vm13 = vcmp.ge.s32.totalorder %v223_v47, 5  ;;  %v2532_v41 = vrot.slane %v6516_v56, 2  ;;  %vm2661_vm12 = vcmp.ge.s32.totalorder %v223_v47, 6 }
  0x90   :  { %5344 = vmatmul.msk.f32.gmra.mxu0 %vm4324_vm3, %v6566_v9  ;;  %v3428_v60 = vmul.f32 %v5497_v42, %v3237_v36  ;;  %vm3433_vm5 = vweird.f32 %v5497_v42  ;;  %v1826_v37 = vadd.f32 %v1762_v49, %v1505_v40  ;;  %v2853_v2 = vrot.slane %v6516_v56, 1 }
  0x91   :  { %v2319_v46 = vsel %vm2265_vm8, %v2210_v51, %v2211_v53  ;;  %v2640_v39 = vsel %vm2586_vm10, %v2531_v1, %v2532_v41  ;;  %vm2982_vm15 = vcmp.ge.s32.totalorder %v223_v47, 7  ;;  %v3174_v6 = vcvt.s32.f32 %v223_v47  ;;  %vm6603_vm9 = vmor %vm3432_vm4, %vm3433_vm5 }
  0x92   :  { %v3429_v3 = vsub.f32 1.0, %v3428_v60  ;;  %v2147_v27 = vadd.f32 %v2083_v11, %v1826_v37  ;;  %v2404_v61 = vsel %vm2340_vm13, %v2319_v46, 0.0  ;;  %v2725_v20 = vsel %vm2661_vm12, %v2640_v39, 0.0 }
  0x93   :  { %v2961_v51 = vsel %vm2907_vm11, %v2852_v25, %v2853_v2  ;;  %v96_v63 = vadd.s32 88, %v5791_v5  ;;  %v928_v7 = vrot.slane %v6575_v38, 7  ;;  %vm6596_vm7 = vcmp.eq.f32.partialorder %v3436_v55, 8.507059e+37 }
  0x94   :  { %v3430_v1 = vmul.f32 %v5497_v42, %v3429_v3  ;;  %v2468_v22 = vadd.f32 %v2404_v61, %v2147_v27  ;;  %v1249_v58 = vrot.slane %v6575_v38, 6  ;;  %v3439_v25 = vor.u32 1.1754944e-38, %v3438_v15 }
  0x95   :  { %v3046_v47 = vsel %vm2982_vm15, %v2961_v51, 0.0  ;;  %v3238_v35 = vadd.f32 1.0, %v3174_v6  ;;  %v230_v24 = vand.u32 7, %v96_v63  ;;  %v1034_v55 = vsel %vm981_vm0, %v927_v62, %v928_v7  ;;  %v6658_v51 = vld [vmem:[%s11820_s0 + $0x60] sm:$0xff] }
  0x96   :  { %v3431_v19 = vadd.f32 %v5497_v42, %v3430_v1  ;;  %v2789_v12 = vadd.f32 %v2725_v20, %v2468_v22  ;;  %v1570_v29 = vrot.slane %v6575_v38, 5  ;;  %v1355_v36 = vsel %vm1302_vm1, %v1248_v48, %v1249_v58 }
  0x97   :  { %5498 = vrcp.f32 %v3238_v35  ;;  %v1891_v15 = vrot.slane %v6575_v38, 4  ;;  %vm3447_vm4 = vweird.f32 %v3238_v35  ;;  %v3451_v17 = vand.u32 2147483647, %v3238_v35 }
  0x98   :  { %v3435_v23 = vsel %vm6603_vm9, %v5497_v42, %v3431_v19  ;;  %vm1057_vm14 = vcmp.ge.s32.totalorder %v230_v24, 1  ;;  %vm1378_vm13 = vcmp.ge.s32.totalorder %v230_v24, 2  ;;  %v6625_v57 = vadd.f32 %v3046_v47, %v2789_v12 }
  0x99   :  { %v3440_v62 = vsel %vm6596_vm7, %v3439_v25, %v3435_v23  ;;  %v3453_v43 = vand.u32 2147483648, %v3238_v35  ;;  %v1121_v40 = vsel %vm1057_vm14, %v1034_v55, 0.0  ;;  %v1442_v48 = vsel %vm1378_vm13, %v1355_v36, 0.0 }
  0x9a   :  { %v3441_v49 = vmul.f32 %v3440_v62, %v3109_v45  ;;  %v1185_v11 = vadd.f32 %v1121_v40, %v6575_v38  ;;  %v1676_v42 = vsel %vm1623_vm2, %v1569_v18, %v1570_v29  ;;  %vm1699_vm5 = vcmp.ge.s32.totalorder %v230_v24, 3 }
  0x9b   :  { %v1997_v60 = vsel %vm1944_vm6, %v1890_v28, %v1891_v15  ;;  %vm2020_vm12 = vcmp.ge.s32.totalorder %v230_v24, 4  ;;  %v2212_v45 = vrot.slane %v6575_v38, 3  ;;  %vm6644_vm15 = vcmp.eq.f32.partialorder %v3451_v17, 8.507059e+37 }
  0x9c   :  { %v6642_v37 = vadd.f32 %v3441_v49, %v6446_v32  ;;  %v1506_v39 = vadd.f32 %v1442_v48, %v1185_v11  ;;  %v1763_v18 = vsel %vm1699_vm5, %v1676_v42, 0.0  ;;  %v2084_v27 = vsel %vm2020_vm12, %v1997_v60, 0.0 }
  0x9d   :  { %v5499_v3 = vpop.eup %5498  ;;  %v2318_v61 = vsel %vm2265_vm8, %v2211_v53, %v2212_v45  ;;  %vm2341_vm7 = vcmp.ge.s32.totalorder %v230_v24, 5  ;;  %v2533_v28 = vrot.slane %v6575_v38, 2  ;;  %vm2662_vm14 = vcmp.ge.s32.totalorder %v230_v24, 6 }
  0x9e   :  { %5345 = vmatmul.msk.f32.gmra.mxu0 %vm4324_vm3, %v6642_v37  ;;  %v3443_v32 = vmul.f32 %v5499_v3, %v3238_v35  ;;  %vm3448_vm9 = vweird.f32 %v5499_v3  ;;  %v1827_v20 = vadd.f32 %v1763_v18, %v1506_v39  ;;  %v2405_v6 = vsel %vm2341_vm7, %v2318_v61, 0.0 }
  0x9f   :  { %v2639_v53 = vsel %vm2586_vm10, %v2532_v41, %v2533_v28  ;;  %v2854_v63 = vrot.slane %v6575_v38, 1  ;;  %v3175_v1 = vcvt.s32.f32 %v230_v24  ;;  %vm2983_vm13 = vcmp.ge.s32.totalorder %v230_v24, 7  ;;  %vm6681_vm5 = vmor %vm3447_vm4, %vm3448_vm9 }
  0xa0   :  { %v3444_v30 = vsub.f32 1.0, %v3443_v32  ;;  %v2148_v22 = vadd.f32 %v2084_v27, %v1827_v20  ;;  %v97_v14 = vadd.s32 96, %v5791_v5  ;;  %v929_v19 = vrot.slane %v6658_v51, 7 }
  0xa1   :  { %v2960_v25 = vsel %vm2907_vm11, %v2853_v2, %v2854_v63  ;;  %v6672_v47 = vadd.f32 1.0, %v3175_v1  ;;  %v1250_v41 = vrot.slane %v6658_v51, 6  ;;  %v2726_v36 = vsel %vm2662_vm14, %v2639_v53, 0.0 }
  0xa2   :  { %v3445_v12 = vmul.f32 %v5499_v3, %v3444_v30  ;;  %v2469_v55 = vadd.f32 %v2405_v6, %v2148_v22  ;;  %v6677_v23 = vand.u32 7, %v97_v14  ;;  %v3454_v62 = vor.u32 1.1754944e-38, %v3453_v43  ;;  %v6743_v14 = vld [vmem:[%s11820_s0 + $0x68] sm:$0xff] }
  0xa3   :  { %v3047_v2 = vsel %vm2983_vm13, %v2960_v25, 0.0  ;;  %5500 = vrcp.f32 %v6672_v47  ;;  %v3468_v40 = vand.u32 2147483648, %v6672_v47  ;;  %vm3462_vm12 = vweird.f32 %v6672_v47 }
  0xa4   :  { %v3446_v49 = vadd.f32 %v5499_v3, %v3445_v12  ;;  %v1033_v35 = vsel %vm981_vm0, %v928_v7, %v929_v19  ;;  %vm1058_vm4 = vcmp.ge.s32.totalorder %v6677_v23, 1  ;;  %v2790_v24 = vadd.f32 %v2726_v36, %v2469_v55 }
  0xa5   :  { %v3466_v43 = vand.u32 2147483647, %v6672_v47  ;;  %v1122_v11 = vsel %vm1058_vm4, %v1033_v35, 0.0  ;;  %v1354_v48 = vsel %vm1302_vm1, %v1249_v58, %v1250_v41  ;;  %v3469_v60 = vor.u32 1.1754944e-38, %v3468_v40 }
  0xa6   :  { %v3450_v42 = vsel %vm6681_vm5, %v5499_v3, %v3446_v49  ;;  %v1186_v39 = vadd.f32 %v1122_v11, %v6658_v51  ;;  %vm1379_vm7 = vcmp.ge.s32.totalorder %v6677_v23, 2  ;;  %v1571_v27 = vrot.slane %v6658_v51, 5 }
  0xa7   :  { %v3455_v7 = vsel %vm6644_vm15, %v3454_v62, %v3450_v42  ;;  %v1443_v18 = vsel %vm1379_vm7, %v1354_v48, 0.0  ;;  %vm1700_vm9 = vcmp.ge.s32.totalorder %v6677_v23, 3  ;;  %v1892_v58 = vrot.slane %v6658_v51, 4 }
  0xa8   :  { %v3456_v61 = vmul.f32 %v3455_v7, %v6625_v57  ;;  %v1507_v32 = vadd.f32 %v1443_v18, %v1186_v39  ;;  %vm2021_vm14 = vcmp.ge.s32.totalorder %v6677_v23, 4  ;;  %v1675_v20 = vsel %vm1623_vm2, %v1570_v29, %v1571_v27 }
  0xa9   :  { %v5501_v3 = vpop.eup %5500  ;;  %v2213_v46 = vrot.slane %v6658_v51, 3  ;;  %vm2342_vm15 = vcmp.ge.s32.totalorder %v6677_v23, 5  ;;  %v2534_v6 = vrot.slane %v6658_v51, 2  ;;  %v1764_v1 = vsel %vm1700_vm9, %v1675_v20, 0.0 }
  0xaa   :  { %v6721_v53 = vadd.f32 %v3456_v61, %v6516_v56  ;;  %v3458_v57 = vmul.f32 %v5501_v3, %v6672_v47  ;;  %vm3463_vm13 = vweird.f32 %v5501_v3  ;;  %v1828_v30 = vadd.f32 %v1764_v1, %v1507_v32 }
  0xab   :  { %v1996_v29 = vsel %vm1944_vm6, %v1891_v15, %v1892_v58  ;;  %v2317_v56 = vsel %vm2265_vm8, %v2212_v45, %v2213_v46  ;;  %v2638_v22 = vsel %vm2586_vm10, %v2533_v28, %v2534_v6  ;;  %vm2663_vm5 = vcmp.ge.s32.totalorder %v6677_v23, 6  ;;  %vm6758_vm7 = vmor %vm3462_vm12, %vm3463_vm13 }
  0xac   :  { %5346 = vmatmul.msk.f32.gmra.mxu0 %vm4324_vm3, %v6721_v53  ;;  %v3459_v15 = vsub.f32 1.0, %v3458_v57  ;;  %v2085_v25 = vsel %vm2021_vm14, %v1996_v29, 0.0  ;;  %v2406_v12 = vsel %vm2342_vm15, %v2317_v56, 0.0  ;;  %v2727_v55 = vsel %vm2663_vm5, %v2638_v22, 0.0 }
  0xad   :  { %v2149_v45 = vadd.f32 %v2085_v25, %v1828_v30  ;;  %v2855_v36 = vrot.slane %v6658_v51, 1  ;;  %vm2984_vm4 = vcmp.ge.s32.totalorder %v6677_v23, 7  ;;  %v3176_v17 = vcvt.s32.f32 %v6677_v23 }
  0xae   :  { %v3460_v28 = vmul.f32 %v5501_v3, %v3459_v15  ;;  %v98_v62 = vadd.s32 104, %v5791_v5  ;;  %v930_v40 = vrot.slane %v6743_v14, 7  ;;  %v1251_v48 = vrot.slane %v6743_v14, 6 }
  0xaf   :  { %v2470_v35 = vadd.f32 %v2406_v12, %v2149_v45  ;;  %v2959_v11 = vsel %vm2907_vm11, %v2854_v63, %v2855_v36  ;;  %v1572_v42 = vrot.slane %v6743_v14, 5  ;;  %v3111_v39 = vadd.f32 %v3047_v2, %v2790_v24 }
  0xb0   :  { %v3461_v7 = vadd.f32 %v5501_v3, %v3460_v28  ;;  %vm3467_vm9 = vcmp.eq.f32.partialorder %v3466_v43, 8.507059e+37  ;;  %v3240_v18 = vadd.f32 1.0, %v3176_v17  ;;  %v6768_v47 = vand.u32 7, %v98_v62  ;;  %v6816_v17 = vld [vmem:[%s11820_s0 + $0x70] sm:$0xff] }
  0xb1   :  { %v2791_v61 = vadd.f32 %v2727_v55, %v2470_v35  ;;  %v1032_v32 = vsel %vm981_vm0, %v929_v19, %v930_v40  ;;  %v3048_v20 = vsel %vm2984_vm4, %v2959_v11, 0.0  ;;  %v1353_v2 = vsel %vm1302_vm1, %v1250_v41, %v1251_v48 }
  0xb2   :  { %v3465_v63 = vsel %vm6758_vm7, %v5501_v3, %v3461_v7  ;;  %5502 = vrcp.f32 %v3240_v18  ;;  %vm3477_vm12 = vweird.f32 %v3240_v18  ;;  %vm1059_vm14 = vcmp.ge.s32.totalorder %v6768_v47, 1 }
  0xb3   :  { %v3470_v24 = vsel %vm3467_vm9, %v3469_v60, %v3465_v63  ;;  %v1674_v19 = vsel %vm1623_vm2, %v1571_v27, %v1572_v42  ;;  %v3481_v23 = vand.u32 2147483647, %v3240_v18  ;;  %v1123_v3 = vsel %vm1059_vm14, %v1032_v32, 0.0 }
  0xb4   :  { %v3471_v43 = vmul.f32 %v3470_v24, %v3111_v39  ;;  %vm1380_vm15 = vcmp.ge.s32.totalorder %v6768_v47, 2  ;;  %v3112_v57 = vadd.f32 %v3048_v20, %v2791_v61  ;;  %v1187_v1 = vadd.f32 %v1123_v3, %v6743_v14 }
  0xb5   :  { %v1444_v30 = vsel %vm1380_vm15, %v1353_v2, 0.0  ;;  %vm1701_vm13 = vcmp.ge.s32.totalorder %v6768_v47, 3  ;;  %v1893_v29 = vrot.slane %v6743_v14, 4  ;;  %vm2022_vm5 = vcmp.ge.s32.totalorder %v6768_v47, 4 }
  0xb6   :  { %v6795_v41 = vadd.f32 %v3471_v43, %v6575_v38  ;;  %v1765_v60 = vsel %vm1701_vm13, %v1674_v19, 0.0  ;;  %v3483_v27 = vand.u32 2147483648, %v3240_v18  ;;  %v1508_v56 = vadd.f32 %v1444_v30, %v1187_v1 }
  0xb7   :  { %v2214_v22 = vrot.slane %v6743_v14, 3  ;;  %v2535_v15 = vrot.slane %v6743_v14, 2  ;;  %v1995_v38 = vsel %vm1944_vm6, %v1892_v58, %v1893_v29  ;;  %vm2343_vm4 = vcmp.ge.s32.totalorder %v6768_v47, 5 }
  0xb8   :  { %v5503_v25 = vpop.eup %5502  ;;  %5347 = vmatmul.msk.f32.gmra.mxu0 %vm4324_vm3, %v6795_v41  ;;  %vm2664_vm7 = vcmp.ge.s32.totalorder %v6768_v47, 6  ;;  %v2856_v12 = vrot.slane %v6743_v14, 1  ;;  %v1829_v55 = vadd.f32 %v1765_v60, %v1508_v56  ;;  %v2086_v28 = vsel %vm2022_vm5, %v1995_v38, 0.0 }
  0xb9   :  { %v3473_v45 = vmul.f32 %v5503_v25, %v3240_v18  ;;  %vm2985_vm9 = vcmp.ge.s32.totalorder %v6768_v47, 7  ;;  %vm3478_vm14 = vweird.f32 %v5503_v25  ;;  %v2316_v58 = vsel %vm2265_vm8, %v2213_v46, %v2214_v22 }
  0xba   :  { %v2637_v62 = vsel %vm2586_vm10, %v2534_v6, %v2535_v15  ;;  %v3177_v49 = vcvt.s32.f32 %v6768_v47  ;;  %v2150_v11 = vadd.f32 %v2086_v28, %v1829_v55  ;;  %v2407_v39 = vsel %vm2343_vm4, %v2316_v58, 0.0  ;;  %vm6841_vm15 = vmor %vm3477_vm12, %vm3478_vm14 }
  0xbb   :  { %v3474_v35 = vsub.f32 1.0, %v3473_v45  ;;  %v2958_v7 = vsel %vm2907_vm11, %v2855_v36, %v2856_v12  ;;  %v2728_v61 = vsel %vm2664_vm7, %v2637_v62, 0.0  ;;  %v99_v46 = vadd.s32 112, %v5791_v5 }
  0xbc   :  { %v3241_v32 = vadd.f32 1.0, %v3177_v49  ;;  %v931_v63 = vrot.slane %v6816_v17, 7  ;;  %v2471_v2 = vadd.f32 %v2407_v39, %v2150_v11  ;;  %v1252_v6 = vrot.slane %v6816_v17, 6 }
  0xbd   :  { %v3475_v20 = vmul.f32 %v5503_v25, %v3474_v35  ;;  %v1573_v24 = vrot.slane %v6816_v17, 5  ;;  %vm6845_vm13 = vcmp.eq.f32.partialorder %v3481_v23, 8.507059e+37  ;;  %v3484_v43 = vor.u32 1.1754944e-38, %v3483_v27 }
  0xbe   :  { %5504 = vrcp.f32 %v3241_v32  ;;  %v3496_v3 = vand.u32 2147483647, %v3241_v32  ;;  %v3498_v30 = vand.u32 2147483648, %v3241_v32  ;;  %v251_v60 = vand.u32 7, %v99_v46 }
  0xbf   :  { %v3476_v1 = vadd.f32 %v5503_v25, %v3475_v20  ;;  %v1031_v18 = vsel %vm981_vm0, %v930_v40, %v931_v63  ;;  %v2792_v56 = vadd.f32 %v2728_v61, %v2471_v2  ;;  %v3049_v23 = vsel %vm2985_vm9, %v2958_v7, 0.0  ;;  %v6905_v20 = vld [vmem:[%s11820_s0 + $0x78] sm:$0xff] }
  0xc0   :  { %vm3492_vm12 = vweird.f32 %v3241_v32  ;;  %v1352_v27 = vsel %vm1302_vm1, %v1251_v48, %v1252_v6  ;;  %vm1060_vm5 = vcmp.ge.s32.totalorder %v251_v60, 1  ;;  %vm1381_vm4 = vcmp.ge.s32.totalorder %v251_v60, 2  ;;  %v4796_v48 = vld [vmem:[%s11822_s3 + $0x30] sm:$0xff] }
  0xc1   :  { %v3480_v38 = vsel %vm6841_vm15, %v5503_v25, %v3476_v1  ;;  %v1673_v40 = vsel %vm1623_vm2, %v1572_v42, %v1573_v24  ;;  %v1124_v45 = vsel %vm1060_vm5, %v1031_v18, 0.0  ;;  %v1445_v55 = vsel %vm1381_vm4, %v1352_v27, 0.0 }
  0xc2   :  { %v3485_v47 = vsel %vm6845_vm13, %v3484_v43, %v3480_v38  ;;  %vm1702_vm7 = vcmp.ge.s32.totalorder %v251_v60, 3  ;;  %vm6873_vm9 = vcmp.eq.f32.partialorder %v3496_v3, 8.507059e+37  ;;  %v3499_v25 = vor.u32 1.1754944e-38, %v3498_v30 }
  0xc3   :  { %v3486_v28 = vmul.f32 %v3485_v47, %v3112_v57  ;;  %v1188_v58 = vadd.f32 %v1124_v45, %v6816_v17  ;;  %v1894_v62 = vrot.slane %v6816_v17, 4  ;;  %v1766_v35 = vsel %vm1702_vm7, %v1673_v40, 0.0 }
  0xc4   :  { %v5505_v49 = vpop.eup %5504  ;;  %vm2023_vm14 = vcmp.ge.s32.totalorder %v251_v60, 4  ;;  %v2215_v42 = vrot.slane %v6816_v17, 3  ;;  %v2536_v11 = vrot.slane %v6816_v17, 2  ;;  %vm2344_vm15 = vcmp.ge.s32.totalorder %v251_v60, 5 }
  0xc5   :  { %v6882_v39 = vadd.f32 %v3486_v28, %v6658_v51  ;;  %v3488_v57 = vmul.f32 %v5505_v49, %v3241_v32  ;;  %v1509_v7 = vadd.f32 %v1445_v55, %v1188_v58  ;;  %vm3493_vm13 = vweird.f32 %v5505_v49 }
  0xc6   :  { %v1994_v61 = vsel %vm1944_vm6, %v1893_v29, %v1894_v62  ;;  %v2315_v46 = vsel %vm2265_vm8, %v2214_v22, %v2215_v42  ;;  %v2636_v51 = vsel %vm2586_vm10, %v2535_v15, %v2536_v11  ;;  %vm2665_vm5 = vcmp.ge.s32.totalorder %v251_v60, 6  ;;  %vm6914_vm7 = vmor %vm3492_vm12, %vm3493_vm13 }
  0xc7   :  { %5348 = vmatmul.msk.f32.gmra.mxu0 %vm4324_vm3, %v6882_v39  ;;  %v3489_v29 = vsub.f32 1.0, %v3488_v57  ;;  %v1830_v2 = vadd.f32 %v1766_v35, %v1509_v7  ;;  %v2087_v19 = vsel %vm2023_vm14, %v1994_v61, 0.0  ;;  %v2408_v22 = vsel %vm2344_vm15, %v2315_v46, 0.0 }
  0xc8   :  { %v2857_v36 = vrot.slane %v6816_v17, 1  ;;  %vm2986_vm4 = vcmp.ge.s32.totalorder %v251_v60, 7  ;;  %v3178_v43 = vcvt.s32.f32 %v251_v60  ;;  %v100_v15 = vadd.s32 120, %v5791_v5 }
  0xc9   :  { %v3490_v3 = vmul.f32 %v5505_v49, %v3489_v29  ;;  %v2151_v1 = vadd.f32 %v2087_v19, %v1830_v2  ;;  %v932_v30 = vrot.slane %v6905_v20, 7  ;;  %v3113_v18 = vadd.f32 %v3049_v23, %v2792_v56 }
  0xca   :  { %v2729_v38 = vsel %vm2665_vm5, %v2636_v51, 0.0  ;;  %v2957_v40 = vsel %vm2907_vm11, %v2856_v12, %v2857_v36  ;;  %v6924_v47 = vadd.f32 1.0, %v3178_v43  ;;  %v6926_v28 = vand.u32 7, %v100_v15 }
  0xcb   :  { %v3491_v45 = vadd.f32 %v5505_v49, %v3490_v3  ;;  %v2472_v55 = vadd.f32 %v2408_v22, %v2151_v1  ;;  %v1253_v32 = vrot.slane %v6905_v20, 6  ;;  %v3050_v56 = vsel %vm2986_vm4, %v2957_v40, 0.0  ;;  %v4792_v22 = vld [vmem:[%s11822_s3 + $0x10] sm:$0xff] }
  0xcc   :  { %5506 = vrcp.f32 %v6924_v47  ;;  %v3513_v23 = vand.u32 2147483648, %v6924_v47  ;;  %v1574_v58 = vrot.slane %v6905_v20, 5  ;;  %v3511_v12 = vand.u32 2147483647, %v6924_v47 }
  0xcd   :  { %v3495_v35 = vsel %vm6914_vm7, %v5505_v49, %v3491_v45  ;;  %v1030_v57 = vsel %vm981_vm0, %v931_v63, %v932_v30  ;;  %vm1061_vm12 = vcmp.ge.s32.totalorder %v6926_v28, 1  ;;  %v2793_v7 = vadd.f32 %v2729_v38, %v2472_v55  ;;  %v4797_v49 = vld [vmem:[%s11822_s3 + $0x38] sm:$0xff] }
  0xce   :  { %v3500_v60 = vsel %vm6873_vm9, %v3499_v25, %v3495_v35  ;;  %vm3507_vm14 = vweird.f32 %v6924_v47  ;;  %v1125_v61 = vsel %vm1061_vm12, %v1030_v57, 0.0  ;;  %v6949_v51 = vor.u32 1.1754944e-38, %v3513_v23  ;;  %5003 = vmatpush.msra.mxu1 %v4797_v49  ;;  %5468 = vmatpush.msra.mxu2 %v4797_v49  ;;  %v4534_v35 = vpop.f32.mrf.mxu0 }
  0xcf   :  { %v3501_v46 = vmul.f32 %v3500_v60, %v3113_v18  ;;  %v1189_v29 = vadd.f32 %v1125_v61, %v6905_v20  ;;  %v1351_v63 = vsel %vm1302_vm1, %v1252_v6, %v1253_v32  ;;  %vm1382_vm9 = vcmp.ge.s32.totalorder %v6926_v28, 2  ;;  %v4795_v6 = vld [vmem:[%s11822_s3 + $0x28] sm:$0xff]  ;;  %v4794_v18 = vld [vmem:[%s11822_s3 + $0x20] sm:$0xff] }
  0xd0   :  { %v1672_v25 = vsel %vm1623_vm2, %v1573_v24, %v1574_v58  ;;  %vm1703_vm15 = vcmp.ge.s32.totalorder %v6926_v28, 3  ;;  %v1895_v2 = vrot.slane %v6905_v20, 4  ;;  %vm6976_vm13 = vcmp.eq.f32.partialorder %v3511_v12, 8.507059e+37  ;;  %5004 = vmatpush.msra.mxu1 %v4796_v48  ;;  %5469 = vmatpush.msra.mxu2 %v4796_v48 }
  0xd1   :  { %v6974_v19 = vadd.f32 %v3501_v46, %v6743_v14  ;;  %v1446_v43 = vsel %vm1382_vm9, %v1351_v63, 0.0  ;;  %v1767_v3 = vsel %vm1703_vm15, %v1672_v25, 0.0  ;;  %vm2024_vm5 = vcmp.ge.s32.totalorder %v6926_v28, 4 }
  0xd2   :  { %v5507_v24 = vpop.eup %5506  ;;  %v1510_v1 = vadd.f32 %v1446_v43, %v1189_v29  ;;  %v1993_v15 = vsel %vm1944_vm6, %v1894_v62, %v1895_v2  ;;  %v2216_v14 = vrot.slane %v6905_v20, 3  ;;  %vm2345_vm4 = vcmp.ge.s32.totalorder %v6926_v28, 5  ;;  %5005 = vmatpush.msra.mxu1 %v4795_v6  ;;  %v6999_v62 = vld [vmem:[%s11821_s2] ss:$0 sm:$0xff]  ;;  %5470 = vmatpush.msra.mxu2 %v4795_v6 }
  0xd3   :  { %5349 = vmatmul.msk.f32.gmra.mxu0 %vm4324_vm3, %v6974_v19  ;;  %v3503_v27 = vmul.f32 %v5507_v24, %v6924_v47  ;;  %vm3508_vm7 = vweird.f32 %v5507_v24  ;;  %v2088_v38 = vsel %vm2024_vm5, %v1993_v15, 0.0  ;;  %v2537_v40 = vrot.slane %v6905_v20, 2 }
  0xd4   :  { %v1831_v45 = vadd.f32 %v1767_v3, %v1510_v1  ;;  %v2314_v55 = vsel %vm2265_vm8, %v2215_v42, %v2216_v14  ;;  %vm2666_vm12 = vcmp.ge.s32.totalorder %v6926_v28, 6  ;;  %v2858_v23 = vrot.slane %v6905_v20, 1  ;;  %5006 = vmatpush.msra.mxu1 %v4794_v18  ;;  %v7021_v42 = vld [vmem:[%s11820_s0 + $0x80] sm:$0xff]  ;;  %5471 = vmatpush.msra.mxu2 %v4794_v18  ;;  %vm7037_vm15 = vmor %vm3507_vm14, %vm3508_vm7 }
  0xd5   :  { %v3504_v12 = vsub.f32 1.0, %v3503_v27  ;;  %v2409_v57 = vsel %vm2345_vm4, %v2314_v55, 0.0  ;;  %v2635_v60 = vsel %vm2586_vm10, %v2536_v11, %v2537_v40  ;;  %vm2987_vm9 = vcmp.ge.s32.totalorder %v6926_v28, 7 }
  0xd6   :  { %v3114_v61 = vadd.f32 %v3050_v56, %v2793_v7  ;;  %v2152_v49 = vadd.f32 %v2088_v38, %v1831_v45  ;;  %v2956_v46 = vsel %vm2907_vm11, %v2857_v36, %v2858_v23  ;;  %v3179_v29 = vcvt.s32.f32 %v6926_v28 }
  0xd7   :  { %v3505_v11 = vmul.f32 %v5507_v24, %v3504_v12  ;;  %v2730_v63 = vsel %vm2666_vm12, %v2635_v60, 0.0  ;;  %v4535_v48 = vadd.f32 %v6999_v62, %v4534_v35  ;;  %v101_v25 = vadd.s32 128, %v5791_v5  ;;  %v4793_v35 = vld [vmem:[%s11822_s3 + $0x18] sm:$0xff] }
  0xd8   :  { %v2473_v7 = vadd.f32 %v2409_v57, %v2152_v49  ;;  %v3051_v36 = vsel %vm2987_vm9, %v2956_v46, 0.0  ;;  %v7041_v6 = vadd.f32 1.0, %v3179_v29  ;;  %v933_v43 = vrot.slane %v7021_v42, 7  ;;  %5007 = vmatpush.msra.mxu1 %v4793_v35  ;;  %5472 = vmatpush.msra.mxu2 %v4793_v35 }
  0xd9   :  { %v3506_v3 = vadd.f32 %v5507_v24, %v3505_v11  ;;  %5508 = vtanh.f32 %v4535_v48  ;;  %v7044_v28 = vand.u32 7, %v101_v25  ;;  %v1254_v1 = vrot.slane %v7021_v42, 6 }
  0xda   :  { %v2794_v15 = vadd.f32 %v2730_v63, %v2473_v7  ;;  %5510 = vrcp.f32 %v7041_v6  ;;  %v1575_v47 = vrot.slane %v7021_v42, 5  ;;  %vm3522_vm14 = vweird.f32 %v7041_v6  ;;  %5008 = vmatpush.msra.mxu1 %v4792_v22  ;;  %5473 = vmatpush.msra.mxu2 %v4792_v22 }
  0xdb   :  { %v3510_v18 = vsel %vm7037_vm15, %v5507_v24, %v3506_v3  ;;  %v1029_v27 = vsel %vm981_vm0, %v932_v30, %v933_v43  ;;  %vm1062_vm5 = vcmp.ge.s32.totalorder %v7044_v28, 1  ;;  %v3526_v55 = vand.u32 2147483647, %v7041_v6 }
  0xdc   :  { %v3515_v38 = vsel %vm6976_vm13, %v6949_v51, %v3510_v18  ;;  %v7062_v45 = vadd.f32 %v3051_v36, %v2794_v15  ;;  %v1126_v24 = vsel %vm1062_vm5, %v1029_v27, 0.0  ;;  %v3528_v57 = vand.u32 2147483648, %v7041_v6  ;;  %v4537_v27 = vpop.f32.mrf.mxu0 }
  0xdd   :  { %v3516_v12 = vmul.f32 %v3515_v38, %v3114_v61  ;;  %v1190_v30 = vadd.f32 %v1126_v24, %v7021_v42  ;;  %v1350_v51 = vsel %vm1302_vm1, %v1253_v32, %v1254_v1  ;;  %vm1383_vm13 = vcmp.ge.s32.totalorder %v7044_v28, 2  ;;  %v4791_v32 = vld [vmem:[%s11822_s3 + $0x8] sm:$0xff] }
  0xde   :  { %v1671_v60 = vsel %vm1623_vm2, %v1574_v58, %v1575_v47  ;;  %vm1704_vm4 = vcmp.ge.s32.totalorder %v7044_v28, 3  ;;  %v1896_v61 = vrot.slane %v7021_v42, 4  ;;  %v1447_v29 = vsel %vm1383_vm13, %v1350_v51, 0.0  ;;  %5009 = vmatpush.msra.mxu1 %v4791_v32  ;;  %5474 = vmatpush.msra.mxu2 %v4791_v32 }
  0xdf   :  { %v5509_v49 = vpop.eup %5508  ;;  %v7092_v46 = vadd.f32 %v3516_v12, %v6816_v17  ;;  %v1768_v11 = vsel %vm1704_vm4, %v1671_v60, 0.0  ;;  %vm2025_vm7 = vcmp.ge.s32.totalorder %v7044_v28, 4  ;;  %v1511_v58 = vadd.f32 %v1447_v29, %v1190_v30  ;;  %v4790_v17 = vld [vmem:[%s11822_s3] sm:$0xff] }
  0xe0   :  { %v5511_v63 = vpop.eup %5510  ;;  %v1992_v48 = vsel %vm1944_vm6, %v1895_v2, %v1896_v61  ;;  %v2217_v25 = vrot.slane %v7021_v42, 3  ;;  %vm2346_vm12 = vcmp.ge.s32.totalorder %v7044_v28, 5  ;;  %v3529_v7 = vor.u32 1.1754944e-38, %v3528_v57  ;;  %5010 = vmatpush.msra.mxu1 %v4790_v17  ;;  %5475 = vmatpush.msra.mxu2 %v4790_v17 }
  0xe1   :  { %5350 = vmatmul.msk.f32.gmra.mxu0 %vm4324_vm3, %v7092_v46  ;;  %v3518_v56 = vmul.f32 %v5511_v63, %v7041_v6  ;;  %v2089_v36 = vsel %vm2025_vm7, %v1992_v48, 0.0  ;;  %v2538_v3 = vrot.slane %v7021_v42, 2  ;;  %v1832_v15 = vadd.f32 %v1768_v11, %v1511_v58 }
  0xe2   :  { %v2313_v2 = vsel %vm2265_vm8, %v2216_v14, %v2217_v25  ;;  %vm2667_vm9 = vcmp.ge.s32.totalorder %v7044_v28, 6  ;;  %v2859_v18 = vrot.slane %v7021_v42, 1  ;;  %vm3523_vm15 = vweird.f32 %v5511_v63  ;;  %v7129_v14 = vld [vmem:[%s11820_s0 + $0x88] sm:$0xff] }
  0xe3   :  { %v3519_v38 = vsub.f32 1.0, %v3518_v56  ;;  %v2410_v24 = vsel %vm2346_vm12, %v2313_v2, 0.0  ;;  %v2634_v35 = vsel %vm2586_vm10, %v2537_v40, %v2538_v3  ;;  %v2153_v12 = vadd.f32 %v2089_v36, %v1832_v15  ;;  %vm7142_vm4 = vmor %vm3522_vm14, %vm3523_vm15 }
  0xe4   :  { %v2731_v57 = vsel %vm2667_vm9, %v2634_v35, 0.0  ;;  %vm2988_vm5 = vcmp.ge.s32.totalorder %v7044_v28, 7  ;;  %v3180_v30 = vcvt.s32.f32 %v7044_v28  ;;  %v2955_v40 = vsel %vm2907_vm11, %v2858_v23, %v2859_v18 }
  0xe5   :  { %v3520_v51 = vmul.f32 %v5511_v63, %v3519_v38  ;;  %v4538_v22 = vadd.f32 %v6999_v62, %v4537_v27  ;;  %vm4802_vm13 = vcmask 523264   ;;  %v2474_v32 = vadd.f32 %v2410_v24, %v2153_v12 }
  0xe6   :  { %v7146_v29 = vadd.f32 1.0, %v3180_v30  ;;  %5400 = vmatmul.msk.f32.vlgmr.msra.gmra.mxu1 %vm4802_vm13, %v5509_v49  ;;  %v102_v11 = vadd.s32 136, %v5791_v5  ;;  %v934_v58 = vrot.slane %v7129_v14, 7  ;;  %vm3527_vm7 = vcmp.eq.f32.partialorder %v3526_v55, 8.507059e+37 }
  0xe7   :  { %v3521_v48 = vadd.f32 %v5511_v63, %v3520_v51  ;;  %5512 = vtanh.f32 %v4538_v22  ;;  %v1255_v23 = vrot.slane %v7129_v14, 6  ;;  %v2795_v17 = vadd.f32 %v2731_v57, %v2474_v32 }
  0xe8   :  { %v3052_v6 = vsel %vm2988_vm5, %v2955_v40, 0.0  ;;  %5514 = vrcp.f32 %v7146_v29  ;;  %v1576_v56 = vrot.slane %v7129_v14, 5  ;;  %v3541_v36 = vand.u32 2147483647, %v7146_v29 }
  0xe9   :  { %v3525_v49 = vsel %vm7142_vm4, %v5511_v63, %v3521_v48  ;;  %v272_v15 = vand.u32 7, %v102_v11  ;;  %v1028_v55 = vsel %vm981_vm0, %v933_v43, %v934_v58  ;;  %vm3537_vm14 = vweird.f32 %v7146_v29  ;;  %v4540_v11 = vpop.f32.mrf.mxu0 }
  0xea   :  { %v3530_v2 = vsel %vm3527_vm7, %v3529_v7, %v3525_v49  ;;  %v3543_v28 = vand.u32 2147483648, %v7146_v29  ;;  %v1349_v63 = vsel %vm1302_vm1, %v1254_v1, %v1255_v23  ;;  %v3116_v38 = vadd.f32 %v3052_v6, %v2795_v17 }
  0xeb   :  { %v3531_v27 = vmul.f32 %v3530_v2, %v7062_v45  ;;  %vm1063_vm12 = vcmp.ge.s32.totalorder %v272_v15, 1  ;;  %vm1384_vm9 = vcmp.ge.s32.totalorder %v272_v15, 2  ;;  %v1670_v43 = vsel %vm1623_vm2, %v1575_v47, %v1576_v56 }
  0xec   :  { %v1127_v24 = vsel %vm1063_vm12, %v1028_v55, 0.0  ;;  %v1448_v35 = vsel %vm1384_vm9, %v1349_v63, 0.0  ;;  %vm1705_vm15 = vcmp.ge.s32.totalorder %v272_v15, 3  ;;  %vm7183_vm5 = vcmp.eq.f32.partialorder %v3541_v36, 8.507059e+37 }
  0xed   :  { %v5513_v7 = vpop.eup %5512  ;;  %v7181_v12 = vadd.f32 %v3531_v27, %v6905_v20  ;;  %v1191_v45 = vadd.f32 %v1127_v24, %v7129_v14  ;;  %v1769_v57 = vsel %vm1705_vm15, %v1670_v43, 0.0  ;;  %v1897_v30 = vrot.slane %v7129_v14, 4 }
  0xee   :  { %v5515_v51 = vpop.eup %5514  ;;  %vm2026_vm4 = vcmp.ge.s32.totalorder %v272_v15, 4  ;;  %v2218_v40 = vrot.slane %v7129_v14, 3  ;;  %vm2347_vm7 = vcmp.ge.s32.totalorder %v272_v15, 5  ;;  %v2539_v47 = vrot.slane %v7129_v14, 2  ;;  %5401 = vmatmul.msk.f32.gmra.mxu1 %vm4802_vm13, %v5513_v7 }
  0xef   :  { %5351 = vmatmul.msk.f32.gmra.mxu0 %vm4324_vm3, %v7181_v12  ;;  %v3533_v20 = vmul.f32 %v5515_v51, %v7146_v29  ;;  %v3544_v22 = vor.u32 1.1754944e-38, %v3543_v28  ;;  %v1512_v60 = vadd.f32 %v1448_v35, %v1191_v45  ;;  %v1991_v32 = vsel %vm1944_vm6, %v1896_v61, %v1897_v30  ;;  %v7216_v61 = vld [vmem:[%s11820_s0 + $0x90] sm:$0xff] }
  0xf0   :  { %vm3538_vm12 = vweird.f32 %v5515_v51  ;;  %v2090_v48 = vsel %vm2026_vm4, %v1991_v32, 0.0  ;;  %v2312_v17 = vsel %vm2265_vm8, %v2217_v25, %v2218_v40  ;;  %v2633_v6 = vsel %vm2586_vm10, %v2538_v3, %v2539_v47 }
  0xf1   :  { %v3534_v49 = vsub.f32 1.0, %v3533_v20  ;;  %v1833_v36 = vadd.f32 %v1769_v57, %v1512_v60  ;;  %v2411_v55 = vsel %vm2347_vm7, %v2312_v17, 0.0  ;;  %vm2668_vm9 = vcmp.ge.s32.totalorder %v272_v15, 6  ;;  %vm7226_vm4 = vmor %vm3537_vm14, %vm3538_vm12 }
  0xf2   :  { %v2860_v2 = vrot.slane %v7129_v14, 1  ;;  %vm2989_vm15 = vcmp.ge.s32.totalorder %v272_v15, 7  ;;  %v3181_v25 = vcvt.s32.f32 %v272_v15  ;;  %v4541_v28 = vadd.f32 %v6999_v62, %v4540_v11 }
  0xf3   :  { %v3535_v63 = vmul.f32 %v5515_v51, %v3534_v49  ;;  %v2154_v27 = vadd.f32 %v2090_v48, %v1833_v36  ;;  %v103_v3 = vadd.s32 144, %v5791_v5  ;;  %v935_v24 = vrot.slane %v7216_v61, 7 }
  0xf4   :  { %v2732_v43 = vsel %vm2668_vm9, %v2633_v6, 0.0  ;;  %v2954_v7 = vsel %vm2907_vm11, %v2859_v18, %v2860_v2  ;;  %v3245_v45 = vadd.f32 1.0, %v3181_v25  ;;  %5516 = vtanh.f32 %v4541_v28 }
  0xf5   :  { %v3536_v57 = vadd.f32 %v5515_v51, %v3535_v63  ;;  %v2475_v20 = vadd.f32 %v2411_v55, %v2154_v27  ;;  %v7236_v60 = vand.u32 7, %v103_v3  ;;  %v1256_v29 = vrot.slane %v7216_v61, 6 }
  0xf6   :  { %v3053_v32 = vsel %vm2989_vm15, %v2954_v7, 0.0  ;;  %5518 = vrcp.f32 %v3245_v45  ;;  %v3558_v11 = vand.u32 2147483648, %v3245_v45  ;;  %v3556_v17 = vand.u32 2147483647, %v3245_v45 }
  0xf7   :  { %v3540_v48 = vsel %vm7226_vm4, %v5515_v51, %v3536_v57  ;;  %v1027_v18 = vsel %vm981_vm0, %v934_v58, %v935_v24  ;;  %vm1064_vm14 = vcmp.ge.s32.totalorder %v7236_v60, 1  ;;  %v2796_v15 = vadd.f32 %v2732_v43, %v2475_v20  ;;  %v4543_v20 = vpop.f32.mrf.mxu0 }
  0xf8   :  { %v3545_v6 = vsel %vm7183_vm5, %v3544_v22, %v3540_v48  ;;  %vm3552_vm7 = vweird.f32 %v3245_v45  ;;  %v1128_v49 = vsel %vm1064_vm14, %v1027_v18, 0.0  ;;  %v3559_v55 = vor.u32 1.1754944e-38, %v3558_v11 }
  0xf9   :  { %v3546_v36 = vmul.f32 %v3545_v6, %v3116_v38  ;;  %v1192_v51 = vadd.f32 %v1128_v49, %v7216_v61  ;;  %v1348_v25 = vsel %vm1302_vm1, %v1255_v23, %v1256_v29  ;;  %vm1385_vm12 = vcmp.ge.s32.totalorder %v7236_v60, 2 }
  0xfa   :  { %v5517_v58 = vpop.eup %5516  ;;  %v1577_v1 = vrot.slane %v7216_v61, 5  ;;  %vm1706_vm5 = vcmp.ge.s32.totalorder %v7236_v60, 3  ;;  %v1898_v22 = vrot.slane %v7216_v61, 4  ;;  %vm7265_vm9 = vcmp.eq.f32.partialorder %v3556_v17, 8.507059e+37 }
  0xfb   :  { %v7263_v38 = vadd.f32 %v3546_v36, %v7021_v42  ;;  %v1449_v63 = vsel %vm1385_vm12, %v1348_v25, 0.0  ;;  %vm2027_vm15 = vcmp.ge.s32.totalorder %v7236_v60, 4  ;;  %v2219_v23 = vrot.slane %v7216_v61, 3  ;;  %5402 = vmatmul.msk.f32.gmra.mxu1 %vm4802_vm13, %v5517_v58 }
  0xfc   :  { %v5519_v27 = vpop.eup %5518  ;;  %v1513_v3 = vadd.f32 %v1449_v63, %v1192_v51  ;;  %v1669_v42 = vsel %vm1623_vm2, %v1576_v56, %v1577_v1  ;;  %v1990_v35 = vsel %vm1944_vm6, %v1897_v30, %v1898_v22  ;;  %vm2348_vm4 = vcmp.ge.s32.totalorder %v7236_v60, 5  ;;  %v7310_v51 = vld [vmem:[%s11820_s0 + $0x98] sm:$0xff] }
  0xfd   :  { %5352 = vmatmul.msk.f32.gmra.mxu0 %vm4324_vm3, %v7263_v38  ;;  %v3548_v43 = vmul.f32 %v5519_v27, %v3245_v45  ;;  %vm3553_vm14 = vweird.f32 %v5519_v27  ;;  %v1770_v7 = vsel %vm1706_vm5, %v1669_v42, 0.0  ;;  %v2091_v57 = vsel %vm2027_vm15, %v1990_v35, 0.0 }
  0xfe   :  { %v1834_v56 = vadd.f32 %v1770_v7, %v1513_v3  ;;  %v2311_v30 = vsel %vm2265_vm8, %v2218_v40, %v2219_v23  ;;  %v2540_v11 = vrot.slane %v7216_v61, 2  ;;  %vm2669_vm12 = vcmp.ge.s32.totalorder %v7236_v60, 6  ;;  %vm7321_vm15 = vmor %vm3552_vm7, %vm3553_vm14 }
  0xff   :  { %v3549_v48 = vsub.f32 1.0, %v3548_v43  ;;  %v2412_v17 = vsel %vm2348_vm4, %v2311_v30, 0.0  ;;  %v2861_v18 = vrot.slane %v7216_v61, 1  ;;  %vm2990_vm5 = vcmp.ge.s32.totalorder %v7236_v60, 7 }
 0x100   :  { %v2155_v6 = vadd.f32 %v2091_v57, %v1834_v56  ;;  %v2632_v49 = vsel %vm2586_vm10, %v2539_v47, %v2540_v11  ;;  %v3182_v40 = vcvt.s32.f32 %v7236_v60  ;;  %v4544_v36 = vadd.f32 %v6999_v62, %v4543_v20 }
 0x101   :  { %v3550_v25 = vmul.f32 %v5519_v27, %v3549_v48  ;;  %v2733_v58 = vsel %vm2669_vm12, %v2632_v49, 0.0  ;;  %v2953_v63 = vsel %vm2907_vm11, %v2860_v2, %v2861_v18  ;;  %v104_v47 = vadd.s32 152, %v5791_v5 }
 0x102   :  { %v3117_v3 = vadd.f32 %v3053_v32, %v2796_v15  ;;  %v2476_v35 = vadd.f32 %v2412_v17, %v2155_v6  ;;  %v3246_v43 = vadd.f32 1.0, %v3182_v40  ;;  %5520 = vtanh.f32 %v4544_v36 }
 0x103   :  { %v3551_v7 = vadd.f32 %v5519_v27, %v3550_v25  ;;  %v7325_v57 = vand.u32 7, %v104_v47  ;;  %v936_v20 = vrot.slane %v7310_v51, 7  ;;  %v1257_v56 = vrot.slane %v7310_v51, 6 }
 0x104   :  { %v2797_v2 = vadd.f32 %v2733_v58, %v2476_v35  ;;  %v3054_v32 = vsel %vm2990_vm5, %v2953_v63, 0.0  ;;  %5522 = vrcp.f32 %v3246_v43  ;;  %v3571_v15 = vand.u32 2147483647, %v3246_v43 }
 0x105   :  { %v3555_v45 = vsel %vm7321_vm15, %v5519_v27, %v3551_v7  ;;  %v1026_v30 = vsel %vm981_vm0, %v935_v24, %v936_v20  ;;  %vm1065_vm7 = vcmp.ge.s32.totalorder %v7325_v57, 1  ;;  %vm3567_vm4 = vweird.f32 %v3246_v43 }
 0x106   :  { %v3560_v48 = vsel %vm7265_vm9, %v3559_v55, %v3555_v45  ;;  %v3573_v60 = vand.u32 2147483648, %v3246_v43  ;;  %v1129_v17 = vsel %vm1065_vm7, %v1026_v30, 0.0  ;;  %v3118_v49 = vadd.f32 %v3054_v32, %v2797_v2  ;;  %v4546_v2 = vpop.f32.mrf.mxu0 }
 0x107   :  { %v3561_v6 = vmul.f32 %v3560_v48, %v3117_v3  ;;  %v1193_v27 = vadd.f32 %v1129_v17, %v7310_v51  ;;  %v1347_v40 = vsel %vm1302_vm1, %v1256_v29, %v1257_v56  ;;  %vm1386_vm14 = vcmp.ge.s32.totalorder %v7325_v57, 2 }
 0x108   :  { %v5521_v24 = vpop.eup %5520  ;;  %v1578_v28 = vrot.slane %v7310_v51, 5  ;;  %vm1707_vm9 = vcmp.ge.s32.totalorder %v7325_v57, 3  ;;  %v1899_v55 = vrot.slane %v7310_v51, 4  ;;  %vm7356_vm12 = vcmp.eq.f32.partialorder %v3571_v15, 8.507059e+37 }
 0x109   :  { %v7354_v36 = vadd.f32 %v3561_v6, %v7129_v14  ;;  %v1450_v58 = vsel %vm1386_vm14, %v1347_v40, 0.0  ;;  %vm2028_vm5 = vcmp.ge.s32.totalorder %v7325_v57, 4  ;;  %v2220_v29 = vrot.slane %v7310_v51, 3  ;;  %5403 = vmatmul.msk.f32.gmra.mxu1 %vm4802_vm13, %v5521_v24 }
 0x10a   :  { %v5523_v63 = vpop.eup %5522  ;;  %v1514_v47 = vadd.f32 %v1450_v58, %v1193_v27  ;;  %v1668_v14 = vsel %vm1623_vm2, %v1577_v1, %v1578_v28  ;;  %v1989_v3 = vsel %vm1944_vm6, %v1898_v22, %v1899_v55  ;;  %vm2349_vm15 = vcmp.ge.s32.totalorder %v7325_v57, 5  ;;  %v7401_v27 = vld [vmem:[%s11820_s0 + $0xa0] sm:$0xff] }
 0x10b   :  { %5353 = vmatmul.msk.f32.gmra.mxu0 %vm4324_vm3, %v7354_v36  ;;  %v3563_v42 = vmul.f32 %v5523_v63, %v3246_v43  ;;  %vm3568_vm7 = vweird.f32 %v5523_v63  ;;  %v1771_v35 = vsel %vm1707_vm9, %v1668_v14, 0.0  ;;  %v2092_v7 = vsel %vm2028_vm5, %v1989_v3, 0.0 }
 0x10c   :  { %v1835_v1 = vadd.f32 %v1771_v35, %v1514_v47  ;;  %v2310_v22 = vsel %vm2265_vm8, %v2219_v23, %v2220_v29  ;;  %v2541_v32 = vrot.slane %v7310_v51, 2  ;;  %vm2670_vm14 = vcmp.ge.s32.totalorder %v7325_v57, 6  ;;  %vm7412_vm5 = vmor %vm3567_vm4, %vm3568_vm7 }
 0x10d   :  { %v3564_v45 = vsub.f32 1.0, %v3563_v42  ;;  %v2413_v15 = vsel %vm2349_vm15, %v2310_v22, 0.0  ;;  %v2862_v30 = vrot.slane %v7310_v51, 1  ;;  %vm2991_vm9 = vcmp.ge.s32.totalorder %v7325_v57, 7 }
 0x10e   :  { %v2156_v48 = vadd.f32 %v2092_v7, %v1835_v1  ;;  %v2631_v17 = vsel %vm2586_vm10, %v2540_v11, %v2541_v32  ;;  %v3183_v23 = vcvt.s32.f32 %v7325_v57  ;;  %v4547_v6 = vadd.f32 %v6999_v62, %v4546_v2 }
 0x10f   :  { %v3565_v40 = vmul.f32 %v5523_v63, %v3564_v45  ;;  %v2734_v24 = vsel %vm2670_vm14, %v2631_v17, 0.0  ;;  %v2952_v58 = vsel %vm2907_vm11, %v2861_v18, %v2862_v30  ;;  %v105_v11 = vadd.s32 160, %v5791_v5 }
 0x110   :  { %v3574_v14 = vor.u32 1.1754944e-38, %v3573_v60  ;;  %v2477_v3 = vadd.f32 %v2413_v15, %v2156_v48  ;;  %v3247_v42 = vadd.f32 1.0, %v3183_v23  ;;  %5524 = vtanh.f32 %v4547_v6 }
 0x111   :  { %v3566_v35 = vadd.f32 %v5523_v63, %v3565_v40  ;;  %v7416_v7 = vand.u32 7, %v105_v11  ;;  %v937_v2 = vrot.slane %v7401_v27, 7  ;;  %v1258_v1 = vrot.slane %v7401_v27, 6 }
 0x112   :  { %v2798_v18 = vadd.f32 %v2734_v24, %v2477_v3  ;;  %v3055_v22 = vsel %vm2991_vm9, %v2952_v58, 0.0  ;;  %5526 = vrcp.f32 %v3247_v42  ;;  %v3586_v45 = vand.u32 2147483647, %v3247_v42 }
 0x113   :  { %v3570_v43 = vsel %vm7412_vm5, %v5523_v63, %v3566_v35  ;;  %v1025_v60 = vsel %vm981_vm0, %v936_v20, %v937_v2  ;;  %vm1066_vm4 = vcmp.ge.s32.totalorder %v7416_v7, 1  ;;  %vm3582_vm15 = vweird.f32 %v3247_v42 }
 0x114   :  { %v3575_v15 = vsel %vm7356_vm12, %v3574_v14, %v3570_v43  ;;  %v3588_v57 = vand.u32 2147483648, %v3247_v42  ;;  %v1130_v48 = vsel %vm1066_vm4, %v1025_v60, 0.0  ;;  %v3119_v23 = vadd.f32 %v3055_v22, %v2798_v18  ;;  %v4549_v22 = vpop.f32.mrf.mxu0 }
 0x115   :  { %v3576_v17 = vmul.f32 %v3575_v15, %v3118_v49  ;;  %v1194_v63 = vadd.f32 %v1130_v48, %v7401_v27  ;;  %v1346_v6 = vsel %vm1302_vm1, %v1257_v56, %v1258_v1  ;;  %vm1387_vm7 = vcmp.ge.s32.totalorder %v7416_v7, 2 }
 0x116   :  { %v5525_v20 = vpop.eup %5524  ;;  %v1579_v25 = vrot.slane %v7401_v27, 5  ;;  %vm1708_vm12 = vcmp.ge.s32.totalorder %v7416_v7, 3  ;;  %v1900_v40 = vrot.slane %v7401_v27, 4  ;;  %vm7447_vm14 = vcmp.eq.f32.partialorder %v3586_v45, 8.507059e+37 }
 0x117   :  { %v7445_v49 = vadd.f32 %v3576_v17, %v7216_v61  ;;  %v1451_v58 = vsel %vm1387_vm7, %v1346_v6, 0.0  ;;  %vm2029_vm9 = vcmp.ge.s32.totalorder %v7416_v7, 4  ;;  %v2221_v56 = vrot.slane %v7401_v27, 3  ;;  %5404 = vmatmul.msk.f32.gmra.mxu1 %vm4802_vm13, %v5525_v20  ;;  %v7492_v6 = vld [vmem:[%s11820_s0 + $0xa8] sm:$0xff] }
 0x118   :  { %v5527_v11 = vpop.eup %5526  ;;  %v1515_v47 = vadd.f32 %v1451_v58, %v1194_v63  ;;  %v1667_v61 = vsel %vm1623_vm2, %v1578_v28, %v1579_v25  ;;  %v1988_v14 = vsel %vm1944_vm6, %v1899_v55, %v1900_v40  ;;  %vm2350_vm5 = vcmp.ge.s32.totalorder %v7416_v7, 5 }
 0x119   :  { %5354 = vmatmul.msk.f32.gmra.mxu0 %vm4324_vm3, %v7445_v49  ;;  %v3578_v3 = vmul.f32 %v5527_v11, %v3247_v42  ;;  %vm3583_vm4 = vweird.f32 %v5527_v11  ;;  %v1772_v35 = vsel %vm1708_vm12, %v1667_v61, 0.0  ;;  %v2093_v18 = vsel %vm2029_vm9, %v1988_v14, 0.0 }
 0x11a   :  { %v1836_v28 = vadd.f32 %v1772_v35, %v1515_v47  ;;  %v2309_v55 = vsel %vm2265_vm8, %v2220_v29, %v2221_v56  ;;  %v2542_v43 = vrot.slane %v7401_v27, 2  ;;  %vm2671_vm7 = vcmp.ge.s32.totalorder %v7416_v7, 6  ;;  %vm7503_vm9 = vmor %vm3582_vm15, %vm3583_vm4 }
 0x11b   :  { %v3579_v45 = vsub.f32 1.0, %v3578_v3  ;;  %v2414_v60 = vsel %vm2350_vm5, %v2309_v55, 0.0  ;;  %v2863_v15 = vrot.slane %v7401_v27, 1  ;;  %vm2992_vm12 = vcmp.ge.s32.totalorder %v7416_v7, 7 }
 0x11c   :  { %v2157_v48 = vadd.f32 %v2093_v18, %v1836_v28  ;;  %v2630_v17 = vsel %vm2586_vm10, %v2541_v32, %v2542_v43  ;;  %v3184_v29 = vcvt.s32.f32 %v7416_v7  ;;  %v4550_v63 = vadd.f32 %v6999_v62, %v4549_v22 }
 0x11d   :  { %v3580_v20 = vmul.f32 %v5527_v11, %v3579_v45  ;;  %v2735_v58 = vsel %vm2671_vm7, %v2630_v17, 0.0  ;;  %v2951_v47 = vsel %vm2907_vm11, %v2862_v30, %v2863_v15  ;;  %v106_v32 = vadd.s32 168, %v5791_v5 }
 0x11e   :  { %v3589_v14 = vor.u32 1.1754944e-38, %v3588_v57  ;;  %v2478_v3 = vadd.f32 %v2414_v60, %v2157_v48  ;;  %v3248_v35 = vadd.f32 1.0, %v3184_v29  ;;  %5528 = vtanh.f32 %v4550_v63 }
 0x11f   :  { %v3581_v18 = vadd.f32 %v5527_v11, %v3580_v20  ;;  %v7507_v22 = vand.u32 7, %v106_v32  ;;  %v938_v28 = vrot.slane %v7492_v6, 7  ;;  %v1259_v55 = vrot.slane %v7492_v6, 6 }
 0x120   :  { %v2799_v30 = vadd.f32 %v2735_v58, %v2478_v3  ;;  %v3056_v45 = vsel %vm2992_vm12, %v2951_v47, 0.0  ;;  %5530 = vrcp.f32 %v3248_v35  ;;  %v3601_v17 = vand.u32 2147483647, %v3248_v35 }
 0x121   :  { %v3585_v42 = vsel %vm7503_vm9, %v5527_v11, %v3581_v18  ;;  %v1024_v57 = vsel %vm981_vm0, %v937_v2, %v938_v28  ;;  %vm1067_vm15 = vcmp.ge.s32.totalorder %v7507_v22, 1  ;;  %vm3597_vm5 = vweird.f32 %v3248_v35 }
 0x122   :  { %v3590_v60 = vsel %vm7447_vm14, %v3589_v14, %v3585_v42  ;;  %v3603_v7 = vand.u32 2147483648, %v3248_v35  ;;  %v1131_v48 = vsel %vm1067_vm15, %v1024_v57, 0.0  ;;  %v3120_v63 = vadd.f32 %v3056_v45, %v2799_v30  ;;  %v4552_v42 = vpop.f32.mrf.mxu0 }
 0x123   :  { %v3591_v29 = vmul.f32 %v3590_v60, %v3119_v23  ;;  %v1195_v11 = vadd.f32 %v1131_v48, %v7492_v6  ;;  %v1345_v20 = vsel %vm1302_vm1, %v1258_v1, %v1259_v55  ;;  %vm1388_vm4 = vcmp.ge.s32.totalorder %v7507_v22, 2 }
 0x124   :  { %v5529_v2 = vpop.eup %5528  ;;  %v1580_v24 = vrot.slane %v7492_v6, 5  ;;  %vm1709_vm14 = vcmp.ge.s32.totalorder %v7507_v22, 3  ;;  %v1901_v58 = vrot.slane %v7492_v6, 4  ;;  %vm7538_vm7 = vcmp.eq.f32.partialorder %v3601_v17, 8.507059e+37 }
 0x125   :  { %v7536_v23 = vadd.f32 %v3591_v29, %v7310_v51  ;;  %v1452_v32 = vsel %vm1388_vm4, %v1345_v20, 0.0  ;;  %vm2030_vm12 = vcmp.ge.s32.totalorder %v7507_v22, 4  ;;  %v2222_v1 = vrot.slane %v7492_v6, 3  ;;  %5405 = vmatmul.msk.f32.gmra.mxu1 %vm4802_vm13, %v5529_v2  ;;  %v7583_v2 = vld [vmem:[%s11820_s0 + $0xb0] sm:$0xff] }
 0x126   :  { %v5531_v61 = vpop.eup %5530  ;;  %v1516_v14 = vadd.f32 %v1452_v32, %v1195_v11  ;;  %v1666_v51 = vsel %vm1623_vm2, %v1579_v25, %v1580_v24  ;;  %v1987_v3 = vsel %vm1944_vm6, %v1900_v40, %v1901_v58  ;;  %vm2351_vm9 = vcmp.ge.s32.totalorder %v7507_v22, 5 }
 0x127   :  { %5355 = vmatmul.msk.f32.gmra.mxu0 %vm4324_vm3, %v7536_v23  ;;  %v3593_v18 = vmul.f32 %v5531_v61, %v3248_v35  ;;  %vm3598_vm15 = vweird.f32 %v5531_v61  ;;  %v1773_v30 = vsel %vm1709_vm14, %v1666_v51, 0.0  ;;  %v2094_v45 = vsel %vm2030_vm12, %v1987_v3, 0.0 }
 0x128   :  { %v1837_v25 = vadd.f32 %v1773_v30, %v1516_v14  ;;  %v2308_v40 = vsel %vm2265_vm8, %v2221_v56, %v2222_v1  ;;  %v2543_v17 = vrot.slane %v7492_v6, 2  ;;  %vm2672_vm4 = vcmp.ge.s32.totalorder %v7507_v22, 6  ;;  %vm7594_vm12 = vmor %vm3597_vm5, %vm3598_vm15 }
 0x129   :  { %v3594_v57 = vsub.f32 1.0, %v3593_v18  ;;  %v2415_v60 = vsel %vm2351_vm9, %v2308_v40, 0.0  ;;  %v2864_v48 = vrot.slane %v7492_v6, 1  ;;  %vm2993_vm14 = vcmp.ge.s32.totalorder %v7507_v22, 7 }
 0x12a   :  { %v2158_v29 = vadd.f32 %v2094_v45, %v1837_v25  ;;  %v2629_v11 = vsel %vm2586_vm10, %v2542_v43, %v2543_v17  ;;  %v3185_v56 = vcvt.s32.f32 %v7507_v22  ;;  %v4553_v20 = vadd.f32 %v6999_v62, %v4552_v42 }
 0x12b   :  { %v3595_v32 = vmul.f32 %v5531_v61, %v3594_v57  ;;  %v2736_v14 = vsel %vm2672_vm4, %v2629_v11, 0.0  ;;  %v2950_v51 = vsel %vm2907_vm11, %v2863_v15, %v2864_v48  ;;  %v107_v43 = vadd.s32 176, %v5791_v5 }
 0x12c   :  { %v3604_v18 = vor.u32 1.1754944e-38, %v3603_v7  ;;  %v2479_v30 = vadd.f32 %v2415_v60, %v2158_v29  ;;  %v3249_v45 = vadd.f32 1.0, %v3185_v56  ;;  %5532 = vtanh.f32 %v4553_v20 }
 0x12d   :  { %v3596_v42 = vadd.f32 %v5531_v61, %v3595_v32  ;;  %v7598_v25 = vand.u32 7, %v107_v43  ;;  %v939_v40 = vrot.slane %v7583_v2, 7  ;;  %v1260_v57 = vrot.slane %v7583_v2, 6 }
 0x12e   :  { %v2800_v15 = vadd.f32 %v2736_v14, %v2479_v30  ;;  %v3057_v11 = vsel %vm2993_vm14, %v2950_v51, 0.0  ;;  %5534 = vrcp.f32 %v3249_v45  ;;  %v3616_v34 = vand.u32 2147483647, %v3249_v45 }
 0x12f   :  { %v3600_v35 = vsel %vm7594_vm12, %v5531_v61, %v3596_v42  ;;  %v1023_v7 = vsel %vm981_vm0, %v938_v28, %v939_v40  ;;  %vm1068_vm5 = vcmp.ge.s32.totalorder %v7598_v25, 1  ;;  %vm3612_vm9 = vweird.f32 %v3249_v45 }
 0x130   :  { %v3605_v60 = vsel %vm7538_vm7, %v3604_v18, %v3600_v35  ;;  %v3618_v22 = vand.u32 2147483648, %v3249_v45  ;;  %v1132_v29 = vsel %vm1068_vm5, %v1023_v7, 0.0  ;;  %v3121_v20 = vadd.f32 %v3057_v11, %v2800_v15  ;;  %v4555_v11 = vpop.f32.mrf.mxu0 }
 0x131   :  { %v3606_v56 = vmul.f32 %v3605_v60, %v3120_v63  ;;  %v1196_v61 = vadd.f32 %v1132_v29, %v7583_v2  ;;  %v1344_v32 = vsel %vm1302_vm1, %v1259_v55, %v1260_v57  ;;  %vm1389_vm15 = vcmp.ge.s32.totalorder %v7598_v25, 2 }
 0x132   :  { %v5533_v28 = vpop.eup %5532  ;;  %v1581_v47 = vrot.slane %v7583_v2, 5  ;;  %vm1710_vm7 = vcmp.ge.s32.totalorder %v7598_v25, 3  ;;  %v1902_v14 = vrot.slane %v7583_v2, 4  ;;  %vm7629_vm4 = vcmp.eq.f32.partialorder %v3616_v34, 8.507059e+37 }
 0x133   :  { %v7627_v63 = vadd.f32 %v3606_v56, %v7401_v27  ;;  %v1453_v43 = vsel %vm1389_vm15, %v1344_v32, 0.0  ;;  %vm2031_vm14 = vcmp.ge.s32.totalorder %v7598_v25, 4  ;;  %v2223_v55 = vrot.slane %v7583_v2, 3  ;;  %5406 = vmatmul.msk.f32.gmra.mxu1 %vm4802_vm13, %v5533_v28  ;;  %v7674_v28 = vld [vmem:[%s11820_s0 + $0xb8] sm:$0xff] }
 0x134   :  { %v5535_v3 = vpop.eup %5534  ;;  %v1517_v18 = vadd.f32 %v1453_v43, %v1196_v61  ;;  %v1665_v27 = vsel %vm1623_vm2, %v1580_v24, %v1581_v47  ;;  %v1986_v34 = vsel %vm1944_vm6, %v1901_v58, %v1902_v14  ;;  %vm2352_vm12 = vcmp.ge.s32.totalorder %v7598_v25, 5 }
 0x135   :  { %5356 = vmatmul.msk.f32.gmra.mxu0 %vm4324_vm3, %v7627_v63  ;;  %v3608_v30 = vmul.f32 %v5535_v3, %v3249_v45  ;;  %vm3613_vm5 = vweird.f32 %v5535_v3  ;;  %v1774_v42 = vsel %vm1710_vm7, %v1665_v27, 0.0  ;;  %v2095_v15 = vsel %vm2031_vm14, %v1986_v34, 0.0 }
 0x136   :  { %v1838_v24 = vadd.f32 %v1774_v42, %v1517_v18  ;;  %v2307_v58 = vsel %vm2265_vm8, %v2222_v1, %v2223_v55  ;;  %v2544_v35 = vrot.slane %v7583_v2, 2  ;;  %vm2673_vm15 = vcmp.ge.s32.totalorder %v7598_v25, 6  ;;  %vm7685_vm14 = vmor %vm3612_vm9, %vm3613_vm5 }
 0x137   :  { %v3609_v7 = vsub.f32 1.0, %v3608_v30  ;;  %v2416_v60 = vsel %vm2352_vm12, %v2307_v58, 0.0  ;;  %v2865_v29 = vrot.slane %v7583_v2, 1  ;;  %vm2994_vm7 = vcmp.ge.s32.totalorder %v7598_v25, 7 }
 0x138   :  { %v2159_v56 = vadd.f32 %v2095_v15, %v1838_v24  ;;  %v2628_v61 = vsel %vm2586_vm10, %v2543_v17, %v2544_v35  ;;  %v3186_v1 = vcvt.s32.f32 %v7598_v25  ;;  %v4556_v32 = vadd.f32 %v6999_v62, %v4555_v11 }
 0x139   :  { %v3610_v43 = vmul.f32 %v5535_v3, %v3609_v7  ;;  %v2737_v18 = vsel %vm2673_vm15, %v2628_v61, 0.0  ;;  %v2949_v27 = vsel %vm2907_vm11, %v2864_v48, %v2865_v29  ;;  %v108_v17 = vadd.s32 184, %v5791_v5 }
 0x13a   :  { %v3619_v34 = vor.u32 1.1754944e-38, %v3618_v22  ;;  %v2480_v30 = vadd.f32 %v2416_v60, %v2159_v56  ;;  %v3250_v42 = vadd.f32 1.0, %v3186_v1  ;;  %5536 = vtanh.f32 %v4556_v32 }
 0x13b   :  { %v3611_v15 = vadd.f32 %v5535_v3, %v3610_v43  ;;  %v7689_v11 = vand.u32 7, %v108_v17  ;;  %v940_v24 = vrot.slane %v7674_v28, 7  ;;  %v1261_v58 = vrot.slane %v7674_v28, 6 }
 0x13c   :  { %v2801_v48 = vadd.f32 %v2737_v18, %v2480_v30  ;;  %v3058_v7 = vsel %vm2994_vm7, %v2949_v27, 0.0  ;;  %5538 = vrcp.f32 %v3250_v42  ;;  %v3631_v61 = vand.u32 2147483647, %v3250_v42 }
 0x13d   :  { %v3615_v45 = vsel %vm7685_vm14, %v5535_v3, %v3611_v15  ;;  %v1022_v22 = vsel %vm981_vm0, %v939_v40, %v940_v24  ;;  %vm1069_vm9 = vcmp.ge.s32.totalorder %v7689_v11, 1  ;;  %vm3627_vm12 = vweird.f32 %v3250_v42 }
 0x13e   :  { %v3620_v60 = vsel %vm7629_vm4, %v3619_v34, %v3615_v45  ;;  %v3633_v25 = vand.u32 2147483648, %v3250_v42  ;;  %v1133_v56 = vsel %vm1069_vm9, %v1022_v22, 0.0  ;;  %v7706_v32 = vadd.f32 %v3058_v7, %v2801_v48  ;;  %v4558_v45 = vpop.f32.mrf.mxu0 }
 0x13f   :  { %v3621_v1 = vmul.f32 %v3620_v60, %v3121_v20  ;;  %v1197_v3 = vadd.f32 %v1133_v56, %v7674_v28  ;;  %v1343_v40 = vsel %vm1302_vm1, %v1260_v57, %v1261_v58  ;;  %vm1390_vm5 = vcmp.ge.s32.totalorder %v7689_v11, 2 }
 0x140   :  { %v5537_v43 = vpop.eup %5536  ;;  %v1582_v51 = vrot.slane %v7674_v28, 5  ;;  %vm1711_vm4 = vcmp.ge.s32.totalorder %v7689_v11, 3  ;;  %v1903_v20 = vrot.slane %v7674_v28, 4  ;;  %vm7722_vm15 = vcmp.eq.f32.partialorder %v3631_v61, 8.507059e+37 }
 0x141   :  { %v7720_v18 = vadd.f32 %v3621_v1, %v7492_v6  ;;  %v1454_v17 = vsel %vm1390_vm5, %v1343_v40, 0.0  ;;  %vm2032_vm7 = vcmp.ge.s32.totalorder %v7689_v11, 4  ;;  %v2224_v57 = vrot.slane %v7674_v28, 3  ;;  %5407 = vmatmul.msk.f32.gmra.mxu1 %vm4802_vm13, %v5537_v43  ;;  %v7766_v40 = vld [vmem:[%s11821_s2] ss:$0 sm:$0xff] }
 0x142   :  { %v5539_v62 = vpop.eup %5538  ;;  %v1518_v34 = vadd.f32 %v1454_v17, %v1197_v3  ;;  %v1664_v6 = vsel %vm1623_vm2, %v1581_v47, %v1582_v51  ;;  %v1985_v30 = vsel %vm1944_vm6, %v1902_v14, %v1903_v20  ;;  %vm2353_vm14 = vcmp.ge.s32.totalorder %v7689_v11, 5  ;;  %v7772_v17 = vld [vmem:[%s11820_s0 + $0xc0] sm:$0xff] }
 0x143   :  { %5357 = vmatmul.msk.f32.gmra.mxu0 %vm4324_vm3, %v7720_v18  ;;  %v3623_v15 = vmul.f32 %v5539_v62, %v3250_v42  ;;  %vm3628_vm9 = vweird.f32 %v5539_v62  ;;  %v1775_v48 = vsel %vm1711_vm4, %v1664_v6, 0.0  ;;  %v2096_v7 = vsel %vm2032_vm7, %v1985_v30, 0.0 }
 0x144   :  { %v1839_v47 = vadd.f32 %v1775_v48, %v1518_v34  ;;  %v2306_v14 = vsel %vm2265_vm8, %v2223_v55, %v2224_v57  ;;  %v2545_v61 = vrot.slane %v7674_v28, 2  ;;  %vm2674_vm5 = vcmp.ge.s32.totalorder %v7689_v11, 6  ;;  %vm7783_vm7 = vmor %vm3627_vm12, %vm3628_vm9 }
 0x145   :  { %v3624_v22 = vsub.f32 1.0, %v3623_v15  ;;  %v2417_v60 = vsel %vm2353_vm14, %v2306_v14, 0.0  ;;  %v2866_v56 = vrot.slane %v7674_v28, 1  ;;  %vm2995_vm4 = vcmp.ge.s32.totalorder %v7689_v11, 7 }
 0x146   :  { %v2160_v1 = vadd.f32 %v2096_v7, %v1839_v47  ;;  %v2627_v3 = vsel %vm2586_vm10, %v2544_v35, %v2545_v61  ;;  %v3187_v55 = vcvt.s32.f32 %v7689_v11  ;;  %v4559_v43 = vadd.f32 %v7766_v40, %v4558_v45 }
 0x147   :  { %v3625_v34 = vmul.f32 %v5539_v62, %v3624_v22  ;;  %v2738_v6 = vsel %vm2674_vm5, %v2627_v3, 0.0  ;;  %v2948_v35 = vsel %vm2907_vm11, %v2865_v29, %v2866_v56  ;;  %v109_v30 = vadd.s32 192, %v5791_v5 }
 0x148   :  { %v3634_v48 = vor.u32 1.1754944e-38, %v3633_v25  ;;  %v2481_v7 = vadd.f32 %v2417_v60, %v2160_v1  ;;  %v3251_v45 = vadd.f32 1.0, %v3187_v55  ;;  %5540 = vtanh.f32 %v4559_v43 }
 0x149   :  { %v3626_v47 = vadd.f32 %v5539_v62, %v3625_v34  ;;  %v7787_v14 = vand.u32 7, %v109_v30  ;;  %v941_v22 = vrot.slane %v7772_v17, 7  ;;  %v1262_v3 = vrot.slane %v7772_v17, 6 }
 0x14a   :  { %v2802_v29 = vadd.f32 %v2738_v6, %v2481_v7  ;;  %v3059_v31 = vsel %vm2995_vm4, %v2948_v35, 0.0  ;;  %5542 = vrcp.f32 %v3251_v45  ;;  %v3646_v26 = vand.u32 2147483647, %v3251_v45 }
 0x14b   :  { %v3630_v42 = vsel %vm7783_vm7, %v5539_v62, %v3626_v47  ;;  %v1021_v25 = vsel %vm981_vm0, %v940_v24, %v941_v22  ;;  %vm1070_vm12 = vcmp.ge.s32.totalorder %v7787_v14, 1  ;;  %vm3642_vm14 = vweird.f32 %v3251_v45 }
 0x14c   :  { %v3635_v60 = vsel %vm7722_vm15, %v3634_v48, %v3630_v42  ;;  %v3648_v11 = vand.u32 2147483648, %v3251_v45  ;;  %v1134_v1 = vsel %vm1070_vm12, %v1021_v25, 0.0  ;;  %v3123_v43 = vadd.f32 %v3059_v31, %v2802_v29  ;;  %v4561_v29 = vpop.f32.mrf.mxu0 }
 0x14d   :  { %v3636_v55 = vmul.f32 %v3635_v60, %v7706_v32  ;;  %v1198_v62 = vadd.f32 %v1134_v1, %v7772_v17  ;;  %v1342_v24 = vsel %vm1302_vm1, %v1261_v58, %v1262_v3  ;;  %vm1391_vm9 = vcmp.ge.s32.totalorder %v7787_v14, 2 }
 0x14e   :  { %v5541_v34 = vpop.eup %5540  ;;  %v1583_v27 = vrot.slane %v7772_v17, 5  ;;  %vm1712_vm15 = vcmp.ge.s32.totalorder %v7787_v14, 3  ;;  %v1904_v6 = vrot.slane %v7772_v17, 4  ;;  %vm7819_vm5 = vcmp.eq.f32.partialorder %v3646_v26, 8.507059e+37 }
 0x14f   :  { %v7817_v31 = vadd.f32 %v3636_v55, %v7583_v2  ;;  %v1455_v35 = vsel %vm1391_vm9, %v1342_v24, 0.0  ;;  %vm2033_vm4 = vcmp.ge.s32.totalorder %v7787_v14, 4  ;;  %v2225_v58 = vrot.slane %v7772_v17, 3  ;;  %5408 = vmatmul.msk.f32.gmra.mxu1 %vm4802_vm13, %v5541_v34  ;;  %v7864_v34 = vld [vmem:[%s11820_s0 + $0xc8] sm:$0xff] }
 0x150   :  { %v5543_v30 = vpop.eup %5542  ;;  %v1519_v15 = vadd.f32 %v1455_v35, %v1198_v62  ;;  %v1663_v2 = vsel %vm1623_vm2, %v1582_v51, %v1583_v27  ;;  %v1984_v26 = vsel %vm1944_vm6, %v1903_v20, %v1904_v6  ;;  %vm2354_vm7 = vcmp.ge.s32.totalorder %v7787_v14, 5 }
 0x151   :  { %5358 = vmatmul.msk.f32.gmra.mxu0 %vm4324_vm3, %v7817_v31  ;;  %v3638_v48 = vmul.f32 %v5543_v30, %v3251_v45  ;;  %vm3643_vm12 = vweird.f32 %v5543_v30  ;;  %v1776_v7 = vsel %vm1712_vm15, %v1663_v2, 0.0  ;;  %v2097_v47 = vsel %vm2033_vm4, %v1984_v26, 0.0 }
 0x152   :  { %v1840_v51 = vadd.f32 %v1776_v7, %v1519_v15  ;;  %v2305_v20 = vsel %vm2265_vm8, %v2224_v57, %v2225_v58  ;;  %v2546_v42 = vrot.slane %v7772_v17, 2  ;;  %vm2675_vm9 = vcmp.ge.s32.totalorder %v7787_v14, 6  ;;  %vm7875_vm4 = vmor %vm3642_vm14, %vm3643_vm12 }
 0x153   :  { %v3639_v25 = vsub.f32 1.0, %v3638_v48  ;;  %v2418_v60 = vsel %vm2354_vm7, %v2305_v20, 0.0  ;;  %v2867_v1 = vrot.slane %v7772_v17, 1  ;;  %vm2996_vm15 = vcmp.ge.s32.totalorder %v7787_v14, 7 }
 0x154   :  { %v2161_v55 = vadd.f32 %v2097_v47, %v1840_v51  ;;  %v2626_v62 = vsel %vm2586_vm10, %v2545_v61, %v2546_v42  ;;  %v3188_v57 = vcvt.s32.f32 %v7787_v14  ;;  %v4562_v24 = vadd.f32 %v7766_v40, %v4561_v29 }
 0x155   :  { %v3640_v35 = vmul.f32 %v5543_v30, %v3639_v25  ;;  %v2739_v15 = vsel %vm2675_vm9, %v2626_v62, 0.0  ;;  %v2947_v2 = vsel %vm2907_vm11, %v2866_v56, %v2867_v1  ;;  %v110_v61 = vadd.s32 200, %v5791_v5 }
 0x156   :  { %v3649_v48 = vor.u32 1.1754944e-38, %v3648_v11  ;;  %v2482_v7 = vadd.f32 %v2418_v60, %v2161_v55  ;;  %v3252_v47 = vadd.f32 1.0, %v3188_v57  ;;  %5544 = vtanh.f32 %v4562_v24 }
 0x157   :  { %v3641_v29 = vadd.f32 %v5543_v30, %v3640_v35  ;;  %v7879_v51 = vand.u32 7, %v110_v61  ;;  %v942_v20 = vrot.slane %v7864_v34, 7  ;;  %v1263_v25 = vrot.slane %v7864_v34, 6 }
 0x158   :  { %v2803_v56 = vadd.f32 %v2739_v15, %v2482_v7  ;;  %v3060_v62 = vsel %vm2996_vm15, %v2947_v2, 0.0  ;;  %5546 = vrcp.f32 %v3252_v47  ;;  %v3661_v21 = vand.u32 2147483647, %v3252_v47 }
 0x159   :  { %v3645_v45 = vsel %vm7875_vm4, %v5543_v30, %v3641_v29  ;;  %v1020_v11 = vsel %vm981_vm0, %v941_v22, %v942_v20  ;;  %vm1071_vm14 = vcmp.ge.s32.totalorder %v7879_v51, 1  ;;  %vm3657_vm7 = vweird.f32 %v3252_v47 }
 0x15a   :  { %v3650_v60 = vsel %vm7819_vm5, %v3649_v48, %v3645_v45  ;;  %v3663_v14 = vand.u32 2147483648, %v3252_v47  ;;  %v1135_v55 = vsel %vm1071_vm14, %v1020_v11, 0.0  ;;  %v3124_v24 = vadd.f32 %v3060_v62, %v2803_v56  ;;  %v4564_v62 = vpop.f32.mrf.mxu0 }
 0x15b   :  { %v3651_v57 = vmul.f32 %v3650_v60, %v3123_v43  ;;  %v1199_v30 = vadd.f32 %v1135_v55, %v7864_v34  ;;  %v1341_v35 = vsel %vm1302_vm1, %v1262_v3, %v1263_v25  ;;  %vm1392_vm12 = vcmp.ge.s32.totalorder %v7879_v51, 2 }
 0x15c   :  { %v5545_v22 = vpop.eup %5544  ;;  %v1584_v32 = vrot.slane %v7864_v34, 5  ;;  %vm1713_vm5 = vcmp.ge.s32.totalorder %v7879_v51, 3  ;;  %v1905_v15 = vrot.slane %v7864_v34, 4  ;;  %vm7910_vm9 = vcmp.eq.f32.partialorder %v3661_v21, 8.507059e+37 }
 0x15d   :  { %v7908_v43 = vadd.f32 %v3651_v57, %v7674_v28  ;;  %v1456_v61 = vsel %vm1392_vm12, %v1341_v35, 0.0  ;;  %vm2034_vm15 = vcmp.ge.s32.totalorder %v7879_v51, 4  ;;  %v2226_v3 = vrot.slane %v7864_v34, 3  ;;  %5409 = vmatmul.msk.f32.gmra.mxu1 %vm4802_vm13, %v5545_v22  ;;  %v7955_v22 = vld [vmem:[%s11820_s0 + $0xd0] sm:$0xff] }
 0x15e   :  { %v5547_v26 = vpop.eup %5546  ;;  %v1520_v48 = vadd.f32 %v1456_v61, %v1199_v30  ;;  %v1662_v28 = vsel %vm1623_vm2, %v1583_v27, %v1584_v32  ;;  %v1983_v21 = vsel %vm1944_vm6, %v1904_v6, %v1905_v15  ;;  %vm2355_vm4 = vcmp.ge.s32.totalorder %v7879_v51, 5 }
 0x15f   :  { %5359 = vmatmul.msk.f32.gmra.mxu0 %vm4324_vm3, %v7908_v43  ;;  %v3653_v7 = vmul.f32 %v5547_v26, %v3252_v47  ;;  %vm3658_vm14 = vweird.f32 %v5547_v26  ;;  %v1777_v29 = vsel %vm1713_vm5, %v1662_v28, 0.0  ;;  %v2098_v56 = vsel %vm2034_vm15, %v1983_v21, 0.0 }
 0x160   :  { %v1841_v27 = vadd.f32 %v1777_v29, %v1520_v48  ;;  %v2304_v6 = vsel %vm2265_vm8, %v2225_v58, %v2226_v3  ;;  %v2547_v45 = vrot.slane %v7864_v34, 2  ;;  %vm2676_vm12 = vcmp.ge.s32.totalorder %v7879_v51, 6  ;;  %vm7966_vm15 = vmor %vm3657_vm7, %vm3658_vm14 }
 0x161   :  { %v3654_v11 = vsub.f32 1.0, %v3653_v7  ;;  %v2419_v60 = vsel %vm2355_vm4, %v2304_v6, 0.0  ;;  %v2868_v55 = vrot.slane %v7864_v34, 1  ;;  %vm2997_vm5 = vcmp.ge.s32.totalorder %v7879_v51, 7 }
 0x162   :  { %v2162_v57 = vadd.f32 %v2098_v56, %v1841_v27  ;;  %v2625_v30 = vsel %vm2586_vm10, %v2546_v42, %v2547_v45  ;;  %v3189_v58 = vcvt.s32.f32 %v7879_v51  ;;  %v4565_v35 = vadd.f32 %v7766_v40, %v4564_v62 }
 0x163   :  { %v3655_v61 = vmul.f32 %v5547_v26, %v3654_v11  ;;  %v2740_v48 = vsel %vm2676_vm12, %v2625_v30, 0.0  ;;  %v2946_v28 = vsel %vm2907_vm11, %v2867_v1, %v2868_v55  ;;  %v111_v42 = vadd.s32 208, %v5791_v5 }
 0x164   :  { %v3664_v7 = vor.u32 1.1754944e-38, %v3663_v14  ;;  %v2483_v29 = vadd.f32 %v2419_v60, %v2162_v57  ;;  %v3253_v56 = vadd.f32 1.0, %v3189_v58  ;;  %5548 = vtanh.f32 %v4565_v35 }
 0x165   :  { %v3656_v62 = vadd.f32 %v5547_v26, %v3655_v61  ;;  %v7970_v27 = vand.u32 7, %v111_v42  ;;  %v943_v6 = vrot.slane %v7955_v22, 7  ;;  %v1264_v11 = vrot.slane %v7955_v22, 6 }
 0x166   :  { %v2804_v1 = vadd.f32 %v2740_v48, %v2483_v29  ;;  %v3061_v30 = vsel %vm2997_vm5, %v2946_v28, 0.0  ;;  %5550 = vrcp.f32 %v3253_v56  ;;  %v3676_v16 = vand.u32 2147483647, %v3253_v56 }
 0x167   :  { %v3660_v47 = vsel %vm7966_vm15, %v5547_v26, %v3656_v62  ;;  %v1019_v14 = vsel %vm981_vm0, %v942_v20, %v943_v6  ;;  %vm1072_vm7 = vcmp.ge.s32.totalorder %v7970_v27, 1  ;;  %vm3672_vm4 = vweird.f32 %v3253_v56 }
 0x168   :  { %v3665_v60 = vsel %vm7910_vm9, %v3664_v7, %v3660_v47  ;;  %v3678_v51 = vand.u32 2147483648, %v3253_v56  ;;  %v1136_v57 = vsel %vm1072_vm7, %v1019_v14, 0.0  ;;  %v7987_v35 = vadd.f32 %v3061_v30, %v2804_v1  ;;  %v4567_v30 = vpop.f32.mrf.mxu0 }
 0x169   :  { %v3666_v58 = vmul.f32 %v3665_v60, %v3124_v24  ;;  %v1200_v26 = vadd.f32 %v1136_v57, %v7955_v22  ;;  %v1340_v20 = vsel %vm1302_vm1, %v1263_v25, %v1264_v11  ;;  %vm1393_vm14 = vcmp.ge.s32.totalorder %v7970_v27, 2 }
 0x16a   :  { %v5549_v61 = vpop.eup %5548  ;;  %v1585_v2 = vrot.slane %v7955_v22, 5  ;;  %vm1714_vm9 = vcmp.ge.s32.totalorder %v7970_v27, 3  ;;  %v1906_v24 = vrot.slane %v7955_v22, 4  ;;  %vm8003_vm12 = vcmp.eq.f32.partialorder %v3676_v16, 8.507059e+37 }
 0x16b   :  { %v8001_v48 = vadd.f32 %v3666_v58, %v7772_v17  ;;  %v1457_v42 = vsel %vm1393_vm14, %v1340_v20, 0.0  ;;  %vm2035_vm5 = vcmp.ge.s32.totalorder %v7970_v27, 4  ;;  %v2227_v25 = vrot.slane %v7955_v22, 3  ;;  %5410 = vmatmul.msk.f32.gmra.mxu1 %vm4802_vm13, %v5549_v61  ;;  %v8048_v61 = vld [vmem:[%s11820_s0 + $0xd8] sm:$0xff] }
 0x16c   :  { %v5551_v21 = vpop.eup %5550  ;;  %v1521_v7 = vadd.f32 %v1457_v42, %v1200_v26  ;;  %v1661_v17 = vsel %vm1623_vm2, %v1584_v32, %v1585_v2  ;;  %v1982_v16 = vsel %vm1944_vm6, %v1905_v15, %v1906_v24  ;;  %vm2356_vm15 = vcmp.ge.s32.totalorder %v7970_v27, 5 }
 0x16d   :  { %5360 = vmatmul.msk.f32.gmra.mxu0 %vm4324_vm3, %v8001_v48  ;;  %v3668_v29 = vmul.f32 %v5551_v21, %v3253_v56  ;;  %vm3673_vm7 = vweird.f32 %v5551_v21  ;;  %v1778_v62 = vsel %vm1714_vm9, %v1661_v17, 0.0  ;;  %v2099_v1 = vsel %vm2035_vm5, %v1982_v16, 0.0 }
 0x16e   :  { %v1842_v32 = vadd.f32 %v1778_v62, %v1521_v7  ;;  %v2303_v15 = vsel %vm2265_vm8, %v2226_v3, %v2227_v25  ;;  %v2548_v47 = vrot.slane %v7955_v22, 2  ;;  %vm2677_vm14 = vcmp.ge.s32.totalorder %v7970_v27, 6  ;;  %vm8059_vm5 = vmor %vm3672_vm4, %vm3673_vm7 }
 0x16f   :  { %v3669_v14 = vsub.f32 1.0, %v3668_v29  ;;  %v2420_v60 = vsel %vm2356_vm15, %v2303_v15, 0.0  ;;  %v2869_v57 = vrot.slane %v7955_v22, 1  ;;  %vm2998_vm9 = vcmp.ge.s32.totalorder %v7970_v27, 7 }
 0x170   :  { %v2163_v58 = vadd.f32 %v2099_v1, %v1842_v32  ;;  %v2624_v26 = vsel %vm2586_vm10, %v2547_v45, %v2548_v47  ;;  %v3190_v3 = vcvt.s32.f32 %v7970_v27  ;;  %v4568_v20 = vadd.f32 %v7766_v40, %v4567_v30 }
 0x171   :  { %v3670_v42 = vmul.f32 %v5551_v21, %v3669_v14  ;;  %v2741_v7 = vsel %vm2677_vm14, %v2624_v26, 0.0  ;;  %v2945_v17 = vsel %vm2907_vm11, %v2868_v55, %v2869_v57  ;;  %v112_v45 = vadd.s32 216, %v5791_v5 }
 0x172   :  { %v3679_v29 = vor.u32 1.1754944e-38, %v3678_v51  ;;  %v2484_v62 = vadd.f32 %v2420_v60, %v2163_v58  ;;  %v3254_v1 = vadd.f32 1.0, %v3190_v3  ;;  %5552 = vtanh.f32 %v4568_v20 }
 0x173   :  { %v3671_v30 = vadd.f32 %v5551_v21, %v3670_v42  ;;  %v8063_v32 = vand.u32 7, %v112_v45  ;;  %v944_v15 = vrot.slane %v8048_v61, 7  ;;  %v1265_v14 = vrot.slane %v8048_v61, 6 }
 0x174   :  { %v2805_v55 = vadd.f32 %v2741_v7, %v2484_v62  ;;  %v3062_v26 = vsel %vm2998_vm9, %v2945_v17, 0.0  ;;  %5554 = vrcp.f32 %v3254_v1  ;;  %v3691_v10 = vand.u32 2147483647, %v3254_v1 }
 0x175   :  { %v3675_v56 = vsel %vm8059_vm5, %v5551_v21, %v3671_v30  ;;  %v1018_v51 = vsel %vm981_vm0, %v943_v6, %v944_v15  ;;  %vm1073_vm4 = vcmp.ge.s32.totalorder %v8063_v32, 1  ;;  %vm3687_vm15 = vweird.f32 %v3254_v1 }
 0x176   :  { %v3680_v60 = vsel %vm8003_vm12, %v3679_v29, %v3675_v56  ;;  %v3693_v27 = vand.u32 2147483648, %v3254_v1  ;;  %v1137_v58 = vsel %vm1073_vm4, %v1018_v51, 0.0  ;;  %v3126_v20 = vadd.f32 %v3062_v26, %v2805_v55  ;;  %v4570_v26 = vpop.f32.mrf.mxu0 }
 0x177   :  { %v3681_v3 = vmul.f32 %v3680_v60, %v7987_v35  ;;  %v1201_v21 = vadd.f32 %v1137_v58, %v8048_v61  ;;  %v1339_v6 = vsel %vm1302_vm1, %v1264_v11, %v1265_v14  ;;  %vm1394_vm7 = vcmp.ge.s32.totalorder %v8063_v32, 2 }
 0x178   :  { %v5553_v42 = vpop.eup %5552  ;;  %v1586_v28 = vrot.slane %v8048_v61, 5  ;;  %vm1715_vm12 = vcmp.ge.s32.totalorder %v8063_v32, 3  ;;  %v1907_v7 = vrot.slane %v8048_v61, 4  ;;  %vm8095_vm14 = vcmp.eq.f32.partialorder %v3691_v10, 8.507059e+37 }
 0x179   :  { %v8093_v35 = vadd.f32 %v3681_v3, %v7864_v34  ;;  %v1458_v45 = vsel %vm1394_vm7, %v1339_v6, 0.0  ;;  %vm2036_vm9 = vcmp.ge.s32.totalorder %v8063_v32, 4  ;;  %v2228_v11 = vrot.slane %v8048_v61, 3  ;;  %5411 = vmatmul.msk.f32.gmra.mxu1 %vm4802_vm13, %v5553_v42  ;;  %v8140_v42 = vld [vmem:[%s11820_s0 + $0xe0] sm:$0xff] }
 0x17a   :  { %v5555_v16 = vpop.eup %5554  ;;  %v1522_v29 = vadd.f32 %v1458_v45, %v1201_v21  ;;  %v1660_v34 = vsel %vm1623_vm2, %v1585_v2, %v1586_v28  ;;  %v1981_v10 = vsel %vm1944_vm6, %v1906_v24, %v1907_v7  ;;  %vm2357_vm5 = vcmp.ge.s32.totalorder %v8063_v32, 5 }
 0x17b   :  { %5361 = vmatmul.msk.f32.gmra.mxu0 %vm4324_vm3, %v8093_v35  ;;  %v3683_v62 = vmul.f32 %v5555_v16, %v3254_v1  ;;  %vm3688_vm4 = vweird.f32 %v5555_v16  ;;  %v1779_v30 = vsel %vm1715_vm12, %v1660_v34, 0.0  ;;  %v2100_v55 = vsel %vm2036_vm9, %v1981_v10, 0.0 }
 0x17c   :  { %v1843_v2 = vadd.f32 %v1779_v30, %v1522_v29  ;;  %v2302_v24 = vsel %vm2265_vm8, %v2227_v25, %v2228_v11  ;;  %v2549_v56 = vrot.slane %v8048_v61, 2  ;;  %vm2678_vm7 = vcmp.ge.s32.totalorder %v8063_v32, 6  ;;  %vm8151_vm9 = vmor %vm3687_vm15, %vm3688_vm4 }
 0x17d   :  { %v3684_v51 = vsub.f32 1.0, %v3683_v62  ;;  %v2421_v60 = vsel %vm2357_vm5, %v2302_v24, 0.0  ;;  %v2870_v58 = vrot.slane %v8048_v61, 1  ;;  %vm2999_vm12 = vcmp.ge.s32.totalorder %v8063_v32, 7 }
 0x17e   :  { %v2164_v3 = vadd.f32 %v2100_v55, %v1843_v2  ;;  %v2623_v21 = vsel %vm2586_vm10, %v2548_v47, %v2549_v56  ;;  %v3191_v25 = vcvt.s32.f32 %v8063_v32  ;;  %v4571_v6 = vadd.f32 %v7766_v40, %v4570_v26 }
 0x17f   :  { %v3685_v45 = vmul.f32 %v5555_v16, %v3684_v51  ;;  %v2742_v29 = vsel %vm2678_vm7, %v2623_v21, 0.0  ;;  %v2944_v34 = vsel %vm2907_vm11, %v2869_v57, %v2870_v58  ;;  %v113_v47 = vadd.s32 224, %v5791_v5 }
 0x180   :  { %v3694_v62 = vor.u32 1.1754944e-38, %v3693_v27  ;;  %v2485_v30 = vadd.f32 %v2421_v60, %v2164_v3  ;;  %v3255_v55 = vadd.f32 1.0, %v3191_v25  ;;  %5556 = vtanh.f32 %v4571_v6 }
 0x181   :  { %v3686_v26 = vadd.f32 %v5555_v16, %v3685_v45  ;;  %v8155_v2 = vand.u32 7, %v113_v47  ;;  %v945_v24 = vrot.slane %v8140_v42, 7  ;;  %v1266_v51 = vrot.slane %v8140_v42, 6 }
 0x182   :  { %v2806_v57 = vadd.f32 %v2742_v29, %v2485_v30  ;;  %v3063_v21 = vsel %vm2999_vm12, %v2944_v34, 0.0  ;;  %5558 = vrcp.f32 %v3255_v55  ;;  %v3706_v8 = vand.u32 2147483647, %v3255_v55 }
 0x183   :  { %v3690_v1 = vsel %vm8151_vm9, %v5555_v16, %v3686_v26  ;;  %v1017_v27 = vsel %vm981_vm0, %v944_v15, %v945_v24  ;;  %vm1074_vm15 = vcmp.ge.s32.totalorder %v8155_v2, 1  ;;  %vm3702_vm5 = vweird.f32 %v3255_v55 }
 0x184   :  { %v3695_v60 = vsel %vm8095_vm14, %v3694_v62, %v3690_v1  ;;  %v3708_v32 = vand.u32 2147483648, %v3255_v55  ;;  %v1138_v3 = vsel %vm1074_vm15, %v1017_v27, 0.0  ;;  %v3127_v6 = vadd.f32 %v3063_v21, %v2806_v57  ;;  %v4573_v21 = vpop.f32.mrf.mxu0 }
 0x185   :  { %v3696_v25 = vmul.f32 %v3695_v60, %v3126_v20  ;;  %v1202_v16 = vadd.f32 %v1138_v3, %v8140_v42  ;;  %v1338_v45 = vsel %vm1302_vm1, %v1265_v14, %v1266_v51  ;;  %vm1395_vm4 = vcmp.ge.s32.totalorder %v8155_v2, 2 }
 0x186   :  { %v5557_v15 = vpop.eup %5556  ;;  %v1587_v17 = vrot.slane %v8140_v42, 5  ;;  %vm1716_vm14 = vcmp.ge.s32.totalorder %v8155_v2, 3  ;;  %v1908_v29 = vrot.slane %v8140_v42, 4  ;;  %vm8186_vm7 = vcmp.eq.f32.partialorder %v3706_v8, 8.507059e+37 }
 0x187   :  { %v8184_v20 = vadd.f32 %v3696_v25, %v7955_v22  ;;  %v1459_v47 = vsel %vm1395_vm4, %v1338_v45, 0.0  ;;  %vm2037_vm12 = vcmp.ge.s32.totalorder %v8155_v2, 4  ;;  %v2229_v14 = vrot.slane %v8140_v42, 3  ;;  %5412 = vmatmul.msk.f32.gmra.mxu1 %vm4802_vm13, %v5557_v15  ;;  %v8231_v15 = vld [vmem:[%s11820_s0 + $0xe8] sm:$0xff] }
 0x188   :  { %v5559_v10 = vpop.eup %5558  ;;  %v1523_v62 = vadd.f32 %v1459_v47, %v1202_v16  ;;  %v1659_v22 = vsel %vm1623_vm2, %v1586_v28, %v1587_v17  ;;  %v1980_v8 = vsel %vm1944_vm6, %v1907_v7, %v1908_v29  ;;  %vm2358_vm9 = vcmp.ge.s32.totalorder %v8155_v2, 5 }
 0x189   :  { %5362 = vmatmul.msk.f32.gmra.mxu0 %vm4324_vm3, %v8184_v20  ;;  %v3698_v30 = vmul.f32 %v5559_v10, %v3255_v55  ;;  %vm3703_vm15 = vweird.f32 %v5559_v10  ;;  %v1780_v26 = vsel %vm1716_vm14, %v1659_v22, 0.0  ;;  %v2101_v57 = vsel %vm2037_vm12, %v1980_v8, 0.0 }
 0x18a   :  { %v1844_v28 = vadd.f32 %v1780_v26, %v1523_v62  ;;  %v2301_v7 = vsel %vm2265_vm8, %v2228_v11, %v2229_v14  ;;  %v2550_v1 = vrot.slane %v8140_v42, 2  ;;  %vm2679_vm4 = vcmp.ge.s32.totalorder %v8155_v2, 6  ;;  %vm8242_vm12 = vmor %vm3702_vm5, %vm3703_vm15 }
 0x18b   :  { %v3699_v27 = vsub.f32 1.0, %v3698_v30  ;;  %v2422_v60 = vsel %vm2358_vm9, %v2301_v7, 0.0  ;;  %v11832_v3 = vrot.slane %v8140_v42, 1  ;;  %vm3000_vm14 = vcmp.ge.s32.totalorder %v8155_v2, 7 }
 0x18c   :  { %v2165_v25 = vadd.f32 %v2101_v57, %v1844_v28  ;;  %v2622_v16 = vsel %vm2586_vm10, %v2549_v56, %v2550_v1  ;;  %v3192_v11 = vcvt.s32.f32 %v8155_v2  ;;  %v4574_v45 = vadd.f32 %v7766_v40, %v4573_v21 }
 0x18d   :  { %v3700_v47 = vmul.f32 %v5559_v10, %v3699_v27  ;;  %v2743_v62 = vsel %vm2679_vm4, %v2622_v16, 0.0  ;;  %v2943_v22 = vsel %vm2907_vm11, %v2870_v58, %v11832_v3  ;;  %v114_v56 = vadd.s32 232, %v5791_v5 }
 0x18e   :  { %v3709_v30 = vor.u32 1.1754944e-38, %v3708_v32  ;;  %v2486_v26 = vadd.f32 %v2422_v60, %v2165_v25  ;;  %v3256_v57 = vadd.f32 1.0, %v3192_v11  ;;  %5560 = vtanh.f32 %v4574_v45 }
 0x18f   :  { %v3701_v21 = vadd.f32 %v5559_v10, %v3700_v47  ;;  %v8246_v28 = vand.u32 7, %v114_v56  ;;  %v946_v7 = vrot.slane %v8231_v15, 7  ;;  %v1267_v27 = vrot.slane %v8231_v15, 6 }
 0x190   :  { %v2807_v58 = vadd.f32 %v2743_v62, %v2486_v26  ;;  %v3064_v16 = vsel %vm3000_vm14, %v2943_v22, 0.0  ;;  %5562 = vrcp.f32 %v3256_v57  ;;  %v3721_v3 = vand.u32 2147483647, %v3256_v57 }
 0x191   :  { %v3705_v55 = vsel %vm8242_vm12, %v5559_v10, %v3701_v21  ;;  %v1016_v32 = vsel %vm981_vm0, %v945_v24, %v946_v7  ;;  %vm1075_vm5 = vcmp.ge.s32.totalorder %v8246_v28, 1  ;;  %vm3717_vm9 = vweird.f32 %v3256_v57 }
 0x192   :  { %v3710_v60 = vsel %vm8186_vm7, %v3709_v30, %v3705_v55  ;;  %v3723_v2 = vand.u32 2147483648, %v3256_v57  ;;  %v1139_v25 = vsel %vm1075_vm5, %v1016_v32, 0.0  ;;  %v3128_v45 = vadd.f32 %v3064_v16, %v2807_v58  ;;  %v4576_v16 = vpop.f32.mrf.mxu0 }
 0x193   :  { %v3711_v11 = vmul.f32 %v3710_v60, %v3127_v6  ;;  %v1203_v10 = vadd.f32 %v1139_v25, %v8231_v15  ;;  %v1337_v47 = vsel %vm1302_vm1, %v1266_v51, %v1267_v27  ;;  %vm1396_vm15 = vcmp.ge.s32.totalorder %v8246_v28, 2 }
 0x194   :  { %v5561_v24 = vpop.eup %5560  ;;  %v1588_v34 = vrot.slane %v8231_v15, 5  ;;  %vm1717_vm7 = vcmp.ge.s32.totalorder %v8246_v28, 3  ;;  %v1909_v62 = vrot.slane %v8231_v15, 4  ;;  %vm8277_vm4 = vcmp.eq.f32.partialorder %v3721_v3, 8.507059e+37 }
 0x195   :  { %v8275_v6 = vadd.f32 %v3711_v11, %v8048_v61  ;;  %v1460_v56 = vsel %vm1396_vm15, %v1337_v47, 0.0  ;;  %vm2038_vm14 = vcmp.ge.s32.totalorder %v8246_v28, 4  ;;  %v2230_v51 = vrot.slane %v8231_v15, 3  ;;  %5413 = vmatmul.msk.f32.gmra.mxu1 %vm4802_vm13, %v5561_v24  ;;  %v8322_v24 = vld [vmem:[%s11820_s0 + $0xf0] sm:$0xff] }
 0x196   :  { %v5563_v8 = vpop.eup %5562  ;;  %v1524_v30 = vadd.f32 %v1460_v56, %v1203_v10  ;;  %v1658_v61 = vsel %vm1623_vm2, %v1587_v17, %v1588_v34  ;;  %v1979_v3 = vsel %vm1944_vm6, %v1908_v29, %v1909_v62  ;;  %vm2359_vm12 = vcmp.ge.s32.totalorder %v8246_v28, 5 }
 0x197   :  { %5363 = vmatmul.msk.f32.gmra.mxu0 %vm4324_vm3, %v8275_v6  ;;  %v3713_v26 = vmul.f32 %v5563_v8, %v3256_v57  ;;  %vm3718_vm5 = vweird.f32 %v5563_v8  ;;  %v1781_v21 = vsel %vm1717_vm7, %v1658_v61, 0.0  ;;  %v2102_v58 = vsel %vm2038_vm14, %v1979_v3, 0.0 }
 0x198   :  { %v1845_v17 = vadd.f32 %v1781_v21, %v1524_v30  ;;  %v2300_v29 = vsel %vm2265_vm8, %v2229_v14, %v2230_v51  ;;  %v11834_v55 = vrot.slane %v8231_v15, 2  ;;  %vm2680_vm15 = vcmp.ge.s32.totalorder %v8246_v28, 6  ;;  %vm8333_vm14 = vmor %vm3717_vm9, %vm3718_vm5 }
 0x199   :  { %v3714_v32 = vsub.f32 1.0, %v3713_v26  ;;  %v2423_v60 = vsel %vm2359_vm12, %v2300_v29, 0.0  ;;  %v11833_v25 = vrot.slane %v8231_v15, 1  ;;  %vm3001_vm7 = vcmp.ge.s32.totalorder %v8246_v28, 7 }
 0x19a   :  { %v2166_v11 = vadd.f32 %v2102_v58, %v1845_v17  ;;  %v2621_v10 = vsel %vm2586_vm10, %v2550_v1, %v11834_v55  ;;  %v3193_v14 = vcvt.s32.f32 %v8246_v28  ;;  %v4577_v47 = vadd.f32 %v7766_v40, %v4576_v16 }
 0x19b   :  { %v3715_v56 = vmul.f32 %v5563_v8, %v3714_v32  ;;  %v2744_v30 = vsel %vm2680_vm15, %v2621_v10, 0.0  ;;  %v12107_v61 = vrot.slane %v8140_v42, 1  ;;  %v115_v1 = vadd.s32 240, %v5791_v5 }
 0x19c   :  { %v3724_v21 = vor.u32 1.1754944e-38, %v3723_v2  ;;  %v2487_v58 = vadd.f32 %v2423_v60, %v2166_v11  ;;  %v3257_v16 = vadd.f32 1.0, %v3193_v14  ;;  %5564 = vtanh.f32 %v4577_v47 }
 0x19d   :  { %v2942_v3 = vsel %vm2907_vm11, %v12107_v61, %v11833_v25  ;;  %v3716_v17 = vadd.f32 %v5563_v8, %v3715_v56  ;;  %v8337_v29 = vand.u32 7, %v115_v1  ;;  %v947_v32 = vrot.slane %v8322_v24, 7 }
 0x19e   :  { %v1268_v10 = vrot.slane %v8322_v24, 6  ;;  %v2808_v61 = vadd.f32 %v2744_v30, %v2487_v58  ;;  %v3065_v25 = vsel %vm3001_vm7, %v2942_v3, 0.0  ;;  %5566 = vrcp.f32 %v3257_v16 }
 0x19f   :  { %v3720_v57 = vsel %vm8333_vm14, %v5563_v8, %v3716_v17  ;;  %v3736_v55 = vand.u32 2147483647, %v3257_v16  ;;  %v1015_v2 = vsel %vm981_vm0, %v946_v7, %v947_v32  ;;  %vm1076_vm9 = vcmp.ge.s32.totalorder %v8337_v29, 1 }
 0x1a0   :  { %v3725_v60 = vsel %vm8277_vm4, %v3724_v21, %v3720_v57  ;;  %vm3732_vm12 = vweird.f32 %v3257_v16  ;;  %v3738_v28 = vand.u32 2147483648, %v3257_v16  ;;  %v1140_v11 = vsel %vm1076_vm9, %v1015_v2, 0.0 }
 0x1a1   :  { %v3726_v14 = vmul.f32 %v3725_v60, %v3128_v45  ;;  %v3129_v47 = vadd.f32 %v3065_v25, %v2808_v61  ;;  %v1204_v8 = vadd.f32 %v1140_v11, %v8322_v24  ;;  %v1336_v56 = vsel %vm1302_vm1, %v1267_v27, %v1268_v10  ;;  %v4579_v61 = vpop.f32.mrf.mxu0 }
 0x1a2   :  { %v5565_v7 = vpop.eup %5564  ;;  %vm1397_vm5 = vcmp.ge.s32.totalorder %v8337_v29, 2  ;;  %v1589_v22 = vrot.slane %v8322_v24, 5  ;;  %vm1718_vm4 = vcmp.ge.s32.totalorder %v8337_v29, 3  ;;  %v1910_v30 = vrot.slane %v8322_v24, 4 }
 0x1a3   :  { %v8366_v45 = vadd.f32 %v3726_v14, %v8140_v42  ;;  %vm8368_vm15 = vcmp.eq.f32.partialorder %v3736_v55, 8.507059e+37  ;;  %v1461_v3 = vsel %vm1397_vm5, %v1336_v56, 0.0  ;;  %vm2039_vm7 = vcmp.ge.s32.totalorder %v8337_v29, 4  ;;  %5414 = vmatmul.msk.f32.gmra.mxu1 %vm4802_vm13, %v5565_v7 }
 0x1a4   :  { %v11837_v27 = vrot.slane %v8322_v24, 3  ;;  %v5567_v1 = vpop.eup %5566  ;;  %v1525_v26 = vadd.f32 %v1461_v3, %v1204_v8  ;;  %v1657_v42 = vsel %vm1623_vm2, %v1588_v34, %v1589_v22  ;;  %v1978_v55 = vsel %vm1944_vm6, %v1909_v62, %v1910_v30  ;;  %v8413_v3 = vld [vmem:[%s11820_s0 + $0xf8] sm:$0xff] }
 0x1a5   :  { %vm2360_vm14 = vcmp.ge.s32.totalorder %v8337_v29, 5  ;;  %5364 = vmatmul.msk.f32.gmra.mxu0 %vm4324_vm3, %v8366_v45  ;;  %v3728_v21 = vmul.f32 %v5567_v1, %v3257_v16  ;;  %vm3733_vm9 = vweird.f32 %v5567_v1  ;;  %v1782_v58 = vsel %vm1718_vm4, %v1657_v42, 0.0 }
 0x1a6   :  { %v2103_v17 = vsel %vm2039_vm7, %v1978_v55, 0.0  ;;  %v1846_v34 = vadd.f32 %v1782_v58, %v1525_v26  ;;  %v2299_v62 = vsel %vm2265_vm8, %v2230_v51, %v11837_v27  ;;  %v11835_v57 = vrot.slane %v8322_v24, 2  ;;  %vm8424_vm7 = vmor %vm3732_vm12, %vm3733_vm9 }
 0x1a7   :  { %vm2681_vm5 = vcmp.ge.s32.totalorder %v8337_v29, 6  ;;  %v3729_v2 = vsub.f32 1.0, %v3728_v21  ;;  %v2424_v60 = vsel %vm2360_vm14, %v2299_v62, 0.0  ;;  %v11836_v11 = vrot.slane %v8322_v24, 1 }
 0x1a8   :  { %vm3002_vm4 = vcmp.ge.s32.totalorder %v8337_v29, 7  ;;  %v2167_v14 = vadd.f32 %v2103_v17, %v1846_v34  ;;  %v12112_v8 = vrot.slane %v8231_v15, 2  ;;  %v3194_v51 = vcvt.s32.f32 %v8337_v29 }
 0x1a9   :  { %v4580_v7 = vadd.f32 %v7766_v40, %v4579_v61  ;;  %v3730_v26 = vmul.f32 %v5567_v1, %v3729_v2  ;;  %v12113_v55 = vrot.slane %v8231_v15, 1  ;;  %v116_v58 = vadd.s32 248, %v5791_v5 }
 0x1aa   :  { %v2620_v56 = vsel %vm2586_vm10, %v12112_v8, %v11835_v57  ;;  %v3739_v61 = vor.u32 1.1754944e-38, %v3738_v28  ;;  %v2488_v34 = vadd.f32 %v2424_v60, %v2167_v14  ;;  %v3258_v62 = vadd.f32 1.0, %v3194_v51 }
 0x1ab   :  { %v2745_v42 = vsel %vm2681_vm5, %v2620_v56, 0.0  ;;  %v2941_v21 = vsel %vm2907_vm11, %v12113_v55, %v11836_v11  ;;  %5568 = vtanh.f32 %v4580_v7  ;;  %v3731_v2 = vadd.f32 %v5567_v1, %v3730_v26 }
 0x1ac   :  { %v8428_v8 = vand.u32 7, %v116_v58  ;;  %v948_v56 = vrot.slane %v8413_v3, 7  ;;  %v1269_v57 = vrot.slane %v8413_v3, 6  ;;  %v2809_v55 = vadd.f32 %v2745_v42, %v2488_v34 }
 0x1ad   :  { %v3066_v11 = vsel %vm3002_vm4, %v2941_v21, 0.0  ;;  %5570 = vrcp.f32 %v3258_v62  ;;  %v3735_v16 = vsel %vm8424_vm7, %v5567_v1, %v3731_v2  ;;  %v3751_v27 = vand.u32 2147483647, %v3258_v62 }
 0x1ae   :  { %v1014_v28 = vsel %vm981_vm0, %v947_v32, %v948_v56  ;;  %vm1077_vm12 = vcmp.ge.s32.totalorder %v8428_v8, 1  ;;  %v3740_v60 = vsel %vm8368_vm15, %v3739_v61, %v3735_v16  ;;  %vm3747_vm14 = vweird.f32 %v3258_v62 }
 0x1af   :  { %v3753_v29 = vand.u32 2147483648, %v3258_v62  ;;  %v1141_v14 = vsel %vm1077_vm12, %v1014_v28, 0.0  ;;  %v3741_v51 = vmul.f32 %v3740_v60, %v3129_v47  ;;  %v3130_v7 = vadd.f32 %v3066_v11, %v2809_v55  ;;  %v4582_v55 = vpop.f32.mrf.mxu0 }
 0x1b0   :  { %v1205_v1 = vadd.f32 %v1141_v14, %v8413_v3  ;;  %v1335_v26 = vsel %vm1302_vm1, %v1268_v10, %v1269_v57  ;;  %vm1398_vm9 = vcmp.ge.s32.totalorder %v8428_v8, 2  ;;  %v1590_v25 = vrot.slane %v8413_v3, 5 }
 0x1b1   :  { %v5569_v32 = vpop.eup %5568  ;;  %vm1719_vm15 = vcmp.ge.s32.totalorder %v8428_v8, 3  ;;  %v1911_v42 = vrot.slane %v8413_v3, 4  ;;  %v8457_v47 = vadd.f32 %v3741_v51, %v8231_v15  ;;  %vm8459_vm5 = vcmp.eq.f32.partialorder %v3751_v27, 8.507059e+37 }
 0x1b2   :  { %v1462_v21 = vsel %vm1398_vm9, %v1335_v26, 0.0  ;;  %vm2040_vm4 = vcmp.ge.s32.totalorder %v8428_v8, 4  ;;  %v11839_v10 = vrot.slane %v8413_v3, 3  ;;  %5415 = vmatmul.msk.f32.gmra.mxu1 %vm4802_vm13, %v5569_v32  ;;  %v1656_v15 = vsel %vm1623_vm2, %v1589_v22, %v1590_v25 }
 0x1b3   :  { %v5571_v58 = vpop.eup %5570  ;;  %v1526_v17 = vadd.f32 %v1462_v21, %v1205_v1  ;;  %v1977_v27 = vsel %vm1944_vm6, %v1910_v30, %v1911_v42  ;;  %vm2361_vm7 = vcmp.ge.s32.totalorder %v8428_v8, 5  ;;  %5365 = vmatmul.msk.f32.gmra.mxu0 %vm4324_vm3, %v8457_v47  ;;  %v1783_v34 = vsel %vm1719_vm15, %v1656_v15, 0.0  ;;  %v8504_v15 = vld [vmem:[%s11820_s0 + $0x100] sm:$0xff] }
 0x1b4   :  { %v3743_v61 = vmul.f32 %v5571_v58, %v3258_v62  ;;  %vm3748_vm12 = vweird.f32 %v5571_v58  ;;  %v2104_v2 = vsel %vm2040_vm4, %v1977_v27, 0.0  ;;  %v12118_v16 = vrot.slane %v8322_v24, 3 }
 0x1b5   :  { %v1847_v22 = vadd.f32 %v1783_v34, %v1526_v17  ;;  %v11838_v28 = vrot.slane %v8413_v3, 2  ;;  %vm2682_vm9 = vcmp.ge.s32.totalorder %v8428_v8, 6  ;;  %v11840_v51 = vrot.slane %v8413_v3, 1  ;;  %vm8515_vm4 = vmor %vm3747_vm14, %vm3748_vm12 }
 0x1b6   :  { %v2298_v30 = vsel %vm2265_vm8, %v12118_v16, %v11839_v10  ;;  %v3744_v60 = vsub.f32 1.0, %v3743_v61  ;;  %vm3003_vm15 = vcmp.ge.s32.totalorder %v8428_v8, 7  ;;  %v12119_v26 = vrot.slane %v8322_v24, 2 }
 0x1b7   :  { %v2425_v14 = vsel %vm2361_vm7, %v2298_v30, 0.0  ;;  %v2168_v1 = vadd.f32 %v2104_v2, %v1847_v22  ;;  %v3195_v21 = vcvt.s32.f32 %v8428_v8  ;;  %v4583_v17 = vadd.f32 %v7766_v40, %v4582_v55 }
 0x1b8   :  { %v2619_v32 = vsel %vm2586_vm10, %v12119_v26, %v11838_v28  ;;  %v3745_v27 = vmul.f32 %v5571_v58, %v3744_v60  ;;  %v12120_v34 = vrot.slane %v8322_v24, 1  ;;  %v117_v22 = vadd.s32 256, %v5791_v5 }
 0x1b9   :  { %v2746_v61 = vsel %vm2682_vm9, %v2619_v32, 0.0  ;;  %v3754_v55 = vor.u32 1.1754944e-38, %v3753_v29  ;;  %v2489_v16 = vadd.f32 %v2425_v14, %v2168_v1  ;;  %v3259_v30 = vadd.f32 1.0, %v3195_v21 }
 0x1ba   :  { %v2940_v2 = vsel %vm2907_vm11, %v12120_v34, %v11840_v51  ;;  %5572 = vtanh.f32 %v4583_v17  ;;  %v3746_v60 = vadd.f32 %v5571_v58, %v3745_v27  ;;  %v377_v26 = vand.u32 7, %v117_v22 }
 0x1bb   :  { %v949_v32 = vrot.slane %v8504_v15, 7  ;;  %v1270_v28 = vrot.slane %v8504_v15, 6  ;;  %v2810_v10 = vadd.f32 %v2746_v61, %v2489_v16  ;;  %v3067_v34 = vsel %vm3003_vm15, %v2940_v2, 0.0 }
 0x1bc   :  { %5574 = vrcp.f32 %v3259_v30  ;;  %v3750_v62 = vsel %vm8515_vm4, %v5571_v58, %v3746_v60  ;;  %v3766_v51 = vand.u32 2147483647, %v3259_v30  ;;  %vm1078_vm14 = vcmp.ge.s32.totalorder %v377_v26, 1 }
 0x1bd   :  { %v1013_v29 = vsel %vm981_vm0, %v948_v56, %v949_v32  ;;  %v3755_v14 = vsel %vm8459_vm5, %v3754_v55, %v3750_v62  ;;  %vm3762_vm7 = vweird.f32 %v3259_v30  ;;  %v3768_v1 = vand.u32 2147483648, %v3259_v30 }
 0x1be   :  { %v1142_v8 = vsel %vm1078_vm14, %v1013_v29, 0.0  ;;  %v3756_v21 = vmul.f32 %v3755_v14, %v3130_v7  ;;  %v3131_v17 = vadd.f32 %v3067_v34, %v2810_v10  ;;  %v1334_v58 = vsel %vm1302_vm1, %v1269_v57, %v1270_v28 }
 0x1bf   :  { %v1206_v27 = vadd.f32 %v1142_v8, %v8504_v15  ;;  %vm1399_vm12 = vcmp.ge.s32.totalorder %v377_v26, 2  ;;  %v1591_v56 = vrot.slane %v8504_v15, 5  ;;  %vm1720_vm9 = vcmp.ge.s32.totalorder %v377_v26, 3 }
 0x1c0   :  { %v5573_v61 = vpop.eup %5572  ;;  %v1912_v11 = vrot.slane %v8504_v15, 4  ;;  %v8543_v2 = vadd.f32 %v3756_v21, %v8322_v24  ;;  %vm8545_vm5 = vcmp.eq.f32.partialorder %v3766_v51, 8.507059e+37  ;;  %v1463_v10 = vsel %vm1399_vm12, %v1334_v58, 0.0 }
 0x1c1   :  { %vm2041_vm15 = vcmp.ge.s32.totalorder %v377_v26, 4  ;;  %v11843_v22 = vrot.slane %v8504_v15, 3  ;;  %5416 = vmatmul.msk.f32.gmra.mxu1 %vm4802_vm13, %v5573_v61  ;;  %v1527_v40 = vadd.f32 %v1463_v10, %v1206_v27  ;;  %v1655_v24 = vsel %vm1623_vm2, %v1590_v25, %v1591_v56 }
 0x1c2   :  { %v5575_v57 = vpop.eup %5574  ;;  %v1976_v51 = vsel %vm1944_vm6, %v1911_v42, %v1912_v11  ;;  %vm2362_vm4 = vcmp.ge.s32.totalorder %v377_v26, 5  ;;  %5366 = vmatmul.msk.f32.gmra.mxu0 %vm4324_vm3, %v8543_v2  ;;  %v1784_v16 = vsel %vm1720_vm9, %v1655_v24, 0.0  ;;  %v12125_v25 = vrot.slane %v8413_v3, 3  ;;  %v8576_v42 = vld [vmem:[%s11820_s0 + $0x108] sm:$0xff] }
 0x1c3   :  { %v3758_v55 = vmul.f32 %v5575_v57, %v3259_v30  ;;  %vm3763_vm14 = vweird.f32 %v5575_v57  ;;  %v2105_v60 = vsel %vm2041_vm15, %v1976_v51, 0.0  ;;  %v1848_v34 = vadd.f32 %v1784_v16, %v1527_v40 }
 0x1c4   :  { %v2297_v62 = vsel %vm2265_vm8, %v12125_v25, %v11843_v22  ;;  %v11842_v29 = vrot.slane %v8504_v15, 2  ;;  %vm2683_vm12 = vcmp.ge.s32.totalorder %v377_v26, 6  ;;  %v11841_v21 = vrot.slane %v8504_v15, 1  ;;  %vm8595_vm15 = vmor %vm3762_vm7, %vm3763_vm14 }
 0x1c5   :  { %v3759_v14 = vsub.f32 1.0, %v3758_v55  ;;  %v2426_v8 = vsel %vm2362_vm4, %v2297_v62, 0.0  ;;  %vm3004_vm9 = vcmp.ge.s32.totalorder %v377_v26, 7  ;;  %v2169_v27 = vadd.f32 %v2105_v60, %v1848_v34 }
 0x1c6   :  { %v12126_v58 = vrot.slane %v8413_v3, 2  ;;  %v3196_v10 = vcvt.s32.f32 %v377_v26  ;;  %v118_v40 = vadd.s32 264, %v5791_v5  ;;  %v12127_v55 = vrot.slane %v8413_v3, 1 }
 0x1c7   :  { %v3760_v24 = vmul.f32 %v5575_v57, %v3759_v14  ;;  %v950_v60 = vrot.slane %v8576_v42, 7  ;;  %v3769_v26 = vor.u32 1.1754944e-38, %v3768_v1  ;;  %v2490_v25 = vadd.f32 %v2426_v8, %v2169_v27 }
 0x1c8   :  { %v2618_v61 = vsel %vm2586_vm10, %v12126_v58, %v11842_v29  ;;  %v2939_v16 = vsel %vm2907_vm11, %v12127_v55, %v11841_v21  ;;  %v3260_v14 = vadd.f32 1.0, %v3196_v10  ;;  %v1271_v21 = vrot.slane %v8576_v42, 6 }
 0x1c9   :  { %v2747_v51 = vsel %vm2683_vm12, %v2618_v61, 0.0  ;;  %v3068_v62 = vsel %vm3004_vm9, %v2939_v16, 0.0  ;;  %v3761_v58 = vadd.f32 %v5575_v57, %v3760_v24  ;;  %v384_v61 = vand.u32 7, %v118_v40 }
 0x1ca   :  { %v1012_v55 = vsel %vm981_vm0, %v949_v32, %v950_v60  ;;  %v2811_v30 = vadd.f32 %v2747_v51, %v2490_v25  ;;  %5576 = vrcp.f32 %v3260_v14  ;;  %v3781_v29 = vand.u32 2147483647, %v3260_v14 }
 0x1cb   :  { %v1592_v22 = vrot.slane %v8576_v42, 5  ;;  %v3765_v1 = vsel %vm8595_vm15, %v5575_v57, %v3761_v58  ;;  %v3783_v8 = vand.u32 2147483648, %v3260_v14  ;;  %vm1079_vm7 = vcmp.ge.s32.totalorder %v384_v61, 1 }
 0x1cc   :  { %v1333_v27 = vsel %vm1302_vm1, %v1270_v28, %v1271_v21  ;;  %v3770_v32 = vsel %vm8545_vm5, %v3769_v26, %v3765_v1  ;;  %v8617_v10 = vadd.f32 %v3068_v62, %v2811_v30  ;;  %vm3777_vm4 = vweird.f32 %v3260_v14 }
 0x1cd   :  { %v1143_v40 = vsel %vm1079_vm7, %v1012_v55, 0.0  ;;  %v3771_v24 = vmul.f32 %v3770_v32, %v3131_v17  ;;  %v3784_v51 = vor.u32 1.1754944e-38, %v3783_v8  ;;  %vm1400_vm14 = vcmp.ge.s32.totalorder %v384_v61, 2  ;;  %v5012_v8 = vpop.f32.mrf.mxu1 }
 0x1ce   :  { %v1207_v57 = vadd.f32 %v1143_v40, %v8576_v42  ;;  %v1464_v16 = vsel %vm1400_vm14, %v1333_v27, 0.0  ;;  %v1654_v28 = vsel %vm1623_vm2, %v1591_v56, %v1592_v22  ;;  %vm1721_vm12 = vcmp.ge.s32.totalorder %v384_v61, 3 }
 0x1cf   :  { %v11846_v7 = vrot.slane %v8576_v42, 4  ;;  %v8628_v34 = vadd.f32 %v3771_v24, %v8413_v3  ;;  %vm8630_vm5 = vcmp.eq.f32.partialorder %v3781_v29, 8.507059e+37  ;;  %v1785_v25 = vsel %vm1721_vm12, %v1654_v28, 0.0  ;;  %v8645_v29 = vld [vmem:[%s11823_s4] ss:$0 sm:$0xff] }
 0x1d0   :  { %v1528_v26 = vadd.f32 %v1464_v16, %v1207_v57  ;;  %vm2042_vm9 = vcmp.ge.s32.totalorder %v384_v61, 4  ;;  %v5577_v62 = vpop.eup %5576  ;;  %v11845_v58 = vrot.slane %v8576_v42, 3  ;;  %vm2363_vm15 = vcmp.ge.s32.totalorder %v384_v61, 5  ;;  %v4585_v57 = vpop.f32.mrf.mxu0 }
 0x1d1   :  { %v1975_v56 = vsel %vm1944_vm6, %v1912_v11, %v11846_v7  ;;  %v11844_v3 = vrot.slane %v8576_v42, 2  ;;  %5367 = vmatmul.msk.f32.gmra.mxu0 %vm4324_vm3, %v8628_v34  ;;  %v3773_v55 = vmul.f32 %v5577_v62, %v3260_v14  ;;  %vm3778_vm7 = vweird.f32 %v5577_v62 }
 0x1d2   :  { %v1849_v30 = vadd.f32 %v1785_v25, %v1528_v26  ;;  %v2106_v1 = vsel %vm2042_vm9, %v1975_v56, 0.0  ;;  %v12132_v11 = vrot.slane %v8504_v15, 3  ;;  %v12133_v32 = vrot.slane %v8504_v15, 2  ;;  %v8666_v56 = vld [vmem:[%s11820_s0 + $0x110] sm:$0xff]  ;;  %vm8683_vm9 = vmor %vm3777_vm4, %vm3778_vm7 }
 0x1d3   :  { %vm2684_vm14 = vcmp.ge.s32.totalorder %v384_v61, 6  ;;  %v2876_v24 = vrot.slane %v8576_v42, 1  ;;  %v3774_v16 = vsub.f32 1.0, %v3773_v55  ;;  %vm3005_vm12 = vcmp.ge.s32.totalorder %v384_v61, 7 }
 0x1d4   :  { %v2296_v27 = vsel %vm2265_vm8, %v12132_v11, %v11845_v58  ;;  %v2617_v40 = vsel %vm2586_vm10, %v12133_v32, %v11844_v3  ;;  %v2170_v28 = vadd.f32 %v2106_v1, %v1849_v30  ;;  %v12134_v11 = vrot.slane %v8504_v15, 1 }
 0x1d5   :  { %v2427_v26 = vsel %vm2363_vm15, %v2296_v27, 0.0  ;;  %v2748_v25 = vsel %vm2684_vm14, %v2617_v40, 0.0  ;;  %v3197_v3 = vcvt.s32.f32 %v384_v61  ;;  %v5013_v55 = vadd.f32 %v8645_v29, %v5012_v8  ;;  %v8678_v40 = vld [vmem:[%s11821_s2] ss:$0 sm:$0xff] }
 0x1d6   :  { %v2938_v32 = vsel %vm2907_vm11, %v12134_v11, %v2876_v24  ;;  %v3775_v30 = vmul.f32 %v5577_v62, %v3774_v16  ;;  %v2491_v1 = vadd.f32 %v2427_v26, %v2170_v28  ;;  %v4586_v58 = vadd.f32 %v8678_v40, %v4585_v57 }
 0x1d7   :  { %v3069_v27 = vsel %vm3005_vm12, %v2938_v32, 0.0  ;;  %v8687_v11 = vadd.f32 1.0, %v3197_v3  ;;  %v5204_v61 = vadd.f32 %v5013_v55, %v5977_v59  ;;  %v119_v8 = vadd.s32 272, %v5791_v5 }
 0x1d8   :  { %v951_v16 = vrot.slane %v8666_v56, 7  ;;  %v3776_v28 = vadd.f32 %v5577_v62, %v3775_v30  ;;  %v2812_v26 = vadd.f32 %v2748_v25, %v2491_v1  ;;  %5578 = vtanh.f32 %v4586_v58 }
 0x1d9   :  { %v11851_v32 = vrot.slane %v8666_v56, 6  ;;  %5580 = vrcp.f32 %v8687_v11  ;;  %5268 = vst.msk [vmem:[%s11824_s5] sm:$0xff] %vm4324_vm3, %v5204_v61  ;;  %vm3792_vm4 = vweird.f32 %v8687_v11  ;;  %v3796_v59 = vand.u32 2147483647, %v8687_v11 }
 0x1da   :  { %v3780_v14 = vsel %vm8683_vm9, %v5577_v62, %v3776_v28  ;;  %v391_v3 = vand.u32 7, %v119_v8  ;;  %v1011_v58 = vsel %vm981_vm0, %v950_v60, %v951_v16  ;;  %v8710_v25 = vadd.f32 %v3069_v27, %v2812_v26 }
 0x1db   :  { %v3785_v57 = vsel %vm8630_vm5, %v3784_v51, %v3780_v14  ;;  %v3798_v7 = vand.u32 2147483648, %v8687_v11  ;;  %v1332_v62 = vsel %vm1302_vm1, %v1271_v21, %v11851_v32  ;;  %v11848_v60 = vrot.slane %v8666_v56, 5 }
 0x1dc   :  { %v3786_v55 = vmul.f32 %v3785_v57, %v8617_v10  ;;  %vm1080_vm15 = vcmp.ge.s32.totalorder %v391_v3, 1  ;;  %vm1401_vm7 = vcmp.ge.s32.totalorder %v391_v3, 2  ;;  %vm1722_vm5 = vcmp.ge.s32.totalorder %v391_v3, 3  ;;  %v5015_v57 = vpop.f32.mrf.mxu1 }
 0x1dd   :  { %v1144_v30 = vsel %vm1080_vm15, %v1011_v58, 0.0  ;;  %v1465_v17 = vsel %vm1401_vm7, %v1332_v62, 0.0  ;;  %v11847_v51 = vrot.slane %v8666_v56, 4  ;;  %v1653_v21 = vsel %vm1623_vm2, %v1592_v22, %v11848_v60  ;;  %v8759_v60 = vld [vmem:[%s11820_s0 + $0x118] sm:$0xff] }
 0x1de   :  { %v5579_v1 = vpop.eup %5578  ;;  %v8723_v27 = vadd.f32 %v3786_v55, %v8504_v15  ;;  %v1208_v61 = vadd.f32 %v1144_v30, %v8666_v56  ;;  %vm2043_vm14 = vcmp.ge.s32.totalorder %v391_v3, 4  ;;  %vm8732_vm12 = vcmp.eq.f32.partialorder %v3796_v59, 8.507059e+37 }
 0x1df   :  { %v5581_v10 = vpop.eup %5580  ;;  %v1786_v28 = vsel %vm1722_vm5, %v1653_v21, 0.0  ;;  %v12139_v15 = vrot.slane %v8576_v42, 4  ;;  %v11849_v14 = vrot.slane %v8666_v56, 3  ;;  %5417 = vmatmul.msk.f32.gmra.mxu1 %vm4802_vm13, %v5579_v1  ;;  %v3799_v59 = vor.u32 1.1754944e-38, %v3798_v7  ;;  %v4588_v7 = vpop.f32.mrf.mxu0 }
 0x1e0   :  { %5368 = vmatmul.msk.f32.gmra.mxu0 %vm4324_vm3, %v8723_v27  ;;  %v3788_v22 = vmul.f32 %v5581_v10, %v8687_v11  ;;  %v1529_v58 = vadd.f32 %v1465_v17, %v1208_v61  ;;  %vm2364_vm9 = vcmp.ge.s32.totalorder %v391_v3, 5  ;;  %v12140_v55 = vrot.slane %v8576_v42, 3 }
 0x1e1   :  { %v1974_v26 = vsel %vm1944_vm6, %v12139_v15, %v11847_v51  ;;  %v11850_v21 = vrot.slane %v8666_v56, 2  ;;  %v11852_v1 = vrot.slane %v8666_v56, 1  ;;  %vm3793_vm15 = vweird.f32 %v5581_v10 }
 0x1e2   :  { %v2107_v62 = vsel %vm2043_vm14, %v1974_v26, 0.0  ;;  %v2295_v30 = vsel %vm2265_vm8, %v12140_v55, %v11849_v14  ;;  %v3789_v15 = vsub.f32 1.0, %v3788_v22  ;;  %v1850_v51 = vadd.f32 %v1786_v28, %v1529_v58  ;;  %vm8775_vm14 = vmor %vm3792_vm4, %vm3793_vm15 }
 0x1e3   :  { %vm2685_vm7 = vcmp.ge.s32.totalorder %v391_v3, 6  ;;  %v2428_v17 = vsel %vm2364_vm9, %v2295_v30, 0.0  ;;  %vm3006_vm5 = vcmp.ge.s32.totalorder %v391_v3, 7  ;;  %v3198_v61 = vcvt.s32.f32 %v391_v3 }
 0x1e4   :  { %v5016_v26 = vadd.f32 %v8645_v29, %v5015_v57  ;;  %v3790_v55 = vmul.f32 %v5581_v10, %v3789_v15  ;;  %v2171_v14 = vadd.f32 %v2107_v62, %v1850_v51  ;;  %v12141_v22 = vrot.slane %v8576_v42, 2 }
 0x1e5   :  { %v2937_v58 = vsel %vm2907_vm11, %v2876_v24, %v11852_v1  ;;  %v8779_v51 = vadd.f32 1.0, %v3198_v61  ;;  %v4589_v30 = vadd.f32 %v8678_v40, %v4588_v7  ;;  %v120_v15 = vadd.s32 280, %v5791_v5 }
 0x1e6   :  { %v2616_v28 = vsel %vm2586_vm10, %v12141_v22, %v11850_v21  ;;  %v5205_v62 = vadd.f32 %v5016_v26, %v6042_v52  ;;  %v3791_v22 = vadd.f32 %v5581_v10, %v3790_v55  ;;  %v2492_v21 = vadd.f32 %v2428_v17, %v2171_v14 }
 0x1e7   :  { %v11857_v32 = vrot.slane %v8759_v60, 7  ;;  %v11856_v24 = vrot.slane %v8759_v60, 6  ;;  %v2749_v11 = vsel %vm2685_vm7, %v2616_v28, 0.0  ;;  %v3070_v1 = vsel %vm3006_vm5, %v2937_v58, 0.0 }
 0x1e8   :  { %5582 = vrcp.f32 %v8779_v51  ;;  %5269 = vst.msk [vmem:[%s11824_s5 + $0x8] sm:$0xff] %vm4324_vm3, %v5205_v62  ;;  %v3795_v52 = vsel %vm8775_vm14, %v5581_v10, %v3791_v22  ;;  %v3811_v14 = vand.u32 2147483647, %v8779_v51  ;;  %v398_v7 = vand.u32 7, %v120_v15 }
 0x1e9   :  { %5584 = vtanh.f32 %v4589_v30  ;;  %v3800_v17 = vsel %vm8732_vm12, %v3799_v59, %v3795_v52  ;;  %vm3807_vm4 = vweird.f32 %v8779_v51  ;;  %v3813_v3 = vand.u32 2147483648, %v8779_v51 }
 0x1ea   :  { %v1010_v61 = vsel %vm981_vm0, %v951_v16, %v11857_v32  ;;  %v3801_v10 = vmul.f32 %v3800_v17, %v8710_v25  ;;  %v2813_v26 = vadd.f32 %v2749_v11, %v2492_v21  ;;  %vm1081_vm9 = vcmp.ge.s32.totalorder %v398_v7, 1 }
 0x1eb   :  { %v12144_v8 = vrot.slane %v8666_v56, 6  ;;  %v1145_v55 = vsel %vm1081_vm9, %v1010_v61, 0.0  ;;  %vm1402_vm12 = vcmp.ge.s32.totalorder %v398_v7, 2  ;;  %v11853_v28 = vrot.slane %v8759_v60, 5 }
 0x1ec   :  { %vm1723_vm15 = vcmp.ge.s32.totalorder %v398_v7, 3  ;;  %v8815_v58 = vadd.f32 %v3801_v10, %v8576_v42  ;;  %vm8817_vm7 = vcmp.eq.f32.partialorder %v3811_v14, 8.507059e+37  ;;  %v1209_v25 = vadd.f32 %v1145_v55, %v8759_v60  ;;  %v5018_v55 = vpop.f32.mrf.mxu1 }
 0x1ed   :  { %v1331_v59 = vsel %vm1302_vm1, %v12144_v8, %v11856_v24  ;;  %v11854_v57 = vrot.slane %v8759_v60, 4  ;;  %v3814_v30 = vor.u32 1.1754944e-38, %v3813_v3  ;;  %v12148_v15 = vrot.slane %v8666_v56, 5 }
 0x1ee   :  { %12145 = vst [vmem:[#allocation2_spill] sm:$0xff] %v8815_v58  ;;  %v1466_v21 = vsel %vm1402_vm12, %v1331_v59, 0.0  ;;  %v5583_v62 = vpop.eup %5582  ;;  %vm2044_vm5 = vcmp.ge.s32.totalorder %v398_v7, 4  ;;  %v11855_v42 = vrot.slane %v8759_v60, 3  ;;  %5369 = vmatmul.msk.f32.vlgmr.msra.gmra.mxu3 %vm4324_vm3, %v8815_v58  ;;  %vm2365_vm14 = vcmp.ge.s32.totalorder %v398_v7, 5 }
 0x1ef   :  { %v1652_v22 = vsel %vm1623_vm2, %v12148_v15, %v11853_v28  ;;  %v5585_v11 = vpop.eup %5584  ;;  %v3803_v52 = vmul.f32 %v5583_v62, %v8779_v51  ;;  %v1530_v14 = vadd.f32 %v1466_v21, %v1209_v25  ;;  %vm3808_vm9 = vweird.f32 %v5583_v62 }
 0x1f0   :  { %v1787_v17 = vsel %vm1723_vm15, %v1652_v22, 0.0  ;;  %v12149_v3 = vrot.slane %v8666_v56, 4  ;;  %v12150_v10 = vrot.slane %v8666_v56, 3  ;;  %v11858_v59 = vrot.slane %v8759_v60, 2  ;;  %5418 = vmatmul.msk.f32.gmra.mxu1 %vm4802_vm13, %v5585_v11  ;;  %v4591_v22 = vpop.f32.mrf.mxu0 }
 0x1f1   :  { %v3804_v25 = vsub.f32 1.0, %v3803_v52  ;;  %v1851_v21 = vadd.f32 %v1787_v17, %v1530_v14  ;;  %vm2686_vm12 = vcmp.ge.s32.totalorder %v398_v7, 6  ;;  %vm3007_vm15 = vcmp.ge.s32.totalorder %v398_v7, 7 }
 0x1f2   :  { %v1973_v61 = vsel %vm1944_vm6, %v12149_v3, %v11854_v57  ;;  %v2294_v8 = vsel %vm2265_vm8, %v12150_v10, %v11855_v42  ;;  %v12151_v3 = vrot.slane %v8666_v56, 2  ;;  %v2878_v10 = vrot.slane %v8759_v60, 1 }
 0x1f3   :  { %v2108_v15 = vsel %vm2044_vm5, %v1973_v61, 0.0  ;;  %v2429_v28 = vsel %vm2365_vm14, %v2294_v8, 0.0  ;;  %v3199_v42 = vcvt.s32.f32 %v398_v7  ;;  %v3805_v24 = vmul.f32 %v5583_v62, %v3804_v25  ;;  %vm8859_vm5 = vmor %vm3807_vm4, %vm3808_vm9 }
 0x1f4   :  { %v2615_v57 = vsel %vm2586_vm10, %v12151_v3, %v11858_v59  ;;  %v2172_v32 = vadd.f32 %v2108_v15, %v1851_v21  ;;  %v5019_v11 = vadd.f32 %v8645_v29, %v5018_v55  ;;  %v12154_v14 = vrot.slane %v8666_v56, 1  ;;  %v8877_v3 = vld [vmem:[%s11820_s0 + $0x120] sm:$0xff] }
 0x1f5   :  { %v8869_v61 = vadd.f32 1.0, %v3199_v42  ;;  %v4592_v8 = vadd.f32 %v8678_v40, %v4591_v22  ;;  %v121_v55 = vadd.s32 288, %v5791_v5  ;;  %v3134_v25 = vadd.f32 %v3070_v1, %v2813_v26 }
 0x1f6   :  { %v2936_v17 = vsel %vm2907_vm11, %v12154_v14, %v2878_v10  ;;  %v3806_v21 = vadd.f32 %v5583_v62, %v3805_v24  ;;  %v2493_v51 = vadd.f32 %v2429_v28, %v2172_v32  ;;  %v5206_v15 = vadd.f32 %v5019_v11, %v6118_v44 }
 0x1f7   :  { %v2750_v59 = vsel %vm2686_vm12, %v2615_v57, 0.0  ;;  %v3071_v58 = vsel %vm3007_vm15, %v2936_v17, 0.0  ;;  %5586 = vrcp.f32 %v8869_v61  ;;  %v3826_v22 = vand.u32 2147483647, %v8869_v61 }
 0x1f8   :  { %v3810_v42 = vsel %vm8859_vm5, %v5583_v62, %v3806_v21  ;;  %5270 = vst.msk [vmem:[%s11824_s5 + $0x10] sm:$0xff] %vm4324_vm3, %v5206_v15  ;;  %5588 = vtanh.f32 %v4592_v8  ;;  %v8888_v44 = vand.u32 7, %v121_v55  ;;  %vm3822_vm4 = vweird.f32 %v8869_v61 }
 0x1f9   :  { %v3815_v32 = vsel %vm8817_vm7, %v3814_v30, %v3810_v42  ;;  %v3828_v1 = vand.u32 2147483648, %v8869_v61  ;;  %v953_v24 = vrot.slane %v8877_v3, 7  ;;  %v2814_v26 = vadd.f32 %v2750_v59, %v2493_v51 }
 0x1fa   :  { %v3816_v7 = vmul.f32 %v3815_v32, %v3134_v25  ;;  %vm1082_vm14 = vcmp.ge.s32.totalorder %v8888_v44, 1  ;;  %v1274_v28 = vrot.slane %v8877_v3, 6  ;;  %v12155_v57 = vrot.slane %v8759_v60, 7 }
 0x1fb   :  { %vm1403_vm7 = vcmp.ge.s32.totalorder %v8888_v44, 2  ;;  %v11861_v62 = vrot.slane %v8877_v3, 5  ;;  %vm1724_vm9 = vcmp.ge.s32.totalorder %v8888_v44, 3  ;;  %vm8909_vm12 = vcmp.eq.f32.partialorder %v3826_v22, 8.507059e+37 }
 0x1fc   :  { %v1009_v16 = vsel %vm981_vm0, %v12155_v57, %v953_v24  ;;  %v8907_v30 = vadd.f32 %v3816_v7, %v8666_v56  ;;  %v12158_v52 = vrot.slane %v8759_v60, 6  ;;  %v11860_v17 = vrot.slane %v8877_v3, 4 }
 0x1fd   :  { %v1146_v11 = vsel %vm1082_vm14, %v1009_v16, 0.0  ;;  %v5587_v8 = vpop.eup %5586  ;;  %v12159_v56 = vrot.slane %v8759_v60, 5  ;;  %vm2045_vm15 = vcmp.ge.s32.totalorder %v8888_v44, 4  ;;  %v3829_v42 = vor.u32 1.1754944e-38, %v3828_v1 }
 0x1fe   :  { %v1330_v14 = vsel %vm1302_vm1, %v12158_v52, %v1274_v28  ;;  %v1210_v55 = vadd.f32 %v1146_v11, %v8877_v3  ;;  %v5589_v51 = vpop.eup %5588  ;;  %5370 = vmatmul.msk.f32.gmra.mxu3 %vm4324_vm3, %v8907_v30  ;;  %v3818_v15 = vmul.f32 %v5587_v8, %v8869_v61  ;;  %v12160_v32 = vrot.slane %v8759_v60, 4 }
 0x1ff   :  { %v1467_v25 = vsel %vm1403_vm7, %v1330_v14, 0.0  ;;  %v1651_v21 = vsel %vm1623_vm2, %v12159_v56, %v11861_v62  ;;  %vm3823_vm5 = vweird.f32 %v5587_v8  ;;  %v11863_v16 = vrot.slane %v8877_v3, 3  ;;  %5419 = vmatmul.msk.f32.gmra.mxu1 %vm4802_vm13, %v5589_v51  ;;  %v4594_v62 = vpop.f32.mrf.mxu0 }
 0x200   :  { %v1788_v22 = vsel %vm1724_vm9, %v1651_v21, 0.0  ;;  %v1972_v7 = vsel %vm1944_vm6, %v12160_v32, %v11860_v17  ;;  %v1531_v57 = vadd.f32 %v1467_v25, %v1210_v55  ;;  %vm2366_vm14 = vcmp.ge.s32.totalorder %v8888_v44, 5  ;;  %v5021_v17 = vpop.f32.mrf.mxu1  ;;  %vm8959_vm9 = vmor %vm3822_vm4, %vm3823_vm5 }
 0x201   :  { %v3819_v11 = vsub.f32 1.0, %v3818_v15  ;;  %v2109_v52 = vsel %vm2045_vm15, %v1972_v7, 0.0  ;;  %v11862_v1 = vrot.slane %v8877_v3, 2  ;;  %v2879_v14 = vrot.slane %v8877_v3, 1 }
 0x202   :  { %v3135_v56 = vadd.f32 %v3071_v58, %v2814_v26  ;;  %v1852_v21 = vadd.f32 %v1788_v22, %v1531_v57  ;;  %v12161_v32 = vrot.slane %v8759_v60, 3  ;;  %v3200_v25 = vcvt.s32.f32 %v8888_v44 }
 0x203   :  { %v3820_v51 = vmul.f32 %v5587_v8, %v3819_v11  ;;  %v12162_v7 = vrot.slane %v8759_v60, 2  ;;  %vm2687_vm7 = vcmp.ge.s32.totalorder %v8888_v44, 6  ;;  %v2935_v57 = vsel %vm2907_vm11, %v2878_v10, %v2879_v14 }
 0x204   :  { %v2293_v55 = vsel %vm2265_vm8, %v12161_v32, %v11863_v16  ;;  %v2173_v22 = vadd.f32 %v2109_v52, %v1852_v21  ;;  %vm3008_vm15 = vcmp.ge.s32.totalorder %v8888_v44, 7  ;;  %v3264_v11 = vadd.f32 1.0, %v3200_v25  ;;  %v8976_v52 = vld [vmem:[%s11820_s0 + $0x128] sm:$0xff] }
 0x205   :  { %v2430_v15 = vsel %vm2366_vm14, %v2293_v55, 0.0  ;;  %v2614_v58 = vsel %vm2586_vm10, %v12162_v7, %v11862_v1  ;;  %v3821_v32 = vadd.f32 %v5587_v8, %v3820_v51  ;;  %v5022_v55 = vadd.f32 %v8645_v29, %v5021_v17 }
 0x206   :  { %v4595_v61 = vadd.f32 %v8678_v40, %v4594_v62  ;;  %v122_v7 = vadd.s32 296, %v5791_v5  ;;  %v2494_v1 = vadd.f32 %v2430_v15, %v2173_v22  ;;  %v2751_v16 = vsel %vm2687_vm7, %v2614_v58, 0.0 }
 0x207   :  { %5590 = vrcp.f32 %v3264_v11  ;;  %v3825_v10 = vsel %vm8959_vm9, %v5587_v8, %v3821_v32  ;;  %v3841_v44 = vand.u32 2147483647, %v3264_v11  ;;  %v5207_v21 = vadd.f32 %v5022_v55, %v6194_v33 }
 0x208   :  { %5592 = vtanh.f32 %v4595_v61  ;;  %v3830_v62 = vsel %vm8909_vm12, %v3829_v42, %v3825_v10  ;;  %v3072_v17 = vsel %vm3008_vm15, %v2935_v57, 0.0  ;;  %vm3837_vm4 = vweird.f32 %v3264_v11 }
 0x209   :  { %v8983_v25 = vand.u32 7, %v122_v7  ;;  %v3831_v51 = vmul.f32 %v3830_v62, %v3135_v56  ;;  %v3843_v15 = vand.u32 2147483648, %v3264_v11  ;;  %5271 = vst.msk [vmem:[%s11824_s5 + $0x18] sm:$0xff] %vm4324_vm3, %v5207_v21  ;;  %v954_v8 = vrot.slane %v8976_v52, 7 }
 0x20a   :  { %v11867_v58 = vrot.slane %v8976_v52, 6  ;;  %v2815_v33 = vadd.f32 %v2751_v16, %v2494_v1  ;;  %v11865_v59 = vrot.slane %v8976_v52, 5  ;;  %vm8997_vm14 = vcmp.eq.f32.partialorder %v3841_v44, 8.507059e+37 }
 0x20b   :  { %vm1083_vm5 = vcmp.ge.s32.totalorder %v8983_v25, 1  ;;  %vm1404_vm12 = vcmp.ge.s32.totalorder %v8983_v25, 2  ;;  %v8995_v42 = vadd.f32 %v3831_v51, %v8759_v60  ;;  %v1008_v16 = vsel %vm981_vm0, %v953_v24, %v954_v8 }
 0x20c   :  { %v1329_v1 = vsel %vm1302_vm1, %v1274_v28, %v11867_v58  ;;  %vm1725_vm7 = vcmp.ge.s32.totalorder %v8983_v25, 3  ;;  %v1147_v26 = vsel %vm1083_vm5, %v1008_v16, 0.0  ;;  %v12167_v57 = vrot.slane %v8877_v3, 5 }
 0x20d   :  { %v5591_v60 = vpop.eup %5590  ;;  %v1468_v22 = vsel %vm1404_vm12, %v1329_v1, 0.0  ;;  %v11864_v24 = vrot.slane %v8976_v52, 4  ;;  %5371 = vmatmul.msk.f32.gmra.mxu3 %vm4324_vm3, %v8995_v42  ;;  %v3844_v28 = vor.u32 1.1754944e-38, %v3843_v15  ;;  %v1211_v7 = vadd.f32 %v1147_v26, %v8976_v52  ;;  %v5024_v1 = vpop.f32.mrf.mxu1 }
 0x20e   :  { %v1650_v32 = vsel %vm1623_vm2, %v12167_v57, %v11865_v59  ;;  %v5593_v55 = vpop.eup %5592  ;;  %v3833_v61 = vmul.f32 %v5591_v60, %v3264_v11  ;;  %vm3838_vm9 = vweird.f32 %v5591_v60  ;;  %v12168_v44 = vrot.slane %v8877_v3, 4  ;;  %v4597_v59 = vpop.f32.mrf.mxu0 }
 0x20f   :  { %v1789_v10 = vsel %vm1725_vm7, %v1650_v32, 0.0  ;;  %vm2046_vm15 = vcmp.ge.s32.totalorder %v8983_v25, 4  ;;  %v11866_v62 = vrot.slane %v8976_v52, 3  ;;  %5420 = vmatmul.msk.f32.gmra.mxu1 %vm4802_vm13, %v5593_v55  ;;  %v1532_v16 = vadd.f32 %v1468_v22, %v1211_v7 }
 0x210   :  { %v1971_v21 = vsel %vm1944_vm6, %v12168_v44, %v11864_v24  ;;  %v3834_v51 = vsub.f32 1.0, %v3833_v61  ;;  %vm2367_vm5 = vcmp.ge.s32.totalorder %v8983_v25, 5  ;;  %v11868_v15 = vrot.slane %v8976_v52, 2 }
 0x211   :  { %v3136_v26 = vadd.f32 %v3072_v17, %v2815_v33  ;;  %v2110_v57 = vsel %vm2046_vm15, %v1971_v21, 0.0  ;;  %v12169_v32 = vrot.slane %v8877_v3, 3  ;;  %v2880_v24 = vrot.slane %v8976_v52, 1  ;;  %v9047_v17 = vld [vmem:[%s11820_s0 + $0x130] sm:$0xff]  ;;  %vm9051_vm15 = vmor %vm3837_vm4, %vm3838_vm9 }
 0x212   :  { %v3835_v55 = vmul.f32 %v5591_v60, %v3834_v51  ;;  %v1853_v61 = vadd.f32 %v1789_v10, %v1532_v16  ;;  %vm2688_vm12 = vcmp.ge.s32.totalorder %v8983_v25, 6  ;;  %vm3009_vm7 = vcmp.ge.s32.totalorder %v8983_v25, 7 }
 0x213   :  { %v2292_v44 = vsel %vm2265_vm8, %v12169_v32, %v11866_v62  ;;  %v12172_v7 = vrot.slane %v8877_v3, 2  ;;  %v3201_v21 = vcvt.s32.f32 %v8983_v25  ;;  %v5025_v51 = vadd.f32 %v8645_v29, %v5024_v1 }
 0x214   :  { %v2431_v22 = vsel %vm2367_vm5, %v2292_v44, 0.0  ;;  %v3836_v16 = vadd.f32 %v5591_v60, %v3835_v55  ;;  %v2174_v32 = vadd.f32 %v2110_v57, %v1853_v61  ;;  %v2934_v11 = vsel %vm2907_vm11, %v2879_v14, %v2880_v24 }
 0x215   :  { %v2613_v10 = vsel %vm2586_vm10, %v12172_v7, %v11868_v15  ;;  %v4598_v44 = vadd.f32 %v8678_v40, %v4597_v59  ;;  %v9070_v62 = vadd.f32 1.0, %v3201_v21  ;;  %v5208_v58 = vadd.f32 %v5025_v51, %v6273_v54 }
 0x216   :  { %v123_v7 = vadd.s32 304, %v5791_v5  ;;  %v11873_v15 = vrot.slane %v9047_v17, 7  ;;  %v3840_v1 = vsel %vm9051_vm15, %v5591_v60, %v3836_v16  ;;  %v2495_v57 = vadd.f32 %v2431_v22, %v2174_v32 }
 0x217   :  { %5594 = vtanh.f32 %v4598_v44  ;;  %v11872_v55 = vrot.slane %v9047_v17, 6  ;;  %v3845_v14 = vsel %vm8997_vm14, %v3844_v28, %v3840_v1  ;;  %v2752_v59 = vsel %vm2688_vm12, %v2613_v10, 0.0  ;;  %5272 = vst.msk [vmem:[%s11824_s5 + $0x20] sm:$0xff] %vm4324_vm3, %v5208_v58 }
 0x218   :  { %5596 = vrcp.f32 %v9070_v62  ;;  %v3846_v54 = vmul.f32 %v3845_v14, %v3136_v26  ;;  %v3073_v60 = vsel %vm3009_vm7, %v2934_v11, 0.0  ;;  %v3856_v61 = vand.u32 2147483647, %v9070_v62 }
 0x219   :  { %v419_v33 = vand.u32 7, %v123_v7  ;;  %vm3852_vm4 = vweird.f32 %v9070_v62  ;;  %v1007_v56 = vsel %vm981_vm0, %v954_v8, %v11873_v15  ;;  %v12173_v58 = vrot.slane %v8976_v52, 6 }
 0x21a   :  { %v11870_v28 = vrot.slane %v9047_v17, 5  ;;  %v9105_v26 = vadd.f32 %v3846_v54, %v8877_v3  ;;  %v2816_v22 = vadd.f32 %v2752_v59, %v2495_v57  ;;  %v3858_v10 = vand.u32 2147483648, %v9070_v62 }
 0x21b   :  { %v1328_v25 = vsel %vm1302_vm1, %v12173_v58, %v11872_v55  ;;  %vm1084_vm14 = vcmp.ge.s32.totalorder %v419_v33, 1  ;;  %vm1405_vm9 = vcmp.ge.s32.totalorder %v419_v33, 2  ;;  %v12174_v8 = vrot.slane %v8976_v52, 5 }
 0x21c   :  { %v1148_v21 = vsel %vm1084_vm14, %v1007_v56, 0.0  ;;  %vm1726_vm5 = vcmp.ge.s32.totalorder %v419_v33, 3  ;;  %5372 = vmatmul.msk.f32.gmra.mxu3 %vm4324_vm3, %v9105_v26  ;;  %vm9116_vm12 = vcmp.eq.f32.partialorder %v3856_v61, 8.507059e+37  ;;  %v1469_v11 = vsel %vm1405_vm9, %v1328_v25, 0.0  ;;  %v5027_v25 = vpop.f32.mrf.mxu1 }
 0x21d   :  { %v1649_v51 = vsel %vm1623_vm2, %v12174_v8, %v11870_v28  ;;  %v5595_v16 = vpop.eup %5594  ;;  %v1212_v32 = vadd.f32 %v1148_v21, %v9047_v17  ;;  %v11869_v7 = vrot.slane %v9047_v17, 4  ;;  %vm2047_vm7 = vcmp.ge.s32.totalorder %v419_v33, 4 }
 0x21e   :  { %v1790_v44 = vsel %vm1726_vm5, %v1649_v51, 0.0  ;;  %v5597_v1 = vpop.eup %5596  ;;  %v11871_v57 = vrot.slane %v9047_v17, 3  ;;  %vm2368_vm15 = vcmp.ge.s32.totalorder %v419_v33, 5  ;;  %v11874_v14 = vrot.slane %v9047_v17, 2  ;;  %5421 = vmatmul.msk.f32.gmra.mxu1 %vm4802_vm13, %v5595_v16 }
 0x21f   :  { %v3848_v59 = vmul.f32 %v5597_v1, %v9070_v62  ;;  %v3859_v54 = vor.u32 1.1754944e-38, %v3858_v10  ;;  %v1533_v61 = vadd.f32 %v1469_v11, %v1212_v32  ;;  %v12177_v56 = vrot.slane %v8976_v52, 4  ;;  %v4600_v32 = vpop.f32.mrf.mxu0 }
 0x220   :  { %vm3853_vm14 = vweird.f32 %v5597_v1  ;;  %v12178_v8 = vrot.slane %v8976_v52, 3  ;;  %v12179_v10 = vrot.slane %v8976_v52, 2  ;;  %vm2689_vm9 = vcmp.ge.s32.totalorder %v419_v33, 6 }
 0x221   :  { %v1970_v58 = vsel %vm1944_vm6, %v12177_v56, %v11869_v7  ;;  %v3849_v11 = vsub.f32 1.0, %v3848_v59  ;;  %v1854_v56 = vadd.f32 %v1790_v44, %v1533_v61  ;;  %v2881_v28 = vrot.slane %v9047_v17, 1 }
 0x222   :  { %v2111_v21 = vsel %vm2047_vm7, %v1970_v58, 0.0  ;;  %v2291_v51 = vsel %vm2265_vm8, %v12178_v8, %v11871_v57  ;;  %v2612_v16 = vsel %vm2586_vm10, %v12179_v10, %v11874_v14  ;;  %v9147_v58 = vld [vmem:[%s11820_s0 + $0x138] sm:$0xff]  ;;  %vm3010_vm5 = vcmp.ge.s32.totalorder %v419_v33, 7  ;;  %vm9156_vm7 = vmor %vm3852_vm4, %vm3853_vm14 }
 0x223   :  { %v2432_v7 = vsel %vm2368_vm15, %v2291_v51, 0.0  ;;  %v3202_v8 = vcvt.s32.f32 %v419_v33  ;;  %v5028_v57 = vadd.f32 %v8645_v29, %v5027_v25  ;;  %v3850_v55 = vmul.f32 %v5597_v1, %v3849_v11 }
 0x224   :  { %v2175_v15 = vadd.f32 %v2111_v21, %v1854_v56  ;;  %v4601_v10 = vadd.f32 %v8678_v40, %v4600_v32  ;;  %v124_v59 = vadd.s32 312, %v5791_v5  ;;  %v2933_v61 = vsel %vm2907_vm11, %v2880_v24, %v2881_v28 }
 0x225   :  { %v3266_v25 = vadd.f32 1.0, %v3202_v8  ;;  %v5209_v21 = vadd.f32 %v5028_v57, %v6342_v50  ;;  %v11880_v51 = vrot.slane %v9147_v58, 7  ;;  %v3137_v32 = vadd.f32 %v3073_v60, %v2816_v22 }
 0x226   :  { %v3851_v11 = vadd.f32 %v5597_v1, %v3850_v55  ;;  %v2496_v56 = vadd.f32 %v2432_v7, %v2175_v15  ;;  %5598 = vtanh.f32 %v4601_v10  ;;  %v2753_v62 = vsel %vm2689_vm9, %v2612_v16, 0.0 }
 0x227   :  { %v3074_v14 = vsel %vm3010_vm5, %v2933_v61, 0.0  ;;  %5600 = vrcp.f32 %v3266_v25  ;;  %5273 = vst.msk [vmem:[%s11824_s5 + $0x28] sm:$0xff] %vm4324_vm3, %v5209_v21  ;;  %v3871_v50 = vand.u32 2147483647, %v3266_v25  ;;  %v426_v57 = vand.u32 7, %v124_v59 }
 0x228   :  { %v3855_v24 = vsel %vm9156_vm7, %v5597_v1, %v3851_v11  ;;  %v12182_v15 = vrot.slane %v9047_v17, 7  ;;  %vm3867_vm4 = vweird.f32 %v3266_v25  ;;  %v3873_v33 = vand.u32 2147483648, %v3266_v25 }
 0x229   :  { %v3860_v60 = vsel %vm9116_vm12, %v3859_v54, %v3855_v24  ;;  %v11877_v22 = vrot.slane %v9147_v58, 6  ;;  %v2817_v16 = vadd.f32 %v2753_v62, %v2496_v56  ;;  %vm1085_vm15 = vcmp.ge.s32.totalorder %v426_v57, 1 }
 0x22a   :  { %v1006_v55 = vsel %vm981_vm0, %v12182_v15, %v11880_v51  ;;  %v3861_v7 = vmul.f32 %v3860_v60, %v3137_v32  ;;  %vm1406_vm14 = vcmp.ge.s32.totalorder %v426_v57, 2  ;;  %v12183_v8 = vrot.slane %v9047_v17, 6 }
 0x22b   :  { %v1149_v1 = vsel %vm1085_vm15, %v1006_v55, 0.0  ;;  %v11876_v59 = vrot.slane %v9147_v58, 5  ;;  %vm1727_vm9 = vcmp.ge.s32.totalorder %v426_v57, 3  ;;  %vm9195_vm12 = vcmp.eq.f32.partialorder %v3871_v50, 8.507059e+37 }
 0x22c   :  { %v1327_v10 = vsel %vm1302_vm1, %v12183_v8, %v11877_v22  ;;  %v5599_v3 = vpop.eup %5598  ;;  %v9193_v54 = vadd.f32 %v3861_v7, %v8976_v52  ;;  %v1213_v61 = vadd.f32 %v1149_v1, %v9147_v58  ;;  %v11875_v32 = vrot.slane %v9147_v58, 4 }
 0x22d   :  { %v1470_v21 = vsel %vm1406_vm14, %v1327_v10, 0.0  ;;  %v5601_v11 = vpop.eup %5600  ;;  %v3874_v56 = vor.u32 1.1754944e-38, %v3873_v33  ;;  %v12186_v62 = vrot.slane %v9047_v17, 5  ;;  %vm2048_vm5 = vcmp.ge.s32.totalorder %v426_v57, 4  ;;  %5422 = vmatmul.msk.f32.gmra.mxu1 %vm4802_vm13, %v5599_v3  ;;  %v5030_v10 = vpop.f32.mrf.mxu1 }
 0x22e   :  { %v11878_v52 = vrot.slane %v9147_v58, 3  ;;  %5373 = vmatmul.msk.f32.gmra.mxu3 %vm4324_vm3, %v9193_v54  ;;  %v3863_v50 = vmul.f32 %v5601_v11, %v3266_v25  ;;  %v1534_v15 = vadd.f32 %v1470_v21, %v1213_v61  ;;  %vm2369_vm7 = vcmp.ge.s32.totalorder %v426_v57, 5 }
 0x22f   :  { %v1648_v24 = vsel %vm1623_vm2, %v12186_v62, %v11876_v59  ;;  %vm3868_vm15 = vweird.f32 %v5601_v11  ;;  %v12187_v60 = vrot.slane %v9047_v17, 4  ;;  %v12188_v7 = vrot.slane %v9047_v17, 3  ;;  %v4603_v62 = vpop.f32.mrf.mxu0 }
 0x230   :  { %v1791_v55 = vsel %vm1727_vm9, %v1648_v24, 0.0  ;;  %v11879_v8 = vrot.slane %v9147_v58, 2  ;;  %v3864_v3 = vsub.f32 1.0, %v3863_v50  ;;  %vm2690_vm14 = vcmp.ge.s32.totalorder %v426_v57, 6 }
 0x231   :  { %v1969_v33 = vsel %vm1944_vm6, %v12187_v60, %v11875_v32  ;;  %v2290_v1 = vsel %vm2265_vm8, %v12188_v7, %v11878_v52  ;;  %v1855_v61 = vadd.f32 %v1791_v55, %v1534_v15  ;;  %v12189_v60 = vrot.slane %v9047_v17, 2 }
 0x232   :  { %v2112_v21 = vsel %vm2048_vm5, %v1969_v33, 0.0  ;;  %v2433_v24 = vsel %vm2369_vm7, %v2290_v1, 0.0  ;;  %v2882_v59 = vrot.slane %v9147_v58, 1  ;;  %v3203_v22 = vcvt.s32.f32 %v426_v57  ;;  %vm9235_vm5 = vmor %vm3867_vm4, %vm3868_vm15 }
 0x233   :  { %v2611_v32 = vsel %vm2586_vm10, %v12189_v60, %v11879_v8  ;;  %v3865_v7 = vmul.f32 %v5601_v11, %v3864_v3  ;;  %v2176_v52 = vadd.f32 %v2112_v21, %v1855_v61  ;;  %vm3011_vm9 = vcmp.ge.s32.totalorder %v426_v57, 7  ;;  %v9253_v60 = vld [vmem:[%s11820_s0 + $0x140] sm:$0xff] }
 0x234   :  { %v5031_v50 = vadd.f32 %v8645_v29, %v5030_v10  ;;  %v2932_v55 = vsel %vm2907_vm11, %v2881_v28, %v2882_v59  ;;  %v9245_v33 = vadd.f32 1.0, %v3203_v22  ;;  %v4604_v1 = vadd.f32 %v8678_v40, %v4603_v62 }
 0x235   :  { %v125_v3 = vadd.s32 320, %v5791_v5  ;;  %v3138_v10 = vadd.f32 %v3074_v14, %v2817_v16  ;;  %v3866_v61 = vadd.f32 %v5601_v11, %v3865_v7  ;;  %v2497_v25 = vadd.f32 %v2433_v24, %v2176_v52 }
 0x236   :  { %v5210_v21 = vadd.f32 %v5031_v50, %v6423_v0  ;;  %v2754_v8 = vsel %vm2690_vm14, %v2611_v32, 0.0  ;;  %v3075_v51 = vsel %vm3011_vm9, %v2932_v55, 0.0  ;;  %5602 = vrcp.f32 %v9245_v33 }
 0x237   :  { %v3870_v28 = vsel %vm9235_vm5, %v5601_v11, %v3866_v61  ;;  %v3886_v22 = vand.u32 2147483647, %v9245_v33  ;;  %5604 = vtanh.f32 %v4604_v1  ;;  %v9264_v0 = vand.u32 7, %v125_v3 }
 0x238   :  { %5274 = vst.msk [vmem:[%s11824_s5 + $0x30] sm:$0xff] %vm4324_vm3, %v5210_v21  ;;  %v3875_v14 = vsel %vm9195_vm12, %v3874_v56, %v3870_v28  ;;  %vm3882_vm4 = vweird.f32 %v9245_v33  ;;  %v3888_v57 = vand.u32 2147483648, %v9245_v33  ;;  %v957_v16 = vrot.slane %v9253_v60, 7 }
 0x239   :  { %v3876_v32 = vmul.f32 %v3875_v14, %v3138_v10  ;;  %v2818_v11 = vadd.f32 %v2754_v8, %v2497_v25  ;;  %vm1086_vm7 = vcmp.ge.s32.totalorder %v9264_v0, 1  ;;  %v1278_v52 = vrot.slane %v9253_v60, 6 }
 0x23a   :  { %v12192_v62 = vrot.slane %v9147_v58, 7  ;;  %vm1407_vm12 = vcmp.ge.s32.totalorder %v9264_v0, 2  ;;  %v11882_v56 = vrot.slane %v9253_v60, 5  ;;  %vm1728_vm15 = vcmp.ge.s32.totalorder %v9264_v0, 3 }
 0x23b   :  { %v9283_v24 = vadd.f32 %v3876_v32, %v9047_v17  ;;  %vm9285_vm14 = vcmp.eq.f32.partialorder %v3886_v22, 8.507059e+37  ;;  %v12195_v50 = vrot.slane %v9147_v58, 6  ;;  %v11881_v55 = vrot.slane %v9253_v60, 4 }
 0x23c   :  { %v1005_v44 = vsel %vm981_vm0, %v12192_v62, %v957_v16  ;;  %v5603_v1 = vpop.eup %5602  ;;  %v12196_v17 = vrot.slane %v9147_v58, 5  ;;  %vm2049_vm9 = vcmp.ge.s32.totalorder %v9264_v0, 4  ;;  %v3889_v28 = vor.u32 1.1754944e-38, %v3888_v57 }
 0x23d   :  { %v1150_v7 = vsel %vm1086_vm7, %v1005_v44, 0.0  ;;  %v1326_v15 = vsel %vm1302_vm1, %v12195_v50, %v1278_v52  ;;  %v5605_v25 = vpop.eup %5604  ;;  %5374 = vmatmul.msk.f32.gmra.mxu3 %vm4324_vm3, %v9283_v24  ;;  %v3878_v21 = vmul.f32 %v5603_v1, %v9245_v33  ;;  %v12197_v14 = vrot.slane %v9147_v58, 4 }
 0x23e   :  { %v1214_v3 = vadd.f32 %v1150_v7, %v9253_v60  ;;  %v1471_v10 = vsel %vm1407_vm12, %v1326_v15, 0.0  ;;  %v1647_v61 = vsel %vm1623_vm2, %v12196_v17, %v11882_v56  ;;  %vm3883_vm5 = vweird.f32 %v5603_v1  ;;  %5423 = vmatmul.msk.f32.gmra.mxu1 %vm4802_vm13, %v5605_v25  ;;  %v4606_v56 = vpop.f32.mrf.mxu0 }
 0x23f   :  { %v1792_v22 = vsel %vm1728_vm15, %v1647_v61, 0.0  ;;  %v1968_v32 = vsel %vm1944_vm6, %v12197_v14, %v11881_v55  ;;  %v11884_v44 = vrot.slane %v9253_v60, 3  ;;  %vm2370_vm7 = vcmp.ge.s32.totalorder %v9264_v0, 5  ;;  %v5033_v55 = vpop.f32.mrf.mxu1  ;;  %vm9335_vm15 = vmor %vm3882_vm4, %vm3883_vm5 }
 0x240   :  { %v1535_v62 = vadd.f32 %v1471_v10, %v1214_v3  ;;  %v3879_v7 = vsub.f32 1.0, %v3878_v21  ;;  %v2113_v50 = vsel %vm2049_vm9, %v1968_v32, 0.0  ;;  %v11883_v57 = vrot.slane %v9253_v60, 2 }
 0x241   :  { %v2883_v15 = vrot.slane %v9253_v60, 1  ;;  %v3139_v17 = vadd.f32 %v3075_v51, %v2818_v11  ;;  %v12198_v14 = vrot.slane %v9147_v58, 3  ;;  %v3204_v10 = vcvt.s32.f32 %v9264_v0 }
 0x242   :  { %v1856_v61 = vadd.f32 %v1792_v22, %v1535_v62  ;;  %v3880_v25 = vmul.f32 %v5603_v1, %v3879_v7  ;;  %v12199_v32 = vrot.slane %v9147_v58, 2  ;;  %vm2691_vm12 = vcmp.ge.s32.totalorder %v9264_v0, 6 }
 0x243   :  { %v2289_v3 = vsel %vm2265_vm8, %v12198_v14, %v11884_v44  ;;  %v2931_v62 = vsel %vm2907_vm11, %v2882_v59, %v2883_v15  ;;  %vm3012_vm9 = vcmp.ge.s32.totalorder %v9264_v0, 7  ;;  %v3268_v7 = vadd.f32 1.0, %v3204_v10 }
 0x244   :  { %v2434_v21 = vsel %vm2370_vm7, %v2289_v3, 0.0  ;;  %v2610_v51 = vsel %vm2586_vm10, %v12199_v32, %v11883_v57  ;;  %v2177_v22 = vadd.f32 %v2113_v50, %v1856_v61  ;;  %v3881_v14 = vadd.f32 %v5603_v1, %v3880_v25  ;;  %v9352_v50 = vld [vmem:[%s11820_s0 + $0x148] sm:$0xff] }
 0x245   :  { %v5034_v3 = vadd.f32 %v8645_v29, %v5033_v55  ;;  %v4607_v33 = vadd.f32 %v8678_v40, %v4606_v56  ;;  %v126_v32 = vadd.s32 328, %v5791_v5  ;;  %v2755_v44 = vsel %vm2691_vm12, %v2610_v51, 0.0 }
 0x246   :  { %v2498_v57 = vadd.f32 %v2434_v21, %v2177_v22  ;;  %5606 = vrcp.f32 %v3268_v7  ;;  %v3885_v59 = vsel %vm9335_vm15, %v5603_v1, %v3881_v14  ;;  %v3901_v0 = vand.u32 2147483647, %v3268_v7 }
 0x247   :  { %v5211_v61 = vadd.f32 %v5034_v3, %v6492_v13  ;;  %5608 = vtanh.f32 %v4607_v33  ;;  %v3890_v29 = vsel %vm9285_vm14, %v3889_v28, %v3885_v59  ;;  %v3076_v40 = vsel %vm3012_vm9, %v2931_v62, 0.0 }
 0x248   :  { %vm3897_vm4 = vweird.f32 %v3268_v7  ;;  %v9359_v56 = vand.u32 7, %v126_v32  ;;  %v3891_v55 = vmul.f32 %v3890_v29, %v3139_v17  ;;  %v3903_v10 = vand.u32 2147483648, %v3268_v7 }
 0x249   :  { %5275 = vst.msk [vmem:[%s11824_s5 + $0x38] sm:$0xff] %vm4324_vm3, %v5211_v61  ;;  %v958_v1 = vrot.slane %v9352_v50, 7  ;;  %v1279_v25 = vrot.slane %v9352_v50, 6  ;;  %v2819_v13 = vadd.f32 %v2755_v44, %v2498_v57  ;;  %v1600_v8 = vrot.slane %v9352_v50, 5 }
 0x24a   :  { %vm1087_vm5 = vcmp.ge.s32.totalorder %v9359_v56, 1  ;;  %vm1408_vm14 = vcmp.ge.s32.totalorder %v9359_v56, 2  ;;  %v9371_v28 = vadd.f32 %v3891_v55, %v9147_v58  ;;  %vm9373_vm7 = vcmp.eq.f32.partialorder %v3901_v0, 8.507059e+37 }
 0x24b   :  { %v1004_v44 = vsel %vm981_vm0, %v957_v16, %v958_v1  ;;  %v1325_v57 = vsel %vm1302_vm1, %v1278_v52, %v1279_v25  ;;  %vm1729_vm12 = vcmp.ge.s32.totalorder %v9359_v56, 3  ;;  %v12204_v11 = vrot.slane %v9253_v60, 5 }
 0x24c   :  { %v5607_v58 = vpop.eup %5606  ;;  %v1151_v21 = vsel %vm1087_vm5, %v1004_v44, 0.0  ;;  %v1472_v51 = vsel %vm1408_vm14, %v1325_v57, 0.0  ;;  %v11887_v16 = vrot.slane %v9352_v50, 4  ;;  %5375 = vmatmul.msk.f32.gmra.mxu3 %vm4324_vm3, %v9371_v28  ;;  %v3904_v52 = vor.u32 1.1754944e-38, %v3903_v10  ;;  %v5036_v10 = vpop.f32.mrf.mxu1 }
 0x24d   :  { %v1646_v22 = vsel %vm1623_vm2, %v12204_v11, %v1600_v8  ;;  %v5609_v62 = vpop.eup %5608  ;;  %v3893_v14 = vmul.f32 %v5607_v58, %v3268_v7  ;;  %vm3898_vm15 = vweird.f32 %v5607_v58  ;;  %v1215_v3 = vadd.f32 %v1151_v21, %v9352_v50 }
 0x24e   :  { %v1793_v33 = vsel %vm1729_vm12, %v1646_v22, 0.0  ;;  %v12205_v32 = vrot.slane %v9253_v60, 4  ;;  %vm2050_vm9 = vcmp.ge.s32.totalorder %v9359_v56, 4  ;;  %v11886_v0 = vrot.slane %v9352_v50, 3  ;;  %5424 = vmatmul.msk.f32.gmra.mxu1 %vm4802_vm13, %v5609_v62 }
 0x24f   :  { %v3894_v61 = vsub.f32 1.0, %v3893_v14  ;;  %v1536_v29 = vadd.f32 %v1472_v51, %v1215_v3  ;;  %vm2371_vm5 = vcmp.ge.s32.totalorder %v9359_v56, 5  ;;  %v11885_v55 = vrot.slane %v9352_v50, 2 }
 0x250   :  { %v1967_v59 = vsel %vm1944_vm6, %v12205_v32, %v11887_v16  ;;  %v3140_v44 = vadd.f32 %v3076_v40, %v2819_v13  ;;  %v12206_v21 = vrot.slane %v9253_v60, 3  ;;  %v11888_v22 = vrot.slane %v9352_v50, 1  ;;  %v4609_v32 = vpop.f32.mrf.mxu0  ;;  %v9423_v40 = vld [vmem:[%s11820_s0 + $0x150] sm:$0xff] }
 0x251   :  { %v2114_v57 = vsel %vm2050_vm9, %v1967_v59, 0.0  ;;  %v3895_v62 = vmul.f32 %v5607_v58, %v3894_v61  ;;  %v1857_v14 = vadd.f32 %v1793_v33, %v1536_v29  ;;  %vm2692_vm14 = vcmp.ge.s32.totalorder %v9359_v56, 6  ;;  %vm9427_vm9 = vmor %vm3897_vm4, %vm3898_vm15  ;;  %v9441_v61 = vld [vmem:[%s11823_s4] ss:$0 sm:$0xff] }
 0x252   :  { %v2288_v11 = vsel %vm2265_vm8, %v12206_v21, %v11886_v0  ;;  %vm3013_vm12 = vcmp.ge.s32.totalorder %v9359_v56, 7  ;;  %v12209_v3 = vrot.slane %v9253_v60, 2  ;;  %v3205_v59 = vcvt.s32.f32 %v9359_v56 }
 0x253   :  { %v2435_v51 = vsel %vm2371_vm5, %v2288_v11, 0.0  ;;  %v5037_v7 = vadd.f32 %v9441_v61, %v5036_v10  ;;  %v3896_v29 = vadd.f32 %v5607_v58, %v3895_v62  ;;  %v2178_v21 = vadd.f32 %v2114_v57, %v1857_v14 }
 0x254   :  { %v2609_v33 = vsel %vm2586_vm10, %v12209_v3, %v11885_v55  ;;  %v2930_v11 = vsel %vm2907_vm11, %v2883_v15, %v11888_v22  ;;  %v9453_v3 = vld [vmem:[%s11821_s2] ss:$0 sm:$0xff]  ;;  %v9456_v0 = vadd.f32 1.0, %v3205_v59  ;;  %v127_v57 = vadd.s32 336, %v5791_v5 }
 0x255   :  { %v4610_v55 = vadd.f32 %v9453_v3, %v4609_v32  ;;  %v5212_v10 = vadd.f32 %v5037_v7, %v6566_v9  ;;  %v11894_v62 = vrot.slane %v9423_v40, 7  ;;  %v3900_v14 = vsel %vm9427_vm9, %v5607_v58, %v3896_v29 }
 0x256   :  { %v2499_v16 = vadd.f32 %v2435_v51, %v2178_v21  ;;  %v11892_v15 = vrot.slane %v9423_v40, 6  ;;  %v3905_v22 = vsel %vm9373_vm7, %v3904_v52, %v3900_v14  ;;  %v2756_v32 = vsel %vm2692_vm14, %v2609_v33, 0.0 }
 0x257   :  { %5610 = vtanh.f32 %v4610_v55  ;;  %5276 = vst.msk [vmem:[%s11824_s5 + $0x40] sm:$0xff] %vm4324_vm3, %v5212_v10  ;;  %v3906_v9 = vmul.f32 %v3905_v22, %v3140_v44  ;;  %v3077_v58 = vsel %vm3013_vm12, %v2930_v11, 0.0  ;;  %v3916_v55 = vand.u32 2147483647, %v9456_v0 }
 0x258   :  { %5612 = vrcp.f32 %v9456_v0  ;;  %v447_v13 = vand.u32 7, %v127_v57  ;;  %vm3912_vm4 = vweird.f32 %v9456_v0  ;;  %v1003_v17 = vsel %vm981_vm0, %v958_v1, %v11894_v62 }
 0x259   :  { %v1324_v56 = vsel %vm1302_vm1, %v1279_v25, %v11892_v15  ;;  %v11891_v52 = vrot.slane %v9423_v40, 5  ;;  %v9491_v44 = vadd.f32 %v3906_v9, %v9253_v60  ;;  %v2820_v22 = vadd.f32 %v2756_v32, %v2499_v16 }
 0x25a   :  { %v3918_v51 = vand.u32 2147483648, %v9456_v0  ;;  %vm1088_vm7 = vcmp.ge.s32.totalorder %v447_v13, 1  ;;  %vm1409_vm15 = vcmp.ge.s32.totalorder %v447_v13, 2  ;;  %vm1730_vm5 = vcmp.ge.s32.totalorder %v447_v13, 3 }
 0x25b   :  { %v1152_v33 = vsel %vm1088_vm7, %v1003_v17, 0.0  ;;  %v1645_v1 = vsel %vm1623_vm2, %v1600_v8, %v11891_v52  ;;  %5376 = vmatmul.msk.f32.gmra.mxu3 %vm4324_vm3, %v9491_v44  ;;  %vm9502_vm14 = vcmp.eq.f32.partialorder %v3916_v55, 8.507059e+37  ;;  %v1473_v59 = vsel %vm1409_vm15, %v1324_v56, 0.0  ;;  %v5039_v55 = vpop.f32.mrf.mxu1 }
 0x25c   :  { %v1216_v16 = vadd.f32 %v1152_v33, %v9423_v40  ;;  %v1794_v7 = vsel %vm1730_vm5, %v1645_v1, 0.0  ;;  %v11889_v29 = vrot.slane %v9423_v40, 4  ;;  %vm2051_vm12 = vcmp.ge.s32.totalorder %v447_v13, 4 }
 0x25d   :  { %v5611_v25 = vpop.eup %5610  ;;  %v11890_v11 = vrot.slane %v9423_v40, 3  ;;  %vm2372_vm9 = vcmp.ge.s32.totalorder %v447_v13, 5  ;;  %v11893_v8 = vrot.slane %v9423_v40, 2  ;;  %v3919_v57 = vor.u32 1.1754944e-38, %v3918_v51 }
 0x25e   :  { %v5613_v21 = vpop.eup %5612  ;;  %5425 = vmatmul.msk.f32.gmra.mxu1 %vm4802_vm13, %v5611_v25  ;;  %v1537_v14 = vadd.f32 %v1473_v59, %v1216_v16  ;;  %v12212_v32 = vrot.slane %v9352_v50, 4  ;;  %v12213_v56 = vrot.slane %v9352_v50, 3  ;;  %v12214_v51 = vrot.slane %v9352_v50, 2  ;;  %v4612_v25 = vpop.f32.mrf.mxu0 }
 0x25f   :  { %v3908_v10 = vmul.f32 %v5613_v21, %v9456_v0  ;;  %vm3913_vm7 = vweird.f32 %v5613_v21  ;;  %vm2693_vm15 = vcmp.ge.s32.totalorder %v447_v13, 6  ;;  %vm3014_vm5 = vcmp.ge.s32.totalorder %v447_v13, 7 }
 0x260   :  { %v1966_v9 = vsel %vm1944_vm6, %v12212_v32, %v11889_v29  ;;  %v2287_v33 = vsel %vm2265_vm8, %v12213_v56, %v11890_v11  ;;  %v2608_v1 = vsel %vm2586_vm10, %v12214_v51, %v11893_v8  ;;  %v1858_v59 = vadd.f32 %v1794_v7, %v1537_v14 }
 0x261   :  { %v2115_v17 = vsel %vm2051_vm12, %v1966_v9, 0.0  ;;  %v3909_v16 = vsub.f32 1.0, %v3908_v10  ;;  %v2436_v32 = vsel %vm2372_vm9, %v2287_v33, 0.0  ;;  %v9533_v9 = vld [vmem:[%s11820_s0 + $0x158] sm:$0xff]  ;;  %v2885_v29 = vrot.slane %v9423_v40, 1  ;;  %vm9542_vm12 = vmor %vm3912_vm4, %vm3913_vm7 }
 0x262   :  { %v3206_v56 = vcvt.s32.f32 %v447_v13  ;;  %v5040_v11 = vadd.f32 %v9441_v61, %v5039_v55  ;;  %v2179_v15 = vadd.f32 %v2115_v17, %v1858_v59  ;;  %v4613_v51 = vadd.f32 %v9453_v3, %v4612_v25 }
 0x263   :  { %v3910_v52 = vmul.f32 %v5613_v21, %v3909_v16  ;;  %v128_v10 = vadd.s32 344, %v5791_v5  ;;  %v12217_v14 = vrot.slane %v9352_v50, 1  ;;  %v11900_v25 = vrot.slane %v9533_v9, 7 }
 0x264   :  { %v3270_v33 = vadd.f32 1.0, %v3206_v56  ;;  %v5213_v17 = vadd.f32 %v5040_v11, %v6642_v37  ;;  %v3141_v16 = vadd.f32 %v3077_v58, %v2820_v22  ;;  %v2500_v8 = vadd.f32 %v2436_v32, %v2179_v15 }
 0x265   :  { %v2929_v55 = vsel %vm2907_vm11, %v12217_v14, %v2885_v29  ;;  %v3911_v59 = vadd.f32 %v5613_v21, %v3910_v52  ;;  %5614 = vtanh.f32 %v4613_v51  ;;  %v2757_v0 = vsel %vm2693_vm15, %v2608_v1, 0.0 }
 0x266   :  { %v3078_v62 = vsel %vm3014_vm5, %v2929_v55, 0.0  ;;  %5616 = vrcp.f32 %v3270_v33  ;;  %5277 = vst.msk [vmem:[%s11824_s5 + $0x48] sm:$0xff] %vm4324_vm3, %v5213_v17  ;;  %v3931_v37 = vand.u32 2147483647, %v3270_v33  ;;  %v454_v11 = vand.u32 7, %v128_v10 }
 0x267   :  { %v3915_v56 = vsel %vm9542_vm12, %v5613_v21, %v3911_v59  ;;  %v12218_v15 = vrot.slane %v9423_v40, 7  ;;  %vm3927_vm4 = vweird.f32 %v3270_v33  ;;  %v3933_v52 = vand.u32 2147483648, %v3270_v33 }
 0x268   :  { %v3920_v13 = vsel %vm9502_vm14, %v3919_v57, %v3915_v56  ;;  %v11897_v22 = vrot.slane %v9533_v9, 6  ;;  %v2821_v32 = vadd.f32 %v2757_v0, %v2500_v8  ;;  %vm1089_vm9 = vcmp.ge.s32.totalorder %v454_v11, 1 }
 0x269   :  { %v1002_v58 = vsel %vm981_vm0, %v12218_v15, %v11900_v25  ;;  %v3921_v1 = vmul.f32 %v3920_v13, %v3141_v16  ;;  %vm1410_vm7 = vcmp.ge.s32.totalorder %v454_v11, 2  ;;  %v12219_v51 = vrot.slane %v9423_v40, 6 }
 0x26a   :  { %v1153_v21 = vsel %vm1089_vm9, %v1002_v58, 0.0  ;;  %v11896_v7 = vrot.slane %v9533_v9, 5  ;;  %vm1731_vm15 = vcmp.ge.s32.totalorder %v454_v11, 3  ;;  %vm9581_vm14 = vcmp.eq.f32.partialorder %v3931_v37, 8.507059e+37 }
 0x26b   :  { %v1323_v10 = vsel %vm1302_vm1, %v12219_v51, %v11897_v22  ;;  %v5615_v60 = vpop.eup %5614  ;;  %v9579_v57 = vadd.f32 %v3921_v1, %v9352_v50  ;;  %v1217_v8 = vadd.f32 %v1153_v21, %v9533_v9  ;;  %v11895_v17 = vrot.slane %v9533_v9, 4 }
 0x26c   :  { %v1474_v55 = vsel %vm1410_vm7, %v1323_v10, 0.0  ;;  %v5617_v16 = vpop.eup %5616  ;;  %v3934_v59 = vor.u32 1.1754944e-38, %v3933_v52  ;;  %v12222_v0 = vrot.slane %v9423_v40, 5  ;;  %vm2052_vm5 = vcmp.ge.s32.totalorder %v454_v11, 4  ;;  %5426 = vmatmul.msk.f32.gmra.mxu1 %vm4802_vm13, %v5615_v60  ;;  %v5042_v10 = vpop.f32.mrf.mxu1 }
 0x26d   :  { %v11898_v50 = vrot.slane %v9533_v9, 3  ;;  %5377 = vmatmul.msk.f32.gmra.mxu3 %vm4324_vm3, %v9579_v57  ;;  %v3923_v37 = vmul.f32 %v5617_v16, %v3270_v33  ;;  %v1538_v15 = vadd.f32 %v1474_v55, %v1217_v8  ;;  %vm2373_vm12 = vcmp.ge.s32.totalorder %v454_v11, 5 }
 0x26e   :  { %v1644_v56 = vsel %vm1623_vm2, %v12222_v0, %v11896_v7  ;;  %vm3928_vm9 = vweird.f32 %v5617_v16  ;;  %v12223_v13 = vrot.slane %v9423_v40, 4  ;;  %v12224_v1 = vrot.slane %v9423_v40, 3  ;;  %v4615_v0 = vpop.f32.mrf.mxu0 }
 0x26f   :  { %v1795_v58 = vsel %vm1731_vm15, %v1644_v56, 0.0  ;;  %v11899_v51 = vrot.slane %v9533_v9, 2  ;;  %v3924_v60 = vsub.f32 1.0, %v3923_v37  ;;  %vm2694_vm7 = vcmp.ge.s32.totalorder %v454_v11, 6 }
 0x270   :  { %v1965_v52 = vsel %vm1944_vm6, %v12223_v13, %v11895_v17  ;;  %v2286_v21 = vsel %vm2265_vm8, %v12224_v1, %v11898_v50  ;;  %v1859_v8 = vadd.f32 %v1795_v58, %v1538_v15  ;;  %v12225_v13 = vrot.slane %v9423_v40, 2 }
 0x271   :  { %v2116_v55 = vsel %vm2052_vm5, %v1965_v52, 0.0  ;;  %v2437_v56 = vsel %vm2373_vm12, %v2286_v21, 0.0  ;;  %v2886_v7 = vrot.slane %v9533_v9, 1  ;;  %v3207_v22 = vcvt.s32.f32 %v454_v11  ;;  %vm9621_vm5 = vmor %vm3927_vm4, %vm3928_vm9 }
 0x272   :  { %v2607_v17 = vsel %vm2586_vm10, %v12225_v13, %v11899_v51  ;;  %v3925_v1 = vmul.f32 %v5617_v16, %v3924_v60  ;;  %v2180_v50 = vadd.f32 %v2116_v55, %v1859_v8  ;;  %vm3015_vm15 = vcmp.ge.s32.totalorder %v454_v11, 7  ;;  %v9639_v13 = vld [vmem:[%s11820_s0 + $0x160] sm:$0xff] }
 0x273   :  { %v5043_v37 = vadd.f32 %v9441_v61, %v5042_v10  ;;  %v2928_v58 = vsel %vm2907_vm11, %v2885_v29, %v2886_v7  ;;  %v9631_v52 = vadd.f32 1.0, %v3207_v22  ;;  %v4616_v21 = vadd.f32 %v9453_v3, %v4615_v0 }
 0x274   :  { %v129_v60 = vadd.s32 352, %v5791_v5  ;;  %v3142_v10 = vadd.f32 %v3078_v62, %v2821_v32  ;;  %v3926_v8 = vadd.f32 %v5617_v16, %v3925_v1  ;;  %v2501_v33 = vadd.f32 %v2437_v56, %v2180_v50 }
 0x275   :  { %v5214_v55 = vadd.f32 %v5043_v37, %v6721_v53  ;;  %v2758_v51 = vsel %vm2694_vm7, %v2607_v17, 0.0  ;;  %v3079_v25 = vsel %vm3015_vm15, %v2928_v58, 0.0  ;;  %5618 = vrcp.f32 %v9631_v52 }
 0x276   :  { %v3930_v29 = vsel %vm9621_vm5, %v5617_v16, %v3926_v8  ;;  %v3946_v22 = vand.u32 2147483647, %v9631_v52  ;;  %5620 = vtanh.f32 %v4616_v21  ;;  %v9650_v53 = vand.u32 7, %v129_v60 }
 0x277   :  { %5278 = vst.msk [vmem:[%s11824_s5 + $0x50] sm:$0xff] %vm4324_vm3, %v5214_v55  ;;  %v3935_v62 = vsel %vm9581_vm14, %v3934_v59, %v3930_v29  ;;  %vm3942_vm4 = vweird.f32 %v9631_v52  ;;  %v3948_v11 = vand.u32 2147483648, %v9631_v52  ;;  %v961_v32 = vrot.slane %v9639_v13, 7 }
 0x278   :  { %v3936_v17 = vmul.f32 %v3935_v62, %v3142_v10  ;;  %v2822_v16 = vadd.f32 %v2758_v51, %v2501_v33  ;;  %vm1090_vm12 = vcmp.ge.s32.totalorder %v9650_v53, 1  ;;  %v1282_v50 = vrot.slane %v9639_v13, 6 }
 0x279   :  { %v12228_v0 = vrot.slane %v9533_v9, 7  ;;  %vm1411_vm14 = vcmp.ge.s32.totalorder %v9650_v53, 2  ;;  %v11902_v59 = vrot.slane %v9639_v13, 5  ;;  %vm1732_vm9 = vcmp.ge.s32.totalorder %v9650_v53, 3 }
 0x27a   :  { %v9669_v56 = vadd.f32 %v3936_v17, %v9423_v40  ;;  %vm9671_vm7 = vcmp.eq.f32.partialorder %v3946_v22, 8.507059e+37  ;;  %v12231_v37 = vrot.slane %v9533_v9, 6  ;;  %v11901_v58 = vrot.slane %v9639_v13, 4 }
 0x27b   :  { %v1001_v14 = vsel %vm981_vm0, %v12228_v0, %v961_v32  ;;  %v5619_v21 = vpop.eup %5618  ;;  %v12232_v40 = vrot.slane %v9533_v9, 5  ;;  %vm2053_vm15 = vcmp.ge.s32.totalorder %v9650_v53, 4  ;;  %v3949_v29 = vor.u32 1.1754944e-38, %v3948_v11 }
 0x27c   :  { %v1154_v1 = vsel %vm1090_vm12, %v1001_v14, 0.0  ;;  %v1322_v15 = vsel %vm1302_vm1, %v12231_v37, %v1282_v50  ;;  %v5621_v33 = vpop.eup %5620  ;;  %5378 = vmatmul.msk.f32.gmra.mxu3 %vm4324_vm3, %v9669_v56  ;;  %v3938_v55 = vmul.f32 %v5619_v21, %v9631_v52  ;;  %v12233_v62 = vrot.slane %v9533_v9, 4 }
 0x27d   :  { %v1218_v60 = vadd.f32 %v1154_v1, %v9639_v13  ;;  %v1475_v10 = vsel %vm1411_vm14, %v1322_v15, 0.0  ;;  %v1643_v8 = vsel %vm1623_vm2, %v12232_v40, %v11902_v59  ;;  %vm3943_vm5 = vweird.f32 %v5619_v21  ;;  %5427 = vmatmul.msk.f32.gmra.mxu1 %vm4802_vm13, %v5621_v33  ;;  %v4618_v59 = vpop.f32.mrf.mxu0 }
 0x27e   :  { %v1796_v22 = vsel %vm1732_vm9, %v1643_v8, 0.0  ;;  %v1964_v17 = vsel %vm1944_vm6, %v12233_v62, %v11901_v58  ;;  %v11904_v14 = vrot.slane %v9639_v13, 3  ;;  %vm2374_vm12 = vcmp.ge.s32.totalorder %v9650_v53, 5  ;;  %v5045_v58 = vpop.f32.mrf.mxu1  ;;  %vm9721_vm9 = vmor %vm3942_vm4, %vm3943_vm5 }
 0x27f   :  { %v1539_v0 = vadd.f32 %v1475_v10, %v1218_v60  ;;  %v3939_v1 = vsub.f32 1.0, %v3938_v55  ;;  %v2117_v37 = vsel %vm2053_vm15, %v1964_v17, 0.0  ;;  %v11903_v11 = vrot.slane %v9639_v13, 2 }
 0x280   :  { %v2887_v15 = vrot.slane %v9639_v13, 1  ;;  %v3143_v40 = vadd.f32 %v3079_v25, %v2822_v16  ;;  %v12234_v62 = vrot.slane %v9533_v9, 3  ;;  %v3208_v10 = vcvt.s32.f32 %v9650_v53 }
 0x281   :  { %v1860_v8 = vadd.f32 %v1796_v22, %v1539_v0  ;;  %v3940_v33 = vmul.f32 %v5619_v21, %v3939_v1  ;;  %v12235_v17 = vrot.slane %v9533_v9, 2  ;;  %vm2695_vm14 = vcmp.ge.s32.totalorder %v9650_v53, 6 }
 0x282   :  { %v2285_v60 = vsel %vm2265_vm8, %v12234_v62, %v11904_v14  ;;  %v2927_v0 = vsel %vm2907_vm11, %v2886_v7, %v2887_v15  ;;  %vm3016_vm15 = vcmp.ge.s32.totalorder %v9650_v53, 7  ;;  %v3272_v1 = vadd.f32 1.0, %v3208_v10 }
 0x283   :  { %v2438_v55 = vsel %vm2374_vm12, %v2285_v60, 0.0  ;;  %v2606_v25 = vsel %vm2586_vm10, %v12235_v17, %v11903_v11  ;;  %v2181_v22 = vadd.f32 %v2117_v37, %v1860_v8  ;;  %v3941_v62 = vadd.f32 %v5619_v21, %v3940_v33  ;;  %v9738_v37 = vld [vmem:[%s11820_s0 + $0x168] sm:$0xff] }
 0x284   :  { %v5046_v60 = vadd.f32 %v9441_v61, %v5045_v58  ;;  %v4619_v52 = vadd.f32 %v9453_v3, %v4618_v59  ;;  %v130_v17 = vadd.s32 360, %v5791_v5  ;;  %v2759_v14 = vsel %vm2695_vm14, %v2606_v25, 0.0 }
 0x285   :  { %v2502_v11 = vadd.f32 %v2438_v55, %v2181_v22  ;;  %5622 = vrcp.f32 %v3272_v1  ;;  %v3945_v7 = vsel %vm9721_vm9, %v5619_v21, %v3941_v62  ;;  %v3961_v53 = vand.u32 2147483647, %v3272_v1 }
 0x286   :  { %v5215_v8 = vadd.f32 %v5046_v60, %v6795_v41  ;;  %5624 = vtanh.f32 %v4619_v52  ;;  %v3950_v59 = vsel %vm9671_vm7, %v3949_v29, %v3945_v7  ;;  %v3080_v58 = vsel %vm3016_vm15, %v2927_v0, 0.0 }
 0x287   :  { %vm3957_vm4 = vweird.f32 %v3272_v1  ;;  %v9745_v10 = vand.u32 7, %v130_v17  ;;  %v3951_v33 = vmul.f32 %v3950_v59, %v3143_v40  ;;  %v3963_v55 = vand.u32 2147483648, %v3272_v1 }
 0x288   :  { %5279 = vst.msk [vmem:[%s11824_s5 + $0x58] sm:$0xff] %vm4324_vm3, %v5215_v8  ;;  %v962_v21 = vrot.slane %v9738_v37, 7  ;;  %v11908_v25 = vrot.slane %v9738_v37, 6  ;;  %v2823_v41 = vadd.f32 %v2759_v14, %v2502_v11  ;;  %v11906_v51 = vrot.slane %v9738_v37, 5 }
 0x289   :  { %vm1091_vm5 = vcmp.ge.s32.totalorder %v9745_v10, 1  ;;  %vm1412_vm7 = vcmp.ge.s32.totalorder %v9745_v10, 2  ;;  %v9757_v29 = vadd.f32 %v3951_v33, %v9533_v9  ;;  %vm9759_vm12 = vcmp.eq.f32.partialorder %v3961_v53, 8.507059e+37 }
 0x28a   :  { %v1000_v14 = vsel %vm981_vm0, %v961_v32, %v962_v21  ;;  %v1321_v11 = vsel %vm1302_vm1, %v1282_v50, %v11908_v25  ;;  %vm1733_vm14 = vcmp.ge.s32.totalorder %v9745_v10, 3  ;;  %v12240_v0 = vrot.slane %v9639_v13, 5 }
 0x28b   :  { %v5623_v9 = vpop.eup %5622  ;;  %v1155_v16 = vsel %vm1091_vm5, %v1000_v14, 0.0  ;;  %v1476_v22 = vsel %vm1412_vm7, %v1321_v11, 0.0  ;;  %v11905_v32 = vrot.slane %v9738_v37, 4  ;;  %5379 = vmatmul.msk.f32.gmra.mxu3 %vm4324_vm3, %v9757_v29  ;;  %v3964_v50 = vor.u32 1.1754944e-38, %v3963_v55  ;;  %v5048_v11 = vpop.f32.mrf.mxu1 }
 0x28c   :  { %v1642_v62 = vsel %vm1623_vm2, %v12240_v0, %v11906_v51  ;;  %v5625_v60 = vpop.eup %5624  ;;  %v3953_v52 = vmul.f32 %v5623_v9, %v3272_v1  ;;  %vm3958_vm9 = vweird.f32 %v5623_v9  ;;  %v1219_v17 = vadd.f32 %v1155_v16, %v9738_v37  ;;  %v4621_v51 = vpop.f32.mrf.mxu0 }
 0x28d   :  { %v1797_v7 = vsel %vm1733_vm14, %v1642_v62, 0.0  ;;  %v12241_v53 = vrot.slane %v9639_v13, 4  ;;  %vm2054_vm15 = vcmp.ge.s32.totalorder %v9745_v10, 4  ;;  %v11907_v59 = vrot.slane %v9738_v37, 3  ;;  %5428 = vmatmul.msk.f32.gmra.mxu1 %vm4802_vm13, %v5625_v60 }
 0x28e   :  { %v3954_v33 = vsub.f32 1.0, %v3953_v52  ;;  %v1540_v14 = vadd.f32 %v1476_v22, %v1219_v17  ;;  %vm2375_vm5 = vcmp.ge.s32.totalorder %v9745_v10, 5  ;;  %v11909_v55 = vrot.slane %v9738_v37, 2 }
 0x28f   :  { %v1963_v8 = vsel %vm1944_vm6, %v12241_v53, %v11905_v32  ;;  %v3144_v16 = vadd.f32 %v3080_v58, %v2823_v41  ;;  %v12242_v62 = vrot.slane %v9639_v13, 3  ;;  %v2888_v32 = vrot.slane %v9738_v37, 1  ;;  %v9809_v58 = vld [vmem:[%s11820_s0 + $0x170] sm:$0xff] }
 0x290   :  { %v2118_v0 = vsel %vm2054_vm15, %v1963_v8, 0.0  ;;  %v3955_v60 = vmul.f32 %v5623_v9, %v3954_v33  ;;  %v1861_v52 = vadd.f32 %v1797_v7, %v1540_v14  ;;  %vm2696_vm7 = vcmp.ge.s32.totalorder %v9745_v10, 6  ;;  %vm9813_vm15 = vmor %vm3957_vm4, %vm3958_vm9 }
 0x291   :  { %v2284_v53 = vsel %vm2265_vm8, %v12242_v62, %v11907_v59  ;;  %vm3017_vm14 = vcmp.ge.s32.totalorder %v9745_v10, 7  ;;  %v12245_v17 = vrot.slane %v9639_v13, 2  ;;  %v3209_v8 = vcvt.s32.f32 %v9745_v10 }
 0x292   :  { %v2439_v22 = vsel %vm2375_vm5, %v2284_v53, 0.0  ;;  %v5049_v33 = vadd.f32 %v9441_v61, %v5048_v11  ;;  %v3956_v14 = vadd.f32 %v5623_v9, %v3955_v60  ;;  %v2182_v62 = vadd.f32 %v2118_v0, %v1861_v52 }
 0x293   :  { %v2605_v7 = vsel %vm2586_vm10, %v12245_v17, %v11909_v55  ;;  %v2926_v1 = vsel %vm2907_vm11, %v2887_v15, %v2888_v32  ;;  %v4622_v53 = vadd.f32 %v9453_v3, %v4621_v51  ;;  %v9832_v59 = vadd.f32 1.0, %v3209_v8 }
 0x294   :  { %v5216_v25 = vadd.f32 %v5049_v33, %v6882_v39  ;;  %v131_v17 = vadd.s32 368, %v5791_v5  ;;  %v11914_v55 = vrot.slane %v9809_v58, 7  ;;  %v3960_v11 = vsel %vm9813_vm15, %v5623_v9, %v3956_v14 }
 0x295   :  { %v2503_v0 = vadd.f32 %v2439_v22, %v2182_v62  ;;  %5626 = vtanh.f32 %v4622_v53  ;;  %v11913_v60 = vrot.slane %v9809_v58, 6  ;;  %v3965_v15 = vsel %vm9759_vm12, %v3964_v50, %v3960_v11 }
 0x296   :  { %v2760_v51 = vsel %vm2696_vm7, %v2605_v7, 0.0  ;;  %5628 = vrcp.f32 %v9832_v59  ;;  %5280 = vst.msk [vmem:[%s11824_s5 + $0x60] sm:$0xff] %vm4324_vm3, %v5216_v25  ;;  %v3966_v39 = vmul.f32 %v3965_v15, %v3144_v16  ;;  %v3081_v9 = vsel %vm3017_vm14, %v2926_v1, 0.0 }
 0x297   :  { %v3976_v52 = vand.u32 2147483647, %v9832_v59  ;;  %v475_v41 = vand.u32 7, %v131_v17  ;;  %vm3972_vm4 = vweird.f32 %v9832_v59  ;;  %v999_v40 = vsel %vm981_vm0, %v962_v21, %v11914_v55 }
 0x298   :  { %v12246_v25 = vrot.slane %v9738_v37, 6  ;;  %v11911_v50 = vrot.slane %v9809_v58, 5  ;;  %v9867_v16 = vadd.f32 %v3966_v39, %v9639_v13  ;;  %v2824_v22 = vadd.f32 %v2760_v51, %v2503_v0 }
 0x299   :  { %v3978_v7 = vand.u32 2147483648, %v9832_v59  ;;  %vm1092_vm12 = vcmp.ge.s32.totalorder %v475_v41, 1  ;;  %vm1413_vm9 = vcmp.ge.s32.totalorder %v475_v41, 2  ;;  %v12247_v21 = vrot.slane %v9738_v37, 5 }
 0x29a   :  { %v1320_v10 = vsel %vm1302_vm1, %v12246_v25, %v11913_v60  ;;  %v1156_v8 = vsel %vm1092_vm12, %v999_v40, 0.0  ;;  %vm1734_vm5 = vcmp.ge.s32.totalorder %v475_v41, 3  ;;  %5380 = vmatmul.msk.f32.gmra.mxu3 %vm4324_vm3, %v9867_v16  ;;  %vm9878_vm7 = vcmp.eq.f32.partialorder %v3976_v52, 8.507059e+37 }
 0x29b   :  { %v1641_v33 = vsel %vm1623_vm2, %v12247_v21, %v11911_v50  ;;  %v5627_v14 = vpop.eup %5626  ;;  %v1220_v62 = vadd.f32 %v1156_v8, %v9809_v58  ;;  %v1477_v1 = vsel %vm1413_vm9, %v1320_v10, 0.0  ;;  %v11910_v17 = vrot.slane %v9809_v58, 4  ;;  %v5051_v10 = vpop.f32.mrf.mxu1 }
 0x29c   :  { %v1798_v53 = vsel %vm1734_vm5, %v1641_v33, 0.0  ;;  %v5629_v11 = vpop.eup %5628  ;;  %vm2055_vm14 = vcmp.ge.s32.totalorder %v475_v41, 4  ;;  %v11912_v0 = vrot.slane %v9809_v58, 3  ;;  %vm2376_vm15 = vcmp.ge.s32.totalorder %v475_v41, 5  ;;  %5429 = vmatmul.msk.f32.gmra.mxu1 %vm4802_vm13, %v5627_v14 }
 0x29d   :  { %v11915_v15 = vrot.slane %v9809_v58, 2  ;;  %v3968_v51 = vmul.f32 %v5629_v11, %v9832_v59  ;;  %v3979_v39 = vor.u32 1.1754944e-38, %v3978_v7  ;;  %v1541_v52 = vadd.f32 %v1477_v1, %v1220_v62  ;;  %v4624_v62 = vpop.f32.mrf.mxu0 }
 0x29e   :  { %v12250_v40 = vrot.slane %v9738_v37, 4  ;;  %vm3973_vm12 = vweird.f32 %v5629_v11  ;;  %v12251_v21 = vrot.slane %v9738_v37, 3  ;;  %v12252_v7 = vrot.slane %v9738_v37, 2 }
 0x29f   :  { %v3969_v1 = vsub.f32 1.0, %v3968_v51  ;;  %vm2697_vm9 = vcmp.ge.s32.totalorder %v475_v41, 6  ;;  %v2889_v50 = vrot.slane %v9809_v58, 1  ;;  %vm3018_vm5 = vcmp.ge.s32.totalorder %v475_v41, 7 }
 0x2a0   :  { %v1962_v25 = vsel %vm1944_vm6, %v12250_v40, %v11910_v17  ;;  %v2283_v33 = vsel %vm2265_vm8, %v12251_v21, %v11912_v0  ;;  %v2604_v14 = vsel %vm2586_vm10, %v12252_v7, %v11915_v15  ;;  %v1862_v40 = vadd.f32 %v1798_v53, %v1541_v52 }
 0x2a1   :  { %v2119_v8 = vsel %vm2055_vm14, %v1962_v25, 0.0  ;;  %v2440_v17 = vsel %vm2376_vm15, %v2283_v33, 0.0  ;;  %v9909_v25 = vld [vmem:[%s11820_s0 + $0x178] sm:$0xff]  ;;  %v3210_v21 = vcvt.s32.f32 %v475_v41  ;;  %v5052_v0 = vadd.f32 %v9441_v61, %v5051_v10  ;;  %vm9918_vm14 = vmor %vm3972_vm4, %vm3973_vm12 }
 0x2a2   :  { %v3970_v60 = vmul.f32 %v5629_v11, %v3969_v1  ;;  %v2183_v55 = vadd.f32 %v2119_v8, %v1862_v40  ;;  %v4625_v7 = vadd.f32 %v9453_v3, %v4624_v62  ;;  %v132_v51 = vadd.s32 376, %v5791_v5 }
 0x2a3   :  { %v2925_v52 = vsel %vm2907_vm11, %v2888_v32, %v2889_v50  ;;  %v3274_v10 = vadd.f32 1.0, %v3210_v21  ;;  %v5217_v8 = vadd.f32 %v5052_v0, %v6974_v19  ;;  %v11921_v33 = vrot.slane %v9909_v25, 7 }
 0x2a4   :  { %v3145_v62 = vadd.f32 %v3081_v9, %v2824_v22  ;;  %v3971_v1 = vadd.f32 %v5629_v11, %v3970_v60  ;;  %v2504_v40 = vadd.f32 %v2440_v17, %v2183_v55  ;;  %5630 = vtanh.f32 %v4625_v7 }
 0x2a5   :  { %v2761_v59 = vsel %vm2697_vm9, %v2604_v14, 0.0  ;;  %v3082_v15 = vsel %vm3018_vm5, %v2925_v52, 0.0  ;;  %5632 = vrcp.f32 %v3274_v10  ;;  %5281 = vst.msk [vmem:[%s11824_s5 + $0x68] sm:$0xff] %vm4324_vm3, %v5217_v8  ;;  %v3991_v19 = vand.u32 2147483647, %v3274_v10 }
 0x2a6   :  { %v3975_v32 = vsel %vm9918_vm14, %v5629_v11, %v3971_v1  ;;  %v482_v0 = vand.u32 7, %v132_v51  ;;  %v12255_v55 = vrot.slane %v9809_v58, 7  ;;  %vm3987_vm4 = vweird.f32 %v3274_v10 }
 0x2a7   :  { %v3980_v9 = vsel %vm9878_vm7, %v3979_v39, %v3975_v32  ;;  %v3993_v41 = vand.u32 2147483648, %v3274_v10  ;;  %v11918_v22 = vrot.slane %v9909_v25, 6  ;;  %v2825_v14 = vadd.f32 %v2761_v59, %v2504_v40 }
 0x2a8   :  { %v998_v60 = vsel %vm981_vm0, %v12255_v55, %v11921_v33  ;;  %v3981_v17 = vmul.f32 %v3980_v9, %v3145_v62  ;;  %vm1093_vm15 = vcmp.ge.s32.totalorder %v482_v0, 1  ;;  %vm1414_vm12 = vcmp.ge.s32.totalorder %v482_v0, 2 }
 0x2a9   :  { %v1157_v11 = vsel %vm1093_vm15, %v998_v60, 0.0  ;;  %v12256_v21 = vrot.slane %v9809_v58, 6  ;;  %v11917_v51 = vrot.slane %v9909_v25, 5  ;;  %vm1735_vm9 = vcmp.ge.s32.totalorder %v482_v0, 3 }
 0x2aa   :  { %v5631_v13 = vpop.eup %5630  ;;  %v9955_v39 = vadd.f32 %v3981_v17, %v9738_v37  ;;  %vm9957_vm7 = vcmp.eq.f32.partialorder %v3991_v19, 8.507059e+37  ;;  %v1221_v52 = vadd.f32 %v1157_v11, %v9909_v25  ;;  %v11916_v62 = vrot.slane %v9909_v25, 4 }
 0x2ab   :  { %v1319_v7 = vsel %vm1302_vm1, %v12256_v21, %v11918_v22  ;;  %v5633_v1 = vpop.eup %5632  ;;  %v3994_v40 = vor.u32 1.1754944e-38, %v3993_v41  ;;  %v12259_v59 = vrot.slane %v9809_v58, 5  ;;  %vm2056_vm5 = vcmp.ge.s32.totalorder %v482_v0, 4  ;;  %5430 = vmatmul.msk.f32.gmra.mxu1 %vm4802_vm13, %v5631_v13 }
 0x2ac   :  { %v1478_v8 = vsel %vm1414_vm12, %v1319_v7, 0.0  ;;  %v11919_v37 = vrot.slane %v9909_v25, 3  ;;  %5381 = vmatmul.msk.f32.gmra.mxu3 %vm4324_vm3, %v9955_v39  ;;  %v3983_v19 = vmul.f32 %v5633_v1, %v3274_v10  ;;  %vm2377_vm14 = vcmp.ge.s32.totalorder %v482_v0, 5  ;;  %v5054_v7 = vpop.f32.mrf.mxu1 }
 0x2ad   :  { %v1640_v32 = vsel %vm1623_vm2, %v12259_v59, %v11917_v51  ;;  %v1542_v55 = vadd.f32 %v1478_v8, %v1221_v52  ;;  %vm3988_vm15 = vweird.f32 %v5633_v1  ;;  %v12260_v9 = vrot.slane %v9809_v58, 4  ;;  %v4627_v59 = vpop.f32.mrf.mxu0 }
 0x2ae   :  { %v1799_v60 = vsel %vm1735_vm9, %v1640_v32, 0.0  ;;  %v12261_v17 = vrot.slane %v9809_v58, 3  ;;  %v11920_v21 = vrot.slane %v9909_v25, 2  ;;  %v3984_v13 = vsub.f32 1.0, %v3983_v19 }
 0x2af   :  { %v1961_v41 = vsel %vm1944_vm6, %v12260_v9, %v11916_v62  ;;  %v1863_v52 = vadd.f32 %v1799_v60, %v1542_v55  ;;  %vm2698_vm12 = vcmp.ge.s32.totalorder %v482_v0, 6  ;;  %v12262_v9 = vrot.slane %v9809_v58, 2 }
 0x2b0   :  { %v2282_v11 = vsel %vm2265_vm8, %v12261_v17, %v11919_v37  ;;  %v2120_v8 = vsel %vm2056_vm5, %v1961_v41, 0.0  ;;  %v2890_v51 = vrot.slane %v9909_v25, 1  ;;  %v3211_v22 = vcvt.s32.f32 %v482_v0  ;;  %vm9997_vm5 = vmor %vm3987_vm4, %vm3988_vm15 }
 0x2b1   :  { %v2441_v32 = vsel %vm2377_vm14, %v2282_v11, 0.0  ;;  %v2603_v62 = vsel %vm2586_vm10, %v12262_v9, %v11920_v21  ;;  %v3985_v17 = vmul.f32 %v5633_v1, %v3984_v13  ;;  %v2184_v37 = vadd.f32 %v2120_v8, %v1863_v52  ;;  %v10015_v9 = vld [vmem:[%s11820_s0 + $0x180] sm:$0xff] }
 0x2b2   :  { %vm3019_vm9 = vcmp.ge.s32.totalorder %v482_v0, 7  ;;  %v5055_v19 = vadd.f32 %v9441_v61, %v5054_v7  ;;  %v2924_v60 = vsel %vm2907_vm11, %v2889_v50, %v2890_v51  ;;  %v10007_v41 = vadd.f32 1.0, %v3211_v22 }
 0x2b3   :  { %v4628_v11 = vadd.f32 %v9453_v3, %v4627_v59  ;;  %v133_v13 = vadd.s32 384, %v5791_v5  ;;  %v3146_v7 = vadd.f32 %v3082_v15, %v2825_v14  ;;  %v3986_v52 = vadd.f32 %v5633_v1, %v3985_v17 }
 0x2b4   :  { %v2505_v10 = vadd.f32 %v2441_v32, %v2184_v37  ;;  %v5218_v8 = vadd.f32 %v5055_v19, %v7092_v46  ;;  %v2762_v21 = vsel %vm2698_vm12, %v2603_v62, 0.0  ;;  %v3083_v33 = vsel %vm3019_vm9, %v2924_v60, 0.0 }
 0x2b5   :  { %5634 = vrcp.f32 %v10007_v41  ;;  %v3990_v50 = vsel %vm9997_vm5, %v5633_v1, %v3986_v52  ;;  %v4006_v22 = vand.u32 2147483647, %v10007_v41  ;;  %v10026_v46 = vand.u32 7, %v133_v13 }
 0x2b6   :  { %5282 = vst.msk [vmem:[%s11824_s5 + $0x70] sm:$0xff] %vm4324_vm3, %v5218_v8  ;;  %5636 = vtanh.f32 %v4628_v11  ;;  %v3995_v15 = vsel %vm9957_vm7, %v3994_v40, %v3990_v50  ;;  %vm4002_vm4 = vweird.f32 %v10007_v41  ;;  %v4008_v0 = vand.u32 2147483648, %v10007_v41 }
 0x2b7   :  { %v965_v14 = vrot.slane %v10015_v9, 7  ;;  %v3996_v62 = vmul.f32 %v3995_v15, %v3146_v7  ;;  %v2826_v1 = vadd.f32 %v2762_v21, %v2505_v10  ;;  %vm1094_vm14 = vcmp.ge.s32.totalorder %v10026_v46, 1 }
 0x2b8   :  { %v1286_v37 = vrot.slane %v10015_v9, 6  ;;  %v12265_v59 = vrot.slane %v9909_v25, 7  ;;  %vm1415_vm7 = vcmp.ge.s32.totalorder %v10026_v46, 2  ;;  %v11923_v40 = vrot.slane %v10015_v9, 5 }
 0x2b9   :  { %vm1736_vm15 = vcmp.ge.s32.totalorder %v10026_v46, 3  ;;  %v10045_v32 = vadd.f32 %v3996_v62, %v9809_v58  ;;  %vm10047_vm12 = vcmp.eq.f32.partialorder %v4006_v22, 8.507059e+37  ;;  %v12268_v19 = vrot.slane %v9909_v25, 6 }
 0x2ba   :  { %v997_v53 = vsel %vm981_vm0, %v12265_v59, %v965_v14  ;;  %v11922_v60 = vrot.slane %v10015_v9, 4  ;;  %v12269_v58 = vrot.slane %v9909_v25, 5  ;;  %vm2057_vm9 = vcmp.ge.s32.totalorder %v10026_v46, 4 }
 0x2bb   :  { %v1158_v17 = vsel %vm1094_vm14, %v997_v53, 0.0  ;;  %v1318_v55 = vsel %vm1302_vm1, %v12268_v19, %v1286_v37  ;;  %v5635_v11 = vpop.eup %5634  ;;  %5382 = vmatmul.msk.f32.gmra.mxu3 %vm4324_vm3, %v10045_v32  ;;  %v4009_v50 = vor.u32 1.1754944e-38, %v4008_v0  ;;  %v12270_v15 = vrot.slane %v9909_v25, 4 }
 0x2bc   :  { %v1222_v13 = vadd.f32 %v1158_v17, %v10015_v9  ;;  %v1479_v7 = vsel %vm1415_vm7, %v1318_v55, 0.0  ;;  %v1639_v52 = vsel %vm1623_vm2, %v12269_v58, %v11923_v40  ;;  %v5637_v10 = vpop.eup %5636  ;;  %v3998_v8 = vmul.f32 %v5635_v11, %v10007_v41  ;;  %v4630_v40 = vpop.f32.mrf.mxu0 }
 0x2bd   :  { %v1800_v22 = vsel %vm1736_vm15, %v1639_v52, 0.0  ;;  %v1960_v62 = vsel %vm1944_vm6, %v12270_v15, %v11922_v60  ;;  %vm4003_vm5 = vweird.f32 %v5635_v11  ;;  %v11925_v53 = vrot.slane %v10015_v9, 3  ;;  %5431 = vmatmul.msk.f32.gmra.mxu1 %vm4802_vm13, %v5637_v10  ;;  %v5057_v60 = vpop.f32.mrf.mxu1 }
 0x2be   :  { %v1543_v59 = vadd.f32 %v1479_v7, %v1222_v13  ;;  %vm2378_vm14 = vcmp.ge.s32.totalorder %v10026_v46, 5  ;;  %v3999_v17 = vsub.f32 1.0, %v3998_v8  ;;  %v2121_v19 = vsel %vm2057_vm9, %v1960_v62, 0.0  ;;  %vm10097_vm15 = vmor %vm4002_vm4, %vm4003_vm5 }
 0x2bf   :  { %v11924_v0 = vrot.slane %v10015_v9, 2  ;;  %v2891_v55 = vrot.slane %v10015_v9, 1  ;;  %v3147_v58 = vadd.f32 %v3083_v33, %v2826_v1  ;;  %v12271_v15 = vrot.slane %v9909_v25, 3 }
 0x2c0   :  { %v1864_v52 = vadd.f32 %v1800_v22, %v1543_v59  ;;  %v3212_v7 = vcvt.s32.f32 %v10026_v46  ;;  %v4000_v10 = vmul.f32 %v5635_v11, %v3999_v17  ;;  %v12272_v62 = vrot.slane %v9909_v25, 2 }
 0x2c1   :  { %v2281_v13 = vsel %vm2265_vm8, %v12271_v15, %v11925_v53  ;;  %vm2699_vm7 = vcmp.ge.s32.totalorder %v10026_v46, 6  ;;  %v2923_v59 = vsel %vm2907_vm11, %v2890_v51, %v2891_v55  ;;  %vm3020_vm9 = vcmp.ge.s32.totalorder %v10026_v46, 7 }
 0x2c2   :  { %v2442_v8 = vsel %vm2378_vm14, %v2281_v13, 0.0  ;;  %v2602_v33 = vsel %vm2586_vm10, %v12272_v62, %v11924_v0  ;;  %v2185_v22 = vadd.f32 %v2121_v19, %v1864_v52  ;;  %v3276_v17 = vadd.f32 1.0, %v3212_v7  ;;  %v10114_v19 = vld [vmem:[%s11820_s0 + $0x188] sm:$0xff] }
 0x2c3   :  { %v4001_v15 = vadd.f32 %v5635_v11, %v4000_v10  ;;  %v5058_v13 = vadd.f32 %v9441_v61, %v5057_v60  ;;  %v4631_v41 = vadd.f32 %v9453_v3, %v4630_v40  ;;  %v134_v62 = vadd.s32 392, %v5791_v5 }
 0x2c4   :  { %v2506_v0 = vadd.f32 %v2442_v8, %v2185_v22  ;;  %v2763_v53 = vsel %vm2699_vm7, %v2602_v33, 0.0  ;;  %5638 = vrcp.f32 %v3276_v17  ;;  %v4021_v46 = vand.u32 2147483647, %v3276_v17 }
 0x2c5   :  { %v4005_v51 = vsel %vm10097_vm15, %v5635_v11, %v4001_v15  ;;  %v5219_v52 = vadd.f32 %v5058_v13, %v7181_v12  ;;  %5640 = vtanh.f32 %v4631_v41  ;;  %v3084_v3 = vsel %vm3020_vm9, %v2923_v59, 0.0 }
 0x2c6   :  { %v4010_v61 = vsel %vm10047_vm12, %v4009_v50, %v4005_v51  ;;  %vm4017_vm4 = vweird.f32 %v3276_v17  ;;  %v10121_v40 = vand.u32 7, %v134_v62  ;;  %v4023_v7 = vand.u32 2147483648, %v3276_v17 }
 0x2c7   :  { %v4011_v60 = vmul.f32 %v4010_v61, %v3147_v58  ;;  %5283 = vst.msk [vmem:[%s11824_s5 + $0x78] sm:$0xff] %vm4324_vm3, %v5219_v52  ;;  %v966_v11 = vrot.slane %v10114_v19, 7  ;;  %v1287_v10 = vrot.slane %v10114_v19, 6  ;;  %v2827_v12 = vadd.f32 %v2763_v53, %v2506_v0 }
 0x2c8   :  { %vm1095_vm5 = vcmp.ge.s32.totalorder %v10121_v40, 1  ;;  %vm1416_vm12 = vcmp.ge.s32.totalorder %v10121_v40, 2  ;;  %v1608_v21 = vrot.slane %v10114_v19, 5  ;;  %vm10135_vm14 = vcmp.eq.f32.partialorder %v4021_v46, 8.507059e+37 }
 0x2c9   :  { %v10133_v50 = vadd.f32 %v4011_v60, %v9909_v25  ;;  %v996_v53 = vsel %vm981_vm0, %v965_v14, %v966_v11  ;;  %v1317_v0 = vsel %vm1302_vm1, %v1286_v37, %v1287_v10  ;;  %vm1737_vm7 = vcmp.ge.s32.totalorder %v10121_v40, 3 }
 0x2ca   :  { %v5639_v25 = vpop.eup %5638  ;;  %v1159_v8 = vsel %vm1095_vm5, %v996_v53, 0.0  ;;  %v1480_v33 = vsel %vm1416_vm12, %v1317_v0, 0.0  ;;  %v12277_v1 = vrot.slane %v10015_v9, 5  ;;  %v11928_v14 = vrot.slane %v10114_v19, 4 }
 0x2cb   :  { %v5641_v59 = vpop.eup %5640  ;;  %5383 = vmatmul.msk.f32.gmra.mxu3 %vm4324_vm3, %v10133_v50  ;;  %v4013_v15 = vmul.f32 %v5639_v25, %v3276_v17  ;;  %vm4018_vm15 = vweird.f32 %v5639_v25  ;;  %v4024_v37 = vor.u32 1.1754944e-38, %v4023_v7  ;;  %v1223_v13 = vadd.f32 %v1159_v8, %v10114_v19  ;;  %v5060_v7 = vpop.f32.mrf.mxu1 }
 0x2cc   :  { %v1638_v22 = vsel %vm1623_vm2, %v12277_v1, %v1608_v21  ;;  %v12278_v62 = vrot.slane %v10015_v9, 4  ;;  %vm2058_vm9 = vcmp.ge.s32.totalorder %v10121_v40, 4  ;;  %v11927_v46 = vrot.slane %v10114_v19, 3  ;;  %5432 = vmatmul.msk.f32.vlgmr.msra.gmra.mxu2 %vm4802_vm13, %v5641_v59 }
 0x2cd   :  { %v1801_v41 = vsel %vm1737_vm7, %v1638_v22, 0.0  ;;  %v4014_v52 = vsub.f32 1.0, %v4013_v15  ;;  %v1544_v61 = vadd.f32 %v1480_v33, %v1223_v13  ;;  %vm2379_vm5 = vcmp.ge.s32.totalorder %v10121_v40, 5 }
 0x2ce   :  { %v1959_v51 = vsel %vm1944_vm6, %v12278_v62, %v11928_v14  ;;  %v11926_v60 = vrot.slane %v10114_v19, 2  ;;  %v3148_v53 = vadd.f32 %v3084_v3, %v2827_v12  ;;  %v12279_v8 = vrot.slane %v10015_v9, 3  ;;  %v4633_v62 = vpop.f32.mrf.mxu3  ;;  %v10185_v3 = vld [vmem:[%s11820_s0 + $0x190] sm:$0xff] }
 0x2cf   :  { %v2122_v0 = vsel %vm2058_vm9, %v1959_v51, 0.0  ;;  %v11929_v22 = vrot.slane %v10114_v19, 1  ;;  %v4015_v59 = vmul.f32 %v5639_v25, %v4014_v52  ;;  %v1865_v15 = vadd.f32 %v1801_v41, %v1544_v61  ;;  %vm10189_vm9 = vmor %vm4017_vm4, %vm4018_vm15  ;;  %v10203_v52 = vld [vmem:[%s11823_s4] ss:$0 sm:$0xff] }
 0x2d0   :  { %v2280_v1 = vsel %vm2265_vm8, %v12279_v8, %v11927_v46  ;;  %vm2700_vm12 = vcmp.ge.s32.totalorder %v10121_v40, 6  ;;  %vm3021_vm7 = vcmp.ge.s32.totalorder %v10121_v40, 7  ;;  %v12282_v13 = vrot.slane %v10015_v9, 2 }
 0x2d1   :  { %v2443_v33 = vsel %vm2379_vm5, %v2280_v1, 0.0  ;;  %v3213_v51 = vcvt.s32.f32 %v10121_v40  ;;  %v5061_v17 = vadd.f32 %v10203_v52, %v5060_v7  ;;  %v4016_v61 = vadd.f32 %v5639_v25, %v4015_v59 }
 0x2d2   :  { %v2601_v41 = vsel %vm2586_vm10, %v12282_v13, %v11926_v60  ;;  %v2186_v8 = vadd.f32 %v2122_v0, %v1865_v15  ;;  %v2922_v1 = vsel %vm2907_vm11, %v2891_v55, %v11929_v22  ;;  %v10215_v13 = vld [vmem:[%s11821_s2] ss:$0 sm:$0xff]  ;;  %v135_v0 = vadd.s32 400, %v5791_v5 }
 0x2d3   :  { %v4634_v60 = vadd.f32 %v10215_v13, %v4633_v62  ;;  %v10218_v46 = vadd.f32 1.0, %v3213_v51  ;;  %v5220_v7 = vadd.f32 %v5061_v17, %v7263_v38  ;;  %v11935_v59 = vrot.slane %v10185_v3, 7 }
 0x2d4   :  { %v4020_v15 = vsel %vm10189_vm9, %v5639_v25, %v4016_v61  ;;  %v2507_v14 = vadd.f32 %v2443_v33, %v2186_v8  ;;  %v11933_v55 = vrot.slane %v10185_v3, 6  ;;  %v2764_v62 = vsel %vm2700_vm12, %v2601_v41, 0.0 }
 0x2d5   :  { %5642 = vtanh.f32 %v4634_v60  ;;  %v4025_v22 = vsel %vm10135_vm14, %v4024_v37, %v4020_v15  ;;  %5284 = vst.msk [vmem:[%s11824_s5 + $0x80] sm:$0xff] %vm4324_vm3, %v5220_v7  ;;  %v3085_v25 = vsel %vm3021_vm7, %v2922_v1, 0.0  ;;  %v4036_v60 = vand.u32 2147483647, %v10218_v46 }
 0x2d6   :  { %5644 = vrcp.f32 %v10218_v46  ;;  %v4026_v38 = vmul.f32 %v4025_v22, %v3148_v53  ;;  %v503_v12 = vand.u32 7, %v135_v0  ;;  %vm4032_vm4 = vweird.f32 %v10218_v46 }
 0x2d7   :  { %v995_v58 = vsel %vm981_vm0, %v966_v11, %v11935_v59  ;;  %v1316_v40 = vsel %vm1302_vm1, %v1287_v10, %v11933_v55  ;;  %v11932_v37 = vrot.slane %v10185_v3, 5  ;;  %v2828_v22 = vadd.f32 %v2764_v62, %v2507_v14 }
 0x2d8   :  { %v10253_v53 = vadd.f32 %v4026_v38, %v10015_v9  ;;  %v4038_v33 = vand.u32 2147483648, %v10218_v46  ;;  %vm1096_vm14 = vcmp.ge.s32.totalorder %v503_v12, 1  ;;  %vm1417_vm15 = vcmp.ge.s32.totalorder %v503_v12, 2 }
 0x2d9   :  { %v1160_v41 = vsel %vm1096_vm14, %v995_v58, 0.0  ;;  %v1637_v11 = vsel %vm1623_vm2, %v1608_v21, %v11932_v37  ;;  %vm1738_vm5 = vcmp.ge.s32.totalorder %v503_v12, 3  ;;  %vm10264_vm12 = vcmp.eq.f32.partialorder %v4036_v60, 8.507059e+37  ;;  %v5063_v60 = vpop.f32.mrf.mxu1 }
 0x2da   :  { %5384 = vmatmul.msk.f32.gmra.mxu3 %vm4324_vm3, %v10253_v53  ;;  %v1224_v14 = vadd.f32 %v1160_v41, %v10185_v3  ;;  %v1481_v51 = vsel %vm1417_vm15, %v1316_v40, 0.0  ;;  %v1802_v17 = vsel %vm1738_vm5, %v1637_v11, 0.0  ;;  %v11930_v61 = vrot.slane %v10185_v3, 4 }
 0x2db   :  { %v5643_v10 = vpop.eup %5642  ;;  %vm2059_vm7 = vcmp.ge.s32.totalorder %v503_v12, 4  ;;  %v11931_v1 = vrot.slane %v10185_v3, 3  ;;  %vm2380_vm9 = vcmp.ge.s32.totalorder %v503_v12, 5  ;;  %v11934_v21 = vrot.slane %v10185_v3, 2 }
 0x2dc   :  { %v5645_v8 = vpop.eup %5644  ;;  %5433 = vmatmul.msk.f32.gmra.mxu2 %vm4802_vm13, %v5643_v10  ;;  %v4039_v0 = vor.u32 1.1754944e-38, %v4038_v33  ;;  %v1545_v15 = vadd.f32 %v1481_v51, %v1224_v14  ;;  %v12285_v62 = vrot.slane %v10114_v19, 4  ;;  %v12286_v40 = vrot.slane %v10114_v19, 3  ;;  %v4636_v10 = vpop.f32.mrf.mxu3 }
 0x2dd   :  { %v4028_v7 = vmul.f32 %v5645_v8, %v10218_v46  ;;  %vm4033_vm14 = vweird.f32 %v5645_v8  ;;  %v12287_v33 = vrot.slane %v10114_v19, 2  ;;  %vm2701_vm15 = vcmp.ge.s32.totalorder %v503_v12, 6 }
 0x2de   :  { %v1958_v38 = vsel %vm1944_vm6, %v12285_v62, %v11930_v61  ;;  %v2279_v41 = vsel %vm2265_vm8, %v12286_v40, %v11931_v1  ;;  %v1866_v51 = vadd.f32 %v1802_v17, %v1545_v15  ;;  %v2893_v61 = vrot.slane %v10185_v3, 1 }
 0x2df   :  { %v2123_v58 = vsel %vm2059_vm7, %v1958_v38, 0.0  ;;  %v2600_v11 = vsel %vm2586_vm10, %v12287_v33, %v11934_v21  ;;  %v4029_v14 = vsub.f32 1.0, %v4028_v7  ;;  %v2444_v62 = vsel %vm2380_vm9, %v2279_v41, 0.0  ;;  %v10295_v38 = vld [vmem:[%s11820_s0 + $0x198] sm:$0xff]  ;;  %vm10304_vm7 = vmor %vm4032_vm4, %vm4033_vm14 }
 0x2e0   :  { %vm3022_vm5 = vcmp.ge.s32.totalorder %v503_v12, 7  ;;  %v3214_v40 = vcvt.s32.f32 %v503_v12  ;;  %v5064_v1 = vadd.f32 %v10203_v52, %v5063_v60  ;;  %v2187_v55 = vadd.f32 %v2123_v58, %v1866_v51 }
 0x2e1   :  { %v4030_v37 = vmul.f32 %v5645_v8, %v4029_v14  ;;  %v4637_v33 = vadd.f32 %v10215_v13, %v4636_v10  ;;  %v136_v7 = vadd.s32 408, %v5791_v5  ;;  %v12290_v15 = vrot.slane %v10114_v19, 1 }
 0x2e2   :  { %v3278_v41 = vadd.f32 1.0, %v3214_v40  ;;  %v5221_v58 = vadd.f32 %v5064_v1, %v7354_v36  ;;  %v11941_v10 = vrot.slane %v10295_v38, 7  ;;  %v3149_v14 = vadd.f32 %v3085_v25, %v2828_v22 }
 0x2e3   :  { %v2921_v60 = vsel %vm2907_vm11, %v12290_v15, %v2893_v61  ;;  %v4031_v51 = vadd.f32 %v5645_v8, %v4030_v37  ;;  %v2508_v21 = vadd.f32 %v2444_v62, %v2187_v55  ;;  %5646 = vtanh.f32 %v4637_v33 }
 0x2e4   :  { %v2765_v46 = vsel %vm2701_vm15, %v2600_v11, 0.0  ;;  %v3086_v59 = vsel %vm3022_vm5, %v2921_v60, 0.0  ;;  %5648 = vrcp.f32 %v3278_v41  ;;  %5285 = vst.msk [vmem:[%s11824_s5 + $0x88] sm:$0xff] %vm4324_vm3, %v5221_v58  ;;  %v4051_v36 = vand.u32 2147483647, %v3278_v41 }
 0x2e5   :  { %v4035_v40 = vsel %vm10304_vm7, %v5645_v8, %v4031_v51  ;;  %v510_v1 = vand.u32 7, %v136_v7  ;;  %v12291_v55 = vrot.slane %v10185_v3, 7  ;;  %vm4047_vm4 = vweird.f32 %v3278_v41 }
 0x2e6   :  { %v4040_v12 = vsel %vm10264_vm12, %v4039_v0, %v4035_v40  ;;  %v4053_v37 = vand.u32 2147483648, %v3278_v41  ;;  %v11938_v22 = vrot.slane %v10295_v38, 6  ;;  %v2829_v62 = vadd.f32 %v2765_v46, %v2508_v21 }
 0x2e7   :  { %v994_v25 = vsel %vm981_vm0, %v12291_v55, %v11941_v10  ;;  %v4041_v11 = vmul.f32 %v4040_v12, %v3149_v14  ;;  %vm1097_vm9 = vcmp.ge.s32.totalorder %v510_v1, 1  ;;  %vm1418_vm14 = vcmp.ge.s32.totalorder %v510_v1, 2 }
 0x2e8   :  { %v1161_v8 = vsel %vm1097_vm9, %v994_v25, 0.0  ;;  %v12292_v33 = vrot.slane %v10185_v3, 6  ;;  %v11937_v17 = vrot.slane %v10295_v38, 5  ;;  %vm1739_vm15 = vcmp.ge.s32.totalorder %v510_v1, 3 }
 0x2e9   :  { %v5647_v9 = vpop.eup %5646  ;;  %v10341_v0 = vadd.f32 %v4041_v11, %v10114_v19  ;;  %vm10343_vm12 = vcmp.eq.f32.partialorder %v4051_v36, 8.507059e+37  ;;  %v1225_v21 = vadd.f32 %v1161_v8, %v10295_v38  ;;  %v11936_v58 = vrot.slane %v10295_v38, 4 }
 0x2ea   :  { %v1315_v7 = vsel %vm1302_vm1, %v12292_v33, %v11938_v22  ;;  %v5649_v14 = vpop.eup %5648  ;;  %v4054_v51 = vor.u32 1.1754944e-38, %v4053_v37  ;;  %v12295_v46 = vrot.slane %v10185_v3, 5  ;;  %vm2060_vm5 = vcmp.ge.s32.totalorder %v510_v1, 4  ;;  %5434 = vmatmul.msk.f32.gmra.mxu2 %vm4802_vm13, %v5647_v9 }
 0x2eb   :  { %v1482_v60 = vsel %vm1418_vm14, %v1315_v7, 0.0  ;;  %v11939_v19 = vrot.slane %v10295_v38, 3  ;;  %5385 = vmatmul.msk.f32.gmra.mxu3 %vm4324_vm3, %v10341_v0  ;;  %v4043_v36 = vmul.f32 %v5649_v14, %v3278_v41  ;;  %vm2381_vm7 = vcmp.ge.s32.totalorder %v510_v1, 5  ;;  %v5066_v7 = vpop.f32.mrf.mxu1 }
 0x2ec   :  { %v1636_v40 = vsel %vm1623_vm2, %v12295_v46, %v11937_v17  ;;  %v1546_v55 = vadd.f32 %v1482_v60, %v1225_v21  ;;  %vm4048_vm9 = vweird.f32 %v5649_v14  ;;  %v12296_v12 = vrot.slane %v10185_v3, 4  ;;  %v4639_v46 = vpop.f32.mrf.mxu3 }
 0x2ed   :  { %v1803_v25 = vsel %vm1739_vm15, %v1636_v40, 0.0  ;;  %v12297_v11 = vrot.slane %v10185_v3, 3  ;;  %v11940_v33 = vrot.slane %v10295_v38, 2  ;;  %v4044_v9 = vsub.f32 1.0, %v4043_v36 }
 0x2ee   :  { %v1957_v37 = vsel %vm1944_vm6, %v12296_v12, %v11936_v58  ;;  %v1867_v21 = vadd.f32 %v1803_v25, %v1546_v55  ;;  %vm2702_vm14 = vcmp.ge.s32.totalorder %v510_v1, 6  ;;  %v12298_v12 = vrot.slane %v10185_v3, 2 }
 0x2ef   :  { %v2278_v8 = vsel %vm2265_vm8, %v12297_v11, %v11939_v19  ;;  %v2124_v60 = vsel %vm2060_vm5, %v1957_v37, 0.0  ;;  %v2894_v17 = vrot.slane %v10295_v38, 1  ;;  %v3215_v22 = vcvt.s32.f32 %v510_v1  ;;  %vm10383_vm5 = vmor %vm4047_vm4, %vm4048_vm9 }
 0x2f0   :  { %v2445_v40 = vsel %vm2381_vm7, %v2278_v8, 0.0  ;;  %v2599_v58 = vsel %vm2586_vm10, %v12298_v12, %v11940_v33  ;;  %v4045_v11 = vmul.f32 %v5649_v14, %v4044_v9  ;;  %v2188_v19 = vadd.f32 %v2124_v60, %v1867_v21  ;;  %v10401_v12 = vld [vmem:[%s11820_s0 + $0x1a0] sm:$0xff] }
 0x2f1   :  { %vm3023_vm15 = vcmp.ge.s32.totalorder %v510_v1, 7  ;;  %v5067_v36 = vadd.f32 %v10203_v52, %v5066_v7  ;;  %v2920_v25 = vsel %vm2907_vm11, %v2893_v61, %v2894_v17  ;;  %v10393_v37 = vadd.f32 1.0, %v3215_v22 }
 0x2f2   :  { %v4640_v8 = vadd.f32 %v10215_v13, %v4639_v46  ;;  %v137_v9 = vadd.s32 416, %v5791_v5  ;;  %v3150_v7 = vadd.f32 %v3086_v59, %v2829_v62  ;;  %v4046_v21 = vadd.f32 %v5649_v14, %v4045_v11 }
 0x2f3   :  { %v2509_v41 = vadd.f32 %v2445_v40, %v2188_v19  ;;  %v5222_v60 = vadd.f32 %v5067_v36, %v7445_v49  ;;  %v2766_v33 = vsel %vm2702_vm14, %v2599_v58, 0.0  ;;  %v3087_v10 = vsel %vm3023_vm15, %v2920_v25, 0.0 }
 0x2f4   :  { %5650 = vrcp.f32 %v10393_v37  ;;  %v4050_v61 = vsel %vm10383_vm5, %v5649_v14, %v4046_v21  ;;  %v4066_v22 = vand.u32 2147483647, %v10393_v37  ;;  %v10412_v49 = vand.u32 7, %v137_v9 }
 0x2f5   :  { %5286 = vst.msk [vmem:[%s11824_s5 + $0x90] sm:$0xff] %vm4324_vm3, %v5222_v60  ;;  %5652 = vtanh.f32 %v4640_v8  ;;  %v4055_v59 = vsel %vm10343_vm12, %v4054_v51, %v4050_v61  ;;  %vm4062_vm4 = vweird.f32 %v10393_v37  ;;  %v4068_v1 = vand.u32 2147483648, %v10393_v37 }
 0x2f6   :  { %v969_v62 = vrot.slane %v10401_v12, 7  ;;  %v4056_v58 = vmul.f32 %v4055_v59, %v3150_v7  ;;  %v2830_v14 = vadd.f32 %v2766_v33, %v2509_v41  ;;  %vm1098_vm7 = vcmp.ge.s32.totalorder %v10412_v49, 1 }
 0x2f7   :  { %v1290_v19 = vrot.slane %v10401_v12, 6  ;;  %v12301_v46 = vrot.slane %v10295_v38, 7  ;;  %vm1419_vm12 = vcmp.ge.s32.totalorder %v10412_v49, 2  ;;  %v11943_v51 = vrot.slane %v10401_v12, 5 }
 0x2f8   :  { %vm1740_vm9 = vcmp.ge.s32.totalorder %v10412_v49, 3  ;;  %v10431_v40 = vadd.f32 %v4056_v58, %v10185_v3  ;;  %vm10433_vm14 = vcmp.eq.f32.partialorder %v4066_v22, 8.507059e+37  ;;  %v12304_v36 = vrot.slane %v10295_v38, 6 }
 0x2f9   :  { %v993_v15 = vsel %vm981_vm0, %v12301_v46, %v969_v62  ;;  %v11942_v25 = vrot.slane %v10401_v12, 4  ;;  %v12305_v3 = vrot.slane %v10295_v38, 5  ;;  %vm2061_vm15 = vcmp.ge.s32.totalorder %v10412_v49, 4 }
 0x2fa   :  { %v1162_v11 = vsel %vm1098_vm7, %v993_v15, 0.0  ;;  %v1314_v55 = vsel %vm1302_vm1, %v12304_v36, %v1290_v19  ;;  %v5651_v8 = vpop.eup %5650  ;;  %5386 = vmatmul.msk.f32.gmra.mxu3 %vm4324_vm3, %v10431_v40  ;;  %v4069_v61 = vor.u32 1.1754944e-38, %v4068_v1  ;;  %v12306_v59 = vrot.slane %v10295_v38, 4 }
 0x2fb   :  { %v1226_v9 = vadd.f32 %v1162_v11, %v10401_v12  ;;  %v1483_v7 = vsel %vm1419_vm12, %v1314_v55, 0.0  ;;  %v1635_v21 = vsel %vm1623_vm2, %v12305_v3, %v11943_v51  ;;  %v5653_v41 = vpop.eup %5652  ;;  %v4058_v60 = vmul.f32 %v5651_v8, %v10393_v37  ;;  %v4642_v51 = vpop.f32.mrf.mxu3 }
 0x2fc   :  { %v1804_v22 = vsel %vm1740_vm9, %v1635_v21, 0.0  ;;  %v1956_v58 = vsel %vm1944_vm6, %v12306_v59, %v11942_v25  ;;  %vm4063_vm5 = vweird.f32 %v5651_v8  ;;  %v11945_v15 = vrot.slane %v10401_v12, 3  ;;  %5435 = vmatmul.msk.f32.gmra.mxu2 %vm4802_vm13, %v5653_v41  ;;  %v5069_v25 = vpop.f32.mrf.mxu1 }
 0x2fd   :  { %v1547_v46 = vadd.f32 %v1483_v7, %v1226_v9  ;;  %vm2382_vm7 = vcmp.ge.s32.totalorder %v10412_v49, 5  ;;  %v4059_v11 = vsub.f32 1.0, %v4058_v60  ;;  %v2125_v36 = vsel %vm2061_vm15, %v1956_v58, 0.0  ;;  %vm10483_vm9 = vmor %vm4062_vm4, %vm4063_vm5 }
 0x2fe   :  { %v11944_v1 = vrot.slane %v10401_v12, 2  ;;  %v2895_v55 = vrot.slane %v10401_v12, 1  ;;  %v3151_v3 = vadd.f32 %v3087_v10, %v2830_v14  ;;  %v12307_v59 = vrot.slane %v10295_v38, 3 }
 0x2ff   :  { %v1868_v21 = vadd.f32 %v1804_v22, %v1547_v46  ;;  %v3216_v7 = vcvt.s32.f32 %v10412_v49  ;;  %v4060_v41 = vmul.f32 %v5651_v8, %v4059_v11  ;;  %v12308_v58 = vrot.slane %v10295_v38, 2 }
 0x300   :  { %v2277_v9 = vsel %vm2265_vm8, %v12307_v59, %v11945_v15  ;;  %vm2703_vm12 = vcmp.ge.s32.totalorder %v10412_v49, 6  ;;  %v2919_v46 = vsel %vm2907_vm11, %v2894_v17, %v2895_v55  ;;  %vm3024_vm15 = vcmp.ge.s32.totalorder %v10412_v49, 7 }
 0x301   :  { %v2446_v60 = vsel %vm2382_vm7, %v2277_v9, 0.0  ;;  %v2598_v10 = vsel %vm2586_vm10, %v12308_v58, %v11944_v1  ;;  %v2189_v22 = vadd.f32 %v2125_v36, %v1868_v21  ;;  %v3280_v11 = vadd.f32 1.0, %v3216_v7  ;;  %v10500_v36 = vld [vmem:[%s11820_s0 + $0x1a8] sm:$0xff] }
 0x302   :  { %v4061_v59 = vadd.f32 %v5651_v8, %v4060_v41  ;;  %v5070_v9 = vadd.f32 %v10203_v52, %v5069_v25  ;;  %v4643_v37 = vadd.f32 %v10215_v13, %v4642_v51  ;;  %v138_v58 = vadd.s32 424, %v5791_v5 }
 0x303   :  { %v2510_v1 = vadd.f32 %v2446_v60, %v2189_v22  ;;  %v2767_v15 = vsel %vm2703_vm12, %v2598_v10, 0.0  ;;  %5654 = vrcp.f32 %v3280_v11  ;;  %v4081_v49 = vand.u32 2147483647, %v3280_v11 }
 0x304   :  { %v4065_v17 = vsel %vm10483_vm9, %v5651_v8, %v4061_v59  ;;  %v5223_v21 = vadd.f32 %v5070_v9, %v7536_v23  ;;  %5656 = vtanh.f32 %v4643_v37  ;;  %v3088_v25 = vsel %vm3024_vm15, %v2919_v46, 0.0 }
 0x305   :  { %v4070_v51 = vsel %vm10433_vm14, %v4069_v61, %v4065_v17  ;;  %vm4077_vm4 = vweird.f32 %v3280_v11  ;;  %v10507_v7 = vand.u32 7, %v138_v58  ;;  %v4083_v60 = vand.u32 2147483648, %v3280_v11 }
 0x306   :  { %v4071_v41 = vmul.f32 %v4070_v51, %v3151_v3  ;;  %5287 = vst.msk [vmem:[%s11824_s5 + $0x98] sm:$0xff] %vm4324_vm3, %v5223_v21  ;;  %v970_v8 = vrot.slane %v10500_v36, 7  ;;  %v11949_v10 = vrot.slane %v10500_v36, 6  ;;  %v2831_v23 = vadd.f32 %v2767_v15, %v2510_v1 }
 0x307   :  { %vm1099_vm5 = vcmp.ge.s32.totalorder %v10507_v7, 1  ;;  %vm1420_vm14 = vcmp.ge.s32.totalorder %v10507_v7, 2  ;;  %v11947_v33 = vrot.slane %v10500_v36, 5  ;;  %vm10521_vm7 = vcmp.eq.f32.partialorder %v4081_v49, 8.507059e+37 }
 0x308   :  { %v10519_v61 = vadd.f32 %v4071_v41, %v10295_v38  ;;  %v992_v15 = vsel %vm981_vm0, %v969_v62, %v970_v8  ;;  %v1313_v1 = vsel %vm1302_vm1, %v1290_v19, %v11949_v10  ;;  %vm1741_vm12 = vcmp.ge.s32.totalorder %v10507_v7, 3 }
 0x309   :  { %v5655_v38 = vpop.eup %5654  ;;  %v1163_v14 = vsel %vm1099_vm5, %v992_v15, 0.0  ;;  %v1484_v22 = vsel %vm1420_vm14, %v1313_v1, 0.0  ;;  %v12313_v46 = vrot.slane %v10401_v12, 5  ;;  %v11946_v62 = vrot.slane %v10500_v36, 4  ;;  %v5072_v1 = vpop.f32.mrf.mxu1 }
 0x30a   :  { %v5657_v9 = vpop.eup %5656  ;;  %5387 = vmatmul.msk.f32.gmra.mxu3 %vm4324_vm3, %v10519_v61  ;;  %v4073_v37 = vmul.f32 %v5655_v38, %v3280_v11  ;;  %vm4078_vm9 = vweird.f32 %v5655_v38  ;;  %v4084_v19 = vor.u32 1.1754944e-38, %v4083_v60  ;;  %v1227_v58 = vadd.f32 %v1163_v14, %v10500_v36 }
 0x30b   :  { %v1634_v59 = vsel %vm1623_vm2, %v12313_v46, %v11947_v33  ;;  %v12314_v49 = vrot.slane %v10401_v12, 4  ;;  %vm2062_vm15 = vcmp.ge.s32.totalorder %v10507_v7, 4  ;;  %v11948_v51 = vrot.slane %v10500_v36, 3  ;;  %5436 = vmatmul.msk.f32.gmra.mxu2 %vm4802_vm13, %v5657_v9  ;;  %v4645_v33 = vpop.f32.mrf.mxu3 }
 0x30c   :  { %v1805_v17 = vsel %vm1741_vm12, %v1634_v59, 0.0  ;;  %v4074_v41 = vsub.f32 1.0, %v4073_v37  ;;  %v1548_v15 = vadd.f32 %v1484_v22, %v1227_v58  ;;  %vm2383_vm5 = vcmp.ge.s32.totalorder %v10507_v7, 5 }
 0x30d   :  { %v1955_v21 = vsel %vm1944_vm6, %v12314_v49, %v11946_v62  ;;  %v11950_v60 = vrot.slane %v10500_v36, 2  ;;  %v3152_v14 = vadd.f32 %v3088_v25, %v2831_v23  ;;  %v12315_v59 = vrot.slane %v10401_v12, 3  ;;  %v10571_v25 = vld [vmem:[%s11820_s0 + $0x1b0] sm:$0xff] }
 0x30e   :  { %v2126_v46 = vsel %vm2062_vm15, %v1955_v21, 0.0  ;;  %v2896_v62 = vrot.slane %v10500_v36, 1  ;;  %v4075_v9 = vmul.f32 %v5655_v38, %v4074_v41  ;;  %v1869_v37 = vadd.f32 %v1805_v17, %v1548_v15  ;;  %vm10575_vm15 = vmor %vm4077_vm4, %vm4078_vm9 }
 0x30f   :  { %v2276_v49 = vsel %vm2265_vm8, %v12315_v59, %v11948_v51  ;;  %vm2704_vm14 = vcmp.ge.s32.totalorder %v10507_v7, 6  ;;  %vm3025_vm12 = vcmp.ge.s32.totalorder %v10507_v7, 7  ;;  %v12318_v58 = vrot.slane %v10401_v12, 2 }
 0x310   :  { %v2447_v22 = vsel %vm2383_vm5, %v2276_v49, 0.0  ;;  %v3217_v21 = vcvt.s32.f32 %v10507_v7  ;;  %v5073_v41 = vadd.f32 %v10203_v52, %v5072_v1  ;;  %v4076_v15 = vadd.f32 %v5655_v38, %v4075_v9 }
 0x311   :  { %v2597_v17 = vsel %vm2586_vm10, %v12318_v58, %v11950_v60  ;;  %v2190_v59 = vadd.f32 %v2126_v46, %v1869_v37  ;;  %v2918_v11 = vsel %vm2907_vm11, %v2895_v55, %v2896_v62  ;;  %v4646_v49 = vadd.f32 %v10215_v13, %v4645_v33 }
 0x312   :  { %v10594_v51 = vadd.f32 1.0, %v3217_v21  ;;  %v5224_v10 = vadd.f32 %v5073_v41, %v7627_v63  ;;  %v139_v58 = vadd.s32 432, %v5791_v5  ;;  %v11955_v60 = vrot.slane %v10571_v25, 7 }
 0x313   :  { %v4080_v1 = vsel %vm10575_vm15, %v5655_v38, %v4076_v15  ;;  %v2511_v46 = vadd.f32 %v2447_v22, %v2190_v59  ;;  %5658 = vtanh.f32 %v4646_v49  ;;  %v11954_v9 = vrot.slane %v10571_v25, 6 }
 0x314   :  { %v4085_v55 = vsel %vm10521_vm7, %v4084_v19, %v4080_v1  ;;  %v2768_v33 = vsel %vm2704_vm14, %v2597_v17, 0.0  ;;  %5660 = vrcp.f32 %v10594_v51  ;;  %5288 = vst.msk [vmem:[%s11824_s5 + $0xa0] sm:$0xff] %vm4324_vm3, %v5224_v10  ;;  %v3089_v38 = vsel %vm3025_vm12, %v2918_v11, 0.0 }
 0x315   :  { %v4086_v63 = vmul.f32 %v4085_v55, %v3152_v14  ;;  %v4096_v37 = vand.u32 2147483647, %v10594_v51  ;;  %v531_v23 = vand.u32 7, %v139_v58  ;;  %vm4092_vm4 = vweird.f32 %v10594_v51 }
 0x316   :  { %v991_v3 = vsel %vm981_vm0, %v970_v8, %v11955_v60  ;;  %v12319_v10 = vrot.slane %v10500_v36, 6  ;;  %v11952_v19 = vrot.slane %v10571_v25, 5  ;;  %v2832_v22 = vadd.f32 %v2768_v33, %v2511_v46 }
 0x317   :  { %v10629_v14 = vadd.f32 %v4086_v63, %v10401_v12  ;;  %v4098_v17 = vand.u32 2147483648, %v10594_v51  ;;  %vm1100_vm7 = vcmp.ge.s32.totalorder %v531_v23, 1  ;;  %vm1421_vm9 = vcmp.ge.s32.totalorder %v531_v23, 2 }
 0x318   :  { %v1312_v7 = vsel %vm1302_vm1, %v12319_v10, %v11954_v9  ;;  %v1164_v21 = vsel %vm1100_vm7, %v991_v3, 0.0  ;;  %v12320_v8 = vrot.slane %v10500_v36, 5  ;;  %vm1742_vm5 = vcmp.ge.s32.totalorder %v531_v23, 3 }
 0x319   :  { %v5659_v15 = vpop.eup %5658  ;;  %5388 = vmatmul.msk.f32.gmra.mxu3 %vm4324_vm3, %v10629_v14  ;;  %vm10640_vm14 = vcmp.eq.f32.partialorder %v4096_v37, 8.507059e+37  ;;  %v1228_v59 = vadd.f32 %v1164_v21, %v10571_v25  ;;  %v1485_v11 = vsel %vm1421_vm9, %v1312_v7, 0.0  ;;  %v11951_v58 = vrot.slane %v10571_v25, 4  ;;  %v5075_v7 = vpop.f32.mrf.mxu1 }
 0x31a   :  { %v1633_v41 = vsel %vm1623_vm2, %v12320_v8, %v11952_v19  ;;  %v5661_v1 = vpop.eup %5660  ;;  %vm2063_vm12 = vcmp.ge.s32.totalorder %v531_v23, 4  ;;  %v11953_v46 = vrot.slane %v10571_v25, 3  ;;  %vm2384_vm15 = vcmp.ge.s32.totalorder %v531_v23, 5  ;;  %5437 = vmatmul.msk.f32.gmra.mxu2 %vm4802_vm13, %v5659_v15 }
 0x31b   :  { %v1806_v49 = vsel %vm1742_vm5, %v1633_v41, 0.0  ;;  %v11956_v55 = vrot.slane %v10571_v25, 2  ;;  %v4088_v33 = vmul.f32 %v5661_v1, %v10594_v51  ;;  %v4099_v63 = vor.u32 1.1754944e-38, %v4098_v17 }
 0x31c   :  { %v1549_v37 = vadd.f32 %v1485_v11, %v1228_v59  ;;  %v12323_v3 = vrot.slane %v10500_v36, 4  ;;  %vm4093_vm7 = vweird.f32 %v5661_v1  ;;  %v12324_v8 = vrot.slane %v10500_v36, 3  ;;  %v4648_v59 = vpop.f32.mrf.mxu3 }
 0x31d   :  { %v12325_v17 = vrot.slane %v10500_v36, 2  ;;  %v4089_v11 = vsub.f32 1.0, %v4088_v33  ;;  %vm2705_vm9 = vcmp.ge.s32.totalorder %v531_v23, 6  ;;  %v2897_v19 = vrot.slane %v10571_v25, 1 }
 0x31e   :  { %v1954_v10 = vsel %vm1944_vm6, %v12323_v3, %v11951_v58  ;;  %v2275_v41 = vsel %vm2265_vm8, %v12324_v8, %v11953_v46  ;;  %v1870_v3 = vadd.f32 %v1806_v49, %v1549_v37  ;;  %vm3026_vm5 = vcmp.ge.s32.totalorder %v531_v23, 7 }
 0x31f   :  { %v2127_v21 = vsel %vm2063_vm12, %v1954_v10, 0.0  ;;  %v2596_v15 = vsel %vm2586_vm10, %v12325_v17, %v11956_v55  ;;  %v2448_v58 = vsel %vm2384_vm15, %v2275_v41, 0.0  ;;  %v10671_v10 = vld [vmem:[%s11820_s0 + $0x1b8] sm:$0xff]  ;;  %v3218_v8 = vcvt.s32.f32 %v531_v23  ;;  %vm10680_vm12 = vmor %vm4092_vm4, %vm4093_vm7 }
 0x320   :  { %v5076_v46 = vadd.f32 %v10203_v52, %v5075_v7  ;;  %v4090_v9 = vmul.f32 %v5661_v1, %v4089_v11  ;;  %v2191_v60 = vadd.f32 %v2127_v21, %v1870_v3  ;;  %v4649_v17 = vadd.f32 %v10215_v13, %v4648_v59 }
 0x321   :  { %v140_v33 = vadd.s32 440, %v5791_v5  ;;  %v2917_v37 = vsel %vm2907_vm11, %v2896_v62, %v2897_v19  ;;  %v3282_v7 = vadd.f32 1.0, %v3218_v8  ;;  %v11962_v41 = vrot.slane %v10671_v10, 7 }
 0x322   :  { %v5225_v21 = vadd.f32 %v5076_v46, %v7720_v18  ;;  %v3153_v59 = vadd.f32 %v3089_v38, %v2832_v22  ;;  %v4091_v11 = vadd.f32 %v5661_v1, %v4090_v9  ;;  %v2512_v3 = vadd.f32 %v2448_v58, %v2191_v60 }
 0x323   :  { %5662 = vtanh.f32 %v4649_v17  ;;  %v2769_v51 = vsel %vm2705_vm9, %v2596_v15, 0.0  ;;  %v3090_v55 = vsel %vm3026_vm5, %v2917_v37, 0.0  ;;  %v4111_v18 = vand.u32 2147483647, %v3282_v7 }
 0x324   :  { %5664 = vrcp.f32 %v3282_v7  ;;  %5289 = vst.msk [vmem:[%s11824_s5 + $0xa8] sm:$0xff] %vm4324_vm3, %v5225_v21  ;;  %v4095_v62 = vsel %vm10680_vm12, %v5661_v1, %v4091_v11  ;;  %v538_v46 = vand.u32 7, %v140_v33  ;;  %v12328_v60 = vrot.slane %v10571_v25, 7 }
 0x325   :  { %v4100_v38 = vsel %vm10640_vm14, %v4099_v63, %v4095_v62  ;;  %vm4107_vm4 = vweird.f32 %v3282_v7  ;;  %v4113_v23 = vand.u32 2147483648, %v3282_v7  ;;  %v11959_v22 = vrot.slane %v10671_v10, 6 }
 0x326   :  { %v990_v9 = vsel %vm981_vm0, %v12328_v60, %v11962_v41  ;;  %v4101_v58 = vmul.f32 %v4100_v38, %v3153_v59  ;;  %v2833_v15 = vadd.f32 %v2769_v51, %v2512_v3  ;;  %vm1101_vm15 = vcmp.ge.s32.totalorder %v538_v46, 1 }
 0x327   :  { %vm1422_vm7 = vcmp.ge.s32.totalorder %v538_v46, 2  ;;  %v1165_v1 = vsel %vm1101_vm15, %v990_v9, 0.0  ;;  %v12329_v8 = vrot.slane %v10571_v25, 6  ;;  %v11958_v33 = vrot.slane %v10671_v10, 5 }
 0x328   :  { %vm1743_vm9 = vcmp.ge.s32.totalorder %v538_v46, 3  ;;  %v10717_v63 = vadd.f32 %v4101_v58, %v10500_v36  ;;  %vm10719_vm14 = vcmp.eq.f32.partialorder %v4111_v18, 8.507059e+37  ;;  %v1229_v37 = vadd.f32 %v1165_v1, %v10671_v10 }
 0x329   :  { %v1311_v17 = vsel %vm1302_vm1, %v12329_v8, %v11959_v22  ;;  %v5663_v12 = vpop.eup %5662  ;;  %v11957_v59 = vrot.slane %v10671_v10, 4  ;;  %v4114_v3 = vor.u32 1.1754944e-38, %v4113_v23  ;;  %v12332_v51 = vrot.slane %v10571_v25, 5 }
 0x32a   :  { %v1486_v21 = vsel %vm1422_vm7, %v1311_v17, 0.0  ;;  %v5665_v11 = vpop.eup %5664  ;;  %vm2064_vm5 = vcmp.ge.s32.totalorder %v538_v46, 4  ;;  %v11960_v36 = vrot.slane %v10671_v10, 3  ;;  %5438 = vmatmul.msk.f32.gmra.mxu2 %vm4802_vm13, %v5663_v12  ;;  %5389 = vmatmul.msk.f32.gmra.mxu3 %vm4324_vm3, %v10717_v63  ;;  %vm2385_vm12 = vcmp.ge.s32.totalorder %v538_v46, 5  ;;  %v5078_v17 = vpop.f32.mrf.mxu1 }
 0x32b   :  { %v1632_v62 = vsel %vm1623_vm2, %v12332_v51, %v11958_v33  ;;  %v4103_v18 = vmul.f32 %v5665_v11, %v3282_v7  ;;  %v1550_v60 = vadd.f32 %v1486_v21, %v1229_v37  ;;  %vm4108_vm15 = vweird.f32 %v5665_v11  ;;  %v4651_v51 = vpop.f32.mrf.mxu3 }
 0x32c   :  { %v1807_v9 = vsel %vm1743_vm9, %v1632_v62, 0.0  ;;  %v12333_v38 = vrot.slane %v10571_v25, 4  ;;  %v12334_v58 = vrot.slane %v10571_v25, 3  ;;  %v11961_v8 = vrot.slane %v10671_v10, 2 }
 0x32d   :  { %v4104_v12 = vsub.f32 1.0, %v4103_v18  ;;  %v1871_v37 = vadd.f32 %v1807_v9, %v1550_v60  ;;  %vm2706_vm7 = vcmp.ge.s32.totalorder %v538_v46, 6  ;;  %v2898_v33 = vrot.slane %v10671_v10, 1 }
 0x32e   :  { %v1953_v23 = vsel %vm1944_vm6, %v12333_v38, %v11957_v59  ;;  %v2274_v1 = vsel %vm2265_vm8, %v12334_v58, %v11960_v36  ;;  %v12335_v38 = vrot.slane %v10571_v25, 2  ;;  %v3219_v22 = vcvt.s32.f32 %v538_v46 }
 0x32f   :  { %v2128_v21 = vsel %vm2064_vm5, %v1953_v23, 0.0  ;;  %v2449_v62 = vsel %vm2385_vm12, %v2274_v1, 0.0  ;;  %v4105_v58 = vmul.f32 %v5665_v11, %v4104_v12  ;;  %vm3027_vm9 = vcmp.ge.s32.totalorder %v538_v46, 7  ;;  %vm10759_vm5 = vmor %vm4107_vm4, %vm4108_vm15 }
 0x330   :  { %v2595_v59 = vsel %vm2586_vm10, %v12335_v38, %v11961_v8  ;;  %v2192_v36 = vadd.f32 %v2128_v21, %v1871_v37  ;;  %v5079_v18 = vadd.f32 %v10203_v52, %v5078_v17  ;;  %v2916_v9 = vsel %vm2907_vm11, %v2897_v19, %v2898_v33  ;;  %v10777_v38 = vld [vmem:[%s11820_s0 + $0x1c0] sm:$0xff] }
 0x331   :  { %v10769_v23 = vadd.f32 1.0, %v3219_v22  ;;  %v4652_v1 = vadd.f32 %v10215_v13, %v4651_v51  ;;  %v141_v12 = vadd.s32 448, %v5791_v5  ;;  %v3154_v17 = vadd.f32 %v3090_v55, %v2833_v15 }
 0x332   :  { %v4106_v37 = vadd.f32 %v5665_v11, %v4105_v58  ;;  %v2513_v7 = vadd.f32 %v2449_v62, %v2192_v36  ;;  %v5226_v21 = vadd.f32 %v5079_v18, %v7817_v31  ;;  %v2770_v8 = vsel %vm2706_vm7, %v2595_v59, 0.0 }
 0x333   :  { %v3091_v41 = vsel %vm3027_vm9, %v2916_v9, 0.0  ;;  %5666 = vrcp.f32 %v10769_v23  ;;  %v4126_v22 = vand.u32 2147483647, %v10769_v23  ;;  %v10788_v31 = vand.u32 7, %v141_v12 }
 0x334   :  { %v4110_v19 = vsel %vm10759_vm5, %v5665_v11, %v4106_v37  ;;  %5290 = vst.msk [vmem:[%s11824_s5 + $0xb0] sm:$0xff] %vm4324_vm3, %v5226_v21  ;;  %5668 = vtanh.f32 %v4652_v1  ;;  %vm4122_vm4 = vweird.f32 %v10769_v23  ;;  %v4128_v46 = vand.u32 2147483648, %v10769_v23 }
 0x335   :  { %v4115_v55 = vsel %vm10719_vm14, %v4114_v3, %v4110_v19  ;;  %v973_v15 = vrot.slane %v10777_v38, 7  ;;  %v2834_v11 = vadd.f32 %v2770_v8, %v2513_v7  ;;  %vm1102_vm12 = vcmp.ge.s32.totalorder %v10788_v31, 1 }
 0x336   :  { %v4116_v59 = vmul.f32 %v4115_v55, %v3154_v17  ;;  %v1294_v36 = vrot.slane %v10777_v38, 6  ;;  %v12338_v51 = vrot.slane %v10671_v10, 7  ;;  %vm1423_vm14 = vcmp.ge.s32.totalorder %v10788_v31, 2 }
 0x337   :  { %v11964_v3 = vrot.slane %v10777_v38, 5  ;;  %vm1744_vm15 = vcmp.ge.s32.totalorder %v10788_v31, 3  ;;  %vm10809_vm7 = vcmp.eq.f32.partialorder %v4126_v22, 8.507059e+37  ;;  %v12341_v18 = vrot.slane %v10671_v10, 6 }
 0x338   :  { %v989_v49 = vsel %vm981_vm0, %v12338_v51, %v973_v15  ;;  %v10807_v62 = vadd.f32 %v4116_v59, %v10571_v25  ;;  %v11963_v9 = vrot.slane %v10777_v38, 4  ;;  %v12342_v25 = vrot.slane %v10671_v10, 5 }
 0x339   :  { %v1166_v58 = vsel %vm1102_vm12, %v989_v49, 0.0  ;;  %v1310_v60 = vsel %vm1302_vm1, %v12341_v18, %v1294_v36  ;;  %v5667_v1 = vpop.eup %5666  ;;  %vm2065_vm9 = vcmp.ge.s32.totalorder %v10788_v31, 4  ;;  %v4129_v19 = vor.u32 1.1754944e-38, %v4128_v46 }
 0x33a   :  { %v1230_v12 = vadd.f32 %v1166_v58, %v10777_v38  ;;  %v1487_v17 = vsel %vm1423_vm14, %v1310_v60, 0.0  ;;  %v1631_v37 = vsel %vm1623_vm2, %v12342_v25, %v11964_v3  ;;  %v5669_v7 = vpop.eup %5668  ;;  %5390 = vmatmul.msk.f32.gmra.mxu3 %vm4324_vm3, %v10807_v62  ;;  %v4118_v21 = vmul.f32 %v5667_v1, %v10769_v23  ;;  %v4654_v3 = vpop.f32.mrf.mxu3 }
 0x33b   :  { %v1808_v22 = vsel %vm1744_vm15, %v1631_v37, 0.0  ;;  %v12343_v55 = vrot.slane %v10671_v10, 4  ;;  %vm4123_vm5 = vweird.f32 %v5667_v1  ;;  %v11966_v49 = vrot.slane %v10777_v38, 3  ;;  %5439 = vmatmul.msk.f32.gmra.mxu2 %vm4802_vm13, %v5669_v7 }
 0x33c   :  { %v1551_v51 = vadd.f32 %v1487_v17, %v1230_v12  ;;  %vm2386_vm12 = vcmp.ge.s32.totalorder %v10788_v31, 5  ;;  %v4119_v58 = vsub.f32 1.0, %v4118_v21  ;;  %v11965_v46 = vrot.slane %v10777_v38, 2  ;;  %vm10859_vm15 = vmor %vm4122_vm4, %vm4123_vm5 }
 0x33d   :  { %v1952_v59 = vsel %vm1944_vm6, %v12343_v55, %v11963_v9  ;;  %v2899_v60 = vrot.slane %v10777_v38, 1  ;;  %v3155_v25 = vadd.f32 %v3091_v41, %v2834_v11  ;;  %v12344_v55 = vrot.slane %v10671_v10, 3  ;;  %v5081_v9 = vpop.f32.mrf.mxu1 }
 0x33e   :  { %v2129_v18 = vsel %vm2065_vm9, %v1952_v59, 0.0  ;;  %v1872_v37 = vadd.f32 %v1808_v22, %v1551_v51  ;;  %v3220_v17 = vcvt.s32.f32 %v10788_v31  ;;  %v4120_v7 = vmul.f32 %v5667_v1, %v4119_v58 }
 0x33f   :  { %v2273_v12 = vsel %vm2265_vm8, %v12344_v55, %v11966_v49  ;;  %v12345_v59 = vrot.slane %v10671_v10, 2  ;;  %vm2707_vm14 = vcmp.ge.s32.totalorder %v10788_v31, 6  ;;  %v2915_v51 = vsel %vm2907_vm11, %v2898_v33, %v2899_v60 }
 0x340   :  { %v2450_v21 = vsel %vm2386_vm12, %v2273_v12, 0.0  ;;  %v2193_v22 = vadd.f32 %v2129_v18, %v1872_v37  ;;  %vm3028_vm9 = vcmp.ge.s32.totalorder %v10788_v31, 7  ;;  %v3284_v58 = vadd.f32 1.0, %v3220_v17  ;;  %v10876_v18 = vld [vmem:[%s11820_s0 + $0x1c8] sm:$0xff] }
 0x341   :  { %v2594_v41 = vsel %vm2586_vm10, %v12345_v59, %v11965_v46  ;;  %v4121_v55 = vadd.f32 %v5667_v1, %v4120_v7  ;;  %v5082_v12 = vadd.f32 %v10203_v52, %v5081_v9  ;;  %v4655_v23 = vadd.f32 %v10215_v13, %v4654_v3 }
 0x342   :  { %v142_v59 = vadd.s32 456, %v5791_v5  ;;  %v2514_v46 = vadd.f32 %v2450_v21, %v2193_v22  ;;  %v2771_v49 = vsel %vm2707_vm14, %v2594_v41, 0.0  ;;  %5670 = vrcp.f32 %v3284_v58 }
 0x343   :  { %v4125_v33 = vsel %vm10859_vm15, %v5667_v1, %v4121_v55  ;;  %v4141_v31 = vand.u32 2147483647, %v3284_v58  ;;  %v5227_v37 = vadd.f32 %v5082_v12, %v7908_v43  ;;  %5672 = vtanh.f32 %v4655_v23 }
 0x344   :  { %v4130_v52 = vsel %vm10809_vm7, %v4129_v19, %v4125_v33  ;;  %v3092_v13 = vsel %vm3028_vm9, %v2915_v51, 0.0  ;;  %vm4137_vm4 = vweird.f32 %v3284_v58  ;;  %v10883_v3 = vand.u32 7, %v142_v59 }
 0x345   :  { %v4131_v9 = vmul.f32 %v4130_v52, %v3155_v25  ;;  %v4143_v17 = vand.u32 2147483648, %v3284_v58  ;;  %5291 = vst.msk [vmem:[%s11824_s5 + $0xb8] sm:$0xff] %vm4324_vm3, %v5227_v37  ;;  %v974_v1 = vrot.slane %v10876_v18, 7  ;;  %v1295_v7 = vrot.slane %v10876_v18, 6 }
 0x346   :  { %v2835_v43 = vadd.f32 %v2771_v49, %v2514_v46  ;;  %vm1103_vm5 = vcmp.ge.s32.totalorder %v10883_v3, 1  ;;  %vm1424_vm7 = vcmp.ge.s32.totalorder %v10883_v3, 2  ;;  %v1616_v8 = vrot.slane %v10876_v18, 5 }
 0x347   :  { %v10895_v19 = vadd.f32 %v4131_v9, %v10671_v10  ;;  %vm10897_vm12 = vcmp.eq.f32.partialorder %v4141_v31, 8.507059e+37  ;;  %v988_v49 = vsel %vm981_vm0, %v973_v15, %v974_v1  ;;  %v1309_v46 = vsel %vm1302_vm1, %v1294_v36, %v1295_v7 }
 0x348   :  { %vm1745_vm14 = vcmp.ge.s32.totalorder %v10883_v3, 3  ;;  %v5671_v10 = vpop.eup %5670  ;;  %v1167_v21 = vsel %vm1103_vm5, %v988_v49, 0.0  ;;  %v1488_v41 = vsel %vm1424_vm7, %v1309_v46, 0.0  ;;  %v12350_v11 = vrot.slane %v10777_v38, 5 }
 0x349   :  { %v11969_v15 = vrot.slane %v10876_v18, 4  ;;  %v5673_v51 = vpop.eup %5672  ;;  %5391 = vmatmul.msk.f32.gmra.mxu3 %vm4324_vm3, %v10895_v19  ;;  %v4133_v55 = vmul.f32 %v5671_v10, %v3284_v58  ;;  %vm4138_vm15 = vweird.f32 %v5671_v10  ;;  %v4144_v36 = vor.u32 1.1754944e-38, %v4143_v17  ;;  %v5084_v17 = vpop.f32.mrf.mxu1 }
 0x34a   :  { %v1630_v22 = vsel %vm1623_vm2, %v12350_v11, %v1616_v8  ;;  %v1231_v12 = vadd.f32 %v1167_v21, %v10876_v18  ;;  %v12351_v59 = vrot.slane %v10777_v38, 4  ;;  %vm2066_vm9 = vcmp.ge.s32.totalorder %v10883_v3, 4  ;;  %5440 = vmatmul.msk.f32.gmra.mxu2 %vm4802_vm13, %v5673_v51 }
 0x34b   :  { %v1809_v23 = vsel %vm1745_vm14, %v1630_v22, 0.0  ;;  %v11968_v31 = vrot.slane %v10876_v18, 3  ;;  %v4134_v37 = vsub.f32 1.0, %v4133_v55  ;;  %vm2387_vm5 = vcmp.ge.s32.totalorder %v10883_v3, 5 }
 0x34c   :  { %v1951_v33 = vsel %vm1944_vm6, %v12351_v59, %v11969_v15  ;;  %v1552_v52 = vadd.f32 %v1488_v41, %v1231_v12  ;;  %v11967_v9 = vrot.slane %v10876_v18, 2  ;;  %v3156_v49 = vadd.f32 %v3092_v13, %v2835_v43  ;;  %v4657_v59 = vpop.f32.mrf.mxu3  ;;  %v10947_v13 = vld [vmem:[%s11820_s0 + $0x1d0] sm:$0xff] }
 0x34d   :  { %v2130_v46 = vsel %vm2066_vm9, %v1951_v33, 0.0  ;;  %v12352_v21 = vrot.slane %v10777_v38, 3  ;;  %v11970_v22 = vrot.slane %v10876_v18, 1  ;;  %v4135_v51 = vmul.f32 %v5671_v10, %v4134_v37  ;;  %vm10951_vm9 = vmor %vm4137_vm4, %vm4138_vm15  ;;  %v10965_v37 = vld [vmem:[%s11823_s4] ss:$0 sm:$0xff] }
 0x34e   :  { %v1873_v55 = vadd.f32 %v1809_v23, %v1552_v52  ;;  %vm2708_vm7 = vcmp.ge.s32.totalorder %v10883_v3, 6  ;;  %vm3029_vm14 = vcmp.ge.s32.totalorder %v10883_v3, 7  ;;  %v12355_v12 = vrot.slane %v10777_v38, 2 }
 0x34f   :  { %v2272_v11 = vsel %vm2265_vm8, %v12352_v21, %v11968_v31  ;;  %v3221_v33 = vcvt.s32.f32 %v10883_v3  ;;  %v5085_v58 = vadd.f32 %v10965_v37, %v5084_v17  ;;  %v4136_v52 = vadd.f32 %v5671_v10, %v4135_v51 }
 0x350   :  { %v2451_v41 = vsel %vm2387_vm5, %v2272_v11, 0.0  ;;  %v2593_v23 = vsel %vm2586_vm10, %v12355_v12, %v11967_v9  ;;  %v2194_v21 = vadd.f32 %v2130_v46, %v1873_v55  ;;  %v2914_v11 = vsel %vm2907_vm11, %v2899_v60, %v11970_v22  ;;  %v10977_v12 = vld [vmem:[%s11821_s2] ss:$0 sm:$0xff] }
 0x351   :  { %v4658_v9 = vadd.f32 %v10977_v12, %v4657_v59  ;;  %v10980_v31 = vadd.f32 1.0, %v3221_v33  ;;  %v5228_v17 = vadd.f32 %v5085_v58, %v8001_v48  ;;  %v143_v46 = vadd.s32 464, %v5791_v5 }
 0x352   :  { %v11976_v51 = vrot.slane %v10947_v13, 7  ;;  %v4140_v55 = vsel %vm10951_vm9, %v5671_v10, %v4136_v52  ;;  %v2515_v15 = vadd.f32 %v2451_v41, %v2194_v21  ;;  %v11974_v60 = vrot.slane %v10947_v13, 6 }
 0x353   :  { %5674 = vtanh.f32 %v4658_v9  ;;  %v4145_v22 = vsel %vm10897_vm12, %v4144_v36, %v4140_v55  ;;  %v2772_v59 = vsel %vm2708_vm7, %v2593_v23, 0.0  ;;  %5292 = vst.msk [vmem:[%s11824_s5 + $0xc0] sm:$0xff] %vm4324_vm3, %v5228_v17  ;;  %v3093_v10 = vsel %vm3029_vm14, %v2914_v11, 0.0 }
 0x354   :  { %5676 = vrcp.f32 %v10980_v31  ;;  %v4146_v48 = vmul.f32 %v4145_v22, %v3156_v49  ;;  %v4156_v9 = vand.u32 2147483647, %v10980_v31  ;;  %v559_v43 = vand.u32 7, %v143_v46 }
 0x355   :  { %vm4152_vm4 = vweird.f32 %v10980_v31  ;;  %v987_v25 = vsel %vm981_vm0, %v974_v1, %v11976_v51  ;;  %v1308_v3 = vsel %vm1302_vm1, %v1295_v7, %v11974_v60  ;;  %v11973_v36 = vrot.slane %v10947_v13, 5 }
 0x356   :  { %v11015_v49 = vadd.f32 %v4146_v48, %v10777_v38  ;;  %v2836_v22 = vadd.f32 %v2772_v59, %v2515_v15  ;;  %v4158_v41 = vand.u32 2147483648, %v10980_v31  ;;  %vm1104_vm12 = vcmp.ge.s32.totalorder %v559_v43, 1 }
 0x357   :  { %v1168_v23 = vsel %vm1104_vm12, %v987_v25, 0.0  ;;  %vm1425_vm15 = vcmp.ge.s32.totalorder %v559_v43, 2  ;;  %v1629_v1 = vsel %vm1623_vm2, %v1616_v8, %v11973_v36  ;;  %vm1746_vm5 = vcmp.ge.s32.totalorder %v559_v43, 3 }
 0x358   :  { %5392 = vmatmul.msk.f32.gmra.mxu3 %vm4324_vm3, %v11015_v49  ;;  %vm11026_vm7 = vcmp.eq.f32.partialorder %v4156_v9, 8.507059e+37  ;;  %v1232_v15 = vadd.f32 %v1168_v23, %v10947_v13  ;;  %v1489_v33 = vsel %vm1425_vm15, %v1308_v3, 0.0  ;;  %v1810_v58 = vsel %vm1746_vm5, %v1629_v1, 0.0  ;;  %v5087_v9 = vpop.f32.mrf.mxu1 }
 0x359   :  { %v5675_v7 = vpop.eup %5674  ;;  %v11971_v52 = vrot.slane %v10947_v13, 4  ;;  %vm2067_vm14 = vcmp.ge.s32.totalorder %v559_v43, 4  ;;  %v11972_v11 = vrot.slane %v10947_v13, 3  ;;  %vm2388_vm9 = vcmp.ge.s32.totalorder %v559_v43, 5 }
 0x35a   :  { %v5677_v21 = vpop.eup %5676  ;;  %v11975_v8 = vrot.slane %v10947_v13, 2  ;;  %5441 = vmatmul.msk.f32.gmra.mxu2 %vm4802_vm13, %v5675_v7  ;;  %v4159_v46 = vor.u32 1.1754944e-38, %v4158_v41  ;;  %v1553_v55 = vadd.f32 %v1489_v33, %v1232_v15  ;;  %v12358_v59 = vrot.slane %v10876_v18, 4  ;;  %v4660_v7 = vpop.f32.mrf.mxu3 }
 0x35b   :  { %v4148_v17 = vmul.f32 %v5677_v21, %v10980_v31  ;;  %vm4153_vm12 = vweird.f32 %v5677_v21  ;;  %v12359_v3 = vrot.slane %v10876_v18, 3  ;;  %v12360_v41 = vrot.slane %v10876_v18, 2 }
 0x35c   :  { %v1950_v48 = vsel %vm1944_vm6, %v12358_v59, %v11971_v52  ;;  %v1874_v33 = vadd.f32 %v1810_v58, %v1553_v55  ;;  %vm2709_vm15 = vcmp.ge.s32.totalorder %v559_v43, 6  ;;  %v2901_v52 = vrot.slane %v10947_v13, 1 }
 0x35d   :  { %v2131_v25 = vsel %vm2067_vm14, %v1950_v48, 0.0  ;;  %v2271_v23 = vsel %vm2265_vm8, %v12359_v3, %v11972_v11  ;;  %v2592_v1 = vsel %vm2586_vm10, %v12360_v41, %v11975_v8  ;;  %v4149_v15 = vsub.f32 1.0, %v4148_v17  ;;  %v11057_v48 = vld [vmem:[%s11820_s0 + $0x1d8] sm:$0xff]  ;;  %vm11066_vm14 = vmor %vm4152_vm4, %vm4153_vm12 }
 0x35e   :  { %v2452_v59 = vsel %vm2388_vm9, %v2271_v23, 0.0  ;;  %vm3030_vm5 = vcmp.ge.s32.totalorder %v559_v43, 7  ;;  %v3222_v3 = vcvt.s32.f32 %v559_v43  ;;  %v5088_v11 = vadd.f32 %v10965_v37, %v5087_v9 }
 0x35f   :  { %v4150_v36 = vmul.f32 %v5677_v21, %v4149_v15  ;;  %v2195_v60 = vadd.f32 %v2131_v25, %v1874_v33  ;;  %v4661_v41 = vadd.f32 %v10977_v12, %v4660_v7  ;;  %v144_v17 = vadd.s32 472, %v5791_v5 }
 0x360   :  { %v12363_v55 = vrot.slane %v10876_v18, 1  ;;  %v11076_v23 = vadd.f32 1.0, %v3222_v3  ;;  %v5229_v25 = vadd.f32 %v5088_v11, %v8093_v35  ;;  %v976_v7 = vrot.slane %v11057_v48, 7 }
 0x361   :  { %v3157_v15 = vadd.f32 %v3093_v10, %v2836_v22  ;;  %v4151_v33 = vadd.f32 %v5677_v21, %v4150_v36  ;;  %v2516_v31 = vadd.f32 %v2452_v59, %v2195_v60  ;;  %5678 = vtanh.f32 %v4661_v41 }
 0x362   :  { %v2913_v9 = vsel %vm2907_vm11, %v12363_v55, %v2901_v52  ;;  %v2773_v8 = vsel %vm2709_vm15, %v2592_v1, 0.0  ;;  %5680 = vrcp.f32 %v11076_v23  ;;  %5293 = vst.msk [vmem:[%s11824_s5 + $0xc8] sm:$0xff] %vm4324_vm3, %v5229_v25  ;;  %vm4167_vm4 = vweird.f32 %v11076_v23 }
 0x363   :  { %v3094_v51 = vsel %vm3030_vm5, %v2913_v9, 0.0  ;;  %v4155_v35 = vsel %vm11066_vm14, %v5677_v21, %v4151_v33  ;;  %v11090_v10 = vand.u32 7, %v144_v17  ;;  %v12364_v60 = vrot.slane %v10947_v13, 7 }
 0x364   :  { %v4160_v36 = vsel %vm11026_vm7, %v4159_v46, %v4155_v35  ;;  %v4171_v22 = vand.u32 2147483647, %v11076_v23  ;;  %v4173_v11 = vand.u32 2147483648, %v11076_v23  ;;  %v11980_v21 = vrot.slane %v11057_v48, 6 }
 0x365   :  { %v986_v43 = vsel %vm981_vm0, %v12364_v60, %v976_v7  ;;  %v4161_v1 = vmul.f32 %v4160_v36, %v3157_v15  ;;  %v2837_v59 = vadd.f32 %v2773_v8, %v2516_v31  ;;  %vm1105_vm9 = vcmp.ge.s32.totalorder %v11090_v10, 1 }
 0x366   :  { %vm1426_vm12 = vcmp.ge.s32.totalorder %v11090_v10, 2  ;;  %v1169_v3 = vsel %vm1105_vm9, %v986_v43, 0.0  ;;  %v12365_v41 = vrot.slane %v10947_v13, 6  ;;  %v11978_v46 = vrot.slane %v11057_v48, 5 }
 0x367   :  { %vm1747_vm7 = vcmp.ge.s32.totalorder %v11090_v10, 3  ;;  %v5679_v17 = vpop.eup %5678  ;;  %v11114_v58 = vadd.f32 %v4161_v1, %v10876_v18  ;;  %v1233_v8 = vadd.f32 %v1169_v3, %v11057_v48  ;;  %v11977_v9 = vrot.slane %v11057_v48, 4 }
 0x368   :  { %v1307_v38 = vsel %vm1302_vm1, %v12365_v41, %v11980_v21  ;;  %v5681_v25 = vpop.eup %5680  ;;  %v4174_v15 = vor.u32 1.1754944e-38, %v4173_v11  ;;  %v12366_v33 = vrot.slane %v10947_v13, 5  ;;  %vm2068_vm15 = vcmp.ge.s32.totalorder %v11090_v10, 4  ;;  %5442 = vmatmul.msk.f32.gmra.mxu2 %vm4802_vm13, %v5679_v17 }
 0x369   :  { %v1490_v55 = vsel %vm1426_vm12, %v1307_v38, 0.0  ;;  %v11979_v35 = vrot.slane %v11057_v48, 3  ;;  %5393 = vmatmul.msk.f32.gmra.mxu3 %vm4324_vm3, %v11114_v58  ;;  %v4163_v18 = vmul.f32 %v5681_v25, %v11076_v23  ;;  %vm2389_vm5 = vcmp.ge.s32.totalorder %v11090_v10, 5  ;;  %v5090_v38 = vpop.f32.mrf.mxu1 }
 0x36a   :  { %v1628_v31 = vsel %vm1623_vm2, %v12366_v33, %v11978_v46  ;;  %v1554_v60 = vadd.f32 %v1490_v55, %v1233_v8  ;;  %vm4168_vm14 = vweird.f32 %v5681_v25  ;;  %v12367_v36 = vrot.slane %v10947_v13, 4  ;;  %v4663_v33 = vpop.f32.mrf.mxu3 }
 0x36b   :  { %v1811_v43 = vsel %vm1747_vm7, %v1628_v31, 0.0  ;;  %v12368_v1 = vrot.slane %v10947_v13, 3  ;;  %v11981_v41 = vrot.slane %v11057_v48, 2  ;;  %v4164_v17 = vsub.f32 1.0, %v4163_v18  ;;  %vm11158_vm7 = vmor %vm4167_vm4, %vm4168_vm14 }
 0x36c   :  { %v1949_v11 = vsel %vm1944_vm6, %v12367_v36, %v11977_v9  ;;  %v1875_v8 = vadd.f32 %v1811_v43, %v1554_v60  ;;  %vm2710_vm9 = vcmp.ge.s32.totalorder %v11090_v10, 6  ;;  %v12369_v36 = vrot.slane %v10947_v13, 2 }
 0x36d   :  { %v2270_v3 = vsel %vm2265_vm8, %v12368_v1, %v11979_v35  ;;  %v2132_v55 = vsel %vm2068_vm15, %v1949_v11, 0.0  ;;  %v2902_v46 = vrot.slane %v11057_v48, 1  ;;  %v3223_v1 = vcvt.s32.f32 %v11090_v10 }
 0x36e   :  { %v2453_v31 = vsel %vm2389_vm5, %v2270_v3, 0.0  ;;  %v2591_v9 = vsel %vm2586_vm10, %v12369_v36, %v11981_v41  ;;  %v4165_v35 = vmul.f32 %v5681_v25, %v4164_v17  ;;  %v2196_v21 = vadd.f32 %v2132_v55, %v1875_v8  ;;  %v11174_v55 = vld [vmem:[%s11820_s0 + $0x1e0] sm:$0xff] }
 0x36f   :  { %vm3031_vm12 = vcmp.ge.s32.totalorder %v11090_v10, 7  ;;  %v5091_v18 = vadd.f32 %v10965_v37, %v5090_v38  ;;  %v2912_v43 = vsel %vm2907_vm11, %v2901_v52, %v2902_v46  ;;  %v3287_v11 = vadd.f32 1.0, %v3223_v1 }
 0x370   :  { %v4664_v3 = vadd.f32 %v10977_v12, %v4663_v33  ;;  %v145_v17 = vadd.s32 480, %v5791_v5  ;;  %v3158_v38 = vadd.f32 %v3094_v51, %v2837_v59  ;;  %v4166_v8 = vadd.f32 %v5681_v25, %v4165_v35 }
 0x371   :  { %vm4172_vm15 = vcmp.eq.f32.partialorder %v4171_v22, 8.507059e+37  ;;  %v5230_v23 = vadd.f32 %v5091_v18, %v8184_v20  ;;  %v2517_v36 = vadd.f32 %v2453_v31, %v2196_v21  ;;  %v2774_v41 = vsel %vm2710_vm9, %v2591_v9, 0.0 }
 0x372   :  { %5682 = vrcp.f32 %v3287_v11  ;;  %v4170_v52 = vsel %vm11158_vm7, %v5681_v25, %v4166_v8  ;;  %v3095_v51 = vsel %vm3031_vm12, %v2912_v43, 0.0  ;;  %v11186_v20 = vand.u32 7, %v145_v17 }
 0x373   :  { %5294 = vst.msk [vmem:[%s11824_s5 + $0xd0] sm:$0xff] %vm4324_vm3, %v5230_v23  ;;  %5684 = vtanh.f32 %v4664_v3  ;;  %v4175_v22 = vsel %vm4172_vm15, %v4174_v15, %v4170_v52  ;;  %vm4182_vm4 = vweird.f32 %v3287_v11  ;;  %v4186_v21 = vand.u32 2147483647, %v3287_v11 }
 0x374   :  { %v977_v59 = vrot.slane %v11174_v55, 7  ;;  %v4176_v9 = vmul.f32 %v4175_v22, %v3158_v38  ;;  %v4188_v35 = vand.u32 2147483648, %v3287_v11  ;;  %vm1106_vm5 = vcmp.ge.s32.totalorder %v11186_v20, 1 }
 0x375   :  { %v1298_v10 = vrot.slane %v11174_v55, 6  ;;  %vm1427_vm14 = vcmp.ge.s32.totalorder %v11186_v20, 2  ;;  %v11984_v15 = vrot.slane %v11174_v55, 5  ;;  %vm1748_vm9 = vcmp.ge.s32.totalorder %v11186_v20, 3 }
 0x376   :  { %v985_v25 = vsel %vm981_vm0, %v976_v7, %v977_v59  ;;  %v11201_v33 = vadd.f32 %v4176_v9, %v10947_v13  ;;  %v12372_v1 = vrot.slane %v11057_v48, 6  ;;  %v11982_v60 = vrot.slane %v11174_v55, 4 }
 0x377   :  { %v1170_v31 = vsel %vm1106_vm5, %v985_v25, 0.0  ;;  %v12373_v17 = vrot.slane %v11057_v48, 5  ;;  %vm2069_vm12 = vcmp.ge.s32.totalorder %v11186_v20, 4  ;;  %v2838_v8 = vadd.f32 %v2774_v41, %v2517_v36 }
 0x378   :  { %v1306_v18 = vsel %vm1302_vm1, %v12372_v1, %v1298_v10  ;;  %v5683_v7 = vpop.eup %5682  ;;  %v1234_v43 = vadd.f32 %v1170_v31, %v11174_v55  ;;  %5394 = vmatmul.msk.f32.gmra.mxu3 %vm4324_vm3, %v11201_v33  ;;  %v12374_v22 = vrot.slane %v11057_v48, 4  ;;  %vm11226_vm15 = vcmp.eq.f32.partialorder %v4186_v21, 8.507059e+37 }
 0x379   :  { %v1491_v3 = vsel %vm1427_vm14, %v1306_v18, 0.0  ;;  %v1627_v13 = vsel %vm1623_vm2, %v12373_v17, %v11984_v15  ;;  %v5685_v38 = vpop.eup %5684  ;;  %v4178_v23 = vmul.f32 %v5683_v7, %v3287_v11  ;;  %vm4183_vm7 = vweird.f32 %v5683_v7 }
 0x37a   :  { %v1812_v52 = vsel %vm1748_vm9, %v1627_v13, 0.0  ;;  %v1948_v9 = vsel %vm1944_vm6, %v12374_v22, %v11982_v60  ;;  %v1555_v31 = vadd.f32 %v1491_v3, %v1234_v43  ;;  %v11983_v1 = vrot.slane %v11174_v55, 3  ;;  %5443 = vmatmul.msk.f32.gmra.mxu2 %vm4802_vm13, %v5685_v38  ;;  %v5093_v3 = vpop.f32.mrf.mxu1  ;;  %v4666_v60 = vpop.f32.mrf.mxu3  ;;  %vm11245_vm9 = vmor %vm4182_vm4, %vm4183_vm7 }
 0x37b   :  { %v4179_v41 = vsub.f32 1.0, %v4178_v23  ;;  %v2133_v36 = vsel %vm2069_vm12, %v1948_v9, 0.0  ;;  %vm2390_vm5 = vcmp.ge.s32.totalorder %v11186_v20, 5  ;;  %v2582_v18 = vrot.slane %v11174_v55, 2 }
 0x37c   :  { %v4189_v17 = vor.u32 1.1754944e-38, %v4188_v35  ;;  %v1876_v13 = vadd.f32 %v1812_v52, %v1555_v31  ;;  %v12377_v21 = vrot.slane %v11057_v48, 3  ;;  %v3224_v43 = vcvt.s32.f32 %v11186_v20 }
 0x37d   :  { %v3159_v38 = vadd.f32 %v3095_v51, %v2838_v8  ;;  %v4180_v23 = vmul.f32 %v5683_v7, %v4179_v41  ;;  %vm2711_vm14 = vcmp.ge.s32.totalorder %v11186_v20, 6  ;;  %v11986_v9 = vrot.slane %v11174_v55, 1 }
 0x37e   :  { %v2269_v22 = vsel %vm2265_vm8, %v12377_v21, %v11983_v1  ;;  %v2197_v52 = vadd.f32 %v2133_v36, %v1876_v13  ;;  %v12380_v21 = vrot.slane %v11057_v48, 2  ;;  %v3288_v8 = vadd.f32 1.0, %v3224_v43  ;;  %v11262_v36 = vld [vmem:[%s11820_s0 + $0x1e8] sm:$0xff] }
 0x37f   :  { %v2454_v31 = vsel %vm2390_vm5, %v2269_v22, 0.0  ;;  %v4181_v41 = vadd.f32 %v5683_v7, %v4180_v23  ;;  %v5094_v1 = vadd.f32 %v10965_v37, %v5093_v3  ;;  %v4667_v15 = vadd.f32 %v10977_v12, %v4666_v60 }
 0x380   :  { %v2590_v51 = vsel %vm2586_vm10, %v12380_v21, %v2582_v18  ;;  %v146_v11 = vadd.s32 488, %v5791_v5  ;;  %vm3032_vm4 = vcmp.ge.s32.totalorder %v11186_v20, 7  ;;  %5686 = vrcp.f32 %v3288_v8 }
 0x381   :  { %v4185_v13 = vsel %vm11245_vm9, %v5683_v7, %v4181_v41  ;;  %v2911_v60 = vsel %vm2907_vm11, %v2902_v46, %v11986_v9  ;;  %v5231_v22 = vadd.f32 %v5094_v1, %v8275_v6  ;;  %5688 = vtanh.f32 %v4667_v15 }
 0x382   :  { %v4190_v43 = vsel %vm11226_vm15, %v4189_v17, %v4185_v13  ;;  %v2518_v3 = vadd.f32 %v2454_v31, %v2197_v52  ;;  %v2775_v23 = vsel %vm2711_vm14, %v2590_v51, 0.0  ;;  %v11277_v21 = vand.u32 7, %v146_v11 }
 0x383   :  { %v4191_v7 = vmul.f32 %v4190_v43, %v3159_v38  ;;  %v4201_v35 = vand.u32 2147483647, %v3288_v8  ;;  %5295 = vst.msk [vmem:[%s11824_s5 + $0xd8] sm:$0xff] %vm4324_vm3, %v5231_v22  ;;  %v11989_v46 = vrot.slane %v11262_v36, 7  ;;  %v11987_v6 = vrot.slane %v11262_v36, 6 }
 0x384   :  { %v4203_v15 = vand.u32 2147483648, %v3288_v8  ;;  %vm1107_vm12 = vcmp.ge.s32.totalorder %v11277_v21, 1  ;;  %vm1428_vm7 = vcmp.ge.s32.totalorder %v11277_v21, 2  ;;  %v11985_v25 = vrot.slane %v11262_v36, 5 }
 0x385   :  { %v11289_v1 = vadd.f32 %v4191_v7, %v11057_v48  ;;  %v984_v17 = vsel %vm981_vm0, %v977_v59, %v11989_v46  ;;  %v1305_v38 = vsel %vm1302_vm1, %v1298_v10, %v11987_v6  ;;  %vm1749_vm15 = vcmp.ge.s32.totalorder %v11277_v21, 3 }
 0x386   :  { %v5687_v52 = vpop.eup %5686  ;;  %v1171_v31 = vsel %vm1107_vm12, %v984_v17, 0.0  ;;  %v1492_v48 = vsel %vm1428_vm7, %v1305_v38, 0.0  ;;  %v12381_v51 = vrot.slane %v11174_v55, 5  ;;  %v11988_v59 = vrot.slane %v11262_v36, 4 }
 0x387   :  { %v5689_v11 = vpop.eup %5688  ;;  %5395 = vmatmul.msk.f32.gmra.mxu3 %vm4324_vm3, %v11289_v1  ;;  %v2839_v13 = vadd.f32 %v2775_v23, %v2518_v3  ;;  %v3096_v10 = vsel %vm3032_vm4, %v2911_v60, 0.0  ;;  %v4193_v22 = vmul.f32 %v5687_v52, %v3288_v8  ;;  %v1235_v43 = vadd.f32 %v1171_v31, %v11262_v36  ;;  %v5096_v60 = vpop.f32.mrf.mxu1 }
 0x388   :  { %v1626_v41 = vsel %vm1623_vm2, %v12381_v51, %v11985_v25  ;;  %vm4197_vm5 = vweird.f32 %v3288_v8  ;;  %vm4198_vm14 = vweird.f32 %v5687_v52  ;;  %v12382_v17 = vrot.slane %v11174_v55, 4  ;;  %5444 = vmatmul.msk.f32.gmra.mxu2 %vm4802_vm13, %v5689_v11 }
 0x389   :  { %v1813_v7 = vsel %vm1749_vm15, %v1626_v41, 0.0  ;;  %v4194_v51 = vsub.f32 1.0, %v4193_v22  ;;  %v1556_v3 = vadd.f32 %v1492_v48, %v1235_v43  ;;  %vm2070_vm9 = vcmp.ge.s32.totalorder %v11277_v21, 4  ;;  %v4669_v41 = vpop.f32.mrf.mxu3  ;;  %v11333_v48 = vld [vmem:[%s11820_s0 + $0x1f0] sm:$0xff]  ;;  %vm11337_vm7 = vmor %vm4197_vm5, %vm4198_vm14 }
 0x38a   :  { %v1947_v38 = vsel %vm1944_vm6, %v12382_v17, %v11988_v59  ;;  %v2262_v20 = vrot.slane %v11262_v36, 3  ;;  %vm11325_vm4 = vcmp.eq.f32.partialorder %v4201_v35, 8.507059e+37  ;;  %v4204_v31 = vor.u32 1.1754944e-38, %v4203_v15 }
 0x38b   :  { %v3160_v25 = vadd.f32 %v3096_v10, %v2839_v13  ;;  %v4195_v9 = vmul.f32 %v5687_v52, %v4194_v51  ;;  %v1877_v6 = vadd.f32 %v1813_v7, %v1556_v3  ;;  %vm2391_vm12 = vcmp.ge.s32.totalorder %v11277_v21, 5 }
 0x38c   :  { %v2134_v35 = vsel %vm2070_vm9, %v1947_v38, 0.0  ;;  %v2583_v15 = vrot.slane %v11262_v36, 2  ;;  %v3225_v13 = vcvt.s32.f32 %v11277_v21  ;;  %v5097_v10 = vadd.f32 %v10965_v37, %v5096_v60 }
 0x38d   :  { %v4196_v22 = vadd.f32 %v5687_v52, %v4195_v9  ;;  %v12387_v43 = vrot.slane %v11174_v55, 3  ;;  %v11991_v8 = vrot.slane %v11262_v36, 1  ;;  %v4670_v17 = vadd.f32 %v10977_v12, %v4669_v41 }
 0x38e   :  { %v11352_v51 = vadd.f32 1.0, %v3225_v13  ;;  %v5232_v38 = vadd.f32 %v5097_v10, %v8366_v45  ;;  %v147_v3 = vadd.s32 496, %v5791_v5  ;;  %v11994_v60 = vrot.slane %v11333_v48, 7 }
 0x38f   :  { %v2268_v7 = vsel %vm2265_vm8, %v12387_v43, %v2262_v20  ;;  %v4200_v9 = vsel %vm11337_vm7, %v5687_v52, %v4196_v22  ;;  %v2198_v59 = vadd.f32 %v2134_v35, %v1877_v6  ;;  %5690 = vtanh.f32 %v4670_v17 }
 0x390   :  { %v11993_v46 = vrot.slane %v11333_v48, 6  ;;  %v4205_v43 = vsel %vm11325_vm4, %v4204_v31, %v4200_v9  ;;  %v2455_v41 = vsel %vm2391_vm12, %v2268_v7, 0.0  ;;  %5692 = vrcp.f32 %v11352_v51  ;;  %5296 = vst.msk [vmem:[%s11824_s5 + $0xe0] sm:$0xff] %vm4324_vm3, %v5232_v38 }
 0x391   :  { %v4206_v45 = vmul.f32 %v4205_v43, %v3160_v25  ;;  %vm2712_vm15 = vcmp.ge.s32.totalorder %v11277_v21, 6  ;;  %vm3033_vm5 = vcmp.ge.s32.totalorder %v11277_v21, 7  ;;  %v11371_v6 = vand.u32 7, %v147_v3 }
 0x392   :  { %v2589_v52 = vsel %vm2586_vm10, %v2582_v18, %v2583_v15  ;;  %v12388_v23 = vrot.slane %v11262_v36, 7  ;;  %v12389_v31 = vrot.slane %v11262_v36, 6  ;;  %v11990_v35 = vrot.slane %v11333_v48, 5 }
 0x393   :  { %v11393_v13 = vadd.f32 %v4206_v45, %v11174_v55  ;;  %v2519_v18 = vadd.f32 %v2455_v41, %v2198_v59  ;;  %v12390_v10 = vrot.slane %v11174_v55, 1  ;;  %vm1108_vm14 = vcmp.ge.s32.totalorder %v11371_v6, 1  ;;  %v5099_v41 = vpop.f32.mrf.mxu1  ;;  %v4672_v45 = vpop.f32.mrf.mxu3 }
 0x394   :  { %v983_v25 = vsel %vm981_vm0, %v12388_v23, %v11994_v60  ;;  %v1304_v11 = vsel %vm1302_vm1, %v12389_v31, %v11993_v46  ;;  %vm1429_vm9 = vcmp.ge.s32.totalorder %v11371_v6, 2  ;;  %v12391_v17 = vrot.slane %v11262_v36, 5 }
 0x395   :  { %v2910_v22 = vsel %vm2907_vm11, %v12390_v10, %v11991_v8  ;;  %v1172_v7 = vsel %vm1108_vm14, %v983_v25, 0.0  ;;  %vm1750_vm4 = vcmp.ge.s32.totalorder %v11371_v6, 3  ;;  %v5691_v59 = vpop.eup %5690  ;;  %5396 = vmatmul.msk.f32.gmra.mxu3 %vm4324_vm3, %v11393_v13  ;;  %v2776_v55 = vsel %vm2712_vm15, %v2589_v52, 0.0 }
 0x396   :  { %v1625_v38 = vsel %vm1623_vm2, %v12391_v17, %v11990_v35  ;;  %v1236_v3 = vadd.f32 %v1172_v7, %v11333_v48  ;;  %v1493_v9 = vsel %vm1429_vm9, %v1304_v11, 0.0  ;;  %v11992_v43 = vrot.slane %v11333_v48, 4  ;;  %v5693_v23 = vpop.eup %5692  ;;  %5445 = vmatmul.msk.f32.gmra.mxu2 %vm4802_vm13, %v5691_v59 }
 0x397   :  { %v3097_v25 = vsel %vm3033_vm5, %v2910_v22, 0.0  ;;  %v1814_v31 = vsel %vm1750_vm4, %v1625_v38, 0.0  ;;  %vm2071_vm12 = vcmp.ge.s32.totalorder %v11371_v6, 4  ;;  %v4208_v10 = vmul.f32 %v5693_v23, %v11352_v51 }
 0x398   :  { %v1557_v17 = vadd.f32 %v1493_v9, %v1236_v3  ;;  %v12392_v52 = vrot.slane %v11262_v36, 4  ;;  %v11997_v7 = vrot.slane %v11333_v48, 3  ;;  %v2840_v35 = vadd.f32 %v2776_v55, %v2519_v18 }
 0x399   :  { %vm4212_vm7 = vweird.f32 %v11352_v51  ;;  %v4216_v21 = vand.u32 2147483647, %v11352_v51  ;;  %v4218_v22 = vand.u32 2147483648, %v11352_v51  ;;  %v4209_v38 = vsub.f32 1.0, %v4208_v10 }
 0x39a   :  { %v1946_v11 = vsel %vm1944_vm6, %v12392_v52, %v11992_v43  ;;  %vm4213_vm15 = vweird.f32 %v5693_v23  ;;  %vm2392_vm5 = vcmp.ge.s32.totalorder %v11371_v6, 5  ;;  %v11996_v59 = vrot.slane %v11333_v48, 2 }
 0x39b   :  { %v1878_v3 = vadd.f32 %v1814_v31, %v1557_v17  ;;  %v2135_v9 = vsel %vm2071_vm12, %v1946_v11, 0.0  ;;  %v3226_v8 = vcvt.s32.f32 %v11371_v6  ;;  %v5100_v52 = vadd.f32 %v10965_v37, %v5099_v41  ;;  %vm11445_vm14 = vmor %vm4212_vm7, %vm4213_vm15 }
 0x39c   :  { %v4210_v43 = vmul.f32 %v5693_v23, %v4209_v38  ;;  %v2267_v18 = vsel %vm2265_vm8, %v2262_v20, %v11997_v7  ;;  %v4673_v55 = vadd.f32 %v10977_v12, %v4672_v45  ;;  %v148_v10 = vadd.s32 504, %v5791_v5 }
 0x39d   :  { %v4219_v17 = vor.u32 1.1754944e-38, %v4218_v22  ;;  %v11995_v41 = vrot.slane %v11333_v48, 1  ;;  %v11450_v11 = vadd.f32 1.0, %v3226_v8  ;;  %v5233_v38 = vadd.f32 %v5100_v52, %v8457_v47 }
 0x39e   :  { %v3161_v46 = vadd.f32 %v3097_v25, %v2840_v35  ;;  %v4211_v60 = vadd.f32 %v5693_v23, %v4210_v43  ;;  %vm4217_vm9 = vcmp.eq.f32.partialorder %v4216_v21, 8.507059e+37  ;;  %5694 = vtanh.f32 %v4673_v55 }
 0x39f   :  { %v2199_v20 = vadd.f32 %v2135_v9, %v1878_v3  ;;  %v2456_v45 = vsel %vm2392_vm5, %v2267_v18, 0.0  ;;  %v2588_v51 = vsel %vm2586_vm10, %v2583_v15, %v11996_v59  ;;  %5696 = vrcp.f32 %v11450_v11  ;;  %5297 = vst.msk [vmem:[%s11824_s5 + $0xe8] sm:$0xff] %vm4324_vm3, %v5233_v38  ;;  %v5102_v3 = vpop.f32.mrf.mxu1  ;;  %v4675_v9 = vpop.f32.mrf.mxu3 }
 0x3a0   :  { %v4215_v47 = vsel %vm11445_vm14, %v5693_v23, %v4211_v60  ;;  %v11468_v8 = vand.u32 7, %v148_v10  ;;  %v12395_v35 = vrot.slane %v5789_v4, 7  ;;  %v12396_v43 = vrot.slane %v11333_v48, 7  ;;  %v5108_v18 = vpop.f32.mrf.mxu2 }
 0x3a1   :  { %v12397_v15 = vrot.slane %v5789_v4, 6  ;;  %v12398_v21 = vrot.slane %v11333_v48, 6  ;;  %v4220_v52 = vsel %vm4217_vm9, %v4219_v17, %v4215_v47  ;;  %vm2713_vm4 = vcmp.ge.s32.totalorder %v11371_v6, 6 }
 0x3a2   :  { %v982_v25 = vsel %vm981_vm0, %v12396_v43, %v12395_v35  ;;  %v12399_v60 = vrot.slane %v11262_v36, 1  ;;  %vm3034_vm0 = vcmp.ge.s32.totalorder %v11371_v6, 7  ;;  %v4221_v55 = vmul.f32 %v4220_v52, %v3161_v46 }
 0x3a3   :  { %v1303_v22 = vsel %vm1302_vm1, %v12398_v21, %v12397_v15  ;;  %vm1109_vm12 = vcmp.ge.s32.totalorder %v11468_v8, 1  ;;  %vm1430_vm1 = vcmp.ge.s32.totalorder %v11468_v8, 2  ;;  %v12400_v10 = vrot.slane %v5789_v4, 5  ;;  %v11505_v21 = vld [vmem:[%s11820_s0 + $0x1f8] sm:$0xff] }
 0x3a4   :  { %v2909_v23 = vsel %vm2907_vm11, %v12399_v60, %v11995_v41  ;;  %v12401_v31 = vrot.slane %v11333_v48, 5  ;;  %v2520_v38 = vadd.f32 %v2456_v45, %v2199_v20  ;;  %v1173_v47 = vsel %vm1109_vm12, %v982_v25, 0.0  ;;  %v5695_v43 = vpop.eup %5694 }
 0x3a5   :  { %v1494_v35 = vsel %vm1430_vm1, %v1303_v22, 0.0  ;;  %vm1751_vm7 = vcmp.ge.s32.totalorder %v11468_v8, 3  ;;  %v11500_v15 = vadd.f32 %v4221_v55, %v11262_v36  ;;  %v2777_v46 = vsel %vm2713_vm4, %v2588_v51, 0.0  ;;  %v5697_v60 = vpop.eup %5696  ;;  %5446 = vmatmul.msk.f32.gmra.mxu2 %vm4802_vm13, %v5695_v43 }
 0x3a6   :  { %v1624_v17 = vsel %vm1623_vm2, %v12401_v31, %v12400_v10  ;;  %v1237_v52 = vadd.f32 %v11505_v21, %v1173_v47  ;;  %v12403_v20 = vrot.slane %v5789_v4, 4  ;;  %v12404_v45 = vrot.slane %v11333_v48, 4 }
 0x3a7   :  { %12402 = vst [vmem:[#allocation3_spill] sm:$0xff] %v11500_v15  ;;  %v1815_v41 = vsel %vm1751_vm7, %v1624_v17, 0.0  ;;  %vm2072_vm2 = vcmp.ge.s32.totalorder %v11468_v8, 4  ;;  %5397 = vmatmul.msk.f32.gmra.mxu3 %vm4324_vm3, %v11500_v15  ;;  %v3098_v36 = vsel %vm3034_vm0, %v2909_v23, 0.0  ;;  %v4223_v51 = vmul.f32 %v5697_v60, %v11450_v11  ;;  %v4678_v59 = vpop.f32.mrf.mxu3 }
 0x3a8   :  { %v1945_v25 = vsel %vm1944_vm6, %v12404_v45, %v12403_v20  ;;  %vm4227_vm15 = vweird.f32 %v11450_v11  ;;  %v1558_v22 = vadd.f32 %v1494_v35, %v1237_v52  ;;  %v2841_v55 = vadd.f32 %v2777_v46, %v2520_v38  ;;  %v5105_v45 = vpop.f32.mrf.mxu1  ;;  %v5111_v35 = vpop.f32.mrf.mxu2 }
 0x3a9   :  { %v4231_v10 = vand.u32 2147483647, %v11450_v11  ;;  %v4233_v31 = vand.u32 2147483648, %v11450_v11  ;;  %v3227_v17 = vcvt.s32.f32 %v11468_v8  ;;  %v4224_v47 = vsub.f32 1.0, %v4223_v51 }
 0x3aa   :  { %vm4228_vm6 = vweird.f32 %v5697_v60  ;;  %v1879_v43 = vadd.f32 %v1815_v41, %v1558_v22  ;;  %v2136_v20 = vsel %vm2072_vm2, %v1945_v25, 0.0  ;;  %v5103_v23 = vadd.f32 %v10965_v37, %v5102_v3 }
 0x3ab   :  { %v11525_v6 = vadd.f32 1.0, %v3227_v17  ;;  %v4676_v7 = vadd.f32 %v10977_v12, %v4675_v9  ;;  %v5106_v38 = vadd.f32 %v10965_v37, %v5105_v45  ;;  %v4225_v46 = vmul.f32 %v5697_v60, %v4224_v47  ;;  %vm11541_vm14 = vmor %vm4227_vm15, %vm4228_vm6 }
 0x3ac   :  { %v12405_v52 = vrot.slane %v5789_v4, 3  ;;  %v12406_v15 = vrot.slane %v11333_v48, 3  ;;  %vm2393_vm5 = vcmp.ge.s32.totalorder %v11468_v8, 5  ;;  %v5109_v25 = vadd.f32 %v10965_v37, %v5108_v18 }
 0x3ad   :  { %v3162_v51 = vadd.f32 %v3098_v36, %v2841_v55  ;;  %vm11545_vm9 = vcmp.eq.f32.partialorder %v4231_v10, 8.507059e+37  ;;  %v4234_v22 = vor.u32 1.1754944e-38, %v4233_v31  ;;  %5698 = vrcp.f32 %v11525_v6 }
 0x3ae   :  { %v2266_v41 = vsel %vm2265_vm8, %v12406_v15, %v12405_v52  ;;  %v4226_v15 = vadd.f32 %v5697_v60, %v4225_v46  ;;  %v2200_v17 = vadd.f32 %v2136_v20, %v1879_v43  ;;  %v5234_v47 = vadd.f32 %v5103_v23, %v8543_v2 }
 0x3af   :  { %5700 = vtanh.f32 %v4676_v7  ;;  %v2457_v18 = vsel %vm2393_vm5, %v2266_v41, 0.0  ;;  %v12411_v36 = vrot.slane %v5789_v4, 2  ;;  %v12412_v11 = vrot.slane %v11333_v48, 2  ;;  %v4681_v45 = vpop.f32.mrf.mxu3 }
 0x3b0   :  { %vm2714_vm8 = vcmp.ge.s32.totalorder %v11468_v8, 6  ;;  %v5235_v10 = vadd.f32 %v5106_v38, %v8628_v34  ;;  %v4230_v31 = vsel %vm11541_vm14, %v5697_v60, %v4226_v15  ;;  %5298 = vst.msk [vmem:[%s11824_s5 + $0xf0] sm:$0xff] %vm4324_vm3, %v5234_v47  ;;  %v4679_v2 = vadd.f32 %v10977_v12, %v4678_v59  ;;  %v12413_v59 = vld [vmem:[#allocation2_spill] sm:$0xff]  ;;  %v5114_v41 = vpop.f32.mrf.mxu2 }
 0x3b1   :  { %v2587_v55 = vsel %vm2586_vm10, %v12412_v11, %v12411_v36  ;;  %v5236_v7 = vadd.f32 %v5109_v25, %v8723_v27  ;;  %v5112_v43 = vadd.f32 %v10965_v37, %v5111_v35  ;;  %v4235_v20 = vsel %vm11545_vm9, %v4234_v22, %v4230_v31 }
 0x3b2   :  { %5299 = vst.msk [vmem:[%s11824_s5 + $0xf8] sm:$0xff] %vm4324_vm3, %v5235_v10  ;;  %v4236_v34 = vmul.f32 %v4235_v20, %v3162_v51  ;;  %v2521_v60 = vadd.f32 %v2457_v18, %v2200_v17  ;;  %v2778_v38 = vsel %vm2714_vm8, %v2587_v55, 0.0  ;;  %v12414_v35 = vrot.slane %v5789_v4, 1 }
 0x3b3   :  { %5300 = vst.msk [vmem:[%s11824_s5 + $0x100] sm:$0xff] %vm4324_vm3, %v5236_v7  ;;  %v5237_v27 = vadd.f32 %v5112_v43, %v12413_v59  ;;  %v5699_v23 = vpop.eup %5698  ;;  %v12415_v46 = vrot.slane %v11333_v48, 1  ;;  %vm3035_vm10 = vcmp.ge.s32.totalorder %v11468_v8, 7  ;;  %5702 = vtanh.f32 %v4679_v2 }
 0x3b4   :  { %v11587_v51 = vadd.f32 %v4236_v34, %v11333_v48  ;;  %v4238_v3 = vmul.f32 %v5699_v23, %v11525_v6  ;;  %v5115_v4 = vadd.f32 %v10965_v37, %v5114_v41  ;;  %vm4242_vm4 = vweird.f32 %v11525_v6 }
 0x3b5   :  { %v2908_v52 = vsel %vm2907_vm11, %v12415_v46, %v12414_v35  ;;  %v5701_v25 = vpop.eup %5700  ;;  %5301 = vst.msk [vmem:[%s11824_s5 + $0x108] sm:$0xff] %vm4324_vm3, %v5237_v27  ;;  %v4246_v5 = vand.u32 2147483647, %v11525_v6  ;;  %v4248_v9 = vand.u32 2147483648, %v11525_v6  ;;  %v2842_v48 = vadd.f32 %v2778_v38, %v2521_v60 }
 0x3b6   :  { %5447 = vmatmul.msk.f32.gmra.mxu2 %vm4802_vm13, %v5701_v25  ;;  %5398 = vmatmul.msk.f32.gmra.mxu3 %vm4324_vm3, %v11587_v51  ;;  %v4239_v22 = vsub.f32 1.0, %v4238_v3  ;;  %vm4243_vm11 = vweird.f32 %v5699_v23  ;;  %v5238_v15 = vadd.f32 %v5115_v4, %v8907_v30  ;;  %v3099_v17 = vsel %vm3035_vm10, %v2908_v52, 0.0 }
 0x3b7   :  { %v4682_v18 = vadd.f32 %v10977_v12, %v4681_v45  ;;  %vm4244_vm0 = vmor %vm4242_vm4, %vm4243_vm11  ;;  %v4249_v6 = vor.u32 1.1754944e-38, %v4248_v9  ;;  %v3163_v11 = vadd.f32 %v3099_v17, %v2842_v48  ;;  %vm4247_vm12 = vcmp.eq.f32.partialorder %v4246_v5, 8.507059e+37  ;;  %v4684_v10 = vpop.f32.mrf.mxu3 }
 0x3b8   :  { %v4240_v47 = vmul.f32 %v5699_v23, %v4239_v22  ;;  %5302 = vst.msk [vmem:[%s11824_s5 + $0x110] sm:$0xff] %vm4324_vm3, %v5238_v15  ;;  %v5117_v31 = vpop.f32.mrf.mxu2  ;;  %v4685_v34 = vadd.f32 %v10977_v12, %v4684_v10 }
 0x3b9   :  { %v5703_v36 = vpop.eup %5702  ;;  %5704 = vtanh.f32 %v4682_v18  ;;  %v5118_v8 = vadd.f32 %v10965_v37, %v5117_v31 }
 0x3ba   :  { %v4241_v55 = vadd.f32 %v5699_v23, %v4240_v47  ;;  %5706 = vtanh.f32 %v4685_v34  ;;  %v5744_v34 = vld [vmem:[%s11821_s2] ss:$0 sm:$0xff] }
 0x3bb   :  { %v5239_v43 = vadd.f32 %v5118_v8, %v8995_v42 }
 0x3bc   :  { %v4245_v30 = vsel %vm4244_vm0, %v5699_v23, %v4241_v55 }
 0x3bd   :  { %v4250_v2 = vsel %vm4247_vm12, %v4249_v6, %v4245_v30  ;;  %5303 = vst.msk [vmem:[%s11824_s5 + $0x118] sm:$0xff] %vm4324_vm3, %v5239_v43  ;;  %v11673_v43 = vld [vmem:[%s11823_s4] ss:$0 sm:$0xff] }
 0x3be   :  { %5448 = vmatmul.msk.f32.gmra.mxu2 %vm4802_vm13, %v5703_v36  ;;  %v4251_v7 = vmul.f32 %v4250_v2, %v3163_v11 }
 0x3bf   :  { %v5705_v60 = vpop.eup %5704  ;;  %v4687_v45 = vpop.f32.mrf.mxu3 }
 0x3c0   :  { %v11613_v20 = vadd.f32 %v11505_v21, %v4251_v7  ;;  %v5120_v59 = vpop.f32.mrf.mxu2  ;;  %v4688_v21 = vadd.f32 %v10977_v12, %v4687_v45  ;;  %v5707_v23 = vpop.eup %5706 }
 0x3c1   :  { %v5121_v27 = vadd.f32 %v10965_v37, %v5120_v59 }
 0x3c2   :  { %5399 = vmatmul.msk.f32.gmra.mxu3 %vm4324_vm3, %v11613_v20  ;;  %5708 = vtanh.f32 %v4688_v21 }
 0x3c3   :  { %v5240_v42 = vadd.f32 %v5121_v27, %v9105_v26 }
 0x3c5   :  { %5304 = vst.msk [vmem:[%s11824_s5 + $0x120] sm:$0xff] %vm4324_vm3, %v5240_v42 }
 0x3c6   :  { %5449 = vmatmul.msk.f32.gmra.mxu2 %vm4802_vm13, %v5705_v60 }
 0x3c7   :  { %v4690_v38 = vpop.f32.mrf.mxu3 }
 0x3c8   :  { %v5123_v35 = vpop.f32.mrf.mxu2  ;;  %v4691_v41 = vadd.f32 %v10977_v12, %v4690_v38  ;;  %v5709_v26 = vpop.eup %5708 }
 0x3c9   :  { %v5124_v46 = vadd.f32 %v10965_v37, %v5123_v35 }
 0x3ca   :  { %5710 = vtanh.f32 %v4691_v41 }
 0x3cb   :  { %v5241_v52 = vadd.f32 %v5124_v46, %v9193_v54 }
 0x3cd   :  { %5305 = vst.msk [vmem:[%s11824_s5 + $0x128] sm:$0xff] %vm4324_vm3, %v5241_v52 }
 0x3ce   :  { %5450 = vmatmul.msk.f32.gmra.mxu2 %vm4802_vm13, %v5707_v23 }
 0x3cf   :  { %v4693_v25 = vpop.f32.mrf.mxu3 }
 0x3d0   :  { %v5126_v3 = vpop.f32.mrf.mxu2  ;;  %v4694_v9 = vadd.f32 %v10977_v12, %v4693_v25  ;;  %v5711_v54 = vpop.eup %5710 }
 0x3d1   :  { %v5127_v4 = vadd.f32 %v10965_v37, %v5126_v3 }
 0x3d2   :  { %5712 = vtanh.f32 %v4694_v9 }
 0x3d3   :  { %v5242_v5 = vadd.f32 %v5127_v4, %v9283_v24 }
 0x3d5   :  { %5306 = vst.msk [vmem:[%s11824_s5 + $0x130] sm:$0xff] %vm4324_vm3, %v5242_v5 }
 0x3d6   :  { %5451 = vmatmul.msk.f32.gmra.mxu2 %vm4802_vm13, %v5709_v26 }
 0x3d7   :  { %v4696_v48 = vpop.f32.mrf.mxu3 }
 0x3d8   :  { %v5129_v22 = vpop.f32.mrf.mxu2  ;;  %v4697_v47 = vadd.f32 %v10977_v12, %v4696_v48  ;;  %v5713_v24 = vpop.eup %5712 }
 0x3d9   :  { %v5130_v15 = vadd.f32 %v10965_v37, %v5129_v22 }
 0x3da   :  { %5714 = vtanh.f32 %v4697_v47 }
 0x3db   :  { %v5243_v17 = vadd.f32 %v5130_v15, %v9371_v28 }
 0x3dd   :  { %5307 = vst.msk [vmem:[%s11824_s5 + $0x138] sm:$0xff] %vm4324_vm3, %v5243_v17 }
 0x3de   :  { %5452 = vmatmul.msk.f32.gmra.mxu2 %vm4802_vm13, %v5711_v54 }
 0x3df   :  { %v4699_v18 = vpop.f32.mrf.mxu3 }
 0x3e0   :  { %v5132_v6 = vpop.f32.mrf.mxu2  ;;  %v4700_v55 = vadd.f32 %v10977_v12, %v4699_v18  ;;  %v5715_v28 = vpop.eup %5714 }
 0x3e1   :  { %v5133_v36 = vadd.f32 %v10965_v37, %v5132_v6 }
 0x3e2   :  { %5716 = vtanh.f32 %v4700_v55 }
 0x3e3   :  { %v5244_v11 = vadd.f32 %v5133_v36, %v9491_v44 }
 0x3e5   :  { %5308 = vst.msk [vmem:[%s11824_s5 + $0x140] sm:$0xff] %vm4324_vm3, %v5244_v11 }
 0x3e6   :  { %5453 = vmatmul.msk.f32.gmra.mxu2 %vm4802_vm13, %v5713_v24 }
 0x3e7   :  { %v4702_v10 = vpop.f32.mrf.mxu3 }
 0x3e8   :  { %v5135_v31 = vpop.f32.mrf.mxu2  ;;  %v4703_v2 = vadd.f32 %v10977_v12, %v4702_v10  ;;  %v5717_v44 = vpop.eup %5716 }
 0x3e9   :  { %v5136_v30 = vadd.f32 %v10965_v37, %v5135_v31 }
 0x3ea   :  { %5718 = vtanh.f32 %v4703_v2 }
 0x3eb   :  { %v5245_v8 = vadd.f32 %v5136_v30, %v9579_v57 }
 0x3ed   :  { %5309 = vst.msk [vmem:[%s11824_s5 + $0x148] sm:$0xff] %vm4324_vm3, %v5245_v8 }
 0x3ee   :  { %5454 = vmatmul.msk.f32.gmra.mxu2 %vm4802_vm13, %v5715_v28 }
 0x3ef   :  { %v4705_v57 = vpop.f32.mrf.mxu3 }
 0x3f0   :  { %v5138_v7 = vpop.f32.mrf.mxu2  ;;  %v4706_v60 = vadd.f32 %v5744_v34, %v4705_v57  ;;  %v5719_v45 = vpop.eup %5718 }
 0x3f1   :  { %v5139_v37 = vadd.f32 %v11673_v43, %v5138_v7 }
 0x3f2   :  { %5720 = vtanh.f32 %v4706_v60 }
 0x3f3   :  { %v5246_v12 = vadd.f32 %v5139_v37, %v9669_v56 }
 0x3f5   :  { %5310 = vst.msk [vmem:[%s11824_s5 + $0x150] sm:$0xff] %vm4324_vm3, %v5246_v12 }
 0x3f6   :  { %5455 = vmatmul.msk.f32.gmra.mxu2 %vm4802_vm13, %v5717_v44 }
 0x3f8   :  { %v5721_v56 = vpop.eup %5720 }
 0x3fb   :  { %v4708_v59 = vpop.f32.mrf.mxu3 }
 0x3fc   :  { %v4709_v27 = vadd.f32 %v5744_v34, %v4708_v59 }
 0x3fd   :  { %v5141_v42 = vpop.f32.mrf.mxu2 }
 0x3fe   :  { %5456 = vmatmul.msk.f32.gmra.mxu2 %vm4802_vm13, %v5719_v45  ;;  %v5142_v21 = vadd.f32 %v11673_v43, %v5141_v42  ;;  %5722 = vtanh.f32 %v4709_v27 }
 0x400   :  { %v5247_v23 = vadd.f32 %v5142_v21, %v9757_v29 }
 0x402   :  { %5311 = vst.msk [vmem:[%s11824_s5 + $0x158] sm:$0xff] %vm4324_vm3, %v5247_v23 }
 0x404   :  { %v5723_v38 = vpop.eup %5722 }
 0x406   :  { %5457 = vmatmul.msk.f32.gmra.mxu2 %vm4802_vm13, %v5721_v56 }
 0x40a   :  { %v4711_v35 = vpop.f32.mrf.mxu3 }
 0x40b   :  { %v4712_v46 = vadd.f32 %v5744_v34, %v4711_v35  ;;  %v5144_v52 = vpop.f32.mrf.mxu2 }
 0x40c   :  { %v5145_v41 = vadd.f32 %v11673_v43, %v5144_v52 }
 0x40d   :  { %5724 = vtanh.f32 %v4712_v46 }
 0x40e   :  { %5458 = vmatmul.msk.f32.gmra.mxu2 %vm4802_vm13, %v5723_v38  ;;  %v5248_v26 = vadd.f32 %v5145_v41, %v9867_v16 }
 0x410   :  { %5312 = vst.msk [vmem:[%s11824_s5 + $0x160] sm:$0xff] %vm4324_vm3, %v5248_v26 }
 0x413   :  { %v5725_v29 = vpop.eup %5724 }
 0x416   :  { %5459 = vmatmul.msk.f32.gmra.mxu2 %vm4802_vm13, %v5725_v29 }
 0x418   :  { %v4714_v25 = vpop.f32.mrf.mxu3 }
 0x419   :  { %v4715_v3 = vadd.f32 %v5744_v34, %v4714_v25  ;;  %v5147_v4 = vpop.f32.mrf.mxu2 }
 0x41a   :  { %v5148_v5 = vadd.f32 %v11673_v43, %v5147_v4 }
 0x41b   :  { %5726 = vtanh.f32 %v4715_v3 }
 0x41c   :  { %v5249_v9 = vadd.f32 %v5148_v5, %v9955_v39  ;;  %v12416_v5 = vld [vmem:[#allocation3_spill] sm:$0xff] }
 0x41e   :  { %5313 = vst.msk [vmem:[%s11824_s5 + $0x168] sm:$0xff] %vm4324_vm3, %v5249_v9 }
 0x421   :  { %v5727_v16 = vpop.eup %5726 }
 0x422   :  { %5460 = vmatmul.msk.f32.gmra.mxu2 %vm4802_vm13, %v5727_v16 }
 0x428   :  { %v5150_v54 = vpop.f32.mrf.mxu2 }
 0x429   :  { %v5151_v22 = vadd.f32 %v11673_v43, %v5150_v54 }
 0x42a   :  { %v4717_v48 = vpop.f32.mrf.mxu3 }
 0x42b   :  { %v4718_v15 = vadd.f32 %v5744_v34, %v4717_v48  ;;  %v5250_v17 = vadd.f32 %v5151_v22, %v10045_v32 }
 0x42d   :  { %5728 = vtanh.f32 %v4718_v15  ;;  %5314 = vst.msk [vmem:[%s11824_s5 + $0x170] sm:$0xff] %vm4324_vm3, %v5250_v17 }
 0x433   :  { %v5729_v39 = vpop.eup %5728 }
 0x434   :  { %5461 = vmatmul.msk.f32.gmra.mxu2 %vm4802_vm13, %v5729_v39 }
 0x439   :  { %v5153_v47 = vpop.f32.mrf.mxu2  ;;  %v4720_v24 = vpop.f32.mrf.mxu3 }
 0x43a   :  { %v5154_v18 = vadd.f32 %v11673_v43, %v5153_v47  ;;  %v4721_v6 = vadd.f32 %v5744_v34, %v4720_v24 }
 0x43c   :  { %v5251_v36 = vadd.f32 %v5154_v18, %v10133_v50  ;;  %5730 = vtanh.f32 %v4721_v6 }
 0x43e   :  { %5315 = vst.msk [vmem:[%s11824_s5 + $0x178] sm:$0xff] %vm4324_vm3, %v5251_v36 }
 0x441   :  { %v5156_v32 = vpop.f32.mrf.mxu2 }
 0x442   :  { %v5157_v11 = vadd.f32 %v11673_v43, %v5156_v32  ;;  %v5731_v55 = vpop.eup %5730 }
 0x443   :  { %5462 = vmatmul.msk.f32.gmra.mxu2 %vm4802_vm13, %v5731_v55 }
 0x444   :  { %v5252_v28 = vadd.f32 %v5157_v11, %v10253_v53 }
 0x445   :  { %v4723_v10 = vpop.f32.mrf.mxu3 }
 0x446   :  { %5316 = vst.msk [vmem:[%s11824_s5 + $0x180] sm:$0xff] %vm4324_vm3, %v5252_v28  ;;  %v4724_v50 = vadd.f32 %v5744_v34, %v4723_v10 }
 0x448   :  { %5732 = vtanh.f32 %v4724_v50 }
 0x449   :  { %v5159_v31 = vpop.f32.mrf.mxu2 }
 0x44a   :  { %v5160_v30 = vadd.f32 %v11673_v43, %v5159_v31 }
 0x44c   :  { %v5253_v8 = vadd.f32 %v5160_v30, %v10341_v0 }
 0x44e   :  { %5317 = vst.msk [vmem:[%s11824_s5 + $0x188] sm:$0xff] %vm4324_vm3, %v5253_v8  ;;  %v5733_v2 = vpop.eup %5732 }
 0x44f   :  { %5463 = vmatmul.msk.f32.gmra.mxu2 %vm4802_vm13, %v5733_v2 }
 0x451   :  { %v5162_v53 = vpop.f32.mrf.mxu2 }
 0x452   :  { %v5163_v44 = vadd.f32 %v11673_v43, %v5162_v53 }
 0x454   :  { %v5254_v7 = vadd.f32 %v5163_v44, %v10431_v40 }
 0x456   :  { %5318 = vst.msk [vmem:[%s11824_s5 + $0x190] sm:$0xff] %vm4324_vm3, %v5254_v7 }
 0x459   :  { %v5165_v37 = vpop.f32.mrf.mxu2 }
 0x45a   :  { %v5166_v0 = vadd.f32 %v11673_v43, %v5165_v37 }
 0x45c   :  { %v5255_v57 = vadd.f32 %v5166_v0, %v10519_v61 }
 0x45e   :  { %5319 = vst.msk [vmem:[%s11824_s5 + $0x198] sm:$0xff] %vm4324_vm3, %v5255_v57 }
 0x461   :  { %v5168_v12 = vpop.f32.mrf.mxu2 }
 0x462   :  { %v5169_v34 = vadd.f32 %v11673_v43, %v5168_v12 }
 0x464   :  { %v5256_v40 = vadd.f32 %v5169_v34, %v10629_v14 }
 0x466   :  { %5320 = vst.msk [vmem:[%s11824_s5 + $0x1a0] sm:$0xff] %vm4324_vm3, %v5256_v40 }
 0x469   :  { %v5171_v60 = vpop.f32.mrf.mxu2 }
 0x46a   :  { %v5172_v45 = vadd.f32 %v11673_v43, %v5171_v60 }
 0x46c   :  { %v5257_v61 = vadd.f32 %v5172_v45, %v10717_v63 }
 0x46e   :  { %5321 = vst.msk [vmem:[%s11824_s5 + $0x1a8] sm:$0xff] %vm4324_vm3, %v5257_v61 }
 0x471   :  { %v5174_v59 = vpop.f32.mrf.mxu2 }
 0x472   :  { %v5175_v27 = vadd.f32 %v11673_v43, %v5174_v59 }
 0x474   :  { %v5258_v14 = vadd.f32 %v5175_v27, %v10807_v62 }
 0x476   :  { %5322 = vst.msk [vmem:[%s11824_s5 + $0x1b0] sm:$0xff] %vm4324_vm3, %v5258_v14 }
 0x479   :  { %v5177_v42 = vpop.f32.mrf.mxu2 }
 0x47a   :  { %v5178_v21 = vadd.f32 %v11673_v43, %v5177_v42 }
 0x47c   :  { %v5259_v63 = vadd.f32 %v5178_v21, %v10895_v19 }
 0x47e   :  { %5323 = vst.msk [vmem:[%s11824_s5 + $0x1b8] sm:$0xff] %vm4324_vm3, %v5259_v63 }
 0x481   :  { %v5180_v56 = vpop.f32.mrf.mxu2 }
 0x482   :  { %v5181_v23 = vadd.f32 %v11673_v43, %v5180_v56 }
 0x484   :  { %v5260_v62 = vadd.f32 %v5181_v23, %v11015_v49 }
 0x486   :  { %5324 = vst.msk [vmem:[%s11824_s5 + $0x1c0] sm:$0xff] %vm4324_vm3, %v5260_v62 }
 0x489   :  { %v5183_v38 = vpop.f32.mrf.mxu2 }
 0x48a   :  { %v5184_v35 = vadd.f32 %v11673_v43, %v5183_v38 }
 0x48c   :  { %v5261_v19 = vadd.f32 %v5184_v35, %v11114_v58 }
 0x48e   :  { %5325 = vst.msk [vmem:[%s11824_s5 + $0x1c8] sm:$0xff] %vm4324_vm3, %v5261_v19 }
 0x491   :  { %v5186_v46 = vpop.f32.mrf.mxu2 }
 0x492   :  { %v5187_v52 = vadd.f32 %v11673_v43, %v5186_v46 }
 0x494   :  { %v5262_v49 = vadd.f32 %v5187_v52, %v11201_v33 }
 0x496   :  { %5326 = vst.msk [vmem:[%s11824_s5 + $0x1d0] sm:$0xff] %vm4324_vm3, %v5262_v49 }
 0x499   :  { %v5189_v41 = vpop.f32.mrf.mxu2 }
 0x49a   :  { %v5190_v26 = vadd.f32 %v11673_v43, %v5189_v41 }
 0x49c   :  { %v5263_v58 = vadd.f32 %v5190_v26, %v11289_v1 }
 0x49e   :  { %5327 = vst.msk [vmem:[%s11824_s5 + $0x1d8] sm:$0xff] %vm4324_vm3, %v5263_v58 }
 0x4a5   :  { %v5192_v29 = vpop.f32.mrf.mxu2 }
 0x4a6   :  { %v5193_v25 = vadd.f32 %v11673_v43, %v5192_v29 }
 0x4a8   :  { %v5264_v33 = vadd.f32 %v5193_v25, %v11393_v13 }
 0x4aa   :  { %5328 = vst.msk [vmem:[%s11824_s5 + $0x1e0] sm:$0xff] %vm4324_vm3, %v5264_v33 }
 0x4b7   :  { %v5195_v3 = vpop.f32.mrf.mxu2 }
 0x4b8   :  { %v5196_v4 = vadd.f32 %v11673_v43, %v5195_v3 }
 0x4ba   :  { %v5265_v1 = vadd.f32 %v5196_v4, %v12416_v5 }
 0x4bc   :  { %5329 = vst.msk [vmem:[%s11824_s5 + $0x1e8] sm:$0xff] %vm4324_vm3, %v5265_v1 }
 0x4c6   :  { %v5198_v9 = vpop.f32.mrf.mxu2 }
 0x4c7   :  { %v5199_v16 = vadd.f32 %v11673_v43, %v5198_v9 }
 0x4c9   :  { %v5266_v13 = vadd.f32 %v5199_v16, %v11587_v51 }
 0x4cb   :  { %5330 = vst.msk [vmem:[%s11824_s5 + $0x1f0] sm:$0xff] %vm4324_vm3, %v5266_v13 }
 0x4d2   :  { %v5201_v54 = vpop.f32.mrf.mxu2 }
 0x4d3   :  { %v5202_v48 = vadd.f32 %v11673_v43, %v5201_v54 }
 0x4d5   :  { %v5267_v22 = vadd.f32 %v5202_v48, %v11613_v20 }
 0x4d7   :  { %5331 = vst.msk [vmem:[%s11824_s5 + $0x1f8] sm:$0xff] %vm4324_vm3, %v5267_v22 }

</bundles_post_ra>
